<compile_context>
chip_gen: v6e
topology: v6e:2x2x1
jax: 0.10.0
libtpu: 0.0.40
codegen_flags: <defaults>
</compile_context>

<pallas_src>
import functools

import jax
import jax.numpy as jnp
from jax.experimental import pallas as pl
from jax.experimental.pallas import tpu as pltpu

HIDDEN = 512   # fixed by the module (conv1 always maps in_channels -> 512)
BN_EPS = 1e-3


def _round_up(a, b):
    return (a + b - 1) // b * b


def _attention_kernel(x_ref, w1_ref, b1_ref, w2_ref, b2_ref, o_ref, h_ref):
    """One grid step: `nb` images x `tn` tokens of the fused double 1x1-conv.

    x_ref : (nb, Cin, tn)  bf16
    w1_ref: (512, Cin)     bf16  (BN1 scale folded in)
    b1_ref: (512, 1)       f32   (folded BN1 bias)
    w2_ref: (Cout, 512)    bf16  (BN2 scale folded in)
    b2_ref: (Cout, 1)      f32   (folded BN2 bias)
    o_ref : (nb, Cout, tn) output block (lane-dense token axis)
    h_ref : (512, tn)      bf16 VMEM scratch for the stage-1 activation
    """
    nb = x_ref.shape[0]
    for b in range(nb):                       # small static unroll (nb <= 8)
        # Stage 1: 1x1 conv (channel contraction on the MXU) + folded BN + ReLU,
        # f32 accumulation.
        h = jnp.dot(w1_ref[...], x_ref[b], preferred_element_type=jnp.float32)
        h = jnp.maximum(h + b1_ref[...], 0.0)
        h_ref[...] = h.astype(h_ref.dtype)    # stage through VMEM in bf16
        # Stage 2: 1x1 conv + folded BN + ReLU, lane-dense (Cout, tn) store.
        y = jnp.dot(w2_ref[...], h_ref[...], preferred_element_type=jnp.float32)
        y = jnp.maximum(y + b2_ref[...], 0.0)
        o_ref[b] = y.astype(o_ref.dtype)


@functools.partial(jax.jit, static_argnames=("tn", "out_dtype",
                                              "single_buffer_weights", "pad_cin"))
def attention_forward(x_nchw, w1t, b1, w2t, b2, *, tn=2048,
                      out_dtype=jnp.float32, single_buffer_weights=True,
                      pad_cin=False):
    """x_nchw: (N, Cin, H, W).  w1t: (512, Cin) bf16 (BN1 folded), b1: (512,1) f32,
    w2t: (Cout, 512) bf16 (BN2 folded), b2: (Cout,1) f32.
    Returns (N, Cout, H, W) in `out_dtype` (f32 by default)."""
    N, Cin, H, W = x_nchw.shape
    hidden = w1t.shape[0]
    Cout = w2t.shape[0]
    HW = H * W

    # Tokens stay in NCHW order: (N, Cin, H*W).  The only wrapper-side work is
    # a single bf16 cast (halves the kernel's dominant HBM read; fuses with the
    # producer of x in a real model).  No pads, no transposes, no output slice.
    x_tok = x_nchw.reshape(N, Cin, HW).astype(jnp.bfloat16)

    if pad_cin and Cin % 8 != 0:
        # Conservative fallback path only: align the contraction dim to a
        # sublane.  The default path feeds Cin unpadded (full-dim BlockSpec
        # exception), avoiding the extra HBM copy of the whole input.
        cin_p = _round_up(Cin, 8)
        x_tok = jnp.pad(x_tok, ((0, 0), (0, cin_p - Cin), (0, 0)))
        w1t = jnp.pad(w1t, ((0, 0), (0, cin_p - Cin)))
        Cin = cin_p

    # Token tiling: aim to move ~tn tokens of x per grid step.
    tn = max(128, (int(tn) // 128) * 128)
    if HW >= tn:
        # Large feature maps: tile the token axis, one image per step.  A
        # ragged trailing block (HW % tn != 0) is masked by Pallas -> no pad.
        nb, tn_eff, num_t = 1, tn, pl.cdiv(HW, tn)
    else:
        # Small feature maps: batch several images per step so each DMA still
        # moves ~tn tokens.  The whole token axis is one block (full-dim
        # exception -> no 128-alignment padding needed).
        tn_eff, num_t = HW, 1
        nb = max(1, min(N, 8, tn // HW))
        while N % nb:                          # keep the batch grid exact
            nb -= 1
    grid = (N // nb, num_t)

    def resident(shape):
        # Grid-invariant operands (constant index_map): fetched once; single-
        # buffer them to save VMEM headroom (matters on v7x's 64 MiB).
        if single_buffer_weights:
            return pl.BlockSpec(shape, lambda n, t: (0, 0),
                                pipeline_mode=pl.Buffered(1))
        return pl.BlockSpec(shape, lambda n, t: (0, 0))

    # VMEM budget: double-buffered x/out tiles + resident weights + h scratch,
    # x2 headroom, capped generation-aware (~45% of physical VMEM: ~29 MiB on
    # v7x (64 MiB), ~57 MiB on v5e/v6e (128 MiB)).
    out_bytes = jnp.dtype(out_dtype).itemsize
    wbuf = 1 if single_buffer_weights else 2
    est = (2 * nb * Cin * tn_eff * 2                       # x tiles (bf16)
           + 2 * nb * Cout * tn_eff * out_bytes            # out tiles
           + wbuf * ((hidden * Cin + Cout * hidden) * 2    # folded weights
                     + (hidden + Cout) * 4)                # folded biases
           + hidden * tn_eff * 2)                          # h scratch (bf16)
    try:
        vmem_cap = int(pltpu.get_tpu_info().vmem_capacity_bytes)
    except Exception:
        vmem_cap = 64 * 1024 * 1024                        # assume smallest (v7x)
    vmem_limit = int(min(max(2 * est, 16 * 1024 * 1024), int(0.45 * vmem_cap)))

    out = pl.pallas_call(
        _attention_kernel,
        out_shape=jax.ShapeDtypeStruct((N, Cout, HW), out_dtype),
        grid_spec=pltpu.PrefetchScalarGridSpec(
            num_scalar_prefetch=0,
            grid=grid,
            in_specs=[
                pl.BlockSpec((nb, Cin, tn_eff), lambda n, t: (n, 0, t)),  # x
                resident((hidden, Cin)),      # w1 (BN1 scale folded, bf16)
                resident((hidden, 1)),        # b1 (folded BN1 bias, f32)
                resident((Cout, hidden)),     # w2 (BN2 scale folded, bf16)
                resident((Cout, 1)),          # b2 (folded BN2 bias, f32)
            ],
            out_specs=pl.BlockSpec((nb, Cout, tn_eff), lambda n, t: (n, 0, t)),
            scratch_shapes=[pltpu.VMEM((hidden, tn_eff), jnp.bfloat16)],
        ),
        compiler_params=pltpu.CompilerParams(
            dimension_semantics=("parallel", "parallel"),
            vmem_limit_bytes=vmem_limit,
        ),
    )(x_tok, w1t, b1, w2t, b2)

    # (N, Cout, H*W) is already NCHW order — plain reshape, no transpose/slice.
    return out.reshape(N, Cout, H, W)


# ----------------------------- parameter prep -------------------------------

def _fold_bn(gamma, beta, running_mean, running_var, eps=BN_EPS):
    scale = gamma / jnp.sqrt(running_var + eps)
    bias = beta - running_mean * scale
    return scale, bias


def _prepare_params(w1, g1, bt1, m1, v1, w2, g2, bt2, m2, v2):
    """One-time transform: fold eval-mode BN scale into the conv weights
    (PyTorch 1x1 conv weight (Cout, Cin) is already the needed W^T layout),
    cast weights to bf16, keep biases in f32 as (C, 1) columns."""
    s1, b1 = _fold_bn(g1, bt1, m1, v1)
    s2, b2 = _fold_bn(g2, bt2, m2, v2)
    w1t = (w1 * s1[:, None]).astype(jnp.bfloat16)   # (512, Cin)
    w2t = (w2 * s2[:, None]).astype(jnp.bfloat16)   # (Cout, 512)
    return w1t, b1.reshape(-1, 1), w2t, b2.reshape(-1, 1)


def _make_raw_params(key, in_channels, out_channels):
    ks = jax.random.split(key, 6)
    # PyTorch-style 1x1 conv weights stored as (Cout, Cin).
    w1 = jax.random.normal(ks[0], (HIDDEN, in_channels), jnp.float32) * 0.05
    w2 = jax.random.normal(ks[1], (out_channels, HIDDEN), jnp.float32) * 0.05
    # BN params (eval mode): gamma, beta, running_mean, running_var.
    g1 = 1.0 + 0.1 * jax.random.normal(ks[2], (HIDDEN,), jnp.float32)
    bt1 = 0.1 * jax.random.normal(ks[3], (HIDDEN,), jnp.float32)
    m1 = 0.05 * jax.random.normal(ks[4], (HIDDEN,), jnp.float32)
    v1 = jnp.abs(1.0 + 0.1 * jax.random.normal(ks[5], (HIDDEN,), jnp.float32))
    g2 = jnp.ones((out_channels,), jnp.float32)
    bt2 = jnp.zeros((out_channels,), jnp.float32)
    m2 = jnp.zeros((out_channels,), jnp.float32)
    v2 = jnp.ones((out_channels,), jnp.float32)
    return w1, g1, bt1, m1, v1, w2, g2, bt2, m2, v2


def _reference(x, w1, g1, bt1, m1, v1, w2, g2, bt2, m2, v2, eps=BN_EPS):
    """Pure-JAX f32 reference with the same (eval-mode BN) semantics."""
    def basic(x, w, g, b, m, v):
        y = jnp.einsum("oc,nchw->nohw", w, x)
        inv = g / jnp.sqrt(v + eps)
        y = y * inv[None, :, None, None] + (b - m * inv)[None, :, None, None]
        return jnp.maximum(y, 0.0)
    return basic(basic(x, w1, g1, bt1, m1, v1), w2, g2, bt2, m2, v2)


if __name__ == "__main__":
    key = jax.random.PRNGKey(0)
    kx, kp = jax.random.split(key)

    N, Cin, H, W = 2, 4, 16, 16
    Cout = 32

    x = jax.random.normal(kx, (N, Cin, H, W), jnp.float32)
    raw = _make_raw_params(kp, Cin, Cout)
    w1t, b1, w2t, b2 = _prepare_params(*raw)

    # Preferred (fully optimized) configuration first; conservative fallbacks
    # keep the script runnable if this Pallas build rejects single-buffered
    # resident operands or the sublane-unaligned (Cin=4) MXU contraction.
    configs = (
        dict(),
        dict(single_buffer_weights=False),
        dict(pad_cin=True),
        dict(single_buffer_weights=False, pad_cin=True),
    )
    out, last_err = None, None
    for cfg in configs:
        try:
            out = jax.block_until_ready(
                attention_forward(x, w1t, b1, w2t, b2, **cfg))
            break
        except Exception as e:   # retry with a safer static configuration
            last_err = e
    if out is None:
        raise last_err

    ref = _reference(x, *raw)
    assert out.shape == (N, Cout, H, W)
    assert out.dtype == jnp.float32
    # bf16 matmul operands / f32 accumulation vs the full-f32 reference.
    err = float(jnp.max(jnp.abs(out - ref)))
    assert jnp.allclose(out, ref, atol=2e-2, rtol=2e-2), err

    print("KERNEL_OK")
</pallas_src>

<mosaic_0001>
module attributes {stable_mosaic.version = 11 : i64} {
  func.func @_attention_kernel(%arg0: i32, %arg1: i32, %arg2: memref<2x4x256xbf16, #tpu.memory_space<vmem>>, %arg3: memref<512x4xbf16, #tpu.memory_space<vmem>>, %arg4: memref<512x1xf32, #tpu.memory_space<vmem>>, %arg5: memref<32x512xbf16, #tpu.memory_space<vmem>>, %arg6: memref<32x1xf32, #tpu.memory_space<vmem>>, %arg7: memref<2x32x256xf32, #tpu.memory_space<vmem>>, %arg8: memref<512x256xbf16, #tpu.memory_space<vmem>>) attributes {dimension_semantics = [#tpu.dimension_semantics<parallel>, #tpu.dimension_semantics<parallel>], iteration_bounds = array<i64: 1, 1>, scalar_prefetch = 0 : i64, scratch_operands = 1 : i64, tpu.core_type = #tpu.core_type<tc>, window_params = [{transform_indices = @transform_0, window_bounds = array<i64: 2, 4, 256>}, {pipeline_mode = #tpu.pipeline_mode<synchronous>, transform_indices = @transform_1, window_bounds = array<i64: 512, 4>}, {pipeline_mode = #tpu.pipeline_mode<synchronous>, transform_indices = @transform_2, window_bounds = array<i64: 512, 1>}, {pipeline_mode = #tpu.pipeline_mode<synchronous>, transform_indices = @transform_3, window_bounds = array<i64: 32, 512>}, {pipeline_mode = #tpu.pipeline_mode<synchronous>, transform_indices = @transform_4, window_bounds = array<i64: 32, 1>}, {transform_indices = @transform_5, window_bounds = array<i64: 2, 32, 256>}]} {
    %c0 = arith.constant 0 : index
    %c0_0 = arith.constant 0 : index
    %0 = vector.load %arg3[%c0, %c0_0] : memref<512x4xbf16, #tpu.memory_space<vmem>>, vector<512x4xbf16>
    %c0_1 = arith.constant 0 : index
    %c0_2 = arith.constant 0 : index
    %c0_3 = arith.constant 0 : index
    %1 = vector.load %arg2[%c0_1, %c0_2, %c0_3] : memref<2x4x256xbf16, #tpu.memory_space<vmem>>, vector<1x4x256xbf16>
    %2 = vector.shape_cast %1 : vector<1x4x256xbf16> to vector<4x256xbf16>
    %cst = arith.constant dense<0.000000e+00> : vector<512x256xf32>
    %3 = tpu.matmul %0, %2, %cst {dimension_numbers = #tpu.dot_dimension_numbers<[1], [0], [0], [1], [0, 0, 1, 1], [], []>} : vector<512x4xbf16>, vector<4x256xbf16>, vector<512x256xf32> -> vector<512x256xf32>
    %c0_4 = arith.constant 0 : index
    %c0_5 = arith.constant 0 : index
    %4 = vector.load %arg4[%c0_4, %c0_5] : memref<512x1xf32, #tpu.memory_space<vmem>>, vector<512x1xf32>
    %5 = vector.broadcast %4 : vector<512x1xf32> to vector<512x256xf32>
    %6 = arith.addf %3, %5 : vector<512x256xf32>
    %cst_6 = arith.constant 0.000000e+00 : f32
    %7 = vector.broadcast %cst_6 : f32 to vector<512x256xf32>
    %8 = arith.maximumf %6, %7 : vector<512x256xf32>
    %9 = arith.truncf %8 : vector<512x256xf32> to vector<512x256xbf16>
    %c0_7 = arith.constant 0 : index
    %c0_8 = arith.constant 0 : index
    %10 = vector.load %arg8[%c0_7, %c0_8] : memref<512x256xbf16, #tpu.memory_space<vmem>>, vector<512x256xbf16>
    tpu.vector_store %arg8[%c0_7, %c0_8], %9 {strides = array<i32>} : memref<512x256xbf16, #tpu.memory_space<vmem>>, vector<512x256xbf16>,
    %c0_9 = arith.constant 0 : index
    %c0_10 = arith.constant 0 : index
    %11 = vector.load %arg5[%c0_9, %c0_10] : memref<32x512xbf16, #tpu.memory_space<vmem>>, vector<32x512xbf16>
    %c0_11 = arith.constant 0 : index
    %c0_12 = arith.constant 0 : index
    %12 = vector.load %arg8[%c0_11, %c0_12] : memref<512x256xbf16, #tpu.memory_space<vmem>>, vector<512x256xbf16>
    %cst_13 = arith.constant dense<0.000000e+00> : vector<32x256xf32>
    %13 = tpu.matmul %11, %12, %cst_13 {dimension_numbers = #tpu.dot_dimension_numbers<[1], [0], [0], [1], [0, 0, 1, 1], [], []>} : vector<32x512xbf16>, vector<512x256xbf16>, vector<32x256xf32> -> vector<32x256xf32>
    %c0_14 = arith.constant 0 : index
    %c0_15 = arith.constant 0 : index
    %14 = vector.load %arg6[%c0_14, %c0_15] : memref<32x1xf32, #tpu.memory_space<vmem>>, vector<32x1xf32>
    %15 = vector.broadcast %14 : vector<32x1xf32> to vector<32x256xf32>
    %16 = arith.addf %13, %15 : vector<32x256xf32>
    %cst_16 = arith.constant 0.000000e+00 : f32
    %17 = vector.broadcast %cst_16 : f32 to vector<32x256xf32>
    %18 = arith.maximumf %16, %17 : vector<32x256xf32>
    %c0_17 = arith.constant 0 : index
    %c0_18 = arith.constant 0 : index
    %c0_19 = arith.constant 0 : index
    %19 = vector.load %arg7[%c0_17, %c0_18, %c0_19] : memref<2x32x256xf32, #tpu.memory_space<vmem>>, vector<1x32x256xf32>
    %20 = vector.shape_cast %19 : vector<1x32x256xf32> to vector<32x256xf32>
    %21 = vector.shape_cast %18 : vector<32x256xf32> to vector<1x32x256xf32>
    tpu.vector_store %arg7[%c0_17, %c0_18, %c0_19], %21 {strides = array<i32>} : memref<2x32x256xf32, #tpu.memory_space<vmem>>, vector<1x32x256xf32>,
    %c0_20 = arith.constant 0 : index
    %c0_21 = arith.constant 0 : index
    %22 = vector.load %arg3[%c0_20, %c0_21] : memref<512x4xbf16, #tpu.memory_space<vmem>>, vector<512x4xbf16>
    %c1 = arith.constant 1 : index
    %c0_22 = arith.constant 0 : index
    %c0_23 = arith.constant 0 : index
    %23 = vector.load %arg2[%c1, %c0_22, %c0_23] : memref<2x4x256xbf16, #tpu.memory_space<vmem>>, vector<1x4x256xbf16>
    %24 = vector.shape_cast %23 : vector<1x4x256xbf16> to vector<4x256xbf16>
    %cst_24 = arith.constant dense<0.000000e+00> : vector<512x256xf32>
    %25 = tpu.matmul %22, %24, %cst_24 {dimension_numbers = #tpu.dot_dimension_numbers<[1], [0], [0], [1], [0, 0, 1, 1], [], []>} : vector<512x4xbf16>, vector<4x256xbf16>, vector<512x256xf32> -> vector<512x256xf32>
    %c0_25 = arith.constant 0 : index
    %c0_26 = arith.constant 0 : index
    %26 = vector.load %arg4[%c0_25, %c0_26] : memref<512x1xf32, #tpu.memory_space<vmem>>, vector<512x1xf32>
    %27 = vector.broadcast %26 : vector<512x1xf32> to vector<512x256xf32>
    %28 = arith.addf %25, %27 : vector<512x256xf32>
    %cst_27 = arith.constant 0.000000e+00 : f32
    %29 = vector.broadcast %cst_27 : f32 to vector<512x256xf32>
    %30 = arith.maximumf %28, %29 : vector<512x256xf32>
    %31 = arith.truncf %30 : vector<512x256xf32> to vector<512x256xbf16>
    %c0_28 = arith.constant 0 : index
    %c0_29 = arith.constant 0 : index
    %32 = vector.load %arg8[%c0_28, %c0_29] : memref<512x256xbf16, #tpu.memory_space<vmem>>, vector<512x256xbf16>
    tpu.vector_store %arg8[%c0_28, %c0_29], %31 {strides = array<i32>} : memref<512x256xbf16, #tpu.memory_space<vmem>>, vector<512x256xbf16>,
    %c0_30 = arith.constant 0 : index
    %c0_31 = arith.constant 0 : index
    %33 = vector.load %arg5[%c0_30, %c0_31] : memref<32x512xbf16, #tpu.memory_space<vmem>>, vector<32x512xbf16>
    %c0_32 = arith.constant 0 : index
    %c0_33 = arith.constant 0 : index
    %34 = vector.load %arg8[%c0_32, %c0_33] : memref<512x256xbf16, #tpu.memory_space<vmem>>, vector<512x256xbf16>
    %cst_34 = arith.constant dense<0.000000e+00> : vector<32x256xf32>
    %35 = tpu.matmul %33, %34, %cst_34 {dimension_numbers = #tpu.dot_dimension_numbers<[1], [0], [0], [1], [0, 0, 1, 1], [], []>} : vector<32x512xbf16>, vector<512x256xbf16>, vector<32x256xf32> -> vector<32x256xf32>
    %c0_35 = arith.constant 0 : index
    %c0_36 = arith.constant 0 : index
    %36 = vector.load %arg6[%c0_35, %c0_36] : memref<32x1xf32, #tpu.memory_space<vmem>>, vector<32x1xf32>
    %37 = vector.broadcast %36 : vector<32x1xf32> to vector<32x256xf32>
    %38 = arith.addf %35, %37 : vector<32x256xf32>
    %cst_37 = arith.constant 0.000000e+00 : f32
    %39 = vector.broadcast %cst_37 : f32 to vector<32x256xf32>
    %40 = arith.maximumf %38, %39 : vector<32x256xf32>
    %c1_38 = arith.constant 1 : index
    %c0_39 = arith.constant 0 : index
    %c0_40 = arith.constant 0 : index
    %41 = vector.load %arg7[%c1_38, %c0_39, %c0_40] : memref<2x32x256xf32, #tpu.memory_space<vmem>>, vector<1x32x256xf32>
    %42 = vector.shape_cast %41 : vector<1x32x256xf32> to vector<32x256xf32>
    %43 = vector.shape_cast %40 : vector<32x256xf32> to vector<1x32x256xf32>
    tpu.vector_store %arg7[%c1_38, %c0_39, %c0_40], %43 {strides = array<i32>} : memref<2x32x256xf32, #tpu.memory_space<vmem>>, vector<1x32x256xf32>,
    return
  }
  func.func @transform_0(%arg0: i32, %arg1: i32) -> (i32, i32, i32) {
    %c0_i32 = arith.constant 0 : i32
    %c0_i32_0 = arith.constant 0 : i32
    return %arg0, %c0_i32, %arg1 : i32, i32, i32
  }
  func.func @transform_1(%arg0: i32, %arg1: i32) -> (i32, i32) {
    %c0_i32 = arith.constant 0 : i32
    %c0_i32_0 = arith.constant 0 : i32
    %c0_i32_1 = arith.constant 0 : i32
    return %c0_i32, %c0_i32_0 : i32, i32
  }
  func.func @transform_2(%arg0: i32, %arg1: i32) -> (i32, i32) {
    %c0_i32 = arith.constant 0 : i32
    %c0_i32_0 = arith.constant 0 : i32
    %c0_i32_1 = arith.constant 0 : i32
    return %c0_i32, %c0_i32_0 : i32, i32
  }
  func.func @transform_3(%arg0: i32, %arg1: i32) -> (i32, i32) {
    %c0_i32 = arith.constant 0 : i32
    %c0_i32_0 = arith.constant 0 : i32
    %c0_i32_1 = arith.constant 0 : i32
    return %c0_i32, %c0_i32_0 : i32, i32
  }
  func.func @transform_4(%arg0: i32, %arg1: i32) -> (i32, i32) {
    %c0_i32 = arith.constant 0 : i32
    %c0_i32_0 = arith.constant 0 : i32
    %c0_i32_1 = arith.constant 0 : i32
    return %c0_i32, %c0_i32_0 : i32, i32
  }
  func.func @transform_5(%arg0: i32, %arg1: i32) -> (i32, i32, i32) {
    %c0_i32 = arith.constant 0 : i32
    %c0_i32_0 = arith.constant 0 : i32
    return %arg0, %c0_i32, %arg1 : i32, i32, i32
  }
}

module attributes {stable_mosaic.version = 11 : i64} {
  func.func @_attention_kernel(%arg0: i32, %arg1: i32, %arg2: memref<2x4x256xbf16, #tpu.memory_space<vmem>>, %arg3: memref<512x4xbf16, #tpu.memory_space<vmem>>, %arg4: memref<512x1xf32, #tpu.memory_space<vmem>>, %arg5: memref<32x512xbf16, #tpu.memory_space<vmem>>, %arg6: memref<32x1xf32, #tpu.memory_space<vmem>>, %arg7: memref<2x32x256xf32, #tpu.memory_space<vmem>>, %arg8: memref<512x256xbf16, #tpu.memory_space<vmem>>) attributes {dimension_semantics = [#tpu.dimension_semantics<parallel>, #tpu.dimension_semantics<parallel>], iteration_bounds = array<i64: 1, 1>, scalar_prefetch = 0 : i64, scratch_operands = 1 : i64, tpu.core_type = #tpu.core_type<tc>, window_params = [{transform_indices = @transform_0, window_bounds = array<i64: 2, 4, 256>}, {pipeline_mode = #tpu.pipeline_mode<synchronous>, transform_indices = @transform_1, window_bounds = array<i64: 512, 4>}, {pipeline_mode = #tpu.pipeline_mode<synchronous>, transform_indices = @transform_2, window_bounds = array<i64: 512, 1>}, {pipeline_mode = #tpu.pipeline_mode<synchronous>, transform_indices = @transform_3, window_bounds = array<i64: 32, 512>}, {pipeline_mode = #tpu.pipeline_mode<synchronous>, transform_indices = @transform_4, window_bounds = array<i64: 32, 1>}, {transform_indices = @transform_5, window_bounds = array<i64: 2, 32, 256>}]} {
    %c0 = arith.constant 0 : index
    %c0_0 = arith.constant 0 : index
    %0 = vector.load %arg3[%c0, %c0_0] : memref<512x4xbf16, #tpu.memory_space<vmem>>, vector<512x4xbf16>
    %c0_1 = arith.constant 0 : index
    %c0_2 = arith.constant 0 : index
    %c0_3 = arith.constant 0 : index
    %1 = vector.load %arg2[%c0_1, %c0_2, %c0_3] : memref<2x4x256xbf16, #tpu.memory_space<vmem>>, vector<1x4x256xbf16>
    %2 = vector.shape_cast %1 : vector<1x4x256xbf16> to vector<4x256xbf16>
    %cst = arith.constant dense<0.000000e+00> : vector<512x256xf32>
    %3 = tpu.matmul %0, %2, %cst {dimension_numbers = #tpu.dot_dimension_numbers<[1], [0], [0], [1], [0, 0, 1, 1], [], []>} : vector<512x4xbf16>, vector<4x256xbf16>, vector<512x256xf32> -> vector<512x256xf32>
    %c0_4 = arith.constant 0 : index
    %c0_5 = arith.constant 0 : index
    %4 = vector.load %arg4[%c0_4, %c0_5] : memref<512x1xf32, #tpu.memory_space<vmem>>, vector<512x1xf32>
    %5 = vector.broadcast %4 : vector<512x1xf32> to vector<512x256xf32>
    %6 = arith.addf %3, %5 : vector<512x256xf32>
    %cst_6 = arith.constant 0.000000e+00 : f32
    %7 = vector.broadcast %cst_6 : f32 to vector<512x256xf32>
    %8 = arith.maximumf %6, %7 : vector<512x256xf32>
    %9 = arith.truncf %8 : vector<512x256xf32> to vector<512x256xbf16>
    %c0_7 = arith.constant 0 : index
    %c0_8 = arith.constant 0 : index
    %10 = vector.load %arg8[%c0_7, %c0_8] : memref<512x256xbf16, #tpu.memory_space<vmem>>, vector<512x256xbf16>
    tpu.vector_store %arg8[%c0_7, %c0_8], %9 {strides = array<i32>} : memref<512x256xbf16, #tpu.memory_space<vmem>>, vector<512x256xbf16>,
    %c0_9 = arith.constant 0 : index
    %c0_10 = arith.constant 0 : index
    %11 = vector.load %arg5[%c0_9, %c0_10] : memref<32x512xbf16, #tpu.memory_space<vmem>>, vector<32x512xbf16>
    %c0_11 = arith.constant 0 : index
    %c0_12 = arith.constant 0 : index
    %12 = vector.load %arg8[%c0_11, %c0_12] : memref<512x256xbf16, #tpu.memory_space<vmem>>, vector<512x256xbf16>
    %cst_13 = arith.constant dense<0.000000e+00> : vector<32x256xf32>
    %13 = tpu.matmul %11, %12, %cst_13 {dimension_numbers = #tpu.dot_dimension_numbers<[1], [0], [0], [1], [0, 0, 1, 1], [], []>} : vector<32x512xbf16>, vector<512x256xbf16>, vector<32x256xf32> -> vector<32x256xf32>
    %c0_14 = arith.constant 0 : index
    %c0_15 = arith.constant 0 : index
    %14 = vector.load %arg6[%c0_14, %c0_15] : memref<32x1xf32, #tpu.memory_space<vmem>>, vector<32x1xf32>
    %15 = vector.broadcast %14 : vector<32x1xf32> to vector<32x256xf32>
    %16 = arith.addf %13, %15 : vector<32x256xf32>
    %cst_16 = arith.constant 0.000000e+00 : f32
    %17 = vector.broadcast %cst_16 : f32 to vector<32x256xf32>
    %18 = arith.maximumf %16, %17 : vector<32x256xf32>
    %c0_17 = arith.constant 0 : index
    %c0_18 = arith.constant 0 : index
    %c0_19 = arith.constant 0 : index
    %19 = vector.load %arg7[%c0_17, %c0_18, %c0_19] : memref<2x32x256xf32, #tpu.memory_space<vmem>>, vector<1x32x256xf32>
    %20 = vector.shape_cast %19 : vector<1x32x256xf32> to vector<32x256xf32>
    %21 = vector.shape_cast %18 : vector<32x256xf32> to vector<1x32x256xf32>
    tpu.vector_store %arg7[%c0_17, %c0_18, %c0_19], %21 {strides = array<i32>} : memref<2x32x256xf32, #tpu.memory_space<vmem>>, vector<1x32x256xf32>,
    %c0_20 = arith.constant 0 : index
    %c0_21 = arith.constant 0 : index
    %22 = vector.load %arg3[%c0_20, %c0_21] : memref<512x4xbf16, #tpu.memory_space<vmem>>, vector<512x4xbf16>
    %c1 = arith.constant 1 : index
    %c0_22 = arith.constant 0 : index
    %c0_23 = arith.constant 0 : index
    %23 = vector.load %arg2[%c1, %c0_22, %c0_23] : memref<2x4x256xbf16, #tpu.memory_space<vmem>>, vector<1x4x256xbf16>
    %24 = vector.shape_cast %23 : vector<1x4x256xbf16> to vector<4x256xbf16>
    %cst_24 = arith.constant dense<0.000000e+00> : vector<512x256xf32>
    %25 = tpu.matmul %22, %24, %cst_24 {dimension_numbers = #tpu.dot_dimension_numbers<[1], [0], [0], [1], [0, 0, 1, 1], [], []>} : vector<512x4xbf16>, vector<4x256xbf16>, vector<512x256xf32> -> vector<512x256xf32>
    %c0_25 = arith.constant 0 : index
    %c0_26 = arith.constant 0 : index
    %26 = vector.load %arg4[%c0_25, %c0_26] : memref<512x1xf32, #tpu.memory_space<vmem>>, vector<512x1xf32>
    %27 = vector.broadcast %26 : vector<512x1xf32> to vector<512x256xf32>
    %28 = arith.addf %25, %27 : vector<512x256xf32>
    %cst_27 = arith.constant 0.000000e+00 : f32
    %29 = vector.broadcast %cst_27 : f32 to vector<512x256xf32>
    %30 = arith.maximumf %28, %29 : vector<512x256xf32>
    %31 = arith.truncf %30 : vector<512x256xf32> to vector<512x256xbf16>
    %c0_28 = arith.constant 0 : index
    %c0_29 = arith.constant 0 : index
    %32 = vector.load %arg8[%c0_28, %c0_29] : memref<512x256xbf16, #tpu.memory_space<vmem>>, vector<512x256xbf16>
    tpu.vector_store %arg8[%c0_28, %c0_29], %31 {strides = array<i32>} : memref<512x256xbf16, #tpu.memory_space<vmem>>, vector<512x256xbf16>,
    %c0_30 = arith.constant 0 : index
    %c0_31 = arith.constant 0 : index
    %33 = vector.load %arg5[%c0_30, %c0_31] : memref<32x512xbf16, #tpu.memory_space<vmem>>, vector<32x512xbf16>
    %c0_32 = arith.constant 0 : index
    %c0_33 = arith.constant 0 : index
    %34 = vector.load %arg8[%c0_32, %c0_33] : memref<512x256xbf16, #tpu.memory_space<vmem>>, vector<512x256xbf16>
    %cst_34 = arith.constant dense<0.000000e+00> : vector<32x256xf32>
    %35 = tpu.matmul %33, %34, %cst_34 {dimension_numbers = #tpu.dot_dimension_numbers<[1], [0], [0], [1], [0, 0, 1, 1], [], []>} : vector<32x512xbf16>, vector<512x256xbf16>, vector<32x256xf32> -> vector<32x256xf32>
    %c0_35 = arith.constant 0 : index
    %c0_36 = arith.constant 0 : index
    %36 = vector.load %arg6[%c0_35, %c0_36] : memref<32x1xf32, #tpu.memory_space<vmem>>, vector<32x1xf32>
    %37 = vector.broadcast %36 : vector<32x1xf32> to vector<32x256xf32>
    %38 = arith.addf %35, %37 : vector<32x256xf32>
    %cst_37 = arith.constant 0.000000e+00 : f32
    %39 = vector.broadcast %cst_37 : f32 to vector<32x256xf32>
    %40 = arith.maximumf %38, %39 : vector<32x256xf32>
    %c1_38 = arith.constant 1 : index
    %c0_39 = arith.constant 0 : index
    %c0_40 = arith.constant 0 : index
    %41 = vector.load %arg7[%c1_38, %c0_39, %c0_40] : memref<2x32x256xf32, #tpu.memory_space<vmem>>, vector<1x32x256xf32>
    %42 = vector.shape_cast %41 : vector<1x32x256xf32> to vector<32x256xf32>
    %43 = vector.shape_cast %40 : vector<32x256xf32> to vector<1x32x256xf32>
    tpu.vector_store %arg7[%c1_38, %c0_39, %c0_40], %43 {strides = array<i32>} : memref<2x32x256xf32, #tpu.memory_space<vmem>>, vector<1x32x256xf32>,
    return
  }
  func.func @transform_0(%arg0: i32, %arg1: i32) -> (i32, i32, i32) {
    %c0_i32 = arith.constant 0 : i32
    %c0_i32_0 = arith.constant 0 : i32
    return %arg0, %c0_i32, %arg1 : i32, i32, i32
  }
  func.func @transform_1(%arg0: i32, %arg1: i32) -> (i32, i32) {
    %c0_i32 = arith.constant 0 : i32
    %c0_i32_0 = arith.constant 0 : i32
    %c0_i32_1 = arith.constant 0 : i32
    return %c0_i32, %c0_i32_0 : i32, i32
  }
  func.func @transform_2(%arg0: i32, %arg1: i32) -> (i32, i32) {
    %c0_i32 = arith.constant 0 : i32
    %c0_i32_0 = arith.constant 0 : i32
    %c0_i32_1 = arith.constant 0 : i32
    return %c0_i32, %c0_i32_0 : i32, i32
  }
  func.func @transform_3(%arg0: i32, %arg1: i32) -> (i32, i32) {
    %c0_i32 = arith.constant 0 : i32
    %c0_i32_0 = arith.constant 0 : i32
    %c0_i32_1 = arith.constant 0 : i32
    return %c0_i32, %c0_i32_0 : i32, i32
  }
  func.func @transform_4(%arg0: i32, %arg1: i32) -> (i32, i32) {
    %c0_i32 = arith.constant 0 : i32
    %c0_i32_0 = arith.constant 0 : i32
    %c0_i32_1 = arith.constant 0 : i32
    return %c0_i32, %c0_i32_0 : i32, i32
  }
  func.func @transform_5(%arg0: i32, %arg1: i32) -> (i32, i32, i32) {
    %c0_i32 = arith.constant 0 : i32
    %c0_i32_0 = arith.constant 0 : i32
    return %arg0, %c0_i32, %arg1 : i32, i32, i32
  }
}

module attributes {stable_mosaic.version = 11 : i64} {
  func.func @_attention_kernel(%arg0: i32, %arg1: i32, %arg2: memref<2x8x256xbf16, #tpu.memory_space<vmem>>, %arg3: memref<512x8xbf16, #tpu.memory_space<vmem>>, %arg4: memref<512x1xf32, #tpu.memory_space<vmem>>, %arg5: memref<32x512xbf16, #tpu.memory_space<vmem>>, %arg6: memref<32x1xf32, #tpu.memory_space<vmem>>, %arg7: memref<2x32x256xf32, #tpu.memory_space<vmem>>, %arg8: memref<512x256xbf16, #tpu.memory_space<vmem>>) attributes {dimension_semantics = [#tpu.dimension_semantics<parallel>, #tpu.dimension_semantics<parallel>], iteration_bounds = array<i64: 1, 1>, scalar_prefetch = 0 : i64, scratch_operands = 1 : i64, tpu.core_type = #tpu.core_type<tc>, window_params = [{transform_indices = @transform_0, window_bounds = array<i64: 2, 8, 256>}, {pipeline_mode = #tpu.pipeline_mode<synchronous>, transform_indices = @transform_1, window_bounds = array<i64: 512, 8>}, {pipeline_mode = #tpu.pipeline_mode<synchronous>, transform_indices = @transform_2, window_bounds = array<i64: 512, 1>}, {pipeline_mode = #tpu.pipeline_mode<synchronous>, transform_indices = @transform_3, window_bounds = array<i64: 32, 512>}, {pipeline_mode = #tpu.pipeline_mode<synchronous>, transform_indices = @transform_4, window_bounds = array<i64: 32, 1>}, {transform_indices = @transform_5, window_bounds = array<i64: 2, 32, 256>}]} {
    %c0 = arith.constant 0 : index
    %c0_0 = arith.constant 0 : index
    %0 = vector.load %arg3[%c0, %c0_0] : memref<512x8xbf16, #tpu.memory_space<vmem>>, vector<512x8xbf16>
    %c0_1 = arith.constant 0 : index
    %c0_2 = arith.constant 0 : index
    %c0_3 = arith.constant 0 : index
    %1 = vector.load %arg2[%c0_1, %c0_2, %c0_3] : memref<2x8x256xbf16, #tpu.memory_space<vmem>>, vector<1x8x256xbf16>
    %2 = vector.shape_cast %1 : vector<1x8x256xbf16> to vector<8x256xbf16>
    %cst = arith.constant dense<0.000000e+00> : vector<512x256xf32>
    %3 = tpu.matmul %0, %2, %cst {dimension_numbers = #tpu.dot_dimension_numbers<[1], [0], [0], [1], [0, 0, 1, 1], [], []>} : vector<512x8xbf16>, vector<8x256xbf16>, vector<512x256xf32> -> vector<512x256xf32>
    %c0_4 = arith.constant 0 : index
    %c0_5 = arith.constant 0 : index
    %4 = vector.load %arg4[%c0_4, %c0_5] : memref<512x1xf32, #tpu.memory_space<vmem>>, vector<512x1xf32>
    %5 = vector.broadcast %4 : vector<512x1xf32> to vector<512x256xf32>
    %6 = arith.addf %3, %5 : vector<512x256xf32>
    %cst_6 = arith.constant 0.000000e+00 : f32
    %7 = vector.broadcast %cst_6 : f32 to vector<512x256xf32>
    %8 = arith.maximumf %6, %7 : vector<512x256xf32>
    %9 = arith.truncf %8 : vector<512x256xf32> to vector<512x256xbf16>
    %c0_7 = arith.constant 0 : index
    %c0_8 = arith.constant 0 : index
    %10 = vector.load %arg8[%c0_7, %c0_8] : memref<512x256xbf16, #tpu.memory_space<vmem>>, vector<512x256xbf16>
    tpu.vector_store %arg8[%c0_7, %c0_8], %9 {strides = array<i32>} : memref<512x256xbf16, #tpu.memory_space<vmem>>, vector<512x256xbf16>,
    %c0_9 = arith.constant 0 : index
    %c0_10 = arith.constant 0 : index
    %11 = vector.load %arg5[%c0_9, %c0_10] : memref<32x512xbf16, #tpu.memory_space<vmem>>, vector<32x512xbf16>
    %c0_11 = arith.constant 0 : index
    %c0_12 = arith.constant 0 : index
    %12 = vector.load %arg8[%c0_11, %c0_12] : memref<512x256xbf16, #tpu.memory_space<vmem>>, vector<512x256xbf16>
    %cst_13 = arith.constant dense<0.000000e+00> : vector<32x256xf32>
    %13 = tpu.matmul %11, %12, %cst_13 {dimension_numbers = #tpu.dot_dimension_numbers<[1], [0], [0], [1], [0, 0, 1, 1], [], []>} : vector<32x512xbf16>, vector<512x256xbf16>, vector<32x256xf32> -> vector<32x256xf32>
    %c0_14 = arith.constant 0 : index
    %c0_15 = arith.constant 0 : index
    %14 = vector.load %arg6[%c0_14, %c0_15] : memref<32x1xf32, #tpu.memory_space<vmem>>, vector<32x1xf32>
    %15 = vector.broadcast %14 : vector<32x1xf32> to vector<32x256xf32>
    %16 = arith.addf %13, %15 : vector<32x256xf32>
    %cst_16 = arith.constant 0.000000e+00 : f32
    %17 = vector.broadcast %cst_16 : f32 to vector<32x256xf32>
    %18 = arith.maximumf %16, %17 : vector<32x256xf32>
    %c0_17 = arith.constant 0 : index
    %c0_18 = arith.constant 0 : index
    %c0_19 = arith.constant 0 : index
    %19 = vector.load %arg7[%c0_17, %c0_18, %c0_19] : memref<2x32x256xf32, #tpu.memory_space<vmem>>, vector<1x32x256xf32>
    %20 = vector.shape_cast %19 : vector<1x32x256xf32> to vector<32x256xf32>
    %21 = vector.shape_cast %18 : vector<32x256xf32> to vector<1x32x256xf32>
    tpu.vector_store %arg7[%c0_17, %c0_18, %c0_19], %21 {strides = array<i32>} : memref<2x32x256xf32, #tpu.memory_space<vmem>>, vector<1x32x256xf32>,
    %c0_20 = arith.constant 0 : index
    %c0_21 = arith.constant 0 : index
    %22 = vector.load %arg3[%c0_20, %c0_21] : memref<512x8xbf16, #tpu.memory_space<vmem>>, vector<512x8xbf16>
    %c1 = arith.constant 1 : index
    %c0_22 = arith.constant 0 : index
    %c0_23 = arith.constant 0 : index
    %23 = vector.load %arg2[%c1, %c0_22, %c0_23] : memref<2x8x256xbf16, #tpu.memory_space<vmem>>, vector<1x8x256xbf16>
    %24 = vector.shape_cast %23 : vector<1x8x256xbf16> to vector<8x256xbf16>
    %cst_24 = arith.constant dense<0.000000e+00> : vector<512x256xf32>
    %25 = tpu.matmul %22, %24, %cst_24 {dimension_numbers = #tpu.dot_dimension_numbers<[1], [0], [0], [1], [0, 0, 1, 1], [], []>} : vector<512x8xbf16>, vector<8x256xbf16>, vector<512x256xf32> -> vector<512x256xf32>
    %c0_25 = arith.constant 0 : index
    %c0_26 = arith.constant 0 : index
    %26 = vector.load %arg4[%c0_25, %c0_26] : memref<512x1xf32, #tpu.memory_space<vmem>>, vector<512x1xf32>
    %27 = vector.broadcast %26 : vector<512x1xf32> to vector<512x256xf32>
    %28 = arith.addf %25, %27 : vector<512x256xf32>
    %cst_27 = arith.constant 0.000000e+00 : f32
    %29 = vector.broadcast %cst_27 : f32 to vector<512x256xf32>
    %30 = arith.maximumf %28, %29 : vector<512x256xf32>
    %31 = arith.truncf %30 : vector<512x256xf32> to vector<512x256xbf16>
    %c0_28 = arith.constant 0 : index
    %c0_29 = arith.constant 0 : index
    %32 = vector.load %arg8[%c0_28, %c0_29] : memref<512x256xbf16, #tpu.memory_space<vmem>>, vector<512x256xbf16>
    tpu.vector_store %arg8[%c0_28, %c0_29], %31 {strides = array<i32>} : memref<512x256xbf16, #tpu.memory_space<vmem>>, vector<512x256xbf16>,
    %c0_30 = arith.constant 0 : index
    %c0_31 = arith.constant 0 : index
    %33 = vector.load %arg5[%c0_30, %c0_31] : memref<32x512xbf16, #tpu.memory_space<vmem>>, vector<32x512xbf16>
    %c0_32 = arith.constant 0 : index
    %c0_33 = arith.constant 0 : index
    %34 = vector.load %arg8[%c0_32, %c0_33] : memref<512x256xbf16, #tpu.memory_space<vmem>>, vector<512x256xbf16>
    %cst_34 = arith.constant dense<0.000000e+00> : vector<32x256xf32>
    %35 = tpu.matmul %33, %34, %cst_34 {dimension_numbers = #tpu.dot_dimension_numbers<[1], [0], [0], [1], [0, 0, 1, 1], [], []>} : vector<32x512xbf16>, vector<512x256xbf16>, vector<32x256xf32> -> vector<32x256xf32>
    %c0_35 = arith.constant 0 : index
    %c0_36 = arith.constant 0 : index
    %36 = vector.load %arg6[%c0_35, %c0_36] : memref<32x1xf32, #tpu.memory_space<vmem>>, vector<32x1xf32>
    %37 = vector.broadcast %36 : vector<32x1xf32> to vector<32x256xf32>
    %38 = arith.addf %35, %37 : vector<32x256xf32>
    %cst_37 = arith.constant 0.000000e+00 : f32
    %39 = vector.broadcast %cst_37 : f32 to vector<32x256xf32>
    %40 = arith.maximumf %38, %39 : vector<32x256xf32>
    %c1_38 = arith.constant 1 : index
    %c0_39 = arith.constant 0 : index
    %c0_40 = arith.constant 0 : index
    %41 = vector.load %arg7[%c1_38, %c0_39, %c0_40] : memref<2x32x256xf32, #tpu.memory_space<vmem>>, vector<1x32x256xf32>
    %42 = vector.shape_cast %41 : vector<1x32x256xf32> to vector<32x256xf32>
    %43 = vector.shape_cast %40 : vector<32x256xf32> to vector<1x32x256xf32>
    tpu.vector_store %arg7[%c1_38, %c0_39, %c0_40], %43 {strides = array<i32>} : memref<2x32x256xf32, #tpu.memory_space<vmem>>, vector<1x32x256xf32>,
    return
  }
  func.func @transform_0(%arg0: i32, %arg1: i32) -> (i32, i32, i32) {
    %c0_i32 = arith.constant 0 : i32
    %c0_i32_0 = arith.constant 0 : i32
    return %arg0, %c0_i32, %arg1 : i32, i32, i32
  }
  func.func @transform_1(%arg0: i32, %arg1: i32) -> (i32, i32) {
    %c0_i32 = arith.constant 0 : i32
    %c0_i32_0 = arith.constant 0 : i32
    %c0_i32_1 = arith.constant 0 : i32
    return %c0_i32, %c0_i32_0 : i32, i32
  }
  func.func @transform_2(%arg0: i32, %arg1: i32) -> (i32, i32) {
    %c0_i32 = arith.constant 0 : i32
    %c0_i32_0 = arith.constant 0 : i32
    %c0_i32_1 = arith.constant 0 : i32
    return %c0_i32, %c0_i32_0 : i32, i32
  }
  func.func @transform_3(%arg0: i32, %arg1: i32) -> (i32, i32) {
    %c0_i32 = arith.constant 0 : i32
    %c0_i32_0 = arith.constant 0 : i32
    %c0_i32_1 = arith.constant 0 : i32
    return %c0_i32, %c0_i32_0 : i32, i32
  }
  func.func @transform_4(%arg0: i32, %arg1: i32) -> (i32, i32) {
    %c0_i32 = arith.constant 0 : i32
    %c0_i32_0 = arith.constant 0 : i32
    %c0_i32_1 = arith.constant 0 : i32
    return %c0_i32, %c0_i32_0 : i32, i32
  }
  func.func @transform_5(%arg0: i32, %arg1: i32) -> (i32, i32, i32) {
    %c0_i32 = arith.constant 0 : i32
    %c0_i32_0 = arith.constant 0 : i32
    return %arg0, %c0_i32, %arg1 : i32, i32, i32
  }
}

module attributes {stable_mosaic.version = 11 : i64} {
  func.func @_attention_kernel(%arg0: i32, %arg1: i32, %arg2: memref<2x8x256xbf16, #tpu.memory_space<vmem>>, %arg3: memref<512x8xbf16, #tpu.memory_space<vmem>>, %arg4: memref<512x1xf32, #tpu.memory_space<vmem>>, %arg5: memref<32x512xbf16, #tpu.memory_space<vmem>>, %arg6: memref<32x1xf32, #tpu.memory_space<vmem>>, %arg7: memref<2x32x256xf32, #tpu.memory_space<vmem>>, %arg8: memref<512x256xbf16, #tpu.memory_space<vmem>>) attributes {dimension_semantics = [#tpu.dimension_semantics<parallel>, #tpu.dimension_semantics<parallel>], iteration_bounds = array<i64: 1, 1>, scalar_prefetch = 0 : i64, scratch_operands = 1 : i64, tpu.core_type = #tpu.core_type<tc>, window_params = [{transform_indices = @transform_0, window_bounds = array<i64: 2, 8, 256>}, {pipeline_mode = #tpu.pipeline_mode<synchronous>, transform_indices = @transform_1, window_bounds = array<i64: 512, 8>}, {pipeline_mode = #tpu.pipeline_mode<synchronous>, transform_indices = @transform_2, window_bounds = array<i64: 512, 1>}, {pipeline_mode = #tpu.pipeline_mode<synchronous>, transform_indices = @transform_3, window_bounds = array<i64: 32, 512>}, {pipeline_mode = #tpu.pipeline_mode<synchronous>, transform_indices = @transform_4, window_bounds = array<i64: 32, 1>}, {transform_indices = @transform_5, window_bounds = array<i64: 2, 32, 256>}]} {
    %c0 = arith.constant 0 : index
    %c0_0 = arith.constant 0 : index
    %0 = vector.load %arg3[%c0, %c0_0] : memref<512x8xbf16, #tpu.memory_space<vmem>>, vector<512x8xbf16>
    %c0_1 = arith.constant 0 : index
    %c0_2 = arith.constant 0 : index
    %c0_3 = arith.constant 0 : index
    %1 = vector.load %arg2[%c0_1, %c0_2, %c0_3] : memref<2x8x256xbf16, #tpu.memory_space<vmem>>, vector<1x8x256xbf16>
    %2 = vector.shape_cast %1 : vector<1x8x256xbf16> to vector<8x256xbf16>
    %cst = arith.constant dense<0.000000e+00> : vector<512x256xf32>
    %3 = tpu.matmul %0, %2, %cst {dimension_numbers = #tpu.dot_dimension_numbers<[1], [0], [0], [1], [0, 0, 1, 1], [], []>} : vector<512x8xbf16>, vector<8x256xbf16>, vector<512x256xf32> -> vector<512x256xf32>
    %c0_4 = arith.constant 0 : index
    %c0_5 = arith.constant 0 : index
    %4 = vector.load %arg4[%c0_4, %c0_5] : memref<512x1xf32, #tpu.memory_space<vmem>>, vector<512x1xf32>
    %5 = vector.broadcast %4 : vector<512x1xf32> to vector<512x256xf32>
    %6 = arith.addf %3, %5 : vector<512x256xf32>
    %cst_6 = arith.constant 0.000000e+00 : f32
    %7 = vector.broadcast %cst_6 : f32 to vector<512x256xf32>
    %8 = arith.maximumf %6, %7 : vector<512x256xf32>
    %9 = arith.truncf %8 : vector<512x256xf32> to vector<512x256xbf16>
    %c0_7 = arith.constant 0 : index
    %c0_8 = arith.constant 0 : index
    %10 = vector.load %arg8[%c0_7, %c0_8] : memref<512x256xbf16, #tpu.memory_space<vmem>>, vector<512x256xbf16>
    tpu.vector_store %arg8[%c0_7, %c0_8], %9 {strides = array<i32>} : memref<512x256xbf16, #tpu.memory_space<vmem>>, vector<512x256xbf16>,
    %c0_9 = arith.constant 0 : index
    %c0_10 = arith.constant 0 : index
    %11 = vector.load %arg5[%c0_9, %c0_10] : memref<32x512xbf16, #tpu.memory_space<vmem>>, vector<32x512xbf16>
    %c0_11 = arith.constant 0 : index
    %c0_12 = arith.constant 0 : index
    %12 = vector.load %arg8[%c0_11, %c0_12] : memref<512x256xbf16, #tpu.memory_space<vmem>>, vector<512x256xbf16>
    %cst_13 = arith.constant dense<0.000000e+00> : vector<32x256xf32>
    %13 = tpu.matmul %11, %12, %cst_13 {dimension_numbers = #tpu.dot_dimension_numbers<[1], [0], [0], [1], [0, 0, 1, 1], [], []>} : vector<32x512xbf16>, vector<512x256xbf16>, vector<32x256xf32> -> vector<32x256xf32>
    %c0_14 = arith.constant 0 : index
    %c0_15 = arith.constant 0 : index
    %14 = vector.load %arg6[%c0_14, %c0_15] : memref<32x1xf32, #tpu.memory_space<vmem>>, vector<32x1xf32>
    %15 = vector.broadcast %14 : vector<32x1xf32> to vector<32x256xf32>
    %16 = arith.addf %13, %15 : vector<32x256xf32>
    %cst_16 = arith.constant 0.000000e+00 : f32
    %17 = vector.broadcast %cst_16 : f32 to vector<32x256xf32>
    %18 = arith.maximumf %16, %17 : vector<32x256xf32>
    %c0_17 = arith.constant 0 : index
    %c0_18 = arith.constant 0 : index
    %c0_19 = arith.constant 0 : index
    %19 = vector.load %arg7[%c0_17, %c0_18, %c0_19] : memref<2x32x256xf32, #tpu.memory_space<vmem>>, vector<1x32x256xf32>
    %20 = vector.shape_cast %19 : vector<1x32x256xf32> to vector<32x256xf32>
    %21 = vector.shape_cast %18 : vector<32x256xf32> to vector<1x32x256xf32>
    tpu.vector_store %arg7[%c0_17, %c0_18, %c0_19], %21 {strides = array<i32>} : memref<2x32x256xf32, #tpu.memory_space<vmem>>, vector<1x32x256xf32>,
    %c0_20 = arith.constant 0 : index
    %c0_21 = arith.constant 0 : index
    %22 = vector.load %arg3[%c0_20, %c0_21] : memref<512x8xbf16, #tpu.memory_space<vmem>>, vector<512x8xbf16>
    %c1 = arith.constant 1 : index
    %c0_22 = arith.constant 0 : index
    %c0_23 = arith.constant 0 : index
    %23 = vector.load %arg2[%c1, %c0_22, %c0_23] : memref<2x8x256xbf16, #tpu.memory_space<vmem>>, vector<1x8x256xbf16>
    %24 = vector.shape_cast %23 : vector<1x8x256xbf16> to vector<8x256xbf16>
    %cst_24 = arith.constant dense<0.000000e+00> : vector<512x256xf32>
    %25 = tpu.matmul %22, %24, %cst_24 {dimension_numbers = #tpu.dot_dimension_numbers<[1], [0], [0], [1], [0, 0, 1, 1], [], []>} : vector<512x8xbf16>, vector<8x256xbf16>, vector<512x256xf32> -> vector<512x256xf32>
    %c0_25 = arith.constant 0 : index
    %c0_26 = arith.constant 0 : index
    %26 = vector.load %arg4[%c0_25, %c0_26] : memref<512x1xf32, #tpu.memory_space<vmem>>, vector<512x1xf32>
    %27 = vector.broadcast %26 : vector<512x1xf32> to vector<512x256xf32>
    %28 = arith.addf %25, %27 : vector<512x256xf32>
    %cst_27 = arith.constant 0.000000e+00 : f32
    %29 = vector.broadcast %cst_27 : f32 to vector<512x256xf32>
    %30 = arith.maximumf %28, %29 : vector<512x256xf32>
    %31 = arith.truncf %30 : vector<512x256xf32> to vector<512x256xbf16>
    %c0_28 = arith.constant 0 : index
    %c0_29 = arith.constant 0 : index
    %32 = vector.load %arg8[%c0_28, %c0_29] : memref<512x256xbf16, #tpu.memory_space<vmem>>, vector<512x256xbf16>
    tpu.vector_store %arg8[%c0_28, %c0_29], %31 {strides = array<i32>} : memref<512x256xbf16, #tpu.memory_space<vmem>>, vector<512x256xbf16>,
    %c0_30 = arith.constant 0 : index
    %c0_31 = arith.constant 0 : index
    %33 = vector.load %arg5[%c0_30, %c0_31] : memref<32x512xbf16, #tpu.memory_space<vmem>>, vector<32x512xbf16>
    %c0_32 = arith.constant 0 : index
    %c0_33 = arith.constant 0 : index
    %34 = vector.load %arg8[%c0_32, %c0_33] : memref<512x256xbf16, #tpu.memory_space<vmem>>, vector<512x256xbf16>
    %cst_34 = arith.constant dense<0.000000e+00> : vector<32x256xf32>
    %35 = tpu.matmul %33, %34, %cst_34 {dimension_numbers = #tpu.dot_dimension_numbers<[1], [0], [0], [1], [0, 0, 1, 1], [], []>} : vector<32x512xbf16>, vector<512x256xbf16>, vector<32x256xf32> -> vector<32x256xf32>
    %c0_35 = arith.constant 0 : index
    %c0_36 = arith.constant 0 : index
    %36 = vector.load %arg6[%c0_35, %c0_36] : memref<32x1xf32, #tpu.memory_space<vmem>>, vector<32x1xf32>
    %37 = vector.broadcast %36 : vector<32x1xf32> to vector<32x256xf32>
    %38 = arith.addf %35, %37 : vector<32x256xf32>
    %cst_37 = arith.constant 0.000000e+00 : f32
    %39 = vector.broadcast %cst_37 : f32 to vector<32x256xf32>
    %40 = arith.maximumf %38, %39 : vector<32x256xf32>
    %c1_38 = arith.constant 1 : index
    %c0_39 = arith.constant 0 : index
    %c0_40 = arith.constant 0 : index
    %41 = vector.load %arg7[%c1_38, %c0_39, %c0_40] : memref<2x32x256xf32, #tpu.memory_space<vmem>>, vector<1x32x256xf32>
    %42 = vector.shape_cast %41 : vector<1x32x256xf32> to vector<32x256xf32>
    %43 = vector.shape_cast %40 : vector<32x256xf32> to vector<1x32x256xf32>
    tpu.vector_store %arg7[%c1_38, %c0_39, %c0_40], %43 {strides = array<i32>} : memref<2x32x256xf32, #tpu.memory_space<vmem>>, vector<1x32x256xf32>,
    return
  }
  func.func @transform_0(%arg0: i32, %arg1: i32) -> (i32, i32, i32) {
    %c0_i32 = arith.constant 0 : i32
    %c0_i32_0 = arith.constant 0 : i32
    return %arg0, %c0_i32, %arg1 : i32, i32, i32
  }
  func.func @transform_1(%arg0: i32, %arg1: i32) -> (i32, i32) {
    %c0_i32 = arith.constant 0 : i32
    %c0_i32_0 = arith.constant 0 : i32
    %c0_i32_1 = arith.constant 0 : i32
    return %c0_i32, %c0_i32_0 : i32, i32
  }
  func.func @transform_2(%arg0: i32, %arg1: i32) -> (i32, i32) {
    %c0_i32 = arith.constant 0 : i32
    %c0_i32_0 = arith.constant 0 : i32
    %c0_i32_1 = arith.constant 0 : i32
    return %c0_i32, %c0_i32_0 : i32, i32
  }
  func.func @transform_3(%arg0: i32, %arg1: i32) -> (i32, i32) {
    %c0_i32 = arith.constant 0 : i32
    %c0_i32_0 = arith.constant 0 : i32
    %c0_i32_1 = arith.constant 0 : i32
    return %c0_i32, %c0_i32_0 : i32, i32
  }
  func.func @transform_4(%arg0: i32, %arg1: i32) -> (i32, i32) {
    %c0_i32 = arith.constant 0 : i32
    %c0_i32_0 = arith.constant 0 : i32
    %c0_i32_1 = arith.constant 0 : i32
    return %c0_i32, %c0_i32_0 : i32, i32
  }
  func.func @transform_5(%arg0: i32, %arg1: i32) -> (i32, i32, i32) {
    %c0_i32 = arith.constant 0 : i32
    %c0_i32_0 = arith.constant 0 : i32
    return %arg0, %c0_i32, %arg1 : i32, i32, i32
  }
}

</mosaic_0001>

<bundles_post_ra>
// kernel: attention_forward.1
= control target key start
LH: loop header
LB: loop body
LE: loop exit
PB: predicated region body
PF: predicated region fallthrough
CT: control target
= control target key end

     0   :  { %vm736_vm0 = vcmask 1041408   ;;  %v6956_v0 = vmov 0   ;;  %vm639_vm1 = vcmask 31744   ;;  %s6947_s2 = inlined_call_operand.vmem [shape: f32[512,1], index: 2, kind: input, shape index: {}]   ;;  %s6948_s0 = inlined_call_operand.vmem [shape: bf16[2,4,256], index: 0, kind: input, shape index: {}]   ;;  %s6949_s1 = inlined_call_operand.vmem [shape: bf16[512,4], index: 1, kind: input, shape index: {}]   ;;  %s6950_s3 = inlined_call_operand.vmem [shape: bf16[32,512], index: 3, kind: input, shape index: {}]   ;;  %s6951_s4 = inlined_call_operand.vmem [shape: f32[32,1], index: 4, kind: input, shape index: {}]   ;;  %s6952_s5 = inlined_call_operand.vmem [shape: f32[2,32,256], index: 5, kind: output, shape index: {}]  }
   0x1   :  { %5154 = vset.pattern.permute.xlu1 %v6956_v0  ;;  %5153 = vset.pattern.permute.xlu0 %v6956_v0  ;;  %v5279_v1 = vld [vmem:[%s6947_s2 + $0x70] sm:$0xff]  ;;  %v5284_v2 = vld [vmem:[%s6947_s2 + $0x60] sm:$0xff]  ;;  %v5295_v6 = vld [vmem:[%s6947_s2 + $0x78] sm:$0xff] }
   0x2   :  { %v4515_v3 = vld.sshfl [vmem:[%s6948_s0] sm:$0x33 pattern:$0x76325410]  ;;  %222 = vperm.xlu0 %5153, %v5279_v1   ;;  %212 = vperm.xlu1 %5154, %v5284_v2   ;;  %v5300_v7 = vld [vmem:[%s6947_s2 + $0x68] sm:$0xff]  ;;  %v5312_v9 = vld [vmem:[%s6947_s2 + $0x58] sm:$0xff] }
   0x3   :  { %v638_v4 = vcombine.high %v4515_v3, %v4515_v3  ;;  %v738_v5 = vsel %vm736_vm0, %v4515_v3, 0  ;;  %775 = vmatprep.mubr.bf16.mxu0 %v6956_v0  ;;  %v5155_v8 = vld [vmem:[%s6949_s1] sm:$0xff]   ;;  %v5317_v10 = vld [vmem:[%s6947_s2 + $0x50] sm:$0xff]  ;;  %v5326_v11 = vld [vmem:[%s6947_s2 + $0x48] sm:$0xff] }
   0x4   :  { %v5331_v12 = vld [vmem:[%s6947_s2 + $0x40] sm:$0xff]  ;;  %v5156_v13 = vld [vmem:[%s6949_s1 + $0x8] sm:$0xff]   ;;  %v5341_v14 = vld [vmem:[%s6947_s2 + $0x38] sm:$0xff] }
   0x5   :  { %4516 = vmatprep.subr.msk.bf16.mxu0 %vm736_vm0, %v638_v4  ;;  %v5346_v15 = vld [vmem:[%s6947_s2 + $0x30] sm:$0xff]  ;;  %v5355_v16 = vld [vmem:[%s6947_s2 + $0x28] sm:$0xff]  ;;  %v5360_v17 = vld [vmem:[%s6947_s2 + $0x20] sm:$0xff] }
   0x6   :  { %758 = vmatpush1.bf16.msra.mxu0 %v738_v5  ;;  %227 = vperm.xlu0 %5153, %v5295_v6   ;;  %v5157_v18 = vld [vmem:[%s6949_s1 + $0x10] sm:$0xff]   ;;  %v5370_v19 = vld [vmem:[%s6947_s2 + $0x18] sm:$0xff]  ;;  %v5384_v21 = vld [vmem:[%s6947_s2 + $0x8] sm:$0xff] }
   0x7   :  { %217 = vperm.xlu1 %5154, %v5300_v7   ;;  %v5375_v20 = vld [vmem:[%s6947_s2 + $0x10] sm:$0xff]  ;;  %v5389_v22 = vld [vmem:[%s6947_s2] sm:$0xff]  ;;  %v5158_v23 = vld [vmem:[%s6949_s1 + $0x18] sm:$0xff]  }
   0x8   :  { %v5399_v24 = vld [vmem:[%s6947_s2 + $0xf8] sm:$0xff]  ;;  %v5404_v25 = vld [vmem:[%s6947_s2 + $0xf0] sm:$0xff]  ;;  %v5413_v26 = vld [vmem:[%s6947_s2 + $0xe8] sm:$0xff] }
   0x9   :  { %4517 = vmatmul.mubr.msk.bf16.vlgmr.msra.gmra.mxu0 %vm639_vm1, %v5155_v8  ;;  %v5418_v27 = vld [vmem:[%s6947_s2 + $0xe0] sm:$0xff]  ;;  %v5428_v29 = vld [vmem:[%s6947_s2 + $0xd8] sm:$0xff]  ;;  %v5433_v30 = vld [vmem:[%s6947_s2 + $0xd0] sm:$0xff] }
   0xa   :  { %785 = vmatprep.mubr.bf16.mxu0 %v6956_v0  ;;  %202 = vperm.xlu0 %5153, %v5317_v10   ;;  %v5159_v28 = vld [vmem:[%s6949_s1 + $0x20] sm:$0xff]   ;;  %v5442_v31 = vld [vmem:[%s6947_s2 + $0xc8] sm:$0xff]  ;;  %v5455_v34 = vld [vmem:[%s6947_s2 + $0xb8] sm:$0xff] }
   0xb   :  { %207 = vperm.xlu1 %5154, %v5312_v9   ;;  %v5447_v32 = vld [vmem:[%s6947_s2 + $0xc0] sm:$0xff]  ;;  %v5160_v33 = vld [vmem:[%s6949_s1 + $0x28] sm:$0xff]   ;;  %v5462_v35 = vld [vmem:[%s6947_s2 + $0xb0] sm:$0xff] }
   0xc   :  { %v5468_v36 = vld [vmem:[%s6947_s2 + $0xa8] sm:$0xff]  ;;  %v5473_v37 = vld [vmem:[%s6947_s2 + $0xa0] sm:$0xff]  ;;  %v5161_v38 = vld [vmem:[%s6949_s1 + $0x30] sm:$0xff]  }
   0xd   :  { %v5484_v39 = vld [vmem:[%s6947_s2 + $0x98] sm:$0xff]  ;;  %v5491_v40 = vld [vmem:[%s6947_s2 + $0x90] sm:$0xff]  ;;  %v5497_v41 = vld [vmem:[%s6947_s2 + $0x88] sm:$0xff] }
   0xe   :  { %192 = vperm.xlu0 %5153, %v5331_v12   ;;  %v5502_v42 = vld [vmem:[%s6947_s2 + $0x80] sm:$0xff]  ;;  %v5162_v43 = vld [vmem:[%s6949_s1 + $0x38] sm:$0xff]   ;;  %v5520_v45 = vld [vmem:[%s6947_s2 + $0x170] sm:$0xff] }
   0xf   :  { %197 = vperm.xlu1 %5154, %v5326_v11   ;;  %v5513_v44 = vld [vmem:[%s6947_s2 + $0x178] sm:$0xff]  ;;  %v5526_v46 = vld [vmem:[%s6947_s2 + $0x168] sm:$0xff]  ;;  %v5531_v47 = vld [vmem:[%s6947_s2 + $0x160] sm:$0xff] }
  0x10   :  { %v5163_v48 = vld [vmem:[%s6949_s1 + $0x40] sm:$0xff]   ;;  %v5542_v49 = vld [vmem:[%s6947_s2 + $0x158] sm:$0xff]  ;;  %v5549_v50 = vld [vmem:[%s6947_s2 + $0x150] sm:$0xff] }
  0x11   :  { %4518 = vmatmul.mubr.msk.bf16.gmra.mxu0 %vm639_vm1, %v5156_v13  ;;  %v5558_v51 = vld [vmem:[%s6947_s2 + $0x148] sm:$0xff]  ;;  %v5563_v52 = vld [vmem:[%s6947_s2 + $0x140] sm:$0xff]  ;;  %v5573_v54 = vld [vmem:[%s6947_s2 + $0x138] sm:$0xff] }
  0x12   :  { %795 = vmatprep.mubr.bf16.mxu0 %v6956_v0  ;;  %182 = vperm.xlu0 %5153, %v5346_v15   ;;  %v5164_v53 = vld [vmem:[%s6949_s1 + $0x48] sm:$0xff]   ;;  %v5578_v55 = vld [vmem:[%s6947_s2 + $0x130] sm:$0xff]  ;;  %v5592_v57 = vld [vmem:[%s6947_s2 + $0x120] sm:$0xff] }
  0x13   :  { %187 = vperm.xlu1 %5154, %v5341_v14   ;;  %v5587_v56 = vld [vmem:[%s6947_s2 + $0x128] sm:$0xff]  ;;  %v5165_v58 = vld [vmem:[%s6949_s1 + $0x50] sm:$0xff]   ;;  %v5602_v59 = vld [vmem:[%s6947_s2 + $0x118] sm:$0xff] }
  0x14   :  { %v5607_v60 = vld [vmem:[%s6947_s2 + $0x110] sm:$0xff]  ;;  %v5616_v61 = vld [vmem:[%s6947_s2 + $0x108] sm:$0xff]  ;;  %v5621_v62 = vld [vmem:[%s6947_s2 + $0x100] sm:$0xff] }
  0x15   :  { %v5166_v63 = vld [vmem:[%s6949_s1 + $0x58] sm:$0xff]   ;;  %v5636_v4 = vld [vmem:[%s6947_s2 + $0x1f0] sm:$0xff]  ;;  %v5645_v5 = vld [vmem:[%s6947_s2 + $0x1e8] sm:$0xff] }
  0x16   :  { %172 = vperm.xlu0 %5153, %v5360_v17   ;;  %v5631_v3 = vld [vmem:[%s6947_s2 + $0x1f8] sm:$0xff]  ;;  %v5650_v8 = vld [vmem:[%s6947_s2 + $0x1e0] sm:$0xff] }
  0x17   :  { %177 = vperm.xlu1 %5154, %v5355_v16   ;;  %v5167_v13 = vld [vmem:[%s6949_s1 + $0x60] sm:$0xff]  }
  0x19   :  { %4519 = vmatmul.mubr.msk.bf16.gmra.mxu0 %vm639_vm1, %v5157_v18  ;;  %v5660_v18 = vld [vmem:[%s6947_s2 + $0x1d8] sm:$0xff] }
  0x1a   :  { %805 = vmatprep.mubr.bf16.mxu0 %v6956_v0  ;;  %162 = vperm.xlu0 %5153, %v5375_v20  }
  0x1b   :  { %167 = vperm.xlu1 %5154, %v5370_v19  }
  0x1e   :  { %152 = vperm.xlu0 %5153, %v5389_v22  }
  0x1f   :  { %157 = vperm.xlu1 %5154, %v5384_v21  }
  0x21   :  { %4520 = vmatmul.mubr.msk.bf16.gmra.mxu0 %vm639_vm1, %v5158_v23  ;;  %v5665_v23 = vld [vmem:[%s6947_s2 + $0x1d0] sm:$0xff] }
  0x22   :  { %815 = vmatprep.mubr.bf16.mxu0 %v6956_v0  ;;  %302 = vperm.xlu0 %5153, %v5404_v25  }
  0x23   :  { %307 = vperm.xlu1 %5154, %v5399_v24  }
  0x26   :  { %292 = vperm.xlu0 %5153, %v5418_v27  }
  0x27   :  { %297 = vperm.xlu1 %5154, %v5413_v26  }
  0x29   :  { %4521 = vmatmul.mubr.msk.bf16.gmra.mxu0 %vm639_vm1, %v5159_v28  ;;  %v5674_v28 = vld [vmem:[%s6947_s2 + $0x1c8] sm:$0xff] }
  0x2a   :  { %825 = vmatprep.mubr.bf16.mxu0 %v6956_v0  ;;  %282 = vperm.xlu0 %5153, %v5433_v30  }
  0x2b   :  { %287 = vperm.xlu1 %5154, %v5428_v29  }
  0x2e   :  { %272 = vperm.xlu0 %5153, %v5447_v32  }
  0x2f   :  { %277 = vperm.xlu1 %5154, %v5442_v31  }
  0x31   :  { %4522 = vmatmul.mubr.msk.bf16.gmra.mxu0 %vm639_vm1, %v5160_v33  ;;  %v5679_v33 = vld [vmem:[%s6947_s2 + $0x1c0] sm:$0xff] }
  0x32   :  { %835 = vmatprep.mubr.bf16.mxu0 %v6956_v0  ;;  %262 = vperm.xlu0 %5153, %v5462_v35  }
  0x33   :  { %267 = vperm.xlu1 %5154, %v5455_v34  }
  0x36   :  { %252 = vperm.xlu0 %5153, %v5473_v37  }
  0x37   :  { %257 = vperm.xlu1 %5154, %v5468_v36  }
  0x39   :  { %4523 = vmatmul.mubr.msk.bf16.gmra.mxu0 %vm639_vm1, %v5161_v38  ;;  %v5168_v38 = vld [vmem:[%s6949_s1 + $0x68] sm:$0xff]  }
  0x3a   :  { %845 = vmatprep.mubr.bf16.mxu0 %v6956_v0  ;;  %242 = vperm.xlu0 %5153, %v5491_v40  }
  0x3b   :  { %247 = vperm.xlu1 %5154, %v5484_v39  }
  0x3e   :  { %232 = vperm.xlu0 %5153, %v5502_v42  }
  0x3f   :  { %237 = vperm.xlu1 %5154, %v5497_v41  }
  0x41   :  { %4524 = vmatmul.mubr.msk.bf16.gmra.mxu0 %vm639_vm1, %v5162_v43  ;;  %v5689_v43 = vld [vmem:[%s6947_s2 + $0x1b8] sm:$0xff] }
  0x42   :  { %855 = vmatprep.mubr.bf16.mxu0 %v6956_v0  ;;  %382 = vperm.xlu0 %5153, %v5520_v45  }
  0x43   :  { %387 = vperm.xlu1 %5154, %v5513_v44  }
  0x46   :  { %372 = vperm.xlu0 %5153, %v5531_v47  }
  0x47   :  { %377 = vperm.xlu1 %5154, %v5526_v46  }
  0x49   :  { %4525 = vmatmul.mubr.msk.bf16.gmra.mxu0 %vm639_vm1, %v5163_v48  ;;  %v5694_v48 = vld [vmem:[%s6947_s2 + $0x1b0] sm:$0xff] }
  0x4a   :  { %865 = vmatprep.mubr.bf16.mxu0 %v6956_v0  ;;  %362 = vperm.xlu0 %5153, %v5549_v50  }
  0x4b   :  { %367 = vperm.xlu1 %5154, %v5542_v49  }
  0x4e   :  { %352 = vperm.xlu0 %5153, %v5563_v52  }
  0x4f   :  { %357 = vperm.xlu1 %5154, %v5558_v51  }
  0x51   :  { %4526 = vmatmul.mubr.msk.bf16.gmra.mxu0 %vm639_vm1, %v5164_v53  ;;  %v5703_v53 = vld [vmem:[%s6947_s2 + $0x1a8] sm:$0xff] }
  0x52   :  { %875 = vmatprep.mubr.bf16.mxu0 %v6956_v0  ;;  %342 = vperm.xlu0 %5153, %v5578_v55   ;;  %7014 = vst [vmem:[#allocation3_spill] sm:$0xff] %v5703_v53 }
  0x53   :  { %347 = vperm.xlu1 %5154, %v5573_v54  }
  0x56   :  { %332 = vperm.xlu0 %5153, %v5592_v57  }
  0x57   :  { %337 = vperm.xlu1 %5154, %v5587_v56  }
  0x59   :  { %4527 = vmatmul.mubr.msk.bf16.gmra.mxu0 %vm639_vm1, %v5165_v58  ;;  %v5708_v58 = vld [vmem:[%s6947_s2 + $0x1a0] sm:$0xff] }
  0x5a   :  { %885 = vmatprep.mubr.bf16.mxu0 %v6956_v0  ;;  %322 = vperm.xlu0 %5153, %v5607_v60   ;;  %7015 = vst [vmem:[#allocation4_spill] sm:$0xff] %v5708_v58 }
  0x5b   :  { %327 = vperm.xlu1 %5154, %v5602_v59  }
  0x5e   :  { %312 = vperm.xlu0 %5153, %v5621_v62  }
  0x5f   :  { %317 = vperm.xlu1 %5154, %v5616_v61  }
  0x61   :  { %4528 = vmatmul.mubr.msk.bf16.gmra.mxu0 %vm639_vm1, %v5166_v63  ;;  %v5169_v63 = vld [vmem:[%s6949_s1 + $0x70] sm:$0xff]  }
  0x62   :  { %895 = vmatprep.mubr.bf16.mxu0 %v6956_v0  ;;  %462 = vperm.xlu0 %5153, %v5636_v4  }
  0x63   :  { %467 = vperm.xlu1 %5154, %v5631_v3  }
  0x66   :  { %452 = vperm.xlu0 %5153, %v5650_v8  }
  0x67   :  { %457 = vperm.xlu1 %5154, %v5645_v5  }
  0x69   :  { %4529 = vmatmul.mubr.msk.bf16.gmra.mxu0 %vm639_vm1, %v5167_v13  ;;  %v5718_v13 = vld [vmem:[%s6947_s2 + $0x198] sm:$0xff] }
  0x6a   :  { %905 = vmatprep.mubr.bf16.mxu0 %v6956_v0  ;;  %442 = vperm.xlu0 %5153, %v5665_v23  }
  0x6b   :  { %447 = vperm.xlu1 %5154, %v5660_v18  }
  0x6e   :  { %432 = vperm.xlu0 %5153, %v5679_v33  }
  0x6f   :  { %437 = vperm.xlu1 %5154, %v5674_v28  }
  0x71   :  { %4530 = vmatmul.mubr.msk.bf16.gmra.mxu0 %vm639_vm1, %v5168_v38  ;;  %v5723_v38 = vld [vmem:[%s6947_s2 + $0x190] sm:$0xff] }
  0x72   :  { %915 = vmatprep.mubr.bf16.mxu0 %v6956_v0  ;;  %422 = vperm.xlu0 %5153, %v5694_v48   ;;  %7016 = vst [vmem:[#allocation5_spill] sm:$0xff] %v5723_v38 }
  0x73   :  { %427 = vperm.xlu1 %5154, %v5689_v43  }
  0x76   :  { %412 = vperm.xlu0 %5153, %v5708_v58   ;;  %v5732_v58 = vld [vmem:[%s6947_s2 + $0x188] sm:$0xff] }
  0x77   :  { %417 = vperm.xlu1 %5154, %v5703_v53   ;;  %v5737_v53 = vld [vmem:[%s6947_s2 + $0x180] sm:$0xff] }
  0x79   :  { %4531 = vmatmul.mubr.msk.bf16.gmra.mxu0 %vm639_vm1, %v5169_v63  ;;  %v5170_v63 = vld [vmem:[%s6949_s1 + $0x78] sm:$0xff]  }
  0x7a   :  { %925 = vmatprep.mubr.bf16.mxu0 %v6956_v0  ;;  %402 = vperm.xlu0 %5153, %v5723_v38   ;;  %v5171_v38 = vld [vmem:[%s6949_s1 + $0x80] sm:$0xff]  }
  0x7b   :  { %407 = vperm.xlu1 %5154, %v5718_v13  }
  0x7e   :  { %392 = vperm.xlu0 %5153, %v5737_v53  }
  0x7f   :  { %397 = vperm.xlu1 %5154, %v5732_v58  }
  0x81   :  { %4532 = vmatmul.mubr.msk.bf16.gmra.mxu0 %vm639_vm1, %v5170_v63 }
  0x82   :  { %935 = vmatprep.mubr.bf16.mxu0 %v6956_v0  ;;  %2452 = vperm.xlu0 %5153, %v5279_v1   ;;  %v5172_v1 = vld [vmem:[%s6949_s1 + $0x88] sm:$0xff]  }
  0x83   :  { %2457 = vperm.xlu1 %5154, %v5295_v6   ;;  %v5174_v6 = vld [vmem:[%s6949_s1 + $0x98] sm:$0xff]  }
  0x86   :  { %2442 = vperm.xlu0 %5153, %v5284_v2   ;;  %v5173_v2 = vld [vmem:[%s6949_s1 + $0x90] sm:$0xff]  }
  0x87   :  { %2447 = vperm.xlu1 %5154, %v5300_v7   ;;  %v5780_v7 = vpop.permute.xlu0 %222 }
  0x89   :  { %4533 = vmatmul.mubr.msk.bf16.gmra.mxu0 %vm639_vm1, %v5171_v38 }
  0x8a   :  { %945 = vmatprep.mubr.bf16.mxu0 %v6956_v0  ;;  %2432 = vperm.xlu0 %5153, %v5317_v10   ;;  %v5175_v10 = vld [vmem:[%s6949_s1 + $0xa0] sm:$0xff]  }
  0x8b   :  { %2437 = vperm.xlu1 %5154, %v5312_v9   ;;  %v5783_v9 = vpop.permute.xlu1 %212 }
  0x8e   :  { %2422 = vperm.xlu0 %5153, %v5331_v12  }
  0x8f   :  { %2427 = vperm.xlu1 %5154, %v5326_v11   ;;  %v5791_v11 = vpop.permute.xlu0 %227  ;;  %v5795_v12 = vpop.permute.xlu1 %217 }
  0x91   :  { %4534 = vmatmul.mubr.msk.bf16.gmra.mxu0 %vm639_vm1, %v5172_v1 }
  0x92   :  { %955 = vmatprep.mubr.bf16.mxu0 %v6956_v0  ;;  %2412 = vperm.xlu0 %5153, %v5346_v15   ;;  %v5176_v15 = vld [vmem:[%s6949_s1 + $0xa8] sm:$0xff]  }
  0x93   :  { %2417 = vperm.xlu1 %5154, %v5341_v14   ;;  %v5801_v14 = vpop.permute.xlu0 %202 }
  0x96   :  { %2402 = vperm.xlu0 %5153, %v5360_v17  }
  0x97   :  { %2407 = vperm.xlu1 %5154, %v5355_v16   ;;  %v5806_v16 = vpop.permute.xlu1 %207  ;;  %v5812_v17 = vpop.permute.xlu0 %192 }
  0x99   :  { %4535 = vmatmul.mubr.msk.bf16.gmra.mxu0 %vm639_vm1, %v5173_v2 }
  0x9a   :  { %965 = vmatprep.mubr.bf16.mxu0 %v6956_v0  ;;  %2392 = vperm.xlu0 %5153, %v5375_v20   ;;  %v5177_v20 = vld [vmem:[%s6949_s1 + $0xb0] sm:$0xff]  }
  0x9b   :  { %2397 = vperm.xlu1 %5154, %v5370_v19   ;;  %v5816_v19 = vpop.permute.xlu1 %197 }
  0x9e   :  { %2382 = vperm.xlu0 %5153, %v5389_v22  }
  0x9f   :  { %2387 = vperm.xlu1 %5154, %v5384_v21   ;;  %v5823_v21 = vpop.permute.xlu0 %182  ;;  %v5826_v22 = vpop.permute.xlu1 %187 }
  0xa1   :  { %4536 = vmatmul.mubr.msk.bf16.gmra.mxu0 %vm639_vm1, %v5174_v6 }
  0xa2   :  { %975 = vmatprep.mubr.bf16.mxu0 %v6956_v0  ;;  %2532 = vperm.xlu0 %5153, %v5404_v25  }
  0xa3   :  { %2537 = vperm.xlu1 %5154, %v5399_v24   ;;  %v5178_v24 = vld [vmem:[%s6949_s1 + $0xb8] sm:$0xff]   ;;  %v5834_v25 = vpop.permute.xlu0 %172 }
  0xa6   :  { %2522 = vperm.xlu0 %5153, %v5418_v27  }
  0xa7   :  { %2527 = vperm.xlu1 %5154, %v5413_v26   ;;  %v5838_v26 = vpop.permute.xlu1 %177  ;;  %v163_v27 = vpop.permute.xlu0 %162 }
  0xa9   :  { %4537 = vmatmul.mubr.msk.bf16.gmra.mxu0 %vm639_vm1, %v5175_v10  ;;  %v5181_v10 = vld [vmem:[%s6949_s1 + $0xd0] sm:$0xff]  }
  0xaa   :  { %985 = vmatprep.mubr.bf16.mxu0 %v6956_v0  ;;  %2512 = vperm.xlu0 %5153, %v5433_v30  }
  0xab   :  { %2517 = vperm.xlu1 %5154, %v5428_v29   ;;  %v5179_v29 = vld [vmem:[%s6949_s1 + $0xc0] sm:$0xff]   ;;  %v168_v30 = vpop.permute.xlu1 %167 }
  0xae   :  { %2502 = vperm.xlu0 %5153, %v5447_v32   ;;  %v153_v32 = vpop.permute.xlu0 %152 }
  0xaf   :  { %2507 = vperm.xlu1 %5154, %v5442_v31  }
  0xb1   :  { %4538 = vmatmul.mubr.msk.bf16.gmra.mxu0 %vm639_vm1, %v5176_v15 }
  0xb2   :  { %995 = vmatprep.mubr.bf16.mxu0 %v6956_v0  ;;  %2492 = vperm.xlu0 %5153, %v5462_v35   ;;  %v158_v35 = vpop.permute.xlu1 %157  ;;  %v5864_v1 = vpop.permute.xlu0 %302 }
  0xb3   :  { %2497 = vperm.xlu1 %5154, %v5455_v34  }
  0xb6   :  { %2482 = vperm.xlu0 %5153, %v5473_v37  }
  0xb7   :  { %2487 = vperm.xlu1 %5154, %v5468_v36  }
  0xb9   :  { %4539 = vmatmul.mubr.msk.bf16.gmra.mxu0 %vm639_vm1, %v5177_v20 }
  0xba   :  { %1005 = vmatprep.mubr.bf16.mxu0 %v6956_v0  ;;  %2472 = vperm.xlu0 %5153, %v5491_v40  }
  0xbb   :  { %2477 = vperm.xlu1 %5154, %v5484_v39   ;;  %v5180_v39 = vld [vmem:[%s6949_s1 + $0xc8] sm:$0xff]  }
  0xbe   :  { %2462 = vperm.xlu0 %5153, %v5502_v42  }
  0xbf   :  { %2467 = vperm.xlu1 %5154, %v5497_v41  }
  0xc1   :  { %4540 = vmatmul.mubr.msk.bf16.gmra.mxu0 %vm639_vm1, %v5178_v24 }
  0xc2   :  { %1015 = vmatprep.mubr.bf16.mxu0 %v6956_v0  ;;  %2612 = vperm.xlu0 %5153, %v5520_v45  }
  0xc3   :  { %2617 = vperm.xlu1 %5154, %v5513_v44  }
  0xc6   :  { %2602 = vperm.xlu0 %5153, %v5531_v47  }
  0xc7   :  { %2607 = vperm.xlu1 %5154, %v5526_v46  }
  0xc9   :  { %v777_v31 = vpop.f32.mrf.mxu0  ;;  %4541 = vmatmul.mubr.msk.bf16.gmra.mxu0 %vm639_vm1, %v5179_v29 }
  0xca   :  { %1025 = vmatprep.mubr.bf16.mxu0 %v6956_v0  ;;  %2592 = vperm.xlu0 %5153, %v5549_v50   ;;  %v778_v36 = vadd.f32 %v777_v31, %v153_v32 }
  0xcb   :  { %2597 = vperm.xlu1 %5154, %v5542_v49   ;;  %v779_v34 = vpop.f32.mrf.mxu0  ;;  %v5859_v49 = vpop.permute.xlu1 %307 }
  0xcc   :  { %v780_v40 = vadd.f32 %v779_v34, %v153_v32  ;;  %v1096_v44 = vmax.f32 %v778_v36, 0.0  ;;  %v5877_v32 = vpop.permute.xlu0 %292 }
  0xcd   :  { %v781_v37 = vpop.f32.mrf.mxu0 }
  0xce   :  { %v782_v41 = vadd.f32 %v781_v37, %v158_v35  ;;  %2582 = vperm.xlu0 %5153, %v5563_v52   ;;  %v1097_v50 = vmax.f32 %v780_v40, 0.0 }
  0xcf   :  { %2587 = vperm.xlu1 %5154, %v5558_v51   ;;  %v783_v42 = vpop.f32.mrf.mxu0  ;;  %v5875_v29 = vpop.permute.xlu1 %297 }
  0xd0   :  { %v1098_v45 = vmax.f32 %v782_v41, 0.0  ;;  %v784_v46 = vadd.f32 %v783_v42, %v158_v35  ;;  %v5896_v42 = vpop.permute.xlu0 %282 }
  0xd1   :  { %v787_v47 = vpop.f32.mrf.mxu0  ;;  %4542 = vmatmul.mubr.msk.bf16.gmra.mxu0 %vm639_vm1, %v5180_v39  ;;  %v5182_v39 = vld [vmem:[%s6949_s1 + $0xd8] sm:$0xff]   ;;  %7018 = vst [vmem:[#allocation7_spill] sm:$0xff] %v5896_v42 }
  0xd2   :  { %v5861_v38 = vpack.c.bf16 %v1098_v45, %v1096_v44  ;;  %v1099_v63 = vmax.f32 %v784_v46, 0.0  ;;  %1035 = vmatprep.mubr.bf16.mxu0 %v6956_v0  ;;  %2572 = vperm.xlu0 %5153, %v5578_v55   ;;  %v788_v52 = vadd.f32 %v787_v47, %v163_v27 }
  0xd3   :  { %2577 = vperm.xlu1 %5154, %v5573_v54   ;;  %v789_v51 = vpop.f32.mrf.mxu0  ;;  %v5893_v40 = vpop.permute.xlu1 %287 }
  0xd4   :  { %v5868_v2 = vpack.c.bf16 %v1099_v63, %v1097_v50  ;;  %v790_v15 = vadd.f32 %v789_v51, %v163_v27  ;;  %v1100_v54 = vmax.f32 %v788_v52, 0.0  ;;  %7017 = vst [vmem:[#allocation6_spill] sm:$0xff] %v5893_v40  ;;  %v5183_v63 = vld [vmem:[%s6949_s1 + $0xe0] sm:$0xff]  }
  0xd5   :  { %v791_v6 = vpop.f32.mrf.mxu0 }
  0xd6   :  { %v792_v20 = vadd.f32 %v791_v6, %v168_v30  ;;  %2562 = vperm.xlu0 %5153, %v5592_v57   ;;  %v1101_v35 = vmax.f32 %v790_v15, 0.0 }
  0xd7   :  { %2567 = vperm.xlu1 %5154, %v5587_v56   ;;  %v793_v24 = vpop.f32.mrf.mxu0 }
  0xd8   :  { %v1102_v55 = vmax.f32 %v792_v20, 0.0  ;;  %v794_v31 = vadd.f32 %v793_v24, %v168_v30 }
  0xd9   :  { %v797_v34 = vpop.f32.mrf.mxu0  ;;  %4543 = vmatmul.mubr.msk.bf16.gmra.mxu0 %vm639_vm1, %v5181_v10  ;;  %v5184_v10 = vld [vmem:[%s6949_s1 + $0xe8] sm:$0xff]  }
  0xda   :  { %v5880_v36 = vpack.c.bf16 %v1102_v55, %v1100_v54  ;;  %v1103_v27 = vmax.f32 %v794_v31, 0.0  ;;  %1045 = vmatprep.mubr.bf16.mxu0 %v6956_v0  ;;  %2552 = vperm.xlu0 %5153, %v5607_v60   ;;  %v798_v57 = vadd.f32 %v797_v34, %v5834_v25  ;;  %v7025_v31 = vld [vmem:[#allocation3_spill] sm:$0xff]  ;;  %v7026_v34 = vld [vmem:[#allocation4_spill] sm:$0xff] }
  0xdb   :  { %2557 = vperm.xlu1 %5154, %v5602_v59   ;;  %v5885_v56 = vpop.f32.mrf.mxu0 }
  0xdc   :  { %v5888_v30 = vpack.c.bf16 %v1103_v27, %v1101_v35  ;;  %v1104_v60 = vmax.f32 %v798_v57, 0.0 }
  0xdd   :  { %v801_v37 = vpop.f32.mrf.mxu0 }
  0xde   :  { %v802_v41 = vadd.f32 %v801_v37, %v5838_v26  ;;  %2542 = vperm.xlu0 %5153, %v5621_v62   ;;  %v5914_v62 = vpop.permute.xlu0 %272 }
  0xdf   :  { %2547 = vperm.xlu1 %5154, %v5616_v61   ;;  %v5900_v59 = vpop.f32.mrf.mxu0  ;;  %v5912_v61 = vpop.permute.xlu1 %277  ;;  %7020 = vst [vmem:[#allocation9_spill] sm:$0xff] %v5914_v62 }
  0xe0   :  { %v1106_v44 = vmax.f32 %v802_v41, 0.0  ;;  %7019 = vst [vmem:[#allocation8_spill] sm:$0xff] %v5912_v61  ;;  %v5186_v41 = vld [vmem:[%s6949_s1 + $0xf8] sm:$0xff]  }
  0xe1   :  { %v5902_v45 = vpop.f32.mrf.mxu0  ;;  %4544 = vmatmul.mubr.msk.bf16.gmra.mxu0 %vm639_vm1, %v5182_v39 }
  0xe2   :  { %v5905_v46 = vpack.c.bf16 %v1106_v44, %v1104_v60  ;;  %1055 = vmatprep.mubr.bf16.mxu0 %v6956_v0  ;;  %2692 = vperm.xlu0 %5153, %v5636_v4   ;;  %v5931_v52 = vpop.permute.xlu0 %262  ;;  %v1744_v44 = vld [vmem:[%s6951_s4] sm:$0xff] }
  0xe3   :  { %2697 = vperm.xlu1 %5154, %v5631_v3   ;;  %v5910_v47 = vpop.f32.mrf.mxu0  ;;  %v5928_v4 = vpop.permute.xlu1 %267  ;;  %7022 = vst [vmem:[#allocation11_spill] sm:$0xff] %v5931_v52 }
  0xe4   :  { %7021 = vst [vmem:[#allocation10_spill] sm:$0xff] %v5928_v4 }
  0xe5   :  { %v5916_v50 = vpop.f32.mrf.mxu0 }
  0xe6   :  { %2682 = vperm.xlu0 %5153, %v5650_v8   ;;  %v5951_v15 = vpop.permute.xlu0 %252 }
  0xe7   :  { %2687 = vperm.xlu1 %5154, %v5645_v5   ;;  %v5923_v51 = vpop.f32.mrf.mxu0  ;;  %v5189_v5 = vld [vmem:[%s6950_s3 + $0x4] ss:$16 sps:$4 sm:$0xff]   ;;  %7024 = vst [vmem:[#allocation13_spill] sm:$0xff] %v5951_v15 }
  0xe8   :  { %2160 = vmatprep.mubr.bf16.mxu1 %v5189_v5 }
  0xe9   :  { %v5925_v3 = vpop.f32.mrf.mxu0  ;;  %4545 = vmatmul.mubr.msk.bf16.gmra.mxu0 %vm639_vm1, %v5183_v63 }
  0xea   :  { %1065 = vmatprep.mubr.bf16.mxu0 %v6956_v0  ;;  %2672 = vperm.xlu0 %5153, %v5665_v23   ;;  %v5949_v23 = vpop.permute.xlu1 %257  ;;  %v5964_v55 = vpop.permute.xlu0 %242 }
  0xeb   :  { %2677 = vperm.xlu1 %5154, %v5660_v18   ;;  %v5935_v6 = vpop.f32.mrf.mxu0  ;;  %7023 = vst [vmem:[#allocation12_spill] sm:$0xff] %v5949_v23 }
  0xed   :  { %v5940_v8 = vpop.f32.mrf.mxu0 }
  0xee   :  { %2662 = vperm.xlu0 %5153, %v5679_v33   ;;  %v5185_v33 = vld [vmem:[%s6949_s1 + $0xf0] sm:$0xff]   ;;  %v5962_v54 = vpop.permute.xlu1 %247  ;;  %v233_v37 = vpop.permute.xlu0 %232 }
  0xef   :  { %2667 = vperm.xlu1 %5154, %v5674_v28   ;;  %v5947_v18 = vpop.f32.mrf.mxu0 }
  0xf1   :  { %v5953_v20 = vpop.f32.mrf.mxu0  ;;  %4546 = vmatmul.mubr.msk.bf16.gmra.mxu0 %vm639_vm1, %v5184_v10 }
  0xf2   :  { %1075 = vmatprep.mubr.bf16.mxu0 %v6956_v0  ;;  %2652 = vperm.xlu0 %5153, %v5694_v48   ;;  %v5972_v57 = vpop.permute.xlu1 %237  ;;  %v5988_v10 = vpop.permute.xlu0 %382 }
  0xf3   :  { %2657 = vperm.xlu1 %5154, %v5689_v43   ;;  %v829_v24 = vpop.f32.mrf.mxu0  ;;  %v7027_v43 = vld [vmem:[#allocation5_spill] sm:$0xff]  ;;  %7029 = vst [vmem:[#allocation4_spill] sm:$0xff] %v5988_v10 }
  0xf5   :  { %v831_v28 = vpop.f32.mrf.mxu0 }
  0xf6   :  { %2642 = vperm.xlu0 %5153, %v7026_v34   ;;  %v5986_v5 = vpop.permute.xlu1 %387  ;;  %v6003_v23 = vpop.permute.xlu0 %372 }
  0xf7   :  { %2647 = vperm.xlu1 %5154, %v7025_v31   ;;  %v833_v35 = vpop.f32.mrf.mxu0  ;;  %7028 = vst [vmem:[#allocation3_spill] sm:$0xff] %v5986_v5  ;;  %7031 = vst [vmem:[#allocation14_spill] sm:$0xff] %v6003_v23  ;;  %v830_v23 = vadd.f32 %v829_v24, %v5801_v14 }
  0xf9   :  { %v837_v27 = vpop.f32.mrf.mxu0  ;;  %4547 = vmatmul.mubr.msk.bf16.gmra.mxu0 %vm639_vm1, %v5185_v33  ;;  %v1746_v33 = vld [vmem:[%s6951_s4 + $0x10] sm:$0xff] }
  0xfa   :  { %1085 = vmatprep.mubr.bf16.mxu0 %v6956_v0  ;;  %2632 = vperm.xlu0 %5153, %v7027_v43   ;;  %v5999_v5 = vpop.permute.xlu1 %377 }
  0xfb   :  { %2637 = vperm.xlu1 %5154, %v5718_v13   ;;  %v839_v48 = vpop.f32.mrf.mxu0  ;;  %v1745_v13 = vld [vmem:[%s6951_s4 + $0x8] sm:$0xff]  ;;  %7030 = vst [vmem:[#allocation5_spill] sm:$0xff] %v5999_v5 }
  0xfc   :  { %v840_v52 = vadd.f32 %v839_v48, %v5783_v9  ;;  %v832_v48 = vadd.f32 %v831_v28, %v5806_v16 }
  0xfd   :  { %v841_v39 = vpop.f32.mrf.mxu0 }
  0xfe   :  { %2622 = vperm.xlu0 %5153, %v5737_v53   ;;  %v1747_v53 = vld [vmem:[%s6951_s4 + $0x18] sm:$0xff]  ;;  %v1121_v40 = vmax.f32 %v840_v52, 0.0 }
  0xff   :  { %2627 = vperm.xlu1 %5154, %v5732_v58   ;;  %v843_v60 = vpop.f32.mrf.mxu0 }
 0x101   :  { %v847_v63 = vpop.f32.mrf.mxu0  ;;  %4548 = vmatmul.mubr.msk.bf16.gmra.mxu0 %vm639_vm1, %v5186_v41  ;;  %v844_v41 = vadd.f32 %v843_v60, %v5795_v12  ;;  %v834_v60 = vadd.f32 %v833_v35, %v5806_v16 }
 0x102   :  { %1750 = vperm.xlu0 %5153, %v1744_v44   ;;  %v848_v10 = vadd.f32 %v847_v63, %v5780_v7 }
 0x103   :  { %1755 = vperm.xlu1 %5154, %v1745_v13   ;;  %v849_v58 = vpop.f32.mrf.mxu0  ;;  %v1123_v42 = vmax.f32 %v844_v41, 0.0 }
 0x104   :  { %v850_v34 = vadd.f32 %v849_v58, %v5780_v7  ;;  %v842_v58 = vadd.f32 %v841_v39, %v5795_v12  ;;  %v838_v7 = vadd.f32 %v837_v27, %v5783_v9  ;;  %v1124_v63 = vmax.f32 %v848_v10, 0.0  ;;  %v6011_v39 = vpop.permute.xlu1 %367 }
 0x105   :  { %v851_v31 = vpop.f32.mrf.mxu0  ;;  %v824_v9 = vadd.f32 %v5947_v18, %v5816_v19  ;;  %v822_v18 = vadd.f32 %v5940_v8, %v5816_v19  ;;  %v1118_v10 = vmax.f32 %v832_v48, 0.0 }
 0x106   :  { %v852_v43 = vadd.f32 %v851_v31, %v5791_v11  ;;  %1760 = vperm.xlu0 %5153, %v1746_v33   ;;  %v1125_v4 = vmax.f32 %v850_v34, 0.0  ;;  %v1120_v52 = vmax.f32 %v838_v7, 0.0 }
 0x107   :  { %1765 = vperm.xlu1 %5154, %v1747_v53   ;;  %v853_v0 = vpop.f32.mrf.mxu0  ;;  %v1114_v7 = vmax.f32 %v822_v18, 0.0 }
 0x108   :  { %v854_v15 = vadd.f32 %v853_v0, %v5791_v11  ;;  %v1126_v31 = vmax.f32 %v852_v43, 0.0 }
 0x109   :  { %v857_v62 = vpop.f32.mrf.mxu0 }
 0x10a   :  { %v1127_v61 = vmax.f32 %v854_v15, 0.0  ;;  %3978 = vperm.xlu0 %5153, %v1744_v44   ;;  %v858_v0 = vadd.f32 %v857_v62, %v233_v37  ;;  %v1122_v15 = vmax.f32 %v842_v58, 0.0  ;;  %v6014_v44 = vpop.permute.xlu0 %362  ;;  %v1119_v62 = vmax.f32 %v834_v60, 0.0 }
 0x10b   :  { %3983 = vperm.xlu1 %5154, %v1745_v13   ;;  %v859_v5 = vpop.f32.mrf.mxu0  ;;  %v5038_v13 = vpack.c.bf16 %v1126_v31, %v1124_v63  ;;  %v812_v31 = vadd.f32 %v5916_v50, %v5826_v22 }
 0x10c   :  { %v5039_v11 = vpack.c.bf16 %v1127_v61, %v1125_v4  ;;  %v860_v34 = vadd.f32 %v859_v5, %v233_v37  ;;  %v828_v61 = vadd.f32 %v5953_v20, %v5801_v14  ;;  %v5037_v4 = vpack.c.bf16 %v1123_v42, %v1121_v40 }
 0x10d   :  { %v861_v12 = vpop.f32.mrf.mxu0  ;;  %v1128_v24 = vmax.f32 %v858_v0, 0.0  ;;  %v820_v37 = vadd.f32 %v5935_v6, %v5812_v17  ;;  %v1117_v5 = vmax.f32 %v830_v23, 0.0  ;;  %v5036_v20 = vpack.c.bf16 %v1122_v15, %v1120_v52 }
 0x10e   :  { %v862_v35 = vadd.f32 %v861_v12, %v5972_v57  ;;  %2128 = vmatprep.subr.bf16.mxu1 %v5039_v11  ;;  %3988 = vperm.xlu0 %5153, %v1746_v33   ;;  %v814_v42 = vadd.f32 %v5923_v51, %v5826_v22  ;;  %v818_v6 = vadd.f32 %v5925_v3, %v5812_v17  ;;  %v1116_v58 = vmax.f32 %v828_v61, 0.0 }
 0x10f   :  { %3993 = vperm.xlu1 %5154, %v1747_v53   ;;  %v863_v16 = vpop.f32.mrf.mxu0  ;;  %2129 = vmatpush1.bf16.msra.mxu1 %v5038_v13  ;;  %v1129_v53 = vmax.f32 %v860_v34, 0.0  ;;  %v5035_v41 = vpack.c.bf16 %v1119_v62, %v1117_v5  ;;  %v810_v23 = vadd.f32 %v5910_v47, %v5823_v21  ;;  %v1113_v60 = vmax.f32 %v820_v37, 0.0 }
 0x110   :  { %v1130_v28 = vmax.f32 %v862_v35, 0.0  ;;  %v864_v27 = vadd.f32 %v863_v16, %v5972_v57  ;;  %2130 = vmatprep.subr.bf16.mxu1 %v5037_v4  ;;  %v1115_v57 = vmax.f32 %v824_v9, 0.0  ;;  %v5034_v63 = vpack.c.bf16 %v1118_v10, %v1116_v58 }
 0x111   :  { %v867_v14 = vpop.f32.mrf.mxu0  ;;  %v804_v3 = vadd.f32 %v5900_v59, %v5838_v26  ;;  %v808_v11 = vadd.f32 %v5902_v45, %v5823_v21  ;;  %v1111_v48 = vmax.f32 %v814_v42, 0.0  ;;  %v1112_v15 = vmax.f32 %v818_v6, 0.0  ;;  %v6074_v42 = vpop.permute.xlu0 %352 }
 0x112   :  { %v6025_v33 = vpack.c.bf16 %v1130_v28, %v1128_v24  ;;  %v1131_v40 = vmax.f32 %v864_v27, 0.0  ;;  %v868_v8 = vadd.f32 %v867_v14, %v5964_v55  ;;  %v5033_v12 = vpack.c.bf16 %v1115_v57, %v1113_v60 }
 0x113   :  { %v869_v43 = vpop.f32.mrf.mxu0  ;;  %2131 = vmatpush1.bf16.msra.mxu1 %v5036_v20  ;;  %v1109_v35 = vmax.f32 %v810_v23, 0.0  ;;  %v1110_v13 = vmax.f32 %v812_v31, 0.0  ;;  %v5032_v26 = vpack.c.bf16 %v1114_v7, %v1112_v15  ;;  %v1107_v61 = vmax.f32 %v804_v3, 0.0 }
 0x114   :  { %v6031_v19 = vpack.c.bf16 %v1131_v40, %v1129_v53  ;;  %2132 = vmatprep.subr.bf16.mxu1 %v5035_v41  ;;  %v870_v0 = vadd.f32 %v869_v43, %v5964_v55  ;;  %v1132_v22 = vmax.f32 %v868_v8, 0.0  ;;  %v800_v55 = vadd.f32 %v5885_v56, %v5834_v25 }
 0x115   :  { %v871_v51 = vpop.f32.mrf.mxu0  ;;  %v5031_v16 = vpack.c.bf16 %v1111_v48, %v1109_v35  ;;  %v1108_v4 = vmax.f32 %v808_v11, 0.0  ;;  %v6078_v41 = vpop.permute.xlu0 %342 }
 0x116   :  { %v872_v17 = vadd.f32 %v871_v51, %v5962_v54  ;;  %v1133_v59 = vmax.f32 %v870_v0, 0.0  ;;  %v1105_v52 = vmax.f32 %v800_v55, 0.0 }
 0x117   :  { %v873_v47 = vpop.f32.mrf.mxu0  ;;  %2133 = vmatpush1.bf16.msra.mxu1 %v5034_v63  ;;  %v5030_v56 = vpack.c.bf16 %v1110_v13, %v1108_v4 }
 0x118   :  { %v1134_v50 = vmax.f32 %v872_v17, 0.0  ;;  %v874_v34 = vadd.f32 %v873_v47, %v5962_v54  ;;  %2134 = vmatprep.subr.bf16.mxu1 %v5033_v12  ;;  %v5029_v28 = vpack.c.bf16 %v1107_v61, %v1105_v52 }
 0x119   :  { %v6047_v9 = vpop.f32.mrf.mxu0  ;;  %v6082_v8 = vpop.permute.xlu0 %332 }
 0x11a   :  { %v6049_v21 = vpack.c.bf16 %v1134_v50, %v1132_v22  ;;  %v1135_v45 = vmax.f32 %v874_v34, 0.0  ;;  %v7032_v34 = vld [vmem:[#allocation6_spill] sm:$0xff] }
 0x11b   :  { %v6051_v62 = vpop.f32.mrf.mxu0  ;;  %2135 = vmatpush1.bf16.msra.mxu1 %v5032_v26 }
 0x11c   :  { %v6053_v54 = vpack.c.bf16 %v1135_v45, %v1133_v59  ;;  %2136 = vmatprep.subr.bf16.mxu1 %v5031_v16 }
 0x11d   :  { %v6055_v25 = vpop.f32.mrf.mxu0  ;;  %v6086_v51 = vpop.permute.xlu0 %322 }
 0x11f   :  { %v6057_v24 = vpop.f32.mrf.mxu0  ;;  %2137 = vmatpush1.bf16.msra.mxu1 %v5030_v56 }
 0x120   :  { %2138 = vmatprep.subr.bf16.mxu1 %v5029_v28 }
 0x121   :  { %v6059_v27 = vpop.f32.mrf.mxu0  ;;  %v313_v59 = vpop.permute.xlu0 %312 }
 0x123   :  { %v6061_v37 = vpop.f32.mrf.mxu0  ;;  %2139 = vmatpush1.bf16.msra.mxu1 %v5905_v46 }
 0x124   :  { %2140 = vmatprep.subr.bf16.mxu1 %v5888_v30  ;;  %v6076_v30 = vpop.permute.xlu1 %357 }
 0x125   :  { %v6065_v18 = vpop.f32.mrf.mxu0 }
 0x127   :  { %v893_v5 = vpop.f32.mrf.mxu0  ;;  %2141 = vmatpush1.bf16.msra.mxu1 %v5880_v36 }
 0x128   :  { %2142 = vmatprep.subr.bf16.mxu1 %v5868_v2  ;;  %v6080_v2 = vpop.permute.xlu1 %347 }
 0x129   :  { %v6069_v10 = vpop.f32.mrf.mxu0 }
 0x12b   :  { %v899_v14 = vpop.f32.mrf.mxu0  ;;  %2143 = vmatpush1.bf16.msra.mxu1 %v5861_v38 }
 0x12c   :  { %v6084_v23 = vpop.permute.xlu1 %337 }
 0x12d   :  { %v6072_v20 = vpop.f32.mrf.mxu0 }
 0x12f   :  { %v903_v53 = vpop.f32.mrf.mxu0 }
 0x130   :  { %v6091_v3 = vpop.permute.xlu1 %327 }
 0x131   :  { %v907_v40 = vpop.f32.mrf.mxu0 }
 0x133   :  { %v909_v46 = vpop.f32.mrf.mxu0 }
 0x135   :  { %v911_v57 = vpop.f32.mrf.mxu0 }
 0x137   :  { %v913_v43 = vpop.f32.mrf.mxu0 }
 0x138   :  { %v914_v55 = vadd.f32 %v913_v43, %v7032_v34 }
 0x139   :  { %v917_v36 = vpop.f32.mrf.mxu0 }
 0x13a   :  { %v918_v45 = vadd.f32 %v917_v36, %v5877_v32 }
 0x13b   :  { %v919_v6 = vpop.f32.mrf.mxu0 }
 0x13c   :  { %v920_v47 = vadd.f32 %v919_v6, %v5877_v32  ;;  %v7034_v6 = vld [vmem:[#allocation8_spill] sm:$0xff]  ;;  %v7035_v32 = vld [vmem:[#allocation10_spill] sm:$0xff] }
 0x13d   :  { %v921_v58 = vpop.f32.mrf.mxu0  ;;  %v894_v36 = vadd.f32 %v893_v5, %v7035_v32 }
 0x13e   :  { %v922_v15 = vadd.f32 %v921_v58, %v5875_v29  ;;  %v1153_v52 = vmax.f32 %v920_v47, 0.0  ;;  %v912_v58 = vadd.f32 %v911_v57, %v7032_v34 }
 0x13f   :  { %v923_v38 = vpop.f32.mrf.mxu0 }
 0x140   :  { %v924_v63 = vadd.f32 %v923_v38, %v5875_v29  ;;  %v904_v29 = vadd.f32 %v903_v53, %v7034_v6  ;;  %v1154_v38 = vmax.f32 %v922_v15, 0.0  ;;  %v1150_v34 = vmax.f32 %v912_v58, 0.0 }
 0x141   :  { %v927_v31 = vpop.f32.mrf.mxu0 }
 0x142   :  { %v928_v11 = vadd.f32 %v927_v31, %v5864_v1  ;;  %v1155_v35 = vmax.f32 %v924_v63, 0.0 }
 0x143   :  { %v929_v60 = vpop.f32.mrf.mxu0 }
 0x144   :  { %v930_v0 = vadd.f32 %v929_v60, %v5864_v1  ;;  %v1156_v61 = vmax.f32 %v928_v11, 0.0  ;;  %v7033_v1 = vld [vmem:[#allocation7_spill] sm:$0xff]  ;;  %v1151_v60 = vmax.f32 %v914_v55, 0.0 }
 0x145   :  { %v931_v7 = vpop.f32.mrf.mxu0  ;;  %v910_v4 = vadd.f32 %v909_v46, %v7033_v1  ;;  %v908_v11 = vadd.f32 %v907_v40, %v7033_v1 }
 0x146   :  { %v932_v17 = vadd.f32 %v931_v7, %v5859_v49  ;;  %v1157_v13 = vmax.f32 %v930_v0, 0.0  ;;  %v5053_v7 = vpack.c.bf16 %v1155_v35, %v1153_v52  ;;  %v7038_v52 = vld [vmem:[#allocation12_spill] sm:$0xff] }
 0x147   :  { %v933_v48 = vpop.f32.mrf.mxu0  ;;  %v1149_v53 = vmax.f32 %v910_v4, 0.0 }
 0x148   :  { %v934_v12 = vadd.f32 %v933_v48, %v5859_v49  ;;  %v1158_v22 = vmax.f32 %v932_v17, 0.0  ;;  %v318_v49 = vpop.permute.xlu1 %317  ;;  %v7036_v17 = vld [vmem:[#allocation9_spill] sm:$0xff]  ;;  %v1152_v48 = vmax.f32 %v918_v45, 0.0 }
 0x149   :  { %v937_v50 = vpop.f32.mrf.mxu0  ;;  %v900_v46 = vadd.f32 %v899_v14, %v7036_v17  ;;  %v5051_v5 = vpack.c.bf16 %v1151_v60, %v1149_v53 }
 0x14a   :  { %v1159_v26 = vmax.f32 %v934_v12, 0.0  ;;  %v938_v28 = vadd.f32 %v937_v50, %v313_v59  ;;  %v5054_v43 = vpack.c.bf16 %v1158_v22, %v1156_v61  ;;  %v902_v22 = vadd.f32 %v6072_v20, %v7034_v6  ;;  %v7037_v61 = vld [vmem:[#allocation11_spill] sm:$0xff] }
 0x14b   :  { %v939_v16 = vpop.f32.mrf.mxu0  ;;  %v1147_v50 = vmax.f32 %v904_v29, 0.0  ;;  %v5052_v55 = vpack.c.bf16 %v1154_v38, %v1152_v48  ;;  %v1145_v1 = vmax.f32 %v900_v46, 0.0  ;;  %v1143_v29 = vmax.f32 %v894_v36, 0.0 }
 0x14c   :  { %v5055_v56 = vpack.c.bf16 %v1159_v26, %v1157_v13  ;;  %v940_v63 = vadd.f32 %v939_v16, %v313_v59  ;;  %v1160_v12 = vmax.f32 %v938_v28, 0.0  ;;  %v898_v26 = vadd.f32 %v6069_v10, %v7036_v17 }
 0x14d   :  { %v941_v31 = vpop.f32.mrf.mxu0  ;;  %v1148_v59 = vmax.f32 %v908_v11, 0.0  ;;  %v890_v16 = vadd.f32 %v6061_v37, %v7037_v61  ;;  %v892_v28 = vadd.f32 %v6065_v18, %v7035_v32  ;;  %v5049_v58 = vpack.c.bf16 %v1147_v50, %v1145_v1 }
 0x14e   :  { %v942_v0 = vadd.f32 %v941_v31, %v318_v49  ;;  %2144 = vmatprep.subr.bf16.mxu1 %v5055_v56  ;;  %v1161_v13 = vmax.f32 %v940_v63, 0.0  ;;  %v884_v56 = vadd.f32 %v6057_v24, %v7038_v52  ;;  %v888_v60 = vadd.f32 %v6059_v27, %v7037_v61 }
 0x14f   :  { %v943_v47 = vpop.f32.mrf.mxu0  ;;  %2145 = vmatpush2.bf16.msra.mxu1 %v5054_v43  ;;  %v5050_v10 = vpack.c.bf16 %v1150_v34, %v1148_v59  ;;  %v7039_v43 = vld [vmem:[#allocation13_spill] sm:$0xff]  ;;  %v1141_v63 = vmax.f32 %v890_v16, 0.0  ;;  %v1142_v17 = vmax.f32 %v892_v28, 0.0 }
 0x150   :  { %v1162_v57 = vmax.f32 %v942_v0, 0.0  ;;  %v944_v15 = vadd.f32 %v943_v47, %v318_v49  ;;  %2146 = vmatprep.subr.bf16.mxu1 %v5053_v7  ;;  %v1146_v49 = vmax.f32 %v902_v22, 0.0  ;;  %v880_v31 = vadd.f32 %v6051_v62, %v7039_v43 }
 0x151   :  { %v947_v35 = vpop.f32.mrf.mxu0  ;;  %v1144_v7 = vmax.f32 %v898_v26, 0.0  ;;  %v1139_v36 = vmax.f32 %v884_v56, 0.0  ;;  %v5047_v62 = vpack.c.bf16 %v1143_v29, %v1141_v63  ;;  %v878_v53 = vadd.f32 %v6047_v9, %v7039_v43  ;;  %v5195_v29 = vld [vmem:[%s6950_s3 + $0xc] ss:$16 sps:$4 sm:$0xff]  }
 0x152   :  { %v6107_v14 = vpack.c.bf16 %v1162_v57, %v1160_v12  ;;  %v1163_v40 = vmax.f32 %v944_v15, 0.0  ;;  %v948_v4 = vadd.f32 %v947_v35, %v6086_v51  ;;  %v1140_v12 = vmax.f32 %v888_v60, 0.0 }
 0x153   :  { %v949_v45 = vpop.f32.mrf.mxu0  ;;  %2147 = vmatpush2.bf16.msra.mxu1 %v5052_v55  ;;  %v5048_v46 = vpack.c.bf16 %v1146_v49, %v1144_v7  ;;  %v1136_v55 = vmax.f32 %v878_v53, 0.0  ;;  %v7048_v53 = vld [vmem:[#allocation3_spill] sm:$0xff] }
 0x154   :  { %v6113_v20 = vpack.c.bf16 %v1163_v40, %v1161_v13  ;;  %2148 = vmatprep.subr.bf16.mxu1 %v5051_v5  ;;  %v950_v38 = vadd.f32 %v949_v45, %v6086_v51  ;;  %v1164_v18 = vmax.f32 %v948_v4, 0.0  ;;  %v882_v51 = vadd.f32 %v6055_v25, %v7038_v52  ;;  %v6143_v5 = vpop.permute.xlu0 %462  ;;  %v6147_v40 = vpop.permute.xlu1 %467  ;;  %v5187_v4 = vld [vmem:[%s6950_s3] ss:$16 sps:$4 sm:$0xff]  }
 0x155   :  { %v951_v6 = vpop.f32.mrf.mxu0  ;;  %v5046_v22 = vpack.c.bf16 %v1142_v17, %v1140_v12 }
 0x156   :  { %v952_v37 = vadd.f32 %v951_v6, %v6091_v3  ;;  %v1165_v48 = vmax.f32 %v950_v38, 0.0  ;;  %v1138_v25 = vmax.f32 %v882_v51, 0.0 }
 0x157   :  { %v953_v24 = vpop.f32.mrf.mxu0  ;;  %2149 = vmatpush2.bf16.msra.mxu1 %v5050_v10  ;;  %v5192_v10 = vld [vmem:[%s6950_s3 + $0x20] ss:$16 sps:$4 sm:$0xff]  }
 0x158   :  { %v1166_v0 = vmax.f32 %v952_v37, 0.0  ;;  %v954_v32 = vadd.f32 %v953_v24, %v6091_v3  ;;  %2150 = vmatprep.subr.bf16.mxu1 %v5049_v58  ;;  %v1137_v3 = vmax.f32 %v880_v31, 0.0  ;;  %v5044_v9 = vpack.c.bf16 %v1138_v25, %v1136_v55  ;;  %v6154_v45 = vpop.permute.xlu0 %452  ;;  %v6160_v16 = vpop.permute.xlu1 %457 }
 0x159   :  { %v6129_v11 = vpop.f32.mrf.mxu0 }
 0x15a   :  { %v6131_v27 = vpack.c.bf16 %v1166_v0, %v1164_v18  ;;  %v1167_v47 = vmax.f32 %v954_v32, 0.0  ;;  %v5045_v34 = vpack.c.bf16 %v1139_v36, %v1137_v3 }
 0x15b   :  { %v6135_v57 = vpop.f32.mrf.mxu0  ;;  %2151 = vmatpush2.bf16.msra.mxu1 %v5048_v46  ;;  %v7046_v46 = vld [vmem:[#allocation5_spill] sm:$0xff] }
 0x15c   :  { %v6137_v15 = vpack.c.bf16 %v1167_v47, %v1165_v48  ;;  %2152 = vmatprep.subr.bf16.mxu1 %v5047_v62  ;;  %v6173_v56 = vpop.permute.xlu0 %442  ;;  %v7047_v48 = vld [vmem:[#allocation4_spill] sm:$0xff] }
 0x15d   :  { %v6139_v50 = vpop.f32.mrf.mxu0 }
 0x15f   :  { %v6141_v35 = vpop.f32.mrf.mxu0  ;;  %2153 = vmatpush2.bf16.msra.mxu1 %v5046_v22 }
 0x160   :  { %2154 = vmatprep.subr.bf16.mxu1 %v5045_v34  ;;  %v6182_v6 = vpop.permute.xlu0 %432  ;;  %v7049_v34 = vld [vmem:[#allocation14_spill] sm:$0xff] }
 0x161   :  { %v6145_v13 = vpop.f32.mrf.mxu0  ;;  %7040 = vst [vmem:[#allocation6_spill] sm:$0xff] %v6182_v6 }
 0x163   :  { %v6149_v26 = vpop.f32.mrf.mxu0  ;;  %2155 = vmatpush2.bf16.msra.mxu1 %v5044_v9 }
 0x164   :  { %2156 = vmatprep.subr.bf16.mxu1 %v6053_v54  ;;  %v5190_v54 = vld [vmem:[%s6950_s3 + $0x24] ss:$16 sps:$4 sm:$0xff]   ;;  %v6189_v43 = vpop.permute.xlu0 %422 }
 0x165   :  { %v6152_v59 = vpop.f32.mrf.mxu0  ;;  %7042 = vst [vmem:[#allocation8_spill] sm:$0xff] %v6189_v43 }
 0x167   :  { %v6156_v61 = vpop.f32.mrf.mxu0  ;;  %2157 = vmatpush2.bf16.msra.mxu1 %v6049_v21 }
 0x168   :  { %2158 = vmatprep.subr.bf16.mxu1 %v6031_v19  ;;  %v6177_v19 = vpop.permute.xlu1 %447  ;;  %v6193_v63 = vpop.permute.xlu0 %412 }
 0x169   :  { %v6162_v1 = vpop.f32.mrf.mxu0  ;;  %7044 = vst [vmem:[#allocation9_spill] sm:$0xff] %v6193_v63 }
 0x16b   :  { %v6167_v52 = vpop.f32.mrf.mxu0  ;;  %2159 = vmatpush2.bf16.msra.mxu1 %v6025_v33 }
 0x16c   :  { %v6187_v58 = vpop.permute.xlu1 %437  ;;  %v6197_v36 = vpop.permute.xlu0 %402 }
 0x16d   :  { %v6175_v21 = vpop.f32.mrf.mxu0  ;;  %7041 = vst [vmem:[#allocation7_spill] sm:$0xff] %v6187_v58 }
 0x16e   :  { %2161 = vmatmul.mubr.bf16.vlgmr.msra.gmra.mxu1 %v5187_v4 }
 0x16f   :  { %v983_v28 = vpop.f32.mrf.mxu0  ;;  %2170 = vmatprep.mubr.bf16.mxu1 %v5190_v54 }
 0x170   :  { %v6191_v60 = vpop.permute.xlu1 %427 }
 0x171   :  { %v987_v49 = vpop.f32.mrf.mxu0  ;;  %7043 = vst [vmem:[#allocation10_spill] sm:$0xff] %v6191_v60 }
 0x173   :  { %v989_v33 = vpop.f32.mrf.mxu0 }
 0x174   :  { %v6195_v0 = vpop.permute.xlu1 %417 }
 0x175   :  { %v991_v38 = vpop.f32.mrf.mxu0  ;;  %7045 = vst [vmem:[#allocation11_spill] sm:$0xff] %v6195_v0  ;;  %v393_v0 = vpop.permute.xlu0 %392 }
 0x176   :  { %2171 = vmatmul.mubr.bf16.gmra.mxu1 %v5192_v10 }
 0x177   :  { %v993_v37 = vpop.f32.mrf.mxu0  ;;  %2213 = vmatprep.mubr.bf16.mxu1 %v5195_v29 }
 0x178   :  { %v6202_v3 = vpop.permute.xlu1 %407  ;;  %v994_v29 = vadd.f32 %v993_v37, %v6011_v39 }
 0x179   :  { %v997_v31 = vpop.f32.mrf.mxu0 }
 0x17b   :  { %v999_v7 = vpop.f32.mrf.mxu0 }
 0x17c   :  { %v1000_v55 = vadd.f32 %v999_v7, %v7049_v34 }
 0x17d   :  { %v1001_v24 = vpop.f32.mrf.mxu0 }
 0x17e   :  { %v1002_v4 = vadd.f32 %v1001_v24, %v7046_v46  ;;  %v984_v24 = vadd.f32 %v983_v28, %v6076_v30 }
 0x17f   :  { %v1003_v18 = vpop.f32.mrf.mxu0 }
 0x180   :  { %v1004_v62 = vadd.f32 %v1003_v18, %v7046_v46  ;;  %v992_v46 = vadd.f32 %v991_v38, %v6011_v39 }
 0x181   :  { %v1007_v32 = vpop.f32.mrf.mxu0 }
 0x182   :  { %v1008_v25 = vadd.f32 %v1007_v32, %v7047_v48  ;;  %v1187_v18 = vmax.f32 %v1004_v62, 0.0  ;;  %v990_v32 = vadd.f32 %v989_v33, %v6014_v44  ;;  %v980_v33 = vadd.f32 %v6167_v52, %v6074_v42 }
 0x183   :  { %v1009_v51 = vpop.f32.mrf.mxu0 }
 0x184   :  { %v1010_v47 = vadd.f32 %v1009_v51, %v7047_v48  ;;  %v1188_v43 = vmax.f32 %v1008_v25, 0.0  ;;  %v1185_v48 = vmax.f32 %v1000_v55, 0.0  ;;  %v1181_v39 = vmax.f32 %v990_v32, 0.0 }
 0x185   :  { %v1011_v17 = vpop.f32.mrf.mxu0  ;;  %v1182_v55 = vmax.f32 %v992_v46, 0.0  ;;  %v968_v46 = vadd.f32 %v6145_v13, %v6078_v41 }
 0x186   :  { %v1012_v12 = vadd.f32 %v1011_v17, %v7048_v53  ;;  %v1189_v63 = vmax.f32 %v1010_v47, 0.0  ;;  %v998_v17 = vadd.f32 %v997_v31, %v7049_v34  ;;  %v1183_v47 = vmax.f32 %v994_v29, 0.0 }
 0x187   :  { %v1013_v22 = vpop.f32.mrf.mxu0  ;;  %v974_v31 = vadd.f32 %v6156_v61, %v6080_v2 }
 0x188   :  { %v1014_v9 = vadd.f32 %v1013_v22, %v7048_v53  ;;  %v1190_v54 = vmax.f32 %v1012_v12, 0.0  ;;  %v398_v53 = vpop.permute.xlu1 %397  ;;  %v1186_v12 = vmax.f32 %v1002_v4, 0.0  ;;  %v5069_v22 = vpack.c.bf16 %v1187_v18, %v1185_v48 }
 0x189   :  { %v1017_v10 = vpop.f32.mrf.mxu0  ;;  %v1184_v25 = vmax.f32 %v998_v17, 0.0  ;;  %v1177_v18 = vmax.f32 %v980_v33, 0.0  ;;  %v972_v17 = vadd.f32 %v6152_v59, %v6080_v2  ;;  %v1175_v48 = vmax.f32 %v974_v31, 0.0 }
 0x18a   :  { %v1191_v51 = vmax.f32 %v1014_v9, 0.0  ;;  %v1018_v6 = vadd.f32 %v1017_v10, %v393_v0  ;;  %v5070_v37 = vpack.c.bf16 %v1190_v54, %v1188_v43  ;;  %v5067_v54 = vpack.c.bf16 %v1183_v47, %v1181_v39 }
 0x18b   :  { %v1019_v60 = vpop.f32.mrf.mxu0  ;;  %v5068_v4 = vpack.c.bf16 %v1186_v12, %v1184_v25  ;;  %v1172_v25 = vmax.f32 %v968_v46, 0.0 }
 0x18c   :  { %v5071_v7 = vpack.c.bf16 %v1191_v51, %v1189_v63  ;;  %v1020_v9 = vadd.f32 %v1019_v60, %v393_v0  ;;  %v988_v63 = vadd.f32 %v987_v49, %v6014_v44  ;;  %v1192_v38 = vmax.f32 %v1018_v6, 0.0 }
 0x18d   :  { %v1021_v62 = vpop.f32.mrf.mxu0  ;;  %v982_v60 = vadd.f32 %v6175_v21, %v6076_v30  ;;  %v1179_v0 = vmax.f32 %v984_v24, 0.0  ;;  %v978_v49 = vadd.f32 %v6162_v1, %v6074_v42  ;;  %v964_v51 = vadd.f32 %v6141_v35, %v6084_v23 }
 0x18e   :  { %v1022_v58 = vadd.f32 %v1021_v62, %v398_v53  ;;  %2181 = vmatprep.subr.bf16.mxu1 %v5071_v7  ;;  %v1193_v10 = vmax.f32 %v1020_v9, 0.0  ;;  %v1180_v29 = vmax.f32 %v988_v63, 0.0  ;;  %v960_v24 = vadd.f32 %v6135_v57, %v6082_v8 }
 0x18f   :  { %v1023_v28 = vpop.f32.mrf.mxu0  ;;  %2182 = vmatpush1.bf16.msra.mxu1 %v5070_v37  ;;  %v1178_v32 = vmax.f32 %v982_v60, 0.0  ;;  %v5065_v7 = vpack.c.bf16 %v1179_v0, %v1177_v18  ;;  %v1176_v12 = vmax.f32 %v978_v49, 0.0  ;;  %v1171_v47 = vmax.f32 %v964_v51, 0.0 }
 0x190   :  { %v1194_v43 = vmax.f32 %v1022_v58, 0.0  ;;  %v1024_v34 = vadd.f32 %v1023_v28, %v398_v53  ;;  %2183 = vmatprep.subr.bf16.mxu1 %v5069_v22  ;;  %v970_v58 = vadd.f32 %v6149_v26, %v6078_v41  ;;  %v5066_v42 = vpack.c.bf16 %v1182_v55, %v1180_v29 }
 0x191   :  { %v1027_v61 = vpop.f32.mrf.mxu0  ;;  %v1174_v22 = vmax.f32 %v972_v17, 0.0  ;;  %v5064_v9 = vpack.c.bf16 %v1178_v32, %v1176_v12  ;;  %v958_v63 = vadd.f32 %v6129_v11, %v6082_v8 }
 0x192   :  { %v6220_v52 = vpack.c.bf16 %v1194_v43, %v1192_v38  ;;  %v1195_v44 = vmax.f32 %v1024_v34, 0.0  ;;  %v1028_v21 = vadd.f32 %v1027_v61, %v6197_v36  ;;  %v1173_v37 = vmax.f32 %v970_v58, 0.0 }
 0x193   :  { %v1029_v6 = vpop.f32.mrf.mxu0  ;;  %2184 = vmatpush1.bf16.msra.mxu1 %v5068_v4  ;;  %v1168_v34 = vmax.f32 %v958_v63, 0.0 }
 0x194   :  { %v6226_v30 = vpack.c.bf16 %v1195_v44, %v1193_v10  ;;  %2185 = vmatprep.subr.bf16.mxu1 %v5067_v54  ;;  %v1030_v53 = vadd.f32 %v1029_v6, %v6197_v36  ;;  %v1196_v2 = vmax.f32 %v1028_v21, 0.0  ;;  %v962_v36 = vadd.f32 %v6139_v50, %v6084_v23 }
 0x195   :  { %v1031_v1 = vpop.f32.mrf.mxu0  ;;  %v5063_v57 = vpack.c.bf16 %v1175_v48, %v1173_v37  ;;  %v5062_v50 = vpack.c.bf16 %v1174_v22, %v1172_v25  ;;  %v7051_v25 = vld [vmem:[#allocation6_spill] sm:$0xff] }
 0x196   :  { %v1032_v26 = vadd.f32 %v1031_v1, %v6202_v3  ;;  %v1197_v33 = vmax.f32 %v1030_v53, 0.0  ;;  %v1170_v23 = vmax.f32 %v962_v36, 0.0 }
 0x197   :  { %v1033_v35 = vpop.f32.mrf.mxu0  ;;  %2186 = vmatpush1.bf16.msra.mxu1 %v5066_v42 }
 0x198   :  { %v1198_v59 = vmax.f32 %v1032_v26, 0.0  ;;  %v1034_v62 = vadd.f32 %v1033_v35, %v6202_v3  ;;  %2187 = vmatprep.subr.bf16.mxu1 %v5065_v7  ;;  %v1169_v3 = vmax.f32 %v960_v24, 0.0  ;;  %v5060_v0 = vpack.c.bf16 %v1170_v23, %v1168_v34 }
 0x199   :  { %v6242_v31 = vpop.f32.mrf.mxu0 }
 0x19a   :  { %v6244_v41 = vpack.c.bf16 %v1198_v59, %v1196_v2  ;;  %v1199_v13 = vmax.f32 %v1034_v62, 0.0  ;;  %v5061_v43 = vpack.c.bf16 %v1171_v47, %v1169_v3 }
 0x19b   :  { %v6248_v28 = vpop.f32.mrf.mxu0  ;;  %2188 = vmatpush1.bf16.msra.mxu1 %v5064_v9 }
 0x19c   :  { %v6250_v39 = vpack.c.bf16 %v1199_v13, %v1197_v33  ;;  %2189 = vmatprep.subr.bf16.mxu1 %v5063_v57 }
 0x19d   :  { %v6252_v38 = vpop.f32.mrf.mxu0 }
 0x19f   :  { %v6254_v60 = vpop.f32.mrf.mxu0  ;;  %2190 = vmatpush1.bf16.msra.mxu1 %v5062_v50 }
 0x1a0   :  { %2191 = vmatprep.subr.bf16.mxu1 %v5061_v43 }
 0x1a1   :  { %v6256_v8 = vpop.f32.mrf.mxu0 }
 0x1a3   :  { %v6258_v11 = vpop.f32.mrf.mxu0  ;;  %2192 = vmatpush1.bf16.msra.mxu1 %v5060_v0 }
 0x1a4   :  { %2193 = vmatprep.subr.bf16.mxu1 %v6137_v15 }
 0x1a5   :  { %v6261_v55 = vpop.f32.mrf.mxu0 }
 0x1a7   :  { %v1053_v4 = vpop.f32.mrf.mxu0  ;;  %2194 = vmatpush1.bf16.msra.mxu1 %v6131_v27 }
 0x1a8   :  { %2195 = vmatprep.subr.bf16.mxu1 %v6113_v20 }
 0x1a9   :  { %v1057_v61 = vpop.f32.mrf.mxu0 }
 0x1ab   :  { %v1059_v54 = vpop.f32.mrf.mxu0  ;;  %2196 = vmatpush1.bf16.msra.mxu1 %v6107_v14 }
 0x1ad   :  { %v1061_v10 = vpop.f32.mrf.mxu0 }
 0x1af   :  { %v1063_v44 = vpop.f32.mrf.mxu0 }
 0x1b1   :  { %v1067_v49 = vpop.f32.mrf.mxu0 }
 0x1b2   :  { %v1068_v13 = vadd.f32 %v1067_v49, %v6173_v56 }
 0x1b3   :  { %v1069_v29 = vpop.f32.mrf.mxu0 }
 0x1b4   :  { %v1070_v62 = vadd.f32 %v1069_v29, %v6173_v56 }
 0x1b5   :  { %v1071_v6 = vpop.f32.mrf.mxu0 }
 0x1b6   :  { %v1072_v47 = vadd.f32 %v1071_v6, %v6177_v19  ;;  %v1213_v3 = vmax.f32 %v1070_v62, 0.0  ;;  %v1212_v6 = vmax.f32 %v1068_v13, 0.0  ;;  %v5199_v62 = vld [vmem:[%s6949_s1] sm:$0xff]  }
 0x1b7   :  { %v1073_v58 = vpop.f32.mrf.mxu0 }
 0x1b8   :  { %v1074_v46 = vadd.f32 %v1073_v58, %v6177_v19  ;;  %v1214_v50 = vmax.f32 %v1072_v47, 0.0  ;;  %v7052_v19 = vld [vmem:[#allocation10_spill] sm:$0xff]  ;;  %v7053_v58 = vld [vmem:[#allocation8_spill] sm:$0xff] }
 0x1b9   :  { %v1077_v18 = vpop.f32.mrf.mxu0  ;;  %v1054_v34 = vadd.f32 %v1053_v4, %v7052_v19  ;;  %v1050_v56 = vadd.f32 %v6258_v11, %v7053_v58 }
 0x1ba   :  { %v1078_v2 = vadd.f32 %v1077_v18, %v6154_v45 }
 0x1bb   :  { %v1079_v21 = vpop.f32.mrf.mxu0  ;;  %v1207_v4 = vmax.f32 %v1054_v34, 0.0  ;;  %v5204_v34 = vld [vmem:[%s6949_s1 + $0x28] sm:$0xff]  }
 0x1bc   :  { %v1080_v7 = vadd.f32 %v1079_v21, %v6154_v45  ;;  %v1216_v63 = vmax.f32 %v1078_v2, 0.0  ;;  %v1060_v45 = vadd.f32 %v1059_v54, %v7051_v25  ;;  %v1052_v54 = vadd.f32 %v6261_v55, %v7052_v19  ;;  %v7054_v21 = vld [vmem:[#allocation11_spill] sm:$0xff] }
 0x1bd   :  { %v1081_v15 = vpop.f32.mrf.mxu0  ;;  %v1042_v55 = vadd.f32 %v6252_v38, %v7054_v21  ;;  %v4718_v38 = vld.sshfl [vmem:[%s6948_s0 + $0x4] sm:$0x33 pattern:$0x76325410]  ;;  %v7056_v2 = vmov 0  }
 0x1be   :  { %v1082_v26 = vadd.f32 %v1081_v15, %v6160_v16  ;;  %v1217_v36 = vmax.f32 %v1080_v7, 0.0  ;;  %v1209_v49 = vmax.f32 %v1060_v45, 0.0  ;;  %v1044_v15 = vadd.f32 %v6254_v60, %v7054_v21  ;;  %v5207_v21 = vld [vmem:[%s6949_s1 + $0x40] sm:$0xff]  }
 0x1bf   :  { %v1083_v51 = vpop.f32.mrf.mxu0  ;;  %v1202_v7 = vmax.f32 %v1042_v55, 0.0 }
 0x1c0   :  { %v1084_v27 = vadd.f32 %v1083_v51, %v6160_v16  ;;  %v1218_v22 = vmax.f32 %v1082_v26, 0.0  ;;  %v1215_v16 = vmax.f32 %v1074_v46, 0.0  ;;  %v5193_v46 = vld [vmem:[%s6950_s3 + $0x8] ss:$16 sps:$4 sm:$0xff]  }
 0x1c1   :  { %v1087_v17 = vpop.f32.mrf.mxu0 }
 0x1c2   :  { %v1088_v14 = vadd.f32 %v1087_v17, %v6143_v5  ;;  %v1219_v12 = vmax.f32 %v1084_v27, 0.0  ;;  %v5084_v43 = vpack.c.bf16 %v1218_v22, %v1216_v63  ;;  %v5083_v29 = vpack.c.bf16 %v1215_v16, %v1213_v3  ;;  %v5200_v22 = vld [vmem:[%s6949_s1 + $0x8] sm:$0xff]   ;;  %v5201_v16 = vld [vmem:[%s6949_s1 + $0x10] sm:$0xff]   ;;  %v5202_v63 = vld [vmem:[%s6949_s1 + $0x18] sm:$0xff]  }
 0x1c3   :  { %v1089_v32 = vpop.f32.mrf.mxu0  ;;  %v1206_v27 = vmax.f32 %v1052_v54, 0.0 }
 0x1c4   :  { %v1090_v20 = vadd.f32 %v1089_v32, %v6143_v5  ;;  %v1220_v59 = vmax.f32 %v1088_v14, 0.0  ;;  %v5085_v33 = vpack.c.bf16 %v1219_v12, %v1217_v36  ;;  %v7055_v32 = vld [vmem:[#allocation9_spill] sm:$0xff]  ;;  %v5196_v12 = vld [vmem:[%s6950_s3 + $0x2c] ss:$16 sps:$4 sm:$0xff]  }
 0x1c5   :  { %v1091_v42 = vpop.f32.mrf.mxu0  ;;  %v1040_v11 = vadd.f32 %v6248_v28, %v7055_v32  ;;  %v1038_v60 = vadd.f32 %v6242_v31, %v7055_v32  ;;  %v2868_v31 = vcombine.high %v4718_v38, %v4718_v38 }
 0x1c6   :  { %v1092_v1 = vadd.f32 %v1091_v42, %v6147_v40  ;;  %v1221_v35 = vmax.f32 %v1090_v20, 0.0  ;;  %v1205_v42 = vmax.f32 %v1050_v56, 0.0 }
 0x1c7   :  { %v1093_v48 = vpop.f32.mrf.mxu0  ;;  %v1200_v28 = vmax.f32 %v1038_v60, 0.0  ;;  %v5211_v60 = vld [vmem:[%s6949_s1 + $0x60] sm:$0xff]  }
 0x1c8   :  { %v1094_v53 = vadd.f32 %v1093_v48, %v6147_v40  ;;  %v1222_v24 = vmax.f32 %v1092_v1, 0.0  ;;  %v7050_v40 = vld [vmem:[#allocation7_spill] sm:$0xff]  ;;  %v1203_v1 = vmax.f32 %v1044_v15, 0.0  ;;  %v5079_v14 = vpack.c.bf16 %v1207_v4, %v1205_v42 }
 0x1c9   :  { %v1064_v57 = vadd.f32 %v1063_v44, %v7050_v40  ;;  %v1062_v23 = vadd.f32 %v1061_v10, %v7050_v40  ;;  %v1058_v44 = vadd.f32 %v1057_v61, %v7051_v25  ;;  %v5082_v10 = vpack.c.bf16 %v1214_v50, %v1212_v6 }
 0x1ca   :  { %v1223_v37 = vmax.f32 %v1094_v53, 0.0  ;;  %v5086_v9 = vpack.c.bf16 %v1222_v24, %v1220_v59  ;;  %v1048_v61 = vadd.f32 %v6256_v8, %v7053_v58  ;;  %v1201_v8 = vmax.f32 %v1040_v11, 0.0  ;;  %v5209_v11 = vld [vmem:[%s6949_s1 + $0x50] sm:$0xff]  }
 0x1cb   :  { %v1211_v0 = vmax.f32 %v1064_v57, 0.0  ;;  %v1210_v18 = vmax.f32 %v1062_v23, 0.0  ;;  %v1208_v17 = vmax.f32 %v1058_v44, 0.0  ;;  %v5076_v24 = vpack.c.bf16 %v1202_v7, %v1200_v28  ;;  %v5203_v23 = vld [vmem:[%s6949_s1 + $0x20] sm:$0xff]   ;;  %v5205_v44 = vld [vmem:[%s6949_s1 + $0x30] sm:$0xff]  }
 0x1cc   :  { %v5087_v5 = vpack.c.bf16 %v1223_v37, %v1221_v35  ;;  %v1204_v48 = vmax.f32 %v1048_v61, 0.0  ;;  %v5077_v26 = vpack.c.bf16 %v1203_v1, %v1201_v8  ;;  %v2966_v35 = vsel %vm736_vm0, %v4718_v38, 0  ;;  %v5213_v38 = vld [vmem:[%s6949_s1 + $0x70] sm:$0xff]  }
 0x1cd   :  { %v5081_v51 = vpack.c.bf16 %v1211_v0, %v1209_v49  ;;  %v5080_v20 = vpack.c.bf16 %v1210_v18, %v1208_v17  ;;  %v5206_v49 = vld [vmem:[%s6949_s1 + $0x38] sm:$0xff]  }
 0x1ce   :  { %2197 = vmatprep.subr.bf16.mxu1 %v5087_v5  ;;  %v5078_v53 = vpack.c.bf16 %v1206_v27, %v1204_v48 }
 0x1cf   :  { %2198 = vmatpush2.bf16.msra.mxu1 %v5086_v9 }
 0x1d0   :  { %2199 = vmatprep.subr.bf16.mxu1 %v5085_v33 }
 0x1d3   :  { %2200 = vmatpush2.bf16.msra.mxu1 %v5084_v43 }
 0x1d4   :  { %2201 = vmatprep.subr.bf16.mxu1 %v5083_v29 }
 0x1d7   :  { %2202 = vmatpush2.bf16.msra.mxu1 %v5082_v10 }
 0x1d8   :  { %2203 = vmatprep.subr.bf16.mxu1 %v5081_v51  ;;  %v5208_v51 = vld [vmem:[%s6949_s1 + $0x48] sm:$0xff]  }
 0x1db   :  { %2204 = vmatpush2.bf16.msra.mxu1 %v5080_v20  ;;  %v5210_v20 = vld [vmem:[%s6949_s1 + $0x58] sm:$0xff]  }
 0x1dc   :  { %2205 = vmatprep.subr.bf16.mxu1 %v5079_v14 }
 0x1df   :  { %2206 = vmatpush2.bf16.msra.mxu1 %v5078_v53  ;;  %v5212_v53 = vld [vmem:[%s6949_s1 + $0x68] sm:$0xff]  }
 0x1e0   :  { %2207 = vmatprep.subr.bf16.mxu1 %v5077_v26 }
 0x1e3   :  { %2208 = vmatpush2.bf16.msra.mxu1 %v5076_v24 }
 0x1e4   :  { %2209 = vmatprep.subr.bf16.mxu1 %v6250_v39  ;;  %v6310_v39 = vpop.permute.xlu0 %2452 }
 0x1e7   :  { %2210 = vmatpush2.bf16.msra.mxu1 %v6244_v41 }
 0x1e8   :  { %2211 = vmatprep.subr.bf16.mxu1 %v6226_v30  ;;  %v6314_v30 = vpop.permute.xlu1 %2457  ;;  %v6316_v41 = vpop.permute.xlu0 %2442 }
 0x1eb   :  { %2212 = vmatpush2.bf16.msra.mxu1 %v6220_v52  ;;  %v5198_v52 = vld [vmem:[%s6950_s3 + $0x28] ss:$16 sps:$4 sm:$0xff]  }
 0x1ec   :  { %4719 = vmatprep.subr.msk.bf16.mxu1 %vm736_vm0, %v2868_v31  ;;  %v6321_v37 = vpop.permute.xlu1 %2447  ;;  %v6324_v59 = vpop.permute.xlu0 %2432 }
 0x1ee   :  { %2214 = vmatmul.mubr.bf16.vlgmr.msra.gmra.mxu1 %v5193_v46 }
 0x1ef   :  { %2223 = vmatprep.mubr.bf16.mxu1 %v5196_v12  ;;  %2986 = vmatpush1.bf16.msra.mxu1 %v2966_v35  ;;  %v5214_v12 = vld [vmem:[%s6949_s1 + $0x78] sm:$0xff]  }
 0x1f0   :  { %v6329_v36 = vpop.permute.xlu1 %2437  ;;  %v6331_v5 = vpop.permute.xlu0 %2422 }
 0x1f4   :  { %v6335_v47 = vpop.permute.xlu1 %2427  ;;  %v6340_v9 = vpop.permute.xlu0 %2412 }
 0x1f6   :  { %2224 = vmatmul.mubr.bf16.gmra.mxu1 %v5198_v52 }
 0x1f7   :  { %3003 = vmatprep.mubr.bf16.mxu1 %v7056_v2 }
 0x1f8   :  { %v6344_v40 = vpop.permute.xlu1 %2417  ;;  %v6346_v57 = vpop.permute.xlu0 %2402 }
 0x1fc   :  { %v6351_v33 = vpop.permute.xlu1 %2407  ;;  %v6355_v13 = vpop.permute.xlu0 %2392 }
 0x1fe   :  { %4720 = vmatmul.mubr.msk.bf16.vlgmr.msra.gmra.mxu1 %vm639_vm1, %v5199_v62 }
 0x1ff   :  { %3013 = vmatprep.mubr.bf16.mxu1 %v7056_v2 }
 0x200   :  { %v6360_v25 = vpop.permute.xlu1 %2397  ;;  %v6362_v45 = vpop.permute.xlu0 %2382 }
 0x204   :  { %v6366_v3 = vpop.permute.xlu1 %2387  ;;  %v6371_v50 = vpop.permute.xlu0 %2532 }
 0x206   :  { %4721 = vmatmul.mubr.msk.bf16.gmra.mxu1 %vm639_vm1, %v5200_v22  ;;  %v5215_v22 = vld [vmem:[%s6949_s1 + $0x80] sm:$0xff]  }
 0x207   :  { %3023 = vmatprep.mubr.bf16.mxu1 %v7056_v2 }
 0x208   :  { %v6375_v43 = vpop.permute.xlu1 %2537  ;;  %v6377_v19 = vpop.permute.xlu0 %2522 }
 0x20c   :  { %v6382_v0 = vpop.permute.xlu1 %2527  ;;  %v6386_v29 = vpop.permute.xlu0 %2512 }
 0x20e   :  { %4722 = vmatmul.mubr.msk.bf16.gmra.mxu1 %vm639_vm1, %v5201_v16 }
 0x20f   :  { %3033 = vmatprep.mubr.bf16.mxu1 %v7056_v2 }
 0x210   :  { %v6391_v6 = vpop.permute.xlu1 %2517  ;;  %v6393_v58 = vpop.permute.xlu0 %2502 }
 0x211   :  { %7057 = vst [vmem:[#allocation12_spill] sm:$0xff] %v6393_v58 }
 0x214   :  { %v6397_v56 = vpop.permute.xlu1 %2507  ;;  %v6402_v54 = vpop.permute.xlu0 %2492 }
 0x215   :  { %7058 = vst [vmem:[#allocation13_spill] sm:$0xff] %v6397_v56  ;;  %7059 = vst [vmem:[#allocation5_spill] sm:$0xff] %v6402_v54 }
 0x216   :  { %4723 = vmatmul.mubr.msk.bf16.gmra.mxu1 %vm639_vm1, %v5202_v63 }
 0x217   :  { %3043 = vmatprep.mubr.bf16.mxu1 %v7056_v2 }
 0x218   :  { %v6406_v18 = vpop.permute.xlu1 %2497  ;;  %v6408_v10 = vpop.permute.xlu0 %2482 }
 0x219   :  { %7060 = vst [vmem:[#allocation4_spill] sm:$0xff] %v6406_v18  ;;  %7061 = vst [vmem:[#allocation3_spill] sm:$0xff] %v6408_v10 }
 0x21c   :  { %v6413_v15 = vpop.permute.xlu1 %2487  ;;  %v6417_v4 = vpop.permute.xlu0 %2472 }
 0x21d   :  { %7062 = vst [vmem:[#allocation14_spill] sm:$0xff] %v6413_v15 }
 0x21e   :  { %4724 = vmatmul.mubr.msk.bf16.gmra.mxu1 %vm639_vm1, %v5203_v23 }
 0x21f   :  { %3053 = vmatprep.mubr.bf16.mxu1 %v7056_v2 }
 0x220   :  { %v6422_v61 = vpop.permute.xlu1 %2477  ;;  %v6424_v17 = vpop.permute.xlu0 %2462 }
 0x224   :  { %v6428_v32 = vpop.permute.xlu1 %2467  ;;  %v6433_v42 = vpop.permute.xlu0 %2612 }
 0x225   :  { %7063 = vst [vmem:[#allocation7_spill] sm:$0xff] %v6433_v42 }
 0x226   :  { %4725 = vmatmul.mubr.msk.bf16.gmra.mxu1 %vm639_vm1, %v5204_v34  ;;  %v5216_v34 = vld [vmem:[%s6949_s1 + $0x88] sm:$0xff]  }
 0x227   :  { %3063 = vmatprep.mubr.bf16.mxu1 %v7056_v2 }
 0x228   :  { %v6437_v55 = vpop.permute.xlu1 %2617  ;;  %v6439_v27 = vpop.permute.xlu0 %2602 }
 0x229   :  { %7064 = vst [vmem:[#allocation6_spill] sm:$0xff] %v6437_v55  ;;  %7065 = vst [vmem:[#allocation10_spill] sm:$0xff] %v6439_v27 }
 0x22c   :  { %v6444_v1 = vpop.permute.xlu1 %2607  ;;  %v6448_v14 = vpop.permute.xlu0 %2592 }
 0x22d   :  { %7066 = vst [vmem:[#allocation8_spill] sm:$0xff] %v6444_v1  ;;  %7067 = vst [vmem:[#allocation11_spill] sm:$0xff] %v6448_v14 }
 0x22e   :  { %4726 = vmatmul.mubr.msk.bf16.gmra.mxu1 %vm639_vm1, %v5205_v44 }
 0x22f   :  { %3073 = vmatprep.mubr.bf16.mxu1 %v7056_v2 }
 0x230   :  { %v6453_v48 = vpop.permute.xlu1 %2597  ;;  %v6455_v8 = vpop.permute.xlu0 %2582 }
 0x231   :  { %7068 = vst [vmem:[#allocation9_spill] sm:$0xff] %v6453_v48  ;;  %7069 = vst [vmem:[#allocation15_spill] sm:$0xff] %v6455_v8 }
 0x234   :  { %v6459_v7 = vpop.permute.xlu1 %2587  ;;  %v6464_v26 = vpop.permute.xlu0 %2572 }
 0x235   :  { %7070 = vst [vmem:[#allocation16_spill] sm:$0xff] %v6459_v7  ;;  %7071 = vst [vmem:[#allocation17_spill] sm:$0xff] %v6464_v26 }
 0x236   :  { %4727 = vmatmul.mubr.msk.bf16.gmra.mxu1 %vm639_vm1, %v5206_v49 }
 0x237   :  { %3083 = vmatprep.mubr.bf16.mxu1 %v7056_v2 }
 0x238   :  { %v6468_v28 = vpop.permute.xlu1 %2577  ;;  %v6470_v24 = vpop.permute.xlu0 %2562 }
 0x239   :  { %7072 = vst [vmem:[#allocation18_spill] sm:$0xff] %v6468_v28  ;;  %7073 = vst [vmem:[#allocation19_spill] sm:$0xff] %v6470_v24 }
 0x23c   :  { %v6475_v31 = vpop.permute.xlu1 %2567  ;;  %v6479_v46 = vpop.permute.xlu0 %2552 }
 0x23d   :  { %7074 = vst [vmem:[#allocation20_spill] sm:$0xff] %v6475_v31  ;;  %7075 = vst [vmem:[#allocation21_spill] sm:$0xff] %v6479_v46 }
 0x23e   :  { %4728 = vmatmul.mubr.msk.bf16.gmra.mxu1 %vm639_vm1, %v5207_v21  ;;  %v5217_v21 = vld [vmem:[%s6949_s1 + $0x90] sm:$0xff]  }
 0x23f   :  { %3093 = vmatprep.mubr.bf16.mxu1 %v7056_v2 }
 0x240   :  { %v6484_v35 = vpop.permute.xlu1 %2557  ;;  %v6486_v52 = vpop.permute.xlu0 %2542 }
 0x241   :  { %7076 = vst [vmem:[#allocation22_spill] sm:$0xff] %v6484_v35  ;;  %7077 = vst [vmem:[#allocation23_spill] sm:$0xff] %v6486_v52 }
 0x244   :  { %v6490_v62 = vpop.permute.xlu1 %2547  ;;  %v6495_v16 = vpop.permute.xlu0 %2692 }
 0x245   :  { %7078 = vst [vmem:[#allocation24_spill] sm:$0xff] %v6490_v62  ;;  %7079 = vst [vmem:[#allocation25_spill] sm:$0xff] %v6495_v16 }
 0x246   :  { %4729 = vmatmul.mubr.msk.bf16.gmra.mxu1 %vm639_vm1, %v5208_v51 }
 0x247   :  { %3103 = vmatprep.mubr.bf16.mxu1 %v7056_v2 }
 0x248   :  { %v6499_v63 = vpop.permute.xlu1 %2697  ;;  %v6501_v23 = vpop.permute.xlu0 %2682 }
 0x249   :  { %7080 = vst [vmem:[#allocation26_spill] sm:$0xff] %v6499_v63  ;;  %7081 = vst [vmem:[#allocation27_spill] sm:$0xff] %v6501_v23  ;;  %v5221_v63 = vld [vmem:[%s6949_s1 + $0xb0] sm:$0xff]  }
 0x24c   :  { %v6506_v44 = vpop.permute.xlu1 %2687  ;;  %v6510_v49 = vpop.permute.xlu0 %2672 }
 0x24d   :  { %7082 = vst [vmem:[#allocation28_spill] sm:$0xff] %v6506_v44  ;;  %7083 = vst [vmem:[#allocation29_spill] sm:$0xff] %v6510_v49 }
 0x24e   :  { %4730 = vmatmul.mubr.msk.bf16.gmra.mxu1 %vm639_vm1, %v5209_v11 }
 0x24f   :  { %3113 = vmatprep.mubr.bf16.mxu1 %v7056_v2 }
 0x250   :  { %v6515_v51 = vpop.permute.xlu1 %2677  ;;  %v6517_v11 = vpop.permute.xlu0 %2662 }
 0x251   :  { %7084 = vst [vmem:[#allocation30_spill] sm:$0xff] %v6515_v51  ;;  %7085 = vst [vmem:[#allocation31_spill] sm:$0xff] %v6517_v11  ;;  %v5219_v11 = vld [vmem:[%s6949_s1 + $0xa0] sm:$0xff]  }
 0x256   :  { %4731 = vmatmul.mubr.msk.bf16.gmra.mxu1 %vm639_vm1, %v5210_v20  ;;  %v2162_v20 = vpop.f32.mrf.mxu1 }
 0x257   :  { %3123 = vmatprep.mubr.bf16.mxu1 %v7056_v2 }
 0x25e   :  { %4732 = vmatmul.mubr.msk.bf16.gmra.mxu1 %vm639_vm1, %v5211_v60  ;;  %v6521_v60 = vpop.permute.xlu1 %2667 }
 0x25f   :  { %3133 = vmatprep.mubr.bf16.mxu1 %v7056_v2  ;;  %7086 = vst [vmem:[#allocation32_spill] sm:$0xff] %v6521_v60 }
 0x266   :  { %4733 = vmatmul.mubr.msk.bf16.gmra.mxu1 %vm639_vm1, %v5212_v53  ;;  %v5218_v53 = vld [vmem:[%s6949_s1 + $0x98] sm:$0xff]  }
 0x267   :  { %3143 = vmatprep.mubr.bf16.mxu1 %v7056_v2 }
 0x26e   :  { %4734 = vmatmul.mubr.msk.bf16.gmra.mxu1 %vm639_vm1, %v5213_v38  ;;  %v6526_v38 = vpop.permute.xlu0 %2652 }
 0x26f   :  { %3153 = vmatprep.mubr.bf16.mxu1 %v7056_v2  ;;  %7087 = vst [vmem:[#allocation33_spill] sm:$0xff] %v6526_v38 }
 0x276   :  { %4735 = vmatmul.mubr.msk.bf16.gmra.mxu1 %vm639_vm1, %v5214_v12  ;;  %v2164_v12 = vpop.f32.mrf.mxu1 }
 0x277   :  { %3163 = vmatprep.mubr.bf16.mxu1 %v7056_v2 }
 0x27e   :  { %4736 = vmatmul.mubr.msk.bf16.gmra.mxu1 %vm639_vm1, %v5215_v22  ;;  %v6530_v22 = vpop.permute.xlu1 %2657 }
 0x27f   :  { %3173 = vmatprep.mubr.bf16.mxu1 %v7056_v2  ;;  %7088 = vst [vmem:[#allocation34_spill] sm:$0xff] %v6530_v22  ;;  %v5220_v22 = vld [vmem:[%s6949_s1 + $0xa8] sm:$0xff]  }
 0x282   :  { %v6537_v49 = vpop.permute.xlu1 %2647 }
 0x283   :  { %7090 = vst [vmem:[#allocation36_spill] sm:$0xff] %v6537_v49 }
 0x286   :  { %4737 = vmatmul.mubr.msk.bf16.gmra.mxu1 %vm639_vm1, %v5216_v34  ;;  %v2166_v34 = vpop.f32.mrf.mxu1  ;;  %v6546_v51 = vpop.permute.xlu1 %2637 }
 0x287   :  { %3183 = vmatprep.mubr.bf16.mxu1 %v7056_v2  ;;  %7092 = vst [vmem:[#allocation38_spill] sm:$0xff] %v6546_v51 }
 0x288   :  { %v2168_v60 = vpop.f32.mrf.mxu1 }
 0x28e   :  { %4738 = vmatmul.mubr.msk.bf16.gmra.mxu1 %vm639_vm1, %v5217_v21  ;;  %v6532_v21 = vpop.permute.xlu0 %2642 }
 0x28f   :  { %3193 = vmatprep.mubr.bf16.mxu1 %v7056_v2  ;;  %7089 = vst [vmem:[#allocation35_spill] sm:$0xff] %v6532_v21 }
 0x292   :  { %v6541_v38 = vpop.permute.xlu0 %2632 }
 0x293   :  { %7091 = vst [vmem:[#allocation37_spill] sm:$0xff] %v6541_v38 }
 0x296   :  { %4739 = vmatmul.mubr.msk.bf16.gmra.mxu1 %vm639_vm1, %v5218_v53  ;;  %v2172_v53 = vpop.f32.mrf.mxu1  ;;  %v6548_v23 = vpop.permute.xlu0 %2622 }
 0x297   :  { %3203 = vmatprep.mubr.bf16.mxu1 %v7056_v2  ;;  %7093 = vst [vmem:[#allocation39_spill] sm:$0xff] %v6548_v23  ;;  %v5222_v23 = vld [vmem:[%s6949_s1 + $0xb8] sm:$0xff]  }
 0x298   :  { %v2174_v21 = vpop.f32.mrf.mxu1 }
 0x29a   :  { %v2176_v49 = vpop.f32.mrf.mxu1  ;;  %v1751_v16 = vpop.permute.xlu0 %1750 }
 0x29b   :  { %v2163_v24 = vadd.f32 %v2162_v20, %v1751_v16  ;;  %v2165_v51 = vadd.f32 %v2164_v12, %v1751_v16 }
 0x29c   :  { %v2178_v44 = vpop.f32.mrf.mxu1 }
 0x29e   :  { %4740 = vmatmul.mubr.msk.bf16.gmra.mxu1 %vm639_vm1, %v5219_v11  ;;  %v6552_v11 = vpop.permute.xlu1 %2627 }
 0x29f   :  { %3213 = vmatprep.mubr.bf16.mxu1 %v7056_v2  ;;  %7094 = vst [vmem:[#allocation40_spill] sm:$0xff] %v6552_v11 }
 0x2a6   :  { %4741 = vmatmul.mubr.msk.bf16.gmra.mxu1 %vm639_vm1, %v5220_v22  ;;  %v1756_v22 = vpop.permute.xlu1 %1755 }
 0x2a7   :  { %3223 = vmatprep.mubr.bf16.mxu1 %v7056_v2  ;;  %v2167_v8 = vadd.f32 %v2166_v34, %v1756_v22  ;;  %v2169_v14 = vadd.f32 %v2168_v60, %v1756_v22 }
 0x2ae   :  { %v2215_v31 = vpop.f32.mrf.mxu1  ;;  %4742 = vmatmul.mubr.msk.bf16.gmra.mxu1 %vm639_vm1, %v5221_v63 }
 0x2af   :  { %v2216_v38 = vadd.f32 %v2215_v31, %v2163_v24  ;;  %3233 = vmatprep.mubr.bf16.mxu1 %v7056_v2  ;;  %v1761_v24 = vpop.permute.xlu0 %1760 }
 0x2b0   :  { %v2217_v26 = vpop.f32.mrf.mxu1  ;;  %v2173_v20 = vadd.f32 %v2172_v53, %v1761_v24  ;;  %v2175_v12 = vadd.f32 %v2174_v21, %v1761_v24 }
 0x2b1   :  { %v2234_v28 = vmax.f32 %v2216_v38, 0.0  ;;  %v2218_v7 = vadd.f32 %v2217_v26, %v2165_v51 }
 0x2b2   :  { %v2219_v11 = vpop.f32.mrf.mxu1 }
 0x2b3   :  { %2242 = vst [vmem:[%s6952_s5] sm:$0xff] %v2234_v28  ;;  %v2235_v63 = vmax.f32 %v2218_v7, 0.0  ;;  %v2220_v16 = vadd.f32 %v2219_v11, %v2167_v8  ;;  %v1766_v8 = vpop.permute.xlu1 %1765 }
 0x2b4   :  { %v2221_v31 = vpop.f32.mrf.mxu1  ;;  %v2177_v34 = vadd.f32 %v2176_v49, %v1766_v8  ;;  %v2179_v21 = vadd.f32 %v2178_v44, %v1766_v8 }
 0x2b5   :  { %2243 = vst [vmem:[%s6952_s5 + $0x8] sm:$0xff] %v2235_v63  ;;  %v2236_v26 = vmax.f32 %v2220_v16, 0.0  ;;  %v2222_v51 = vadd.f32 %v2221_v31, %v2169_v14 }
 0x2b6   :  { %v2225_v38 = vpop.f32.mrf.mxu1  ;;  %4743 = vmatmul.mubr.msk.bf16.gmra.mxu1 %vm639_vm1, %v5222_v23  ;;  %v5223_v23 = vld [vmem:[%s6949_s1 + $0xc0] sm:$0xff]  }
 0x2b7   :  { %2244 = vst [vmem:[%s6952_s5 + $0x10] sm:$0xff] %v2236_v26  ;;  %v2237_v28 = vmax.f32 %v2222_v51, 0.0  ;;  %v2226_v7 = vadd.f32 %v2225_v38, %v2173_v20  ;;  %3243 = vmatprep.mubr.bf16.mxu1 %v7056_v2  ;;  %v5224_v38 = vld [vmem:[%s6949_s1 + $0xc8] sm:$0xff]  }
 0x2b8   :  { %v2227_v60 = vpop.f32.mrf.mxu1 }
 0x2b9   :  { %2245 = vst [vmem:[%s6952_s5 + $0x18] sm:$0xff] %v2237_v28  ;;  %v2238_v14 = vmax.f32 %v2226_v7, 0.0  ;;  %v2228_v53 = vadd.f32 %v2227_v60, %v2175_v12 }
 0x2ba   :  { %v2229_v11 = vpop.f32.mrf.mxu1 }
 0x2bb   :  { %2246 = vst [vmem:[%s6952_s5 + $0x20] sm:$0xff] %v2238_v14  ;;  %v2239_v22 = vmax.f32 %v2228_v53, 0.0  ;;  %v2230_v63 = vadd.f32 %v2229_v11, %v2177_v34 }
 0x2bc   :  { %v2231_v16 = vpop.f32.mrf.mxu1 }
 0x2bd   :  { %2247 = vst [vmem:[%s6952_s5 + $0x28] sm:$0xff] %v2239_v22  ;;  %v2240_v49 = vmax.f32 %v2230_v63, 0.0  ;;  %v2232_v24 = vadd.f32 %v2231_v16, %v2179_v21  ;;  %v5225_v16 = vld [vmem:[%s6949_s1 + $0xd0] sm:$0xff]  }
 0x2be   :  { %v3005_v31 = vpop.f32.mrf.mxu1  ;;  %4744 = vmatmul.mubr.msk.bf16.gmra.mxu1 %vm639_vm1, %v5223_v23 }
 0x2bf   :  { %2248 = vst [vmem:[%s6952_s5 + $0x30] sm:$0xff] %v2240_v49  ;;  %v2241_v44 = vmax.f32 %v2232_v24, 0.0  ;;  %3253 = vmatprep.mubr.bf16.mxu1 %v7056_v2  ;;  %v3006_v26 = vadd.f32 %v3005_v31, %v6362_v45 }
 0x2c0   :  { %v3007_v20 = vpop.f32.mrf.mxu1 }
 0x2c1   :  { %2249 = vst [vmem:[%s6952_s5 + $0x38] sm:$0xff] %v2241_v44  ;;  %v3008_v12 = vadd.f32 %v3007_v20, %v6362_v45  ;;  %v3324_v8 = vmax.f32 %v3006_v26, 0.0 }
 0x2c2   :  { %v3009_v51 = vpop.f32.mrf.mxu1 }
 0x2c3   :  { %v3010_v28 = vadd.f32 %v3009_v51, %v6366_v3  ;;  %v3325_v53 = vmax.f32 %v3008_v12, 0.0 }
 0x2c4   :  { %v3011_v7 = vpop.f32.mrf.mxu1 }
 0x2c5   :  { %v3326_v60 = vmax.f32 %v3010_v28, 0.0  ;;  %v3012_v34 = vadd.f32 %v3011_v7, %v6366_v3 }
 0x2c6   :  { %v3015_v14 = vpop.f32.mrf.mxu1  ;;  %4745 = vmatmul.mubr.msk.bf16.gmra.mxu1 %vm639_vm1, %v5224_v38 }
 0x2c7   :  { %v6601_v11 = vpack.c.bf16 %v3326_v60, %v3324_v8  ;;  %v3327_v23 = vmax.f32 %v3012_v34, 0.0  ;;  %3263 = vmatprep.mubr.bf16.mxu1 %v7056_v2  ;;  %v3016_v22 = vadd.f32 %v3015_v14, %v6355_v13 }
 0x2c8   :  { %v3017_v21 = vpop.f32.mrf.mxu1 }
 0x2c9   :  { %v6605_v45 = vpack.c.bf16 %v3327_v23, %v3325_v53  ;;  %v3018_v3 = vadd.f32 %v3017_v21, %v6355_v13  ;;  %v3328_v31 = vmax.f32 %v3016_v22, 0.0  ;;  %v5227_v53 = vld [vmem:[%s6949_s1 + $0xe0] sm:$0xff]  }
 0x2ca   :  { %v3019_v63 = vpop.f32.mrf.mxu1 }
 0x2cb   :  { %v3020_v49 = vadd.f32 %v3019_v63, %v6360_v25  ;;  %v3329_v51 = vmax.f32 %v3018_v3, 0.0  ;;  %v5233_v63 = vld [vmem:[%s6950_s3 + $0x4] ss:$16 sps:$4 sm:$0xff]   ;;  %v5228_v3 = vld [vmem:[%s6949_s1 + $0xe8] sm:$0xff]  }
 0x2cc   :  { %v3021_v24 = vpop.f32.mrf.mxu1  ;;  %4388 = vmatprep.mubr.bf16.mxu0 %v5233_v63  ;;  %v5230_v63 = vld [vmem:[%s6949_s1 + $0xf8] sm:$0xff]  }
 0x2cd   :  { %v3330_v44 = vmax.f32 %v3020_v49, 0.0  ;;  %v3022_v20 = vadd.f32 %v3021_v24, %v6360_v25  ;;  %v5226_v25 = vld [vmem:[%s6949_s1 + $0xd8] sm:$0xff]  }
 0x2ce   :  { %v6613_v26 = vpop.f32.mrf.mxu1  ;;  %4746 = vmatmul.mubr.msk.bf16.gmra.mxu1 %vm639_vm1, %v5225_v16 }
 0x2cf   :  { %v6616_v38 = vpack.c.bf16 %v3330_v44, %v3328_v31  ;;  %v3331_v12 = vmax.f32 %v3022_v20, 0.0  ;;  %3273 = vmatprep.mubr.bf16.mxu1 %v7056_v2  ;;  %v5229_v20 = vld [vmem:[%s6949_s1 + $0xf0] sm:$0xff]  }
 0x2d0   :  { %v6619_v28 = vpop.f32.mrf.mxu1 }
 0x2d1   :  { %v6621_v13 = vpack.c.bf16 %v3331_v12, %v3329_v51 }
 0x2d2   :  { %v6623_v7 = vpop.f32.mrf.mxu1 }
 0x2d4   :  { %v6628_v8 = vpop.f32.mrf.mxu1 }
 0x2d6   :  { %v6630_v60 = vpop.f32.mrf.mxu1  ;;  %4747 = vmatmul.mubr.msk.bf16.gmra.mxu1 %vm639_vm1, %v5226_v25 }
 0x2d7   :  { %3283 = vmatprep.mubr.bf16.mxu1 %v7056_v2 }
 0x2d8   :  { %v6634_v34 = vpop.f32.mrf.mxu1 }
 0x2da   :  { %v6636_v14 = vpop.f32.mrf.mxu1 }
 0x2dc   :  { %v3041_v23 = vpop.f32.mrf.mxu1 }
 0x2de   :  { %v6641_v21 = vpop.f32.mrf.mxu1  ;;  %4748 = vmatmul.mubr.msk.bf16.gmra.mxu1 %vm639_vm1, %v5227_v53 }
 0x2df   :  { %3293 = vmatprep.mubr.bf16.mxu1 %v7056_v2 }
 0x2e0   :  { %v3047_v22 = vpop.f32.mrf.mxu1 }
 0x2e2   :  { %v6648_v16 = vpop.f32.mrf.mxu1 }
 0x2e4   :  { %v3051_v49 = vpop.f32.mrf.mxu1 }
 0x2e6   :  { %v3055_v24 = vpop.f32.mrf.mxu1  ;;  %4749 = vmatmul.mubr.msk.bf16.gmra.mxu1 %vm639_vm1, %v5228_v3 }
 0x2e7   :  { %3303 = vmatprep.mubr.bf16.mxu1 %v7056_v2 }
 0x2e8   :  { %v3057_v31 = vpop.f32.mrf.mxu1 }
 0x2ea   :  { %v3059_v44 = vpop.f32.mrf.mxu1 }
 0x2ec   :  { %v3061_v51 = vpop.f32.mrf.mxu1 }
 0x2ee   :  { %v3065_v12 = vpop.f32.mrf.mxu1  ;;  %4750 = vmatmul.mubr.msk.bf16.gmra.mxu1 %vm639_vm1, %v5229_v20 }
 0x2ef   :  { %3313 = vmatprep.mubr.bf16.mxu1 %v7056_v2 }
 0x2f0   :  { %v3067_v25 = vpop.f32.mrf.mxu1 }
 0x2f1   :  { %v3068_v35 = vadd.f32 %v3067_v25, %v6316_v41 }
 0x2f2   :  { %v3069_v53 = vpop.f32.mrf.mxu1 }
 0x2f3   :  { %v3070_v46 = vadd.f32 %v3069_v53, %v6321_v37 }
 0x2f4   :  { %v3071_v3 = vpop.f32.mrf.mxu1 }
 0x2f5   :  { %v3072_v42 = vadd.f32 %v3071_v3, %v6321_v37  ;;  %v3060_v37 = vadd.f32 %v3059_v44, %v6329_v36 }
 0x2f6   :  { %v3075_v48 = vpop.f32.mrf.mxu1  ;;  %4751 = vmatmul.mubr.msk.bf16.gmra.mxu1 %vm639_vm1, %v5230_v63  ;;  %v3062_v63 = vadd.f32 %v3061_v51, %v6329_v36 }
 0x2f7   :  { %v3076_v2 = vadd.f32 %v3075_v48, %v6310_v39  ;;  %v3351_v18 = vmax.f32 %v3072_v42, 0.0  ;;  %v3349_v48 = vmax.f32 %v3068_v35, 0.0  ;;  %v3048_v35 = vadd.f32 %v3047_v22, %v6331_v5 }
 0x2f8   :  { %v3077_v27 = vpop.f32.mrf.mxu1  ;;  %v3347_v42 = vmax.f32 %v3062_v63, 0.0 }
 0x2f9   :  { %v3078_v1 = vadd.f32 %v3077_v27, %v6310_v39  ;;  %v3066_v27 = vadd.f32 %v3065_v12, %v6316_v41  ;;  %v3352_v56 = vmax.f32 %v3076_v2, 0.0  ;;  %v3058_v39 = vadd.f32 %v3057_v31, %v6324_v59 }
 0x2fa   :  { %v3079_v55 = vpop.f32.mrf.mxu1  ;;  %v3042_v31 = vadd.f32 %v3041_v23, %v6344_v40 }
 0x2fb   :  { %v3080_v20 = vadd.f32 %v3079_v55, %v6314_v30  ;;  %v3353_v62 = vmax.f32 %v3078_v1, 0.0  ;;  %v5101_v1 = vpack.c.bf16 %v3351_v18, %v3349_v48  ;;  %v3345_v36 = vmax.f32 %v3058_v39, 0.0 }
 0x2fc   :  { %v3081_v10 = vpop.f32.mrf.mxu1  ;;  %v3050_v18 = vadd.f32 %v6648_v16, %v6335_v47  ;;  %v3339_v48 = vmax.f32 %v3042_v31, 0.0 }
 0x2fd   :  { %v3082_v15 = vadd.f32 %v3081_v10, %v6314_v30  ;;  %v3354_v54 = vmax.f32 %v3080_v20, 0.0  ;;  %v3052_v30 = vadd.f32 %v3051_v49, %v6335_v47  ;;  %v3350_v10 = vmax.f32 %v3070_v46, 0.0 }
 0x2fe   :  { %v3085_v58 = vpop.f32.mrf.mxu1  ;;  %v5099_v12 = vpack.c.bf16 %v3347_v42, %v3345_v36  ;;  %v3342_v39 = vmax.f32 %v3050_v18, 0.0 }
 0x2ff   :  { %v3355_v3 = vmax.f32 %v3082_v15, 0.0  ;;  %v3086_v25 = vadd.f32 %v3085_v58, %v6424_v17  ;;  %v5102_v53 = vpack.c.bf16 %v3354_v54, %v3352_v56  ;;  %v3056_v58 = vadd.f32 %v3055_v24, %v6324_v59 }
 0x300   :  { %v3087_v55 = vpop.f32.mrf.mxu1  ;;  %v3046_v24 = vadd.f32 %v6641_v21, %v6331_v5 }
 0x301   :  { %v5103_v52 = vpack.c.bf16 %v3355_v3, %v3353_v62  ;;  %v3088_v15 = vadd.f32 %v3087_v55, %v6424_v17  ;;  %v3348_v62 = vmax.f32 %v3066_v27, 0.0  ;;  %v3356_v46 = vmax.f32 %v3086_v25, 0.0 }
 0x302   :  { %v3089_v51 = vpop.f32.mrf.mxu1  ;;  %v3343_v17 = vmax.f32 %v3052_v30, 0.0  ;;  %v3344_v2 = vmax.f32 %v3056_v58, 0.0  ;;  %v3341_v3 = vmax.f32 %v3048_v35, 0.0  ;;  %v3032_v27 = vadd.f32 %v6628_v8, %v6351_v33 }
 0x303   :  { %v3090_v41 = vadd.f32 %v3089_v51, %v6428_v32  ;;  %4356 = vmatprep.subr.bf16.mxu0 %v5103_v52  ;;  %v3346_v52 = vmax.f32 %v3060_v37, 0.0  ;;  %v5100_v44 = vpack.c.bf16 %v3350_v10, %v3348_v62  ;;  %v3357_v22 = vmax.f32 %v3088_v15, 0.0 }
 0x304   :  { %v3091_v49 = vpop.f32.mrf.mxu1  ;;  %4357 = vmatpush1.bf16.msra.mxu0 %v5102_v53  ;;  %v3040_v55 = vadd.f32 %v6636_v14, %v6344_v40  ;;  %v5097_v25 = vpack.c.bf16 %v3343_v17, %v3341_v3  ;;  %v3028_v37 = vadd.f32 %v6619_v28, %v6346_v57  ;;  %v3036_v10 = vadd.f32 %v6630_v60, %v6340_v9 }
 0x305   :  { %v3358_v56 = vmax.f32 %v3090_v41, 0.0  ;;  %v3092_v54 = vadd.f32 %v3091_v49, %v6428_v32  ;;  %4358 = vmatprep.subr.bf16.mxu0 %v5101_v1  ;;  %v3038_v32 = vadd.f32 %v6634_v34, %v6340_v9  ;;  %v5098_v5 = vpack.c.bf16 %v3346_v52, %v3344_v2 }
 0x306   :  { %v3095_v23 = vpop.f32.mrf.mxu1  ;;  %v3340_v53 = vmax.f32 %v3046_v24, 0.0  ;;  %v3335_v1 = vmax.f32 %v3032_v27, 0.0  ;;  %v3338_v15 = vmax.f32 %v3040_v55, 0.0  ;;  %v3026_v58 = vadd.f32 %v6613_v26, %v6346_v57 }
 0x307   :  { %v6685_v20 = vpack.c.bf16 %v3358_v56, %v3356_v46  ;;  %v3359_v59 = vmax.f32 %v3092_v54, 0.0  ;;  %v3096_v16 = vadd.f32 %v3095_v23, %v6417_v4  ;;  %v3337_v51 = vmax.f32 %v3038_v32, 0.0 }
 0x308   :  { %v3097_v63 = vpop.f32.mrf.mxu1  ;;  %4359 = vmatpush1.bf16.msra.mxu0 %v5100_v44  ;;  %v5096_v41 = vpack.c.bf16 %v3342_v39, %v3340_v53  ;;  %v3336_v62 = vmax.f32 %v3036_v10, 0.0  ;;  %v3332_v54 = vmax.f32 %v3026_v58, 0.0 }
 0x309   :  { %v6691_v47 = vpack.c.bf16 %v3359_v59, %v3357_v22  ;;  %4360 = vmatprep.subr.bf16.mxu0 %v5099_v12  ;;  %v3098_v30 = vadd.f32 %v3097_v63, %v6417_v4  ;;  %v3360_v40 = vmax.f32 %v3096_v16, 0.0  ;;  %v3030_v4 = vadd.f32 %v6623_v7, %v6351_v33 }
 0x30a   :  { %v3099_v21 = vpop.f32.mrf.mxu1  ;;  %v5095_v60 = vpack.c.bf16 %v3339_v48, %v3337_v51  ;;  %v5094_v7 = vpack.c.bf16 %v3338_v15, %v3336_v62 }
 0x30b   :  { %v3100_v34 = vadd.f32 %v3099_v21, %v6422_v61  ;;  %v3361_v28 = vmax.f32 %v3098_v30, 0.0  ;;  %v3334_v33 = vmax.f32 %v3030_v4, 0.0 }
 0x30c   :  { %v3101_v8 = vpop.f32.mrf.mxu1  ;;  %4361 = vmatpush1.bf16.msra.mxu0 %v5098_v5 }
 0x30d   :  { %v3362_v14 = vmax.f32 %v3100_v34, 0.0  ;;  %v3102_v42 = vadd.f32 %v3101_v8, %v6422_v61  ;;  %4362 = vmatprep.subr.bf16.mxu0 %v5097_v25  ;;  %v3333_v61 = vmax.f32 %v3028_v37, 0.0  ;;  %v5092_v17 = vpack.c.bf16 %v3334_v33, %v3332_v54  ;;  %v7098_v54 = vld [vmem:[#allocation4_spill] sm:$0xff] }
 0x30e   :  { %v6707_v31 = vpop.f32.mrf.mxu1 }
 0x30f   :  { %v6709_v35 = vpack.c.bf16 %v3362_v14, %v3360_v40  ;;  %v3363_v9 = vmax.f32 %v3102_v42, 0.0  ;;  %v5093_v56 = vpack.c.bf16 %v3335_v1, %v3333_v61 }
 0x310   :  { %v6713_v49 = vpop.f32.mrf.mxu1  ;;  %4363 = vmatpush1.bf16.msra.mxu0 %v5096_v41  ;;  %v7095_v41 = vld [vmem:[#allocation23_spill] sm:$0xff] }
 0x311   :  { %v6715_v36 = vpack.c.bf16 %v3363_v9, %v3361_v28  ;;  %4364 = vmatprep.subr.bf16.mxu0 %v5095_v60 }
 0x312   :  { %v6717_v46 = vpop.f32.mrf.mxu1 }
 0x314   :  { %v6719_v18 = vpop.f32.mrf.mxu1  ;;  %4365 = vmatpush1.bf16.msra.mxu0 %v5094_v7 }
 0x315   :  { %4366 = vmatprep.subr.bf16.mxu0 %v5093_v56 }
 0x316   :  { %v6721_v57 = vpop.f32.mrf.mxu1 }
 0x318   :  { %v6723_v26 = vpop.f32.mrf.mxu1  ;;  %4367 = vmatpush1.bf16.msra.mxu0 %v5092_v17 }
 0x319   :  { %4368 = vmatprep.subr.bf16.mxu0 %v6621_v13 }
 0x31a   :  { %v6726_v52 = vpop.f32.mrf.mxu1 }
 0x31c   :  { %v3121_v44 = vpop.f32.mrf.mxu1  ;;  %4369 = vmatpush1.bf16.msra.mxu0 %v6616_v38 }
 0x31d   :  { %4370 = vmatprep.subr.bf16.mxu0 %v6605_v45  ;;  %v3122_v17 = vadd.f32 %v3121_v44, %v7098_v54 }
 0x31e   :  { %v6730_v23 = vpop.f32.mrf.mxu1 }
 0x320   :  { %v3127_v12 = vpop.f32.mrf.mxu1  ;;  %4371 = vmatpush1.bf16.msra.mxu0 %v6601_v11 }
 0x322   :  { %v3129_v22 = vpop.f32.mrf.mxu1 }
 0x324   :  { %v3131_v59 = vpop.f32.mrf.mxu1 }
 0x326   :  { %v3135_v24 = vpop.f32.mrf.mxu1 }
 0x328   :  { %v3137_v2 = vpop.f32.mrf.mxu1 }
 0x32a   :  { %v3139_v63 = vpop.f32.mrf.mxu1 }
 0x32c   :  { %v3141_v32 = vpop.f32.mrf.mxu1 }
 0x32d   :  { %v3142_v53 = vadd.f32 %v3141_v32, %v6391_v6 }
 0x32e   :  { %v3145_v3 = vpop.f32.mrf.mxu1 }
 0x32f   :  { %v3146_v14 = vadd.f32 %v3145_v3, %v6377_v19  ;;  %v3379_v61 = vmax.f32 %v3142_v53, 0.0  ;;  %v3136_v3 = vadd.f32 %v3135_v24, %v6386_v29  ;;  %v7102_v53 = vld [vmem:[#allocation14_spill] sm:$0xff] }
 0x330   :  { %v3147_v13 = vpop.f32.mrf.mxu1 }
 0x331   :  { %v3148_v25 = vadd.f32 %v3147_v13, %v6377_v19  ;;  %v7097_v19 = vld [vmem:[#allocation24_spill] sm:$0xff]  ;;  %v3380_v13 = vmax.f32 %v3146_v14, 0.0 }
 0x332   :  { %v3149_v16 = vpop.f32.mrf.mxu1 }
 0x333   :  { %v3150_v34 = vadd.f32 %v3149_v16, %v6382_v0  ;;  %v3381_v1 = vmax.f32 %v3148_v25, 0.0  ;;  %v7100_v25 = vld [vmem:[#allocation5_spill] sm:$0xff] }
 0x334   :  { %v3151_v27 = vpop.f32.mrf.mxu1 }
 0x335   :  { %v3152_v45 = vadd.f32 %v3151_v27, %v6382_v0  ;;  %v3140_v0 = vadd.f32 %v3139_v63, %v6391_v6  ;;  %v3382_v60 = vmax.f32 %v3150_v34, 0.0 }
 0x336   :  { %v3155_v55 = vpop.f32.mrf.mxu1 }
 0x337   :  { %v3156_v11 = vadd.f32 %v3155_v55, %v6371_v50  ;;  %v3383_v8 = vmax.f32 %v3152_v45, 0.0  ;;  %v5116_v45 = vpack.c.bf16 %v3382_v60, %v3380_v13 }
 0x338   :  { %v3157_v39 = vpop.f32.mrf.mxu1 }
 0x339   :  { %v3158_v5 = vadd.f32 %v3157_v39, %v6371_v50  ;;  %v3384_v42 = vmax.f32 %v3156_v11, 0.0  ;;  %v3138_v50 = vadd.f32 %v3137_v2, %v6386_v29  ;;  %v5117_v33 = vpack.c.bf16 %v3383_v8, %v3381_v1  ;;  %v7099_v2 = vld [vmem:[#allocation12_spill] sm:$0xff] }
 0x33a   :  { %v3159_v38 = vpop.f32.mrf.mxu1  ;;  %v3128_v32 = vadd.f32 %v3127_v12, %v7099_v2  ;;  %v3126_v24 = vadd.f32 %v6730_v23, %v7099_v2  ;;  %v3376_v11 = vmax.f32 %v3136_v3, 0.0  ;;  %v3112_v8 = vadd.f32 %v6719_v18, %v7102_v53 }
 0x33b   :  { %v3160_v21 = vadd.f32 %v3159_v38, %v6375_v43  ;;  %v3385_v51 = vmax.f32 %v3158_v5, 0.0  ;;  %v3377_v6 = vmax.f32 %v3138_v50, 0.0  ;;  %v3378_v38 = vmax.f32 %v3140_v0, 0.0 }
 0x33c   :  { %v3161_v48 = vpop.f32.mrf.mxu1  ;;  %v3373_v34 = vmax.f32 %v3128_v32, 0.0 }
 0x33d   :  { %v3162_v30 = vadd.f32 %v3161_v48, %v6375_v43  ;;  %v3386_v37 = vmax.f32 %v3160_v21, 0.0  ;;  %v7096_v43 = vld [vmem:[#allocation13_spill] sm:$0xff]  ;;  %v5115_v44 = vpack.c.bf16 %v3379_v61, %v3377_v6  ;;  %v5114_v23 = vpack.c.bf16 %v3378_v38, %v3376_v11  ;;  %v5239_v11 = vld [vmem:[%s6950_s3 + $0xc] ss:$16 sps:$4 sm:$0xff]  }
 0x33e   :  { %v3165_v10 = vpop.f32.mrf.mxu1  ;;  %v3132_v9 = vadd.f32 %v3131_v59, %v7096_v43  ;;  %v3130_v55 = vadd.f32 %v3129_v22, %v7096_v43  ;;  %v3372_v43 = vmax.f32 %v3126_v24, 0.0 }
 0x33f   :  { %v3387_v40 = vmax.f32 %v3162_v30, 0.0  ;;  %v3166_v28 = vadd.f32 %v3165_v10, %v7095_v41  ;;  %v5118_v58 = vpack.c.bf16 %v3386_v37, %v3384_v42  ;;  %v3118_v30 = vadd.f32 %v6723_v26, %v7100_v25  ;;  %v7101_v37 = vld [vmem:[#allocation21_spill] sm:$0xff]  ;;  %v7103_v26 = vld [vmem:[#allocation22_spill] sm:$0xff] }
 0x340   :  { %v3167_v4 = vpop.f32.mrf.mxu1  ;;  %v3375_v39 = vmax.f32 %v3132_v9, 0.0  ;;  %v3371_v42 = vmax.f32 %v3122_v17, 0.0 }
 0x341   :  { %v5119_v15 = vpack.c.bf16 %v3387_v40, %v3385_v51  ;;  %v3168_v7 = vadd.f32 %v3167_v4, %v7095_v41  ;;  %v3388_v63 = vmax.f32 %v3166_v28, 0.0  ;;  %v3120_v51 = vadd.f32 %v6726_v52, %v7098_v54 }
 0x342   :  { %v3169_v62 = vpop.f32.mrf.mxu1  ;;  %v3374_v40 = vmax.f32 %v3130_v55, 0.0  ;;  %v5113_v4 = vpack.c.bf16 %v3375_v39, %v3373_v34  ;;  %v3116_v28 = vadd.f32 %v6721_v57, %v7100_v25  ;;  %v3369_v9 = vmax.f32 %v3118_v30, 0.0 }
 0x343   :  { %v3170_v56 = vadd.f32 %v3169_v62, %v7097_v19  ;;  %4372 = vmatprep.subr.bf16.mxu0 %v5119_v15  ;;  %v3389_v21 = vmax.f32 %v3168_v7, 0.0  ;;  %v7104_v15 = vld [vmem:[#allocation3_spill] sm:$0xff]  ;;  %v3367_v62 = vmax.f32 %v3112_v8, 0.0  ;;  %v3370_v61 = vmax.f32 %v3120_v51, 0.0  ;;  %v7105_v51 = vld [vmem:[#allocation8_spill] sm:$0xff] }
 0x344   :  { %v3171_v59 = vpop.f32.mrf.mxu1  ;;  %4373 = vmatpush2.bf16.msra.mxu0 %v5118_v58  ;;  %v3108_v41 = vadd.f32 %v6713_v49, %v7104_v15  ;;  %v3110_v58 = vadd.f32 %v6717_v46, %v7102_v53  ;;  %v5111_v49 = vpack.c.bf16 %v3371_v42, %v3369_v9  ;;  %v3106_v54 = vadd.f32 %v6707_v31, %v7104_v15  ;;  %v7107_v42 = vld [vmem:[#allocation6_spill] sm:$0xff]  ;;  %v7109_v9 = vld [vmem:[#allocation9_spill] sm:$0xff] }
 0x345   :  { %v3390_v16 = vmax.f32 %v3170_v56, 0.0  ;;  %v3172_v27 = vadd.f32 %v3171_v59, %v7097_v19  ;;  %4374 = vmatprep.subr.bf16.mxu0 %v5117_v33  ;;  %v5112_v33 = vpack.c.bf16 %v3374_v40, %v3372_v43  ;;  %v3368_v17 = vmax.f32 %v3116_v28, 0.0 }
 0x346   :  { %v3175_v5 = vpop.f32.mrf.mxu1  ;;  %v3365_v32 = vmax.f32 %v3108_v41, 0.0  ;;  %v3366_v46 = vmax.f32 %v3110_v58, 0.0 }
 0x347   :  { %v6753_v12 = vpack.c.bf16 %v3390_v16, %v3388_v63  ;;  %v3391_v29 = vmax.f32 %v3172_v27, 0.0  ;;  %v3176_v10 = vadd.f32 %v3175_v5, %v7101_v37  ;;  %v5110_v13 = vpack.c.bf16 %v3370_v61, %v3368_v17  ;;  %v5231_v5 = vld [vmem:[%s6950_s3] ss:$16 sps:$4 sm:$0xff]  }
 0x348   :  { %v3177_v48 = vpop.f32.mrf.mxu1  ;;  %4375 = vmatpush2.bf16.msra.mxu0 %v5116_v45  ;;  %v5109_v6 = vpack.c.bf16 %v3367_v62, %v3365_v32  ;;  %v3364_v63 = vmax.f32 %v3106_v54, 0.0  ;;  %v7111_v17 = vld [vmem:[#allocation39_spill] sm:$0xff] }
 0x349   :  { %v6759_v22 = vpack.c.bf16 %v3391_v29, %v3389_v21  ;;  %4376 = vmatprep.subr.bf16.mxu0 %v5115_v44  ;;  %v3178_v50 = vadd.f32 %v3177_v48, %v7101_v37  ;;  %v3392_v52 = vmax.f32 %v3176_v10, 0.0 }
 0x34a   :  { %v3179_v14 = vpop.f32.mrf.mxu1  ;;  %v5108_v27 = vpack.c.bf16 %v3366_v46, %v3364_v63  ;;  %v7112_v46 = vld [vmem:[#allocation16_spill] sm:$0xff] }
 0x34b   :  { %v3180_v1 = vadd.f32 %v3179_v14, %v7103_v26  ;;  %v3393_v19 = vmax.f32 %v3178_v50, 0.0 }
 0x34c   :  { %v3181_v18 = vpop.f32.mrf.mxu1  ;;  %4377 = vmatpush2.bf16.msra.mxu0 %v5114_v23  ;;  %v7106_v23 = vld [vmem:[#allocation7_spill] sm:$0xff] }
 0x34d   :  { %v3394_v0 = vmax.f32 %v3180_v1, 0.0  ;;  %v3182_v60 = vadd.f32 %v3181_v18, %v7103_v26  ;;  %4378 = vmatprep.subr.bf16.mxu0 %v5113_v4  ;;  %v7108_v1 = vld [vmem:[#allocation10_spill] sm:$0xff] }
 0x34e   :  { %v6775_v7 = vpop.f32.mrf.mxu1 }
 0x34f   :  { %v6777_v57 = vpack.c.bf16 %v3394_v0, %v3392_v52  ;;  %v3395_v56 = vmax.f32 %v3182_v60, 0.0 }
 0x350   :  { %v6781_v2 = vpop.f32.mrf.mxu1  ;;  %4379 = vmatpush2.bf16.msra.mxu0 %v5112_v33 }
 0x351   :  { %v6783_v3 = vpack.c.bf16 %v3395_v56, %v3393_v19  ;;  %4380 = vmatprep.subr.bf16.mxu0 %v5111_v49  ;;  %v7110_v49 = vld [vmem:[#allocation11_spill] sm:$0xff] }
 0x352   :  { %v6785_v59 = vpop.f32.mrf.mxu1 }
 0x354   :  { %v6787_v16 = vpop.f32.mrf.mxu1  ;;  %4381 = vmatpush2.bf16.msra.mxu0 %v5110_v13 }
 0x355   :  { %4382 = vmatprep.subr.bf16.mxu0 %v5109_v6 }
 0x356   :  { %v6789_v31 = vpop.f32.mrf.mxu1 }
 0x358   :  { %v6791_v55 = vpop.f32.mrf.mxu1  ;;  %4383 = vmatpush2.bf16.msra.mxu0 %v5108_v27 }
 0x359   :  { %4384 = vmatprep.subr.bf16.mxu0 %v6715_v36  ;;  %v5236_v36 = vld [vmem:[%s6950_s3 + $0x24] ss:$16 sps:$4 sm:$0xff]  }
 0x35a   :  { %v6794_v39 = vpop.f32.mrf.mxu1 }
 0x35c   :  { %v3201_v38 = vpop.f32.mrf.mxu1  ;;  %4385 = vmatpush2.bf16.msra.mxu0 %v6709_v35 }
 0x35d   :  { %4386 = vmatprep.subr.bf16.mxu0 %v6691_v47  ;;  %v5234_v47 = vld [vmem:[%s6950_s3 + $0x20] ss:$16 sps:$4 sm:$0xff]  }
 0x35e   :  { %v6798_v45 = vpop.f32.mrf.mxu1 }
 0x360   :  { %v3207_v44 = vpop.f32.mrf.mxu1  ;;  %4387 = vmatpush2.bf16.msra.mxu0 %v6685_v20 }
 0x362   :  { %v3209_v21 = vpop.f32.mrf.mxu1 }
 0x363   :  { %4389 = vmatmul.mubr.bf16.vlgmr.msra.gmra.mxu0 %v5231_v5 }
 0x364   :  { %v3211_v29 = vpop.f32.mrf.mxu1  ;;  %4398 = vmatprep.mubr.bf16.mxu0 %v5236_v36 }
 0x365   :  { %v3212_v13 = vadd.f32 %v3211_v29, %v7112_v46 }
 0x366   :  { %v3215_v35 = vpop.f32.mrf.mxu1 }
 0x368   :  { %v3217_v24 = vpop.f32.mrf.mxu1 }
 0x369   :  { %v3218_v19 = vadd.f32 %v3217_v24, %v7110_v49 }
 0x36a   :  { %v3219_v48 = vpop.f32.mrf.mxu1 }
 0x36b   :  { %4399 = vmatmul.mubr.bf16.gmra.mxu0 %v5234_v47  ;;  %v3220_v6 = vadd.f32 %v3219_v48, %v7109_v9  ;;  %v3409_v48 = vmax.f32 %v3218_v19, 0.0 }
 0x36c   :  { %v3221_v20 = vpop.f32.mrf.mxu1  ;;  %4441 = vmatprep.mubr.bf16.mxu0 %v5239_v11 }
 0x36d   :  { %v3222_v52 = vadd.f32 %v3221_v20, %v7109_v9  ;;  %v7113_v20 = vld [vmem:[#allocation40_spill] sm:$0xff]  ;;  %v7117_v9 = vld [vmem:[#allocation37_spill] sm:$0xff] }
 0x36e   :  { %v3225_v25 = vpop.f32.mrf.mxu1 }
 0x36f   :  { %v3226_v62 = vadd.f32 %v3225_v25, %v7108_v1  ;;  %v3411_v36 = vmax.f32 %v3222_v52, 0.0 }
 0x370   :  { %v3227_v30 = vpop.f32.mrf.mxu1 }
 0x371   :  { %v3228_v15 = vadd.f32 %v3227_v30, %v7108_v1  ;;  %v7114_v30 = vld [vmem:[#allocation18_spill] sm:$0xff] }
 0x372   :  { %v3229_v34 = vpop.f32.mrf.mxu1  ;;  %v3202_v24 = vadd.f32 %v3201_v38, %v7114_v30  ;;  %v5131_v38 = vpack.c.bf16 %v3411_v36, %v3409_v48 }
 0x373   :  { %v3230_v28 = vadd.f32 %v3229_v34, %v7105_v51  ;;  %v3413_v56 = vmax.f32 %v3228_v15, 0.0  ;;  %v7115_v34 = vld [vmem:[#allocation15_spill] sm:$0xff] }
 0x374   :  { %v3231_v37 = vpop.f32.mrf.mxu1  ;;  %v3206_v1 = vadd.f32 %v6798_v45, %v7115_v34 }
 0x375   :  { %v3232_v40 = vadd.f32 %v3231_v37, %v7105_v51  ;;  %v3414_v63 = vmax.f32 %v3230_v28, 0.0  ;;  %v3208_v37 = vadd.f32 %v3207_v44, %v7115_v34  ;;  %v7116_v28 = vld [vmem:[#allocation17_spill] sm:$0xff] }
 0x376   :  { %v3235_v10 = vpop.f32.mrf.mxu1 }
 0x377   :  { %v3236_v50 = vadd.f32 %v3235_v10, %v7106_v23  ;;  %v3415_v0 = vmax.f32 %v3232_v40, 0.0  ;;  %v3216_v10 = vadd.f32 %v3215_v35, %v7110_v49 }
 0x378   :  { %v3237_v53 = vpop.f32.mrf.mxu1 }
 0x379   :  { %v3238_v14 = vadd.f32 %v3237_v53, %v7106_v23  ;;  %v3416_v61 = vmax.f32 %v3236_v50, 0.0  ;;  %v5133_v47 = vpack.c.bf16 %v3415_v0, %v3413_v56  ;;  %v3412_v53 = vmax.f32 %v3226_v62, 0.0  ;;  %v7118_v0 = vld [vmem:[#allocation20_spill] sm:$0xff] }
 0x37a   :  { %v3239_v8 = vpop.f32.mrf.mxu1  ;;  %v3210_v23 = vadd.f32 %v3209_v21, %v7112_v46  ;;  %v3408_v15 = vmax.f32 %v3216_v10, 0.0  ;;  %v3404_v46 = vmax.f32 %v3206_v1, 0.0 }
 0x37b   :  { %v3240_v4 = vadd.f32 %v3239_v8, %v7107_v42  ;;  %v3417_v60 = vmax.f32 %v3238_v14, 0.0  ;;  %v3407_v14 = vmax.f32 %v3212_v13, 0.0 }
 0x37c   :  { %v3241_v26 = vpop.f32.mrf.mxu1  ;;  %v3406_v62 = vmax.f32 %v3210_v23, 0.0 }
 0x37d   :  { %v3242_v41 = vadd.f32 %v3241_v26, %v7107_v42  ;;  %v3418_v43 = vmax.f32 %v3240_v4, 0.0  ;;  %v3410_v42 = vmax.f32 %v3220_v6, 0.0  ;;  %v5132_v4 = vpack.c.bf16 %v3414_v63, %v3412_v53 }
 0x37e   :  { %v3245_v18 = vpop.f32.mrf.mxu1 }
 0x37f   :  { %v3419_v58 = vmax.f32 %v3242_v41, 0.0  ;;  %v3246_v32 = vadd.f32 %v3245_v18, %v7111_v17  ;;  %v5134_v27 = vpack.c.bf16 %v3418_v43, %v3416_v61  ;;  %v3198_v43 = vadd.f32 %v6791_v55, %v7116_v28  ;;  %v7119_v55 = vld [vmem:[#allocation38_spill] sm:$0xff] }
 0x380   :  { %v3247_v33 = vpop.f32.mrf.mxu1  ;;  %v3405_v18 = vmax.f32 %v3208_v37, 0.0  ;;  %v5130_v45 = vpack.c.bf16 %v3410_v42, %v3408_v15 }
 0x381   :  { %v5135_v54 = vpack.c.bf16 %v3419_v58, %v3417_v60  ;;  %v3248_v11 = vadd.f32 %v3247_v33, %v7111_v17  ;;  %v3420_v8 = vmax.f32 %v3246_v32, 0.0  ;;  %v3192_v60 = vadd.f32 %v6787_v16, %v7118_v0 }
 0x382   :  { %v3249_v5 = vpop.f32.mrf.mxu1  ;;  %v3200_v58 = vadd.f32 %v6794_v39, %v7114_v30  ;;  %v3403_v33 = vmax.f32 %v3202_v24, 0.0  ;;  %v5129_v49 = vpack.c.bf16 %v3407_v14, %v3405_v18  ;;  %v3196_v32 = vadd.f32 %v6789_v31, %v7116_v28 }
 0x383   :  { %v3250_v25 = vadd.f32 %v3249_v5, %v7113_v20  ;;  %4409 = vmatprep.subr.bf16.mxu0 %v5135_v54  ;;  %v3421_v26 = vmax.f32 %v3248_v11, 0.0  ;;  %v7120_v54 = vld [vmem:[#allocation19_spill] sm:$0xff]  ;;  %v3401_v13 = vmax.f32 %v3198_v43, 0.0  ;;  %v3399_v5 = vmax.f32 %v3192_v60, 0.0 }
 0x384   :  { %v3251_v29 = vpop.f32.mrf.mxu1  ;;  %4410 = vmatpush1.bf16.msra.mxu0 %v5134_v27  ;;  %v3188_v17 = vadd.f32 %v6781_v2, %v7120_v54  ;;  %v3190_v27 = vadd.f32 %v6785_v59, %v7118_v0  ;;  %v3402_v36 = vmax.f32 %v3200_v58, 0.0  ;;  %v3186_v30 = vadd.f32 %v6775_v7, %v7120_v54  ;;  %v7125_v54 = vld [vmem:[#allocation30_spill] sm:$0xff] }
 0x385   :  { %v3422_v51 = vmax.f32 %v3250_v25, 0.0  ;;  %v3252_v40 = vadd.f32 %v3251_v29, %v7113_v20  ;;  %4411 = vmatprep.subr.bf16.mxu0 %v5133_v47  ;;  %v5128_v47 = vpack.c.bf16 %v3406_v62, %v3404_v46  ;;  %v5127_v2 = vpack.c.bf16 %v3403_v33, %v3401_v13  ;;  %v7123_v62 = vld [vmem:[#allocation26_spill] sm:$0xff]  ;;  %v7124_v33 = vld [vmem:[#allocation27_spill] sm:$0xff] }
 0x386   :  { %v3255_v50 = vpop.f32.mrf.mxu1  ;;  %v3400_v24 = vmax.f32 %v3196_v32, 0.0  ;;  %v3397_v37 = vmax.f32 %v3188_v17, 0.0  ;;  %v3398_v59 = vmax.f32 %v3190_v27, 0.0 }
 0x387   :  { %v6833_v44 = vpack.c.bf16 %v3422_v51, %v3420_v8  ;;  %v3423_v35 = vmax.f32 %v3252_v40, 0.0  ;;  %v3256_v52 = vadd.f32 %v3255_v50, %v7117_v9  ;;  %v3396_v8 = vmax.f32 %v3186_v30, 0.0 }
 0x388   :  { %v3257_v41 = vpop.f32.mrf.mxu1  ;;  %4412 = vmatpush1.bf16.msra.mxu0 %v5132_v4  ;;  %v5126_v53 = vpack.c.bf16 %v3402_v36, %v3400_v24  ;;  %v5125_v48 = vpack.c.bf16 %v3399_v5, %v3397_v37 }
 0x389   :  { %v6839_v21 = vpack.c.bf16 %v3423_v35, %v3421_v26  ;;  %4413 = vmatprep.subr.bf16.mxu0 %v5131_v38  ;;  %v3258_v19 = vadd.f32 %v3257_v41, %v7117_v9  ;;  %v3424_v39 = vmax.f32 %v3256_v52, 0.0  ;;  %v5124_v40 = vpack.c.bf16 %v3398_v59, %v3396_v8 }
 0x38a   :  { %v3259_v61 = vpop.f32.mrf.mxu1 }
 0x38b   :  { %v3260_v56 = vadd.f32 %v3259_v61, %v7119_v55  ;;  %v3425_v20 = vmax.f32 %v3258_v19, 0.0 }
 0x38c   :  { %v3261_v16 = vpop.f32.mrf.mxu1  ;;  %4414 = vmatpush1.bf16.msra.mxu0 %v5130_v45 }
 0x38d   :  { %v3426_v6 = vmax.f32 %v3260_v56, 0.0  ;;  %v3262_v63 = vadd.f32 %v3261_v16, %v7119_v55  ;;  %4415 = vmatprep.subr.bf16.mxu0 %v5129_v49 }
 0x38e   :  { %v6855_v11 = vpop.f32.mrf.mxu1 }
 0x38f   :  { %v6857_v31 = vpack.c.bf16 %v3426_v6, %v3424_v39  ;;  %v3427_v25 = vmax.f32 %v3262_v63, 0.0  ;;  %v7126_v6 = vld [vmem:[#allocation29_spill] sm:$0xff] }
 0x390   :  { %v6861_v34 = vpop.f32.mrf.mxu1  ;;  %4416 = vmatpush1.bf16.msra.mxu0 %v5128_v47 }
 0x391   :  { %v6863_v10 = vpack.c.bf16 %v3427_v25, %v3425_v20  ;;  %4417 = vmatprep.subr.bf16.mxu0 %v5127_v2  ;;  %v7127_v20 = vld [vmem:[#allocation32_spill] sm:$0xff] }
 0x392   :  { %v6865_v29 = vpop.f32.mrf.mxu1 }
 0x394   :  { %v6867_v51 = vpop.f32.mrf.mxu1  ;;  %4418 = vmatpush1.bf16.msra.mxu0 %v5126_v53  ;;  %v7128_v53 = vld [vmem:[#allocation31_spill] sm:$0xff] }
 0x395   :  { %4419 = vmatprep.subr.bf16.mxu0 %v5125_v48 }
 0x396   :  { %v6869_v7 = vpop.f32.mrf.mxu1 }
 0x398   :  { %v6871_v23 = vpop.f32.mrf.mxu1  ;;  %4420 = vmatpush1.bf16.msra.mxu0 %v5124_v40 }
 0x399   :  { %4421 = vmatprep.subr.bf16.mxu0 %v6783_v3 }
 0x39a   :  { %v6874_v14 = vpop.f32.mrf.mxu1 }
 0x39c   :  { %v3281_v42 = vpop.f32.mrf.mxu1  ;;  %4422 = vmatpush1.bf16.msra.mxu0 %v6777_v57  ;;  %v7121_v57 = vld [vmem:[#allocation28_spill] sm:$0xff] }
 0x39d   :  { %4423 = vmatprep.subr.bf16.mxu0 %v6759_v22  ;;  %v7122_v22 = vld [vmem:[#allocation25_spill] sm:$0xff] }
 0x39e   :  { %v3285_v4 = vpop.f32.mrf.mxu1 }
 0x3a0   :  { %v3287_v50 = vpop.f32.mrf.mxu1  ;;  %4424 = vmatpush1.bf16.msra.mxu0 %v6753_v12 }
 0x3a1   :  { %v3288_v48 = vadd.f32 %v3287_v50, %v7128_v53 }
 0x3a2   :  { %v3289_v38 = vpop.f32.mrf.mxu1 }
 0x3a3   :  { %v3290_v40 = vadd.f32 %v3289_v38, %v7127_v20 }
 0x3a4   :  { %v3291_v26 = vpop.f32.mrf.mxu1 }
 0x3a5   :  { %v3292_v25 = vadd.f32 %v3291_v26, %v7127_v20  ;;  %v3286_v26 = vadd.f32 %v3285_v4, %v7128_v53 }
 0x3a6   :  { %v3295_v35 = vpop.f32.mrf.mxu1 }
 0x3a7   :  { %v3296_v37 = vadd.f32 %v3295_v35, %v7126_v6 }
 0x3a8   :  { %v3297_v1 = vpop.f32.mrf.mxu1 }
 0x3a9   :  { %v3298_v63 = vadd.f32 %v3297_v1, %v7126_v6  ;;  %v3979_v6 = vpop.permute.xlu0 %3978 }
 0x3aa   :  { %v3299_v15 = vpop.f32.mrf.mxu1 }
 0x3ab   :  { %v3300_v36 = vadd.f32 %v3299_v15, %v7125_v54  ;;  %v3441_v8 = vmax.f32 %v3298_v63, 0.0  ;;  %v7129_v15 = vld [vmem:[#allocation34_spill] sm:$0xff] }
 0x3ac   :  { %v3301_v41 = vpop.f32.mrf.mxu1  ;;  %v3280_v50 = vadd.f32 %v6874_v14, %v7129_v15 }
 0x3ad   :  { %v3302_v17 = vadd.f32 %v3301_v41, %v7125_v54  ;;  %v3442_v1 = vmax.f32 %v3300_v36, 0.0 }
 0x3ae   :  { %v3305_v28 = vpop.f32.mrf.mxu1 }
 0x3af   :  { %v3306_v13 = vadd.f32 %v3305_v28, %v7124_v33  ;;  %v3443_v30 = vmax.f32 %v3302_v17, 0.0  ;;  %v3282_v28 = vadd.f32 %v3281_v42, %v7129_v15 }
 0x3b0   :  { %v3307_v43 = vpop.f32.mrf.mxu1 }
 0x3b1   :  { %v3308_v49 = vadd.f32 %v3307_v43, %v7124_v33  ;;  %v3444_v59 = vmax.f32 %v3306_v13, 0.0  ;;  %v3439_v43 = vmax.f32 %v3292_v25, 0.0  ;;  %v3435_v42 = vmax.f32 %v3282_v28, 0.0 }
 0x3b2   :  { %v3309_v3 = vpop.f32.mrf.mxu1 }
 0x3b3   :  { %v3310_v55 = vadd.f32 %v3309_v3, %v7121_v57  ;;  %v3445_v27 = vmax.f32 %v3308_v49, 0.0  ;;  %v5147_v3 = vpack.c.bf16 %v3443_v30, %v3441_v8 }
 0x3b4   :  { %v3311_v18 = vpop.f32.mrf.mxu1 }
 0x3b5   :  { %v3312_v60 = vadd.f32 %v3311_v18, %v7121_v57  ;;  %v3446_v47 = vmax.f32 %v3310_v55, 0.0  ;;  %v3440_v18 = vmax.f32 %v3296_v37, 0.0  ;;  %v7131_v57 = vld [vmem:[#allocation36_spill] sm:$0xff] }
 0x3b6   :  { %v3315_v9 = vpop.f32.mrf.mxu1  ;;  %v3270_v14 = vadd.f32 %v6865_v29, %v7131_v57  ;;  %v5242_v29 = vld [vmem:[%s6950_s3 + $0x2c] ss:$16 sps:$4 sm:$0xff]  }
 0x3b7   :  { %v3316_v12 = vadd.f32 %v3315_v9, %v7122_v22  ;;  %v3447_v32 = vmax.f32 %v3312_v60, 0.0  ;;  %v5148_v41 = vpack.c.bf16 %v3446_v47, %v3444_v59  ;;  %v7130_v9 = vld [vmem:[#allocation33_spill] sm:$0xff]  ;;  %v5146_v38 = vpack.c.bf16 %v3442_v1, %v3440_v18  ;;  %v3984_v47 = vpop.permute.xlu1 %3983 }
 0x3b8   :  { %v3317_v52 = vpop.f32.mrf.mxu1  ;;  %v3278_v35 = vadd.f32 %v6871_v23, %v7130_v9  ;;  %v3272_v60 = vadd.f32 %v6867_v51, %v7131_v57  ;;  %v3276_v4 = vadd.f32 %v6869_v7, %v7130_v9  ;;  %v3430_v55 = vmax.f32 %v3270_v14, 0.0 }
 0x3b9   :  { %v3318_v58 = vadd.f32 %v3317_v52, %v7122_v22  ;;  %v3448_v39 = vmax.f32 %v3316_v12, 0.0  ;;  %v5149_v24 = vpack.c.bf16 %v3447_v32, %v3445_v27  ;;  %v3437_v52 = vmax.f32 %v3288_v48, 0.0  ;;  %v3989_v48 = vpop.permute.xlu0 %3988 }
 0x3ba   :  { %v3319_v0 = vpop.f32.mrf.mxu1  ;;  %v3434_v12 = vmax.f32 %v3280_v50, 0.0  ;;  %v3431_v33 = vmax.f32 %v3272_v60, 0.0 }
 0x3bb   :  { %v3320_v45 = vadd.f32 %v3319_v0, %v7123_v62  ;;  %v3449_v46 = vmax.f32 %v3318_v58, 0.0  ;;  %v3438_v0 = vmax.f32 %v3290_v40, 0.0  ;;  %v5145_v22 = vpack.c.bf16 %v3439_v43, %v3437_v52 }
 0x3bc   :  { %v3321_v61 = vpop.f32.mrf.mxu1  ;;  %v3436_v58 = vmax.f32 %v3286_v26, 0.0  ;;  %v3994_v26 = vpop.permute.xlu1 %3993 }
 0x3bd   :  { %v3322_v19 = vadd.f32 %v3321_v61, %v7123_v62  ;;  %v3450_v56 = vmax.f32 %v3320_v45, 0.0  ;;  %v7132_v62 = vld [vmem:[#allocation35_spill] sm:$0xff]  ;;  %v3433_v45 = vmax.f32 %v3278_v35, 0.0 }
 0x3be   :  { %v3268_v23 = vadd.f32 %v6861_v34, %v7132_v62  ;;  %v5144_v61 = vpack.c.bf16 %v3438_v0, %v3436_v58  ;;  %v3266_v51 = vadd.f32 %v6855_v11, %v7132_v62  ;;  %v5237_v11 = vld [vmem:[%s6950_s3 + $0x8] ss:$16 sps:$4 sm:$0xff]  }
 0x3bf   :  { %v3451_v16 = vmax.f32 %v3322_v19, 0.0  ;;  %v5150_v2 = vpack.c.bf16 %v3450_v56, %v3448_v39  ;;  %v5143_v49 = vpack.c.bf16 %v3435_v42, %v3433_v45  ;;  %v3432_v19 = vmax.f32 %v3276_v4, 0.0 }
 0x3c0   :  { %v3429_v7 = vmax.f32 %v3268_v23, 0.0  ;;  %v3428_v34 = vmax.f32 %v3266_v51, 0.0 }
 0x3c1   :  { %v5151_v5 = vpack.c.bf16 %v3451_v16, %v3449_v46  ;;  %v5142_v56 = vpack.c.bf16 %v3434_v12, %v3432_v19 }
 0x3c2   :  { %v5141_v54 = vpack.c.bf16 %v3431_v33, %v3429_v7  ;;  %v5140_v17 = vpack.c.bf16 %v3430_v55, %v3428_v34 }
 0x3c3   :  { %4425 = vmatprep.subr.bf16.mxu0 %v5151_v5 }
 0x3c4   :  { %4426 = vmatpush2.bf16.msra.mxu0 %v5150_v2 }
 0x3c5   :  { %4427 = vmatprep.subr.bf16.mxu0 %v5149_v24 }
 0x3c8   :  { %4428 = vmatpush2.bf16.msra.mxu0 %v5148_v41 }
 0x3c9   :  { %4429 = vmatprep.subr.bf16.mxu0 %v5147_v3 }
 0x3cc   :  { %4430 = vmatpush2.bf16.msra.mxu0 %v5146_v38 }
 0x3cd   :  { %4431 = vmatprep.subr.bf16.mxu0 %v5145_v22 }
 0x3d0   :  { %4432 = vmatpush2.bf16.msra.mxu0 %v5144_v61 }
 0x3d1   :  { %4433 = vmatprep.subr.bf16.mxu0 %v5143_v49 }
 0x3d4   :  { %4434 = vmatpush2.bf16.msra.mxu0 %v5142_v56 }
 0x3d5   :  { %4435 = vmatprep.subr.bf16.mxu0 %v5141_v54 }
 0x3d8   :  { %4436 = vmatpush2.bf16.msra.mxu0 %v5140_v17 }
 0x3d9   :  { %4437 = vmatprep.subr.bf16.mxu0 %v6863_v10  ;;  %v5240_v10 = vld [vmem:[%s6950_s3 + $0x28] ss:$16 sps:$4 sm:$0xff]  }
 0x3dc   :  { %4438 = vmatpush2.bf16.msra.mxu0 %v6857_v31 }
 0x3dd   :  { %4439 = vmatprep.subr.bf16.mxu0 %v6839_v21 }
 0x3e0   :  { %4440 = vmatpush2.bf16.msra.mxu0 %v6833_v44 }
 0x3e3   :  { %4442 = vmatmul.mubr.bf16.vlgmr.msra.gmra.mxu0 %v5237_v11 }
 0x3e4   :  { %4451 = vmatprep.mubr.bf16.mxu0 %v5242_v29 }
 0x3eb   :  { %4452 = vmatmul.mubr.bf16.gmra.mxu0 %v5240_v10 }
 0x423   :  { %v4390_v31 = vpop.f32.mrf.mxu0 }
 0x424   :  { %v4391_v63 = vadd.f32 %v4390_v31, %v3979_v6 }
 0x425   :  { %v4392_v32 = vpop.f32.mrf.mxu0 }
 0x426   :  { %v4393_v5 = vadd.f32 %v4392_v32, %v3979_v6 }
 0x427   :  { %v4394_v21 = vpop.f32.mrf.mxu0 }
 0x428   :  { %v4395_v20 = vadd.f32 %v4394_v21, %v3984_v47 }
 0x429   :  { %v4396_v46 = vpop.f32.mrf.mxu0 }
 0x42a   :  { %v4397_v37 = vadd.f32 %v4396_v46, %v3984_v47 }
 0x42b   :  { %v4400_v16 = vpop.f32.mrf.mxu0 }
 0x42c   :  { %v4401_v40 = vadd.f32 %v4400_v16, %v3989_v48 }
 0x42d   :  { %v4402_v13 = vpop.f32.mrf.mxu0 }
 0x42e   :  { %v4403_v28 = vadd.f32 %v4402_v13, %v3989_v48 }
 0x42f   :  { %v4404_v39 = vpop.f32.mrf.mxu0 }
 0x430   :  { %v4405_v9 = vadd.f32 %v4404_v39, %v3994_v26 }
 0x431   :  { %v4406_v44 = vpop.f32.mrf.mxu0 }
 0x432   :  { %v4407_v0 = vadd.f32 %v4406_v44, %v3994_v26 }
 0x4a3   :  { %v4443_v27 = vpop.f32.mrf.mxu0 }
 0x4a4   :  { %v4444_v36 = vadd.f32 %v4443_v27, %v4391_v63 }
 0x4a5   :  { %v4445_v2 = vpop.f32.mrf.mxu0 }
 0x4a6   :  { %v4462_v25 = vmax.f32 %v4444_v36, 0.0  ;;  %v4446_v30 = vadd.f32 %v4445_v2, %v4393_v5 }
 0x4a7   :  { %v4447_v24 = vpop.f32.mrf.mxu0 }
 0x4a8   :  { %4888 = vst [vmem:[%s6952_s5 + $0x40] sm:$0xff] %v4462_v25  ;;  %v4463_v59 = vmax.f32 %v4446_v30, 0.0  ;;  %v4448_v53 = vadd.f32 %v4447_v24, %v4395_v20 }
 0x4a9   :  { %v4449_v8 = vpop.f32.mrf.mxu0 }
 0x4aa   :  { %4889 = vst [vmem:[%s6952_s5 + $0x48] sm:$0xff] %v4463_v59  ;;  %v4464_v1 = vmax.f32 %v4448_v53, 0.0  ;;  %v4450_v41 = vadd.f32 %v4449_v8, %v4397_v37 }
 0x4ab   :  { %v4453_v15 = vpop.f32.mrf.mxu0 }
 0x4ac   :  { %4890 = vst [vmem:[%s6952_s5 + $0x50] sm:$0xff] %v4464_v1  ;;  %v4465_v43 = vmax.f32 %v4450_v41, 0.0  ;;  %v4454_v3 = vadd.f32 %v4453_v15, %v4401_v40 }
 0x4ad   :  { %v4455_v18 = vpop.f32.mrf.mxu0 }
 0x4ae   :  { %4891 = vst [vmem:[%s6952_s5 + $0x58] sm:$0xff] %v4465_v43  ;;  %v4466_v35 = vmax.f32 %v4454_v3, 0.0  ;;  %v4456_v52 = vadd.f32 %v4455_v18, %v4403_v28 }
 0x4af   :  { %v4457_v50 = vpop.f32.mrf.mxu0 }
 0x4b0   :  { %4892 = vst [vmem:[%s6952_s5 + $0x60] sm:$0xff] %v4466_v35  ;;  %v4467_v38 = vmax.f32 %v4456_v52, 0.0  ;;  %v4458_v57 = vadd.f32 %v4457_v50, %v4405_v9 }
 0x4b1   :  { %v4459_v60 = vpop.f32.mrf.mxu0 }
 0x4b2   :  { %4893 = vst [vmem:[%s6952_s5 + $0x68] sm:$0xff] %v4467_v38  ;;  %v4468_v42 = vmax.f32 %v4458_v57, 0.0  ;;  %v4460_v22 = vadd.f32 %v4459_v60, %v4407_v0 }
 0x4b4   :  { %4894 = vst [vmem:[%s6952_s5 + $0x70] sm:$0xff] %v4468_v42  ;;  %v4469_v4 = vmax.f32 %v4460_v22, 0.0 }
 0x4b6   :  { %4895 = vst [vmem:[%s6952_s5 + $0x78] sm:$0xff] %v4469_v4 }

// kernel: attention_forward.1
= control target key start
LH: loop header
LB: loop body
LE: loop exit
PB: predicated region body
PF: predicated region fallthrough
CT: control target
= control target key end

     0   :  { %vm736_vm0 = vcmask 1041408   ;;  %v6956_v0 = vmov 0   ;;  %vm639_vm1 = vcmask 31744   ;;  %s6947_s2 = inlined_call_operand.vmem [shape: f32[512,1], index: 2, kind: input, shape index: {}]   ;;  %s6948_s0 = inlined_call_operand.vmem [shape: bf16[2,4,256], index: 0, kind: input, shape index: {}]   ;;  %s6949_s1 = inlined_call_operand.vmem [shape: bf16[512,4], index: 1, kind: input, shape index: {}]   ;;  %s6950_s3 = inlined_call_operand.vmem [shape: bf16[32,512], index: 3, kind: input, shape index: {}]   ;;  %s6951_s4 = inlined_call_operand.vmem [shape: f32[32,1], index: 4, kind: input, shape index: {}]   ;;  %s6952_s5 = inlined_call_operand.vmem [shape: f32[2,32,256], index: 5, kind: output, shape index: {}]  }
   0x1   :  { %5154 = vset.pattern.permute.xlu1 %v6956_v0  ;;  %5153 = vset.pattern.permute.xlu0 %v6956_v0  ;;  %v5279_v1 = vld [vmem:[%s6947_s2 + $0x70] sm:$0xff]  ;;  %v5284_v2 = vld [vmem:[%s6947_s2 + $0x60] sm:$0xff]  ;;  %v5295_v6 = vld [vmem:[%s6947_s2 + $0x78] sm:$0xff] }
   0x2   :  { %v4515_v3 = vld.sshfl [vmem:[%s6948_s0] sm:$0x33 pattern:$0x76325410]  ;;  %222 = vperm.xlu0 %5153, %v5279_v1   ;;  %212 = vperm.xlu1 %5154, %v5284_v2   ;;  %v5300_v7 = vld [vmem:[%s6947_s2 + $0x68] sm:$0xff]  ;;  %v5312_v9 = vld [vmem:[%s6947_s2 + $0x58] sm:$0xff] }
   0x3   :  { %v638_v4 = vcombine.high %v4515_v3, %v4515_v3  ;;  %v738_v5 = vsel %vm736_vm0, %v4515_v3, 0  ;;  %775 = vmatprep.mubr.bf16.mxu0 %v6956_v0  ;;  %v5155_v8 = vld [vmem:[%s6949_s1] sm:$0xff]   ;;  %v5317_v10 = vld [vmem:[%s6947_s2 + $0x50] sm:$0xff]  ;;  %v5326_v11 = vld [vmem:[%s6947_s2 + $0x48] sm:$0xff] }
   0x4   :  { %v5331_v12 = vld [vmem:[%s6947_s2 + $0x40] sm:$0xff]  ;;  %v5156_v13 = vld [vmem:[%s6949_s1 + $0x8] sm:$0xff]   ;;  %v5341_v14 = vld [vmem:[%s6947_s2 + $0x38] sm:$0xff] }
   0x5   :  { %4516 = vmatprep.subr.msk.bf16.mxu0 %vm736_vm0, %v638_v4  ;;  %v5346_v15 = vld [vmem:[%s6947_s2 + $0x30] sm:$0xff]  ;;  %v5355_v16 = vld [vmem:[%s6947_s2 + $0x28] sm:$0xff]  ;;  %v5360_v17 = vld [vmem:[%s6947_s2 + $0x20] sm:$0xff] }
   0x6   :  { %758 = vmatpush1.bf16.msra.mxu0 %v738_v5  ;;  %227 = vperm.xlu0 %5153, %v5295_v6   ;;  %v5157_v18 = vld [vmem:[%s6949_s1 + $0x10] sm:$0xff]   ;;  %v5370_v19 = vld [vmem:[%s6947_s2 + $0x18] sm:$0xff]  ;;  %v5384_v21 = vld [vmem:[%s6947_s2 + $0x8] sm:$0xff] }
   0x7   :  { %217 = vperm.xlu1 %5154, %v5300_v7   ;;  %v5375_v20 = vld [vmem:[%s6947_s2 + $0x10] sm:$0xff]  ;;  %v5389_v22 = vld [vmem:[%s6947_s2] sm:$0xff]  ;;  %v5158_v23 = vld [vmem:[%s6949_s1 + $0x18] sm:$0xff]  }
   0x8   :  { %v5399_v24 = vld [vmem:[%s6947_s2 + $0xf8] sm:$0xff]  ;;  %v5404_v25 = vld [vmem:[%s6947_s2 + $0xf0] sm:$0xff]  ;;  %v5413_v26 = vld [vmem:[%s6947_s2 + $0xe8] sm:$0xff] }
   0x9   :  { %4517 = vmatmul.mubr.msk.bf16.vlgmr.msra.gmra.mxu0 %vm639_vm1, %v5155_v8  ;;  %v5418_v27 = vld [vmem:[%s6947_s2 + $0xe0] sm:$0xff]  ;;  %v5428_v29 = vld [vmem:[%s6947_s2 + $0xd8] sm:$0xff]  ;;  %v5433_v30 = vld [vmem:[%s6947_s2 + $0xd0] sm:$0xff] }
   0xa   :  { %785 = vmatprep.mubr.bf16.mxu0 %v6956_v0  ;;  %202 = vperm.xlu0 %5153, %v5317_v10   ;;  %v5159_v28 = vld [vmem:[%s6949_s1 + $0x20] sm:$0xff]   ;;  %v5442_v31 = vld [vmem:[%s6947_s2 + $0xc8] sm:$0xff]  ;;  %v5455_v34 = vld [vmem:[%s6947_s2 + $0xb8] sm:$0xff] }
   0xb   :  { %207 = vperm.xlu1 %5154, %v5312_v9   ;;  %v5447_v32 = vld [vmem:[%s6947_s2 + $0xc0] sm:$0xff]  ;;  %v5160_v33 = vld [vmem:[%s6949_s1 + $0x28] sm:$0xff]   ;;  %v5462_v35 = vld [vmem:[%s6947_s2 + $0xb0] sm:$0xff] }
   0xc   :  { %v5468_v36 = vld [vmem:[%s6947_s2 + $0xa8] sm:$0xff]  ;;  %v5473_v37 = vld [vmem:[%s6947_s2 + $0xa0] sm:$0xff]  ;;  %v5161_v38 = vld [vmem:[%s6949_s1 + $0x30] sm:$0xff]  }
   0xd   :  { %v5484_v39 = vld [vmem:[%s6947_s2 + $0x98] sm:$0xff]  ;;  %v5491_v40 = vld [vmem:[%s6947_s2 + $0x90] sm:$0xff]  ;;  %v5497_v41 = vld [vmem:[%s6947_s2 + $0x88] sm:$0xff] }
   0xe   :  { %192 = vperm.xlu0 %5153, %v5331_v12   ;;  %v5502_v42 = vld [vmem:[%s6947_s2 + $0x80] sm:$0xff]  ;;  %v5162_v43 = vld [vmem:[%s6949_s1 + $0x38] sm:$0xff]   ;;  %v5520_v45 = vld [vmem:[%s6947_s2 + $0x170] sm:$0xff] }
   0xf   :  { %197 = vperm.xlu1 %5154, %v5326_v11   ;;  %v5513_v44 = vld [vmem:[%s6947_s2 + $0x178] sm:$0xff]  ;;  %v5526_v46 = vld [vmem:[%s6947_s2 + $0x168] sm:$0xff]  ;;  %v5531_v47 = vld [vmem:[%s6947_s2 + $0x160] sm:$0xff] }
  0x10   :  { %v5163_v48 = vld [vmem:[%s6949_s1 + $0x40] sm:$0xff]   ;;  %v5542_v49 = vld [vmem:[%s6947_s2 + $0x158] sm:$0xff]  ;;  %v5549_v50 = vld [vmem:[%s6947_s2 + $0x150] sm:$0xff] }
  0x11   :  { %4518 = vmatmul.mubr.msk.bf16.gmra.mxu0 %vm639_vm1, %v5156_v13  ;;  %v5558_v51 = vld [vmem:[%s6947_s2 + $0x148] sm:$0xff]  ;;  %v5563_v52 = vld [vmem:[%s6947_s2 + $0x140] sm:$0xff]  ;;  %v5573_v54 = vld [vmem:[%s6947_s2 + $0x138] sm:$0xff] }
  0x12   :  { %795 = vmatprep.mubr.bf16.mxu0 %v6956_v0  ;;  %182 = vperm.xlu0 %5153, %v5346_v15   ;;  %v5164_v53 = vld [vmem:[%s6949_s1 + $0x48] sm:$0xff]   ;;  %v5578_v55 = vld [vmem:[%s6947_s2 + $0x130] sm:$0xff]  ;;  %v5592_v57 = vld [vmem:[%s6947_s2 + $0x120] sm:$0xff] }
  0x13   :  { %187 = vperm.xlu1 %5154, %v5341_v14   ;;  %v5587_v56 = vld [vmem:[%s6947_s2 + $0x128] sm:$0xff]  ;;  %v5165_v58 = vld [vmem:[%s6949_s1 + $0x50] sm:$0xff]   ;;  %v5602_v59 = vld [vmem:[%s6947_s2 + $0x118] sm:$0xff] }
  0x14   :  { %v5607_v60 = vld [vmem:[%s6947_s2 + $0x110] sm:$0xff]  ;;  %v5616_v61 = vld [vmem:[%s6947_s2 + $0x108] sm:$0xff]  ;;  %v5621_v62 = vld [vmem:[%s6947_s2 + $0x100] sm:$0xff] }
  0x15   :  { %v5166_v63 = vld [vmem:[%s6949_s1 + $0x58] sm:$0xff]   ;;  %v5636_v4 = vld [vmem:[%s6947_s2 + $0x1f0] sm:$0xff]  ;;  %v5645_v5 = vld [vmem:[%s6947_s2 + $0x1e8] sm:$0xff] }
  0x16   :  { %172 = vperm.xlu0 %5153, %v5360_v17   ;;  %v5631_v3 = vld [vmem:[%s6947_s2 + $0x1f8] sm:$0xff]  ;;  %v5650_v8 = vld [vmem:[%s6947_s2 + $0x1e0] sm:$0xff] }
  0x17   :  { %177 = vperm.xlu1 %5154, %v5355_v16   ;;  %v5167_v13 = vld [vmem:[%s6949_s1 + $0x60] sm:$0xff]  }
  0x19   :  { %4519 = vmatmul.mubr.msk.bf16.gmra.mxu0 %vm639_vm1, %v5157_v18  ;;  %v5660_v18 = vld [vmem:[%s6947_s2 + $0x1d8] sm:$0xff] }
  0x1a   :  { %805 = vmatprep.mubr.bf16.mxu0 %v6956_v0  ;;  %162 = vperm.xlu0 %5153, %v5375_v20  }
  0x1b   :  { %167 = vperm.xlu1 %5154, %v5370_v19  }
  0x1e   :  { %152 = vperm.xlu0 %5153, %v5389_v22  }
  0x1f   :  { %157 = vperm.xlu1 %5154, %v5384_v21  }
  0x21   :  { %4520 = vmatmul.mubr.msk.bf16.gmra.mxu0 %vm639_vm1, %v5158_v23  ;;  %v5665_v23 = vld [vmem:[%s6947_s2 + $0x1d0] sm:$0xff] }
  0x22   :  { %815 = vmatprep.mubr.bf16.mxu0 %v6956_v0  ;;  %302 = vperm.xlu0 %5153, %v5404_v25  }
  0x23   :  { %307 = vperm.xlu1 %5154, %v5399_v24  }
  0x26   :  { %292 = vperm.xlu0 %5153, %v5418_v27  }
  0x27   :  { %297 = vperm.xlu1 %5154, %v5413_v26  }
  0x29   :  { %4521 = vmatmul.mubr.msk.bf16.gmra.mxu0 %vm639_vm1, %v5159_v28  ;;  %v5674_v28 = vld [vmem:[%s6947_s2 + $0x1c8] sm:$0xff] }
  0x2a   :  { %825 = vmatprep.mubr.bf16.mxu0 %v6956_v0  ;;  %282 = vperm.xlu0 %5153, %v5433_v30  }
  0x2b   :  { %287 = vperm.xlu1 %5154, %v5428_v29  }
  0x2e   :  { %272 = vperm.xlu0 %5153, %v5447_v32  }
  0x2f   :  { %277 = vperm.xlu1 %5154, %v5442_v31  }
  0x31   :  { %4522 = vmatmul.mubr.msk.bf16.gmra.mxu0 %vm639_vm1, %v5160_v33  ;;  %v5679_v33 = vld [vmem:[%s6947_s2 + $0x1c0] sm:$0xff] }
  0x32   :  { %835 = vmatprep.mubr.bf16.mxu0 %v6956_v0  ;;  %262 = vperm.xlu0 %5153, %v5462_v35  }
  0x33   :  { %267 = vperm.xlu1 %5154, %v5455_v34  }
  0x36   :  { %252 = vperm.xlu0 %5153, %v5473_v37  }
  0x37   :  { %257 = vperm.xlu1 %5154, %v5468_v36  }
  0x39   :  { %4523 = vmatmul.mubr.msk.bf16.gmra.mxu0 %vm639_vm1, %v5161_v38  ;;  %v5168_v38 = vld [vmem:[%s6949_s1 + $0x68] sm:$0xff]  }
  0x3a   :  { %845 = vmatprep.mubr.bf16.mxu0 %v6956_v0  ;;  %242 = vperm.xlu0 %5153, %v5491_v40  }
  0x3b   :  { %247 = vperm.xlu1 %5154, %v5484_v39  }
  0x3e   :  { %232 = vperm.xlu0 %5153, %v5502_v42  }
  0x3f   :  { %237 = vperm.xlu1 %5154, %v5497_v41  }
  0x41   :  { %4524 = vmatmul.mubr.msk.bf16.gmra.mxu0 %vm639_vm1, %v5162_v43  ;;  %v5689_v43 = vld [vmem:[%s6947_s2 + $0x1b8] sm:$0xff] }
  0x42   :  { %855 = vmatprep.mubr.bf16.mxu0 %v6956_v0  ;;  %382 = vperm.xlu0 %5153, %v5520_v45  }
  0x43   :  { %387 = vperm.xlu1 %5154, %v5513_v44  }
  0x46   :  { %372 = vperm.xlu0 %5153, %v5531_v47  }
  0x47   :  { %377 = vperm.xlu1 %5154, %v5526_v46  }
  0x49   :  { %4525 = vmatmul.mubr.msk.bf16.gmra.mxu0 %vm639_vm1, %v5163_v48  ;;  %v5694_v48 = vld [vmem:[%s6947_s2 + $0x1b0] sm:$0xff] }
  0x4a   :  { %865 = vmatprep.mubr.bf16.mxu0 %v6956_v0  ;;  %362 = vperm.xlu0 %5153, %v5549_v50  }
  0x4b   :  { %367 = vperm.xlu1 %5154, %v5542_v49  }
  0x4e   :  { %352 = vperm.xlu0 %5153, %v5563_v52  }
  0x4f   :  { %357 = vperm.xlu1 %5154, %v5558_v51  }
  0x51   :  { %4526 = vmatmul.mubr.msk.bf16.gmra.mxu0 %vm639_vm1, %v5164_v53  ;;  %v5703_v53 = vld [vmem:[%s6947_s2 + $0x1a8] sm:$0xff] }
  0x52   :  { %875 = vmatprep.mubr.bf16.mxu0 %v6956_v0  ;;  %342 = vperm.xlu0 %5153, %v5578_v55   ;;  %7014 = vst [vmem:[#allocation3_spill] sm:$0xff] %v5703_v53 }
  0x53   :  { %347 = vperm.xlu1 %5154, %v5573_v54  }
  0x56   :  { %332 = vperm.xlu0 %5153, %v5592_v57  }
  0x57   :  { %337 = vperm.xlu1 %5154, %v5587_v56  }
  0x59   :  { %4527 = vmatmul.mubr.msk.bf16.gmra.mxu0 %vm639_vm1, %v5165_v58  ;;  %v5708_v58 = vld [vmem:[%s6947_s2 + $0x1a0] sm:$0xff] }
  0x5a   :  { %885 = vmatprep.mubr.bf16.mxu0 %v6956_v0  ;;  %322 = vperm.xlu0 %5153, %v5607_v60   ;;  %7015 = vst [vmem:[#allocation4_spill] sm:$0xff] %v5708_v58 }
  0x5b   :  { %327 = vperm.xlu1 %5154, %v5602_v59  }
  0x5e   :  { %312 = vperm.xlu0 %5153, %v5621_v62  }
  0x5f   :  { %317 = vperm.xlu1 %5154, %v5616_v61  }
  0x61   :  { %4528 = vmatmul.mubr.msk.bf16.gmra.mxu0 %vm639_vm1, %v5166_v63  ;;  %v5169_v63 = vld [vmem:[%s6949_s1 + $0x70] sm:$0xff]  }
  0x62   :  { %895 = vmatprep.mubr.bf16.mxu0 %v6956_v0  ;;  %462 = vperm.xlu0 %5153, %v5636_v4  }
  0x63   :  { %467 = vperm.xlu1 %5154, %v5631_v3  }
  0x66   :  { %452 = vperm.xlu0 %5153, %v5650_v8  }
  0x67   :  { %457 = vperm.xlu1 %5154, %v5645_v5  }
  0x69   :  { %4529 = vmatmul.mubr.msk.bf16.gmra.mxu0 %vm639_vm1, %v5167_v13  ;;  %v5718_v13 = vld [vmem:[%s6947_s2 + $0x198] sm:$0xff] }
  0x6a   :  { %905 = vmatprep.mubr.bf16.mxu0 %v6956_v0  ;;  %442 = vperm.xlu0 %5153, %v5665_v23  }
  0x6b   :  { %447 = vperm.xlu1 %5154, %v5660_v18  }
  0x6e   :  { %432 = vperm.xlu0 %5153, %v5679_v33  }
  0x6f   :  { %437 = vperm.xlu1 %5154, %v5674_v28  }
  0x71   :  { %4530 = vmatmul.mubr.msk.bf16.gmra.mxu0 %vm639_vm1, %v5168_v38  ;;  %v5723_v38 = vld [vmem:[%s6947_s2 + $0x190] sm:$0xff] }
  0x72   :  { %915 = vmatprep.mubr.bf16.mxu0 %v6956_v0  ;;  %422 = vperm.xlu0 %5153, %v5694_v48   ;;  %7016 = vst [vmem:[#allocation5_spill] sm:$0xff] %v5723_v38 }
  0x73   :  { %427 = vperm.xlu1 %5154, %v5689_v43  }
  0x76   :  { %412 = vperm.xlu0 %5153, %v5708_v58   ;;  %v5732_v58 = vld [vmem:[%s6947_s2 + $0x188] sm:$0xff] }
  0x77   :  { %417 = vperm.xlu1 %5154, %v5703_v53   ;;  %v5737_v53 = vld [vmem:[%s6947_s2 + $0x180] sm:$0xff] }
  0x79   :  { %4531 = vmatmul.mubr.msk.bf16.gmra.mxu0 %vm639_vm1, %v5169_v63  ;;  %v5170_v63 = vld [vmem:[%s6949_s1 + $0x78] sm:$0xff]  }
  0x7a   :  { %925 = vmatprep.mubr.bf16.mxu0 %v6956_v0  ;;  %402 = vperm.xlu0 %5153, %v5723_v38   ;;  %v5171_v38 = vld [vmem:[%s6949_s1 + $0x80] sm:$0xff]  }
  0x7b   :  { %407 = vperm.xlu1 %5154, %v5718_v13  }
  0x7e   :  { %392 = vperm.xlu0 %5153, %v5737_v53  }
  0x7f   :  { %397 = vperm.xlu1 %5154, %v5732_v58  }
  0x81   :  { %4532 = vmatmul.mubr.msk.bf16.gmra.mxu0 %vm639_vm1, %v5170_v63 }
  0x82   :  { %935 = vmatprep.mubr.bf16.mxu0 %v6956_v0  ;;  %2452 = vperm.xlu0 %5153, %v5279_v1   ;;  %v5172_v1 = vld [vmem:[%s6949_s1 + $0x88] sm:$0xff]  }
  0x83   :  { %2457 = vperm.xlu1 %5154, %v5295_v6   ;;  %v5174_v6 = vld [vmem:[%s6949_s1 + $0x98] sm:$0xff]  }
  0x86   :  { %2442 = vperm.xlu0 %5153, %v5284_v2   ;;  %v5173_v2 = vld [vmem:[%s6949_s1 + $0x90] sm:$0xff]  }
  0x87   :  { %2447 = vperm.xlu1 %5154, %v5300_v7   ;;  %v5780_v7 = vpop.permute.xlu0 %222 }
  0x89   :  { %4533 = vmatmul.mubr.msk.bf16.gmra.mxu0 %vm639_vm1, %v5171_v38 }
  0x8a   :  { %945 = vmatprep.mubr.bf16.mxu0 %v6956_v0  ;;  %2432 = vperm.xlu0 %5153, %v5317_v10   ;;  %v5175_v10 = vld [vmem:[%s6949_s1 + $0xa0] sm:$0xff]  }
  0x8b   :  { %2437 = vperm.xlu1 %5154, %v5312_v9   ;;  %v5783_v9 = vpop.permute.xlu1 %212 }
  0x8e   :  { %2422 = vperm.xlu0 %5153, %v5331_v12  }
  0x8f   :  { %2427 = vperm.xlu1 %5154, %v5326_v11   ;;  %v5791_v11 = vpop.permute.xlu0 %227  ;;  %v5795_v12 = vpop.permute.xlu1 %217 }
  0x91   :  { %4534 = vmatmul.mubr.msk.bf16.gmra.mxu0 %vm639_vm1, %v5172_v1 }
  0x92   :  { %955 = vmatprep.mubr.bf16.mxu0 %v6956_v0  ;;  %2412 = vperm.xlu0 %5153, %v5346_v15   ;;  %v5176_v15 = vld [vmem:[%s6949_s1 + $0xa8] sm:$0xff]  }
  0x93   :  { %2417 = vperm.xlu1 %5154, %v5341_v14   ;;  %v5801_v14 = vpop.permute.xlu0 %202 }
  0x96   :  { %2402 = vperm.xlu0 %5153, %v5360_v17  }
  0x97   :  { %2407 = vperm.xlu1 %5154, %v5355_v16   ;;  %v5806_v16 = vpop.permute.xlu1 %207  ;;  %v5812_v17 = vpop.permute.xlu0 %192 }
  0x99   :  { %4535 = vmatmul.mubr.msk.bf16.gmra.mxu0 %vm639_vm1, %v5173_v2 }
  0x9a   :  { %965 = vmatprep.mubr.bf16.mxu0 %v6956_v0  ;;  %2392 = vperm.xlu0 %5153, %v5375_v20   ;;  %v5177_v20 = vld [vmem:[%s6949_s1 + $0xb0] sm:$0xff]  }
  0x9b   :  { %2397 = vperm.xlu1 %5154, %v5370_v19   ;;  %v5816_v19 = vpop.permute.xlu1 %197 }
  0x9e   :  { %2382 = vperm.xlu0 %5153, %v5389_v22  }
  0x9f   :  { %2387 = vperm.xlu1 %5154, %v5384_v21   ;;  %v5823_v21 = vpop.permute.xlu0 %182  ;;  %v5826_v22 = vpop.permute.xlu1 %187 }
  0xa1   :  { %4536 = vmatmul.mubr.msk.bf16.gmra.mxu0 %vm639_vm1, %v5174_v6 }
  0xa2   :  { %975 = vmatprep.mubr.bf16.mxu0 %v6956_v0  ;;  %2532 = vperm.xlu0 %5153, %v5404_v25  }
  0xa3   :  { %2537 = vperm.xlu1 %5154, %v5399_v24   ;;  %v5178_v24 = vld [vmem:[%s6949_s1 + $0xb8] sm:$0xff]   ;;  %v5834_v25 = vpop.permute.xlu0 %172 }
  0xa6   :  { %2522 = vperm.xlu0 %5153, %v5418_v27  }
  0xa7   :  { %2527 = vperm.xlu1 %5154, %v5413_v26   ;;  %v5838_v26 = vpop.permute.xlu1 %177  ;;  %v163_v27 = vpop.permute.xlu0 %162 }
  0xa9   :  { %4537 = vmatmul.mubr.msk.bf16.gmra.mxu0 %vm639_vm1, %v5175_v10  ;;  %v5181_v10 = vld [vmem:[%s6949_s1 + $0xd0] sm:$0xff]  }
  0xaa   :  { %985 = vmatprep.mubr.bf16.mxu0 %v6956_v0  ;;  %2512 = vperm.xlu0 %5153, %v5433_v30  }
  0xab   :  { %2517 = vperm.xlu1 %5154, %v5428_v29   ;;  %v5179_v29 = vld [vmem:[%s6949_s1 + $0xc0] sm:$0xff]   ;;  %v168_v30 = vpop.permute.xlu1 %167 }
  0xae   :  { %2502 = vperm.xlu0 %5153, %v5447_v32   ;;  %v153_v32 = vpop.permute.xlu0 %152 }
  0xaf   :  { %2507 = vperm.xlu1 %5154, %v5442_v31  }
  0xb1   :  { %4538 = vmatmul.mubr.msk.bf16.gmra.mxu0 %vm639_vm1, %v5176_v15 }
  0xb2   :  { %995 = vmatprep.mubr.bf16.mxu0 %v6956_v0  ;;  %2492 = vperm.xlu0 %5153, %v5462_v35   ;;  %v158_v35 = vpop.permute.xlu1 %157  ;;  %v5864_v1 = vpop.permute.xlu0 %302 }
  0xb3   :  { %2497 = vperm.xlu1 %5154, %v5455_v34  }
  0xb6   :  { %2482 = vperm.xlu0 %5153, %v5473_v37  }
  0xb7   :  { %2487 = vperm.xlu1 %5154, %v5468_v36  }
  0xb9   :  { %4539 = vmatmul.mubr.msk.bf16.gmra.mxu0 %vm639_vm1, %v5177_v20 }
  0xba   :  { %1005 = vmatprep.mubr.bf16.mxu0 %v6956_v0  ;;  %2472 = vperm.xlu0 %5153, %v5491_v40  }
  0xbb   :  { %2477 = vperm.xlu1 %5154, %v5484_v39   ;;  %v5180_v39 = vld [vmem:[%s6949_s1 + $0xc8] sm:$0xff]  }
  0xbe   :  { %2462 = vperm.xlu0 %5153, %v5502_v42  }
  0xbf   :  { %2467 = vperm.xlu1 %5154, %v5497_v41  }
  0xc1   :  { %4540 = vmatmul.mubr.msk.bf16.gmra.mxu0 %vm639_vm1, %v5178_v24 }
  0xc2   :  { %1015 = vmatprep.mubr.bf16.mxu0 %v6956_v0  ;;  %2612 = vperm.xlu0 %5153, %v5520_v45  }
  0xc3   :  { %2617 = vperm.xlu1 %5154, %v5513_v44  }
  0xc6   :  { %2602 = vperm.xlu0 %5153, %v5531_v47  }
  0xc7   :  { %2607 = vperm.xlu1 %5154, %v5526_v46  }
  0xc9   :  { %v777_v31 = vpop.f32.mrf.mxu0  ;;  %4541 = vmatmul.mubr.msk.bf16.gmra.mxu0 %vm639_vm1, %v5179_v29 }
  0xca   :  { %1025 = vmatprep.mubr.bf16.mxu0 %v6956_v0  ;;  %2592 = vperm.xlu0 %5153, %v5549_v50   ;;  %v778_v36 = vadd.f32 %v777_v31, %v153_v32 }
  0xcb   :  { %2597 = vperm.xlu1 %5154, %v5542_v49   ;;  %v779_v34 = vpop.f32.mrf.mxu0  ;;  %v5859_v49 = vpop.permute.xlu1 %307 }
  0xcc   :  { %v780_v40 = vadd.f32 %v779_v34, %v153_v32  ;;  %v1096_v44 = vmax.f32 %v778_v36, 0.0  ;;  %v5877_v32 = vpop.permute.xlu0 %292 }
  0xcd   :  { %v781_v37 = vpop.f32.mrf.mxu0 }
  0xce   :  { %v782_v41 = vadd.f32 %v781_v37, %v158_v35  ;;  %2582 = vperm.xlu0 %5153, %v5563_v52   ;;  %v1097_v50 = vmax.f32 %v780_v40, 0.0 }
  0xcf   :  { %2587 = vperm.xlu1 %5154, %v5558_v51   ;;  %v783_v42 = vpop.f32.mrf.mxu0  ;;  %v5875_v29 = vpop.permute.xlu1 %297 }
  0xd0   :  { %v1098_v45 = vmax.f32 %v782_v41, 0.0  ;;  %v784_v46 = vadd.f32 %v783_v42, %v158_v35  ;;  %v5896_v42 = vpop.permute.xlu0 %282 }
  0xd1   :  { %v787_v47 = vpop.f32.mrf.mxu0  ;;  %4542 = vmatmul.mubr.msk.bf16.gmra.mxu0 %vm639_vm1, %v5180_v39  ;;  %v5182_v39 = vld [vmem:[%s6949_s1 + $0xd8] sm:$0xff]   ;;  %7018 = vst [vmem:[#allocation7_spill] sm:$0xff] %v5896_v42 }
  0xd2   :  { %v5861_v38 = vpack.c.bf16 %v1098_v45, %v1096_v44  ;;  %v1099_v63 = vmax.f32 %v784_v46, 0.0  ;;  %1035 = vmatprep.mubr.bf16.mxu0 %v6956_v0  ;;  %2572 = vperm.xlu0 %5153, %v5578_v55   ;;  %v788_v52 = vadd.f32 %v787_v47, %v163_v27 }
  0xd3   :  { %2577 = vperm.xlu1 %5154, %v5573_v54   ;;  %v789_v51 = vpop.f32.mrf.mxu0  ;;  %v5893_v40 = vpop.permute.xlu1 %287 }
  0xd4   :  { %v5868_v2 = vpack.c.bf16 %v1099_v63, %v1097_v50  ;;  %v790_v15 = vadd.f32 %v789_v51, %v163_v27  ;;  %v1100_v54 = vmax.f32 %v788_v52, 0.0  ;;  %7017 = vst [vmem:[#allocation6_spill] sm:$0xff] %v5893_v40  ;;  %v5183_v63 = vld [vmem:[%s6949_s1 + $0xe0] sm:$0xff]  }
  0xd5   :  { %v791_v6 = vpop.f32.mrf.mxu0 }
  0xd6   :  { %v792_v20 = vadd.f32 %v791_v6, %v168_v30  ;;  %2562 = vperm.xlu0 %5153, %v5592_v57   ;;  %v1101_v35 = vmax.f32 %v790_v15, 0.0 }
  0xd7   :  { %2567 = vperm.xlu1 %5154, %v5587_v56   ;;  %v793_v24 = vpop.f32.mrf.mxu0 }
  0xd8   :  { %v1102_v55 = vmax.f32 %v792_v20, 0.0  ;;  %v794_v31 = vadd.f32 %v793_v24, %v168_v30 }
  0xd9   :  { %v797_v34 = vpop.f32.mrf.mxu0  ;;  %4543 = vmatmul.mubr.msk.bf16.gmra.mxu0 %vm639_vm1, %v5181_v10  ;;  %v5184_v10 = vld [vmem:[%s6949_s1 + $0xe8] sm:$0xff]  }
  0xda   :  { %v5880_v36 = vpack.c.bf16 %v1102_v55, %v1100_v54  ;;  %v1103_v27 = vmax.f32 %v794_v31, 0.0  ;;  %1045 = vmatprep.mubr.bf16.mxu0 %v6956_v0  ;;  %2552 = vperm.xlu0 %5153, %v5607_v60   ;;  %v798_v57 = vadd.f32 %v797_v34, %v5834_v25  ;;  %v7025_v31 = vld [vmem:[#allocation3_spill] sm:$0xff]  ;;  %v7026_v34 = vld [vmem:[#allocation4_spill] sm:$0xff] }
  0xdb   :  { %2557 = vperm.xlu1 %5154, %v5602_v59   ;;  %v5885_v56 = vpop.f32.mrf.mxu0 }
  0xdc   :  { %v5888_v30 = vpack.c.bf16 %v1103_v27, %v1101_v35  ;;  %v1104_v60 = vmax.f32 %v798_v57, 0.0 }
  0xdd   :  { %v801_v37 = vpop.f32.mrf.mxu0 }
  0xde   :  { %v802_v41 = vadd.f32 %v801_v37, %v5838_v26  ;;  %2542 = vperm.xlu0 %5153, %v5621_v62   ;;  %v5914_v62 = vpop.permute.xlu0 %272 }
  0xdf   :  { %2547 = vperm.xlu1 %5154, %v5616_v61   ;;  %v5900_v59 = vpop.f32.mrf.mxu0  ;;  %v5912_v61 = vpop.permute.xlu1 %277  ;;  %7020 = vst [vmem:[#allocation9_spill] sm:$0xff] %v5914_v62 }
  0xe0   :  { %v1106_v44 = vmax.f32 %v802_v41, 0.0  ;;  %7019 = vst [vmem:[#allocation8_spill] sm:$0xff] %v5912_v61  ;;  %v5186_v41 = vld [vmem:[%s6949_s1 + $0xf8] sm:$0xff]  }
  0xe1   :  { %v5902_v45 = vpop.f32.mrf.mxu0  ;;  %4544 = vmatmul.mubr.msk.bf16.gmra.mxu0 %vm639_vm1, %v5182_v39 }
  0xe2   :  { %v5905_v46 = vpack.c.bf16 %v1106_v44, %v1104_v60  ;;  %1055 = vmatprep.mubr.bf16.mxu0 %v6956_v0  ;;  %2692 = vperm.xlu0 %5153, %v5636_v4   ;;  %v5931_v52 = vpop.permute.xlu0 %262  ;;  %v1744_v44 = vld [vmem:[%s6951_s4] sm:$0xff] }
  0xe3   :  { %2697 = vperm.xlu1 %5154, %v5631_v3   ;;  %v5910_v47 = vpop.f32.mrf.mxu0  ;;  %v5928_v4 = vpop.permute.xlu1 %267  ;;  %7022 = vst [vmem:[#allocation11_spill] sm:$0xff] %v5931_v52 }
  0xe4   :  { %7021 = vst [vmem:[#allocation10_spill] sm:$0xff] %v5928_v4 }
  0xe5   :  { %v5916_v50 = vpop.f32.mrf.mxu0 }
  0xe6   :  { %2682 = vperm.xlu0 %5153, %v5650_v8   ;;  %v5951_v15 = vpop.permute.xlu0 %252 }
  0xe7   :  { %2687 = vperm.xlu1 %5154, %v5645_v5   ;;  %v5923_v51 = vpop.f32.mrf.mxu0  ;;  %v5189_v5 = vld [vmem:[%s6950_s3 + $0x4] ss:$16 sps:$4 sm:$0xff]   ;;  %7024 = vst [vmem:[#allocation13_spill] sm:$0xff] %v5951_v15 }
  0xe8   :  { %2160 = vmatprep.mubr.bf16.mxu1 %v5189_v5 }
  0xe9   :  { %v5925_v3 = vpop.f32.mrf.mxu0  ;;  %4545 = vmatmul.mubr.msk.bf16.gmra.mxu0 %vm639_vm1, %v5183_v63 }
  0xea   :  { %1065 = vmatprep.mubr.bf16.mxu0 %v6956_v0  ;;  %2672 = vperm.xlu0 %5153, %v5665_v23   ;;  %v5949_v23 = vpop.permute.xlu1 %257  ;;  %v5964_v55 = vpop.permute.xlu0 %242 }
  0xeb   :  { %2677 = vperm.xlu1 %5154, %v5660_v18   ;;  %v5935_v6 = vpop.f32.mrf.mxu0  ;;  %7023 = vst [vmem:[#allocation12_spill] sm:$0xff] %v5949_v23 }
  0xed   :  { %v5940_v8 = vpop.f32.mrf.mxu0 }
  0xee   :  { %2662 = vperm.xlu0 %5153, %v5679_v33   ;;  %v5185_v33 = vld [vmem:[%s6949_s1 + $0xf0] sm:$0xff]   ;;  %v5962_v54 = vpop.permute.xlu1 %247  ;;  %v233_v37 = vpop.permute.xlu0 %232 }
  0xef   :  { %2667 = vperm.xlu1 %5154, %v5674_v28   ;;  %v5947_v18 = vpop.f32.mrf.mxu0 }
  0xf1   :  { %v5953_v20 = vpop.f32.mrf.mxu0  ;;  %4546 = vmatmul.mubr.msk.bf16.gmra.mxu0 %vm639_vm1, %v5184_v10 }
  0xf2   :  { %1075 = vmatprep.mubr.bf16.mxu0 %v6956_v0  ;;  %2652 = vperm.xlu0 %5153, %v5694_v48   ;;  %v5972_v57 = vpop.permute.xlu1 %237  ;;  %v5988_v10 = vpop.permute.xlu0 %382 }
  0xf3   :  { %2657 = vperm.xlu1 %5154, %v5689_v43   ;;  %v829_v24 = vpop.f32.mrf.mxu0  ;;  %v7027_v43 = vld [vmem:[#allocation5_spill] sm:$0xff]  ;;  %7029 = vst [vmem:[#allocation4_spill] sm:$0xff] %v5988_v10 }
  0xf5   :  { %v831_v28 = vpop.f32.mrf.mxu0 }
  0xf6   :  { %2642 = vperm.xlu0 %5153, %v7026_v34   ;;  %v5986_v5 = vpop.permute.xlu1 %387  ;;  %v6003_v23 = vpop.permute.xlu0 %372 }
  0xf7   :  { %2647 = vperm.xlu1 %5154, %v7025_v31   ;;  %v833_v35 = vpop.f32.mrf.mxu0  ;;  %7028 = vst [vmem:[#allocation3_spill] sm:$0xff] %v5986_v5  ;;  %7031 = vst [vmem:[#allocation14_spill] sm:$0xff] %v6003_v23  ;;  %v830_v23 = vadd.f32 %v829_v24, %v5801_v14 }
  0xf9   :  { %v837_v27 = vpop.f32.mrf.mxu0  ;;  %4547 = vmatmul.mubr.msk.bf16.gmra.mxu0 %vm639_vm1, %v5185_v33  ;;  %v1746_v33 = vld [vmem:[%s6951_s4 + $0x10] sm:$0xff] }
  0xfa   :  { %1085 = vmatprep.mubr.bf16.mxu0 %v6956_v0  ;;  %2632 = vperm.xlu0 %5153, %v7027_v43   ;;  %v5999_v5 = vpop.permute.xlu1 %377 }
  0xfb   :  { %2637 = vperm.xlu1 %5154, %v5718_v13   ;;  %v839_v48 = vpop.f32.mrf.mxu0  ;;  %v1745_v13 = vld [vmem:[%s6951_s4 + $0x8] sm:$0xff]  ;;  %7030 = vst [vmem:[#allocation5_spill] sm:$0xff] %v5999_v5 }
  0xfc   :  { %v840_v52 = vadd.f32 %v839_v48, %v5783_v9  ;;  %v832_v48 = vadd.f32 %v831_v28, %v5806_v16 }
  0xfd   :  { %v841_v39 = vpop.f32.mrf.mxu0 }
  0xfe   :  { %2622 = vperm.xlu0 %5153, %v5737_v53   ;;  %v1747_v53 = vld [vmem:[%s6951_s4 + $0x18] sm:$0xff]  ;;  %v1121_v40 = vmax.f32 %v840_v52, 0.0 }
  0xff   :  { %2627 = vperm.xlu1 %5154, %v5732_v58   ;;  %v843_v60 = vpop.f32.mrf.mxu0 }
 0x101   :  { %v847_v63 = vpop.f32.mrf.mxu0  ;;  %4548 = vmatmul.mubr.msk.bf16.gmra.mxu0 %vm639_vm1, %v5186_v41  ;;  %v844_v41 = vadd.f32 %v843_v60, %v5795_v12  ;;  %v834_v60 = vadd.f32 %v833_v35, %v5806_v16 }
 0x102   :  { %1750 = vperm.xlu0 %5153, %v1744_v44   ;;  %v848_v10 = vadd.f32 %v847_v63, %v5780_v7 }
 0x103   :  { %1755 = vperm.xlu1 %5154, %v1745_v13   ;;  %v849_v58 = vpop.f32.mrf.mxu0  ;;  %v1123_v42 = vmax.f32 %v844_v41, 0.0 }
 0x104   :  { %v850_v34 = vadd.f32 %v849_v58, %v5780_v7  ;;  %v842_v58 = vadd.f32 %v841_v39, %v5795_v12  ;;  %v838_v7 = vadd.f32 %v837_v27, %v5783_v9  ;;  %v1124_v63 = vmax.f32 %v848_v10, 0.0  ;;  %v6011_v39 = vpop.permute.xlu1 %367 }
 0x105   :  { %v851_v31 = vpop.f32.mrf.mxu0  ;;  %v824_v9 = vadd.f32 %v5947_v18, %v5816_v19  ;;  %v822_v18 = vadd.f32 %v5940_v8, %v5816_v19  ;;  %v1118_v10 = vmax.f32 %v832_v48, 0.0 }
 0x106   :  { %v852_v43 = vadd.f32 %v851_v31, %v5791_v11  ;;  %1760 = vperm.xlu0 %5153, %v1746_v33   ;;  %v1125_v4 = vmax.f32 %v850_v34, 0.0  ;;  %v1120_v52 = vmax.f32 %v838_v7, 0.0 }
 0x107   :  { %1765 = vperm.xlu1 %5154, %v1747_v53   ;;  %v853_v0 = vpop.f32.mrf.mxu0  ;;  %v1114_v7 = vmax.f32 %v822_v18, 0.0 }
 0x108   :  { %v854_v15 = vadd.f32 %v853_v0, %v5791_v11  ;;  %v1126_v31 = vmax.f32 %v852_v43, 0.0 }
 0x109   :  { %v857_v62 = vpop.f32.mrf.mxu0 }
 0x10a   :  { %v1127_v61 = vmax.f32 %v854_v15, 0.0  ;;  %3978 = vperm.xlu0 %5153, %v1744_v44   ;;  %v858_v0 = vadd.f32 %v857_v62, %v233_v37  ;;  %v1122_v15 = vmax.f32 %v842_v58, 0.0  ;;  %v6014_v44 = vpop.permute.xlu0 %362  ;;  %v1119_v62 = vmax.f32 %v834_v60, 0.0 }
 0x10b   :  { %3983 = vperm.xlu1 %5154, %v1745_v13   ;;  %v859_v5 = vpop.f32.mrf.mxu0  ;;  %v5038_v13 = vpack.c.bf16 %v1126_v31, %v1124_v63  ;;  %v812_v31 = vadd.f32 %v5916_v50, %v5826_v22 }
 0x10c   :  { %v5039_v11 = vpack.c.bf16 %v1127_v61, %v1125_v4  ;;  %v860_v34 = vadd.f32 %v859_v5, %v233_v37  ;;  %v828_v61 = vadd.f32 %v5953_v20, %v5801_v14  ;;  %v5037_v4 = vpack.c.bf16 %v1123_v42, %v1121_v40 }
 0x10d   :  { %v861_v12 = vpop.f32.mrf.mxu0  ;;  %v1128_v24 = vmax.f32 %v858_v0, 0.0  ;;  %v820_v37 = vadd.f32 %v5935_v6, %v5812_v17  ;;  %v1117_v5 = vmax.f32 %v830_v23, 0.0  ;;  %v5036_v20 = vpack.c.bf16 %v1122_v15, %v1120_v52 }
 0x10e   :  { %v862_v35 = vadd.f32 %v861_v12, %v5972_v57  ;;  %2128 = vmatprep.subr.bf16.mxu1 %v5039_v11  ;;  %3988 = vperm.xlu0 %5153, %v1746_v33   ;;  %v814_v42 = vadd.f32 %v5923_v51, %v5826_v22  ;;  %v818_v6 = vadd.f32 %v5925_v3, %v5812_v17  ;;  %v1116_v58 = vmax.f32 %v828_v61, 0.0 }
 0x10f   :  { %3993 = vperm.xlu1 %5154, %v1747_v53   ;;  %v863_v16 = vpop.f32.mrf.mxu0  ;;  %2129 = vmatpush1.bf16.msra.mxu1 %v5038_v13  ;;  %v1129_v53 = vmax.f32 %v860_v34, 0.0  ;;  %v5035_v41 = vpack.c.bf16 %v1119_v62, %v1117_v5  ;;  %v810_v23 = vadd.f32 %v5910_v47, %v5823_v21  ;;  %v1113_v60 = vmax.f32 %v820_v37, 0.0 }
 0x110   :  { %v1130_v28 = vmax.f32 %v862_v35, 0.0  ;;  %v864_v27 = vadd.f32 %v863_v16, %v5972_v57  ;;  %2130 = vmatprep.subr.bf16.mxu1 %v5037_v4  ;;  %v1115_v57 = vmax.f32 %v824_v9, 0.0  ;;  %v5034_v63 = vpack.c.bf16 %v1118_v10, %v1116_v58 }
 0x111   :  { %v867_v14 = vpop.f32.mrf.mxu0  ;;  %v804_v3 = vadd.f32 %v5900_v59, %v5838_v26  ;;  %v808_v11 = vadd.f32 %v5902_v45, %v5823_v21  ;;  %v1111_v48 = vmax.f32 %v814_v42, 0.0  ;;  %v1112_v15 = vmax.f32 %v818_v6, 0.0  ;;  %v6074_v42 = vpop.permute.xlu0 %352 }
 0x112   :  { %v6025_v33 = vpack.c.bf16 %v1130_v28, %v1128_v24  ;;  %v1131_v40 = vmax.f32 %v864_v27, 0.0  ;;  %v868_v8 = vadd.f32 %v867_v14, %v5964_v55  ;;  %v5033_v12 = vpack.c.bf16 %v1115_v57, %v1113_v60 }
 0x113   :  { %v869_v43 = vpop.f32.mrf.mxu0  ;;  %2131 = vmatpush1.bf16.msra.mxu1 %v5036_v20  ;;  %v1109_v35 = vmax.f32 %v810_v23, 0.0  ;;  %v1110_v13 = vmax.f32 %v812_v31, 0.0  ;;  %v5032_v26 = vpack.c.bf16 %v1114_v7, %v1112_v15  ;;  %v1107_v61 = vmax.f32 %v804_v3, 0.0 }
 0x114   :  { %v6031_v19 = vpack.c.bf16 %v1131_v40, %v1129_v53  ;;  %2132 = vmatprep.subr.bf16.mxu1 %v5035_v41  ;;  %v870_v0 = vadd.f32 %v869_v43, %v5964_v55  ;;  %v1132_v22 = vmax.f32 %v868_v8, 0.0  ;;  %v800_v55 = vadd.f32 %v5885_v56, %v5834_v25 }
 0x115   :  { %v871_v51 = vpop.f32.mrf.mxu0  ;;  %v5031_v16 = vpack.c.bf16 %v1111_v48, %v1109_v35  ;;  %v1108_v4 = vmax.f32 %v808_v11, 0.0  ;;  %v6078_v41 = vpop.permute.xlu0 %342 }
 0x116   :  { %v872_v17 = vadd.f32 %v871_v51, %v5962_v54  ;;  %v1133_v59 = vmax.f32 %v870_v0, 0.0  ;;  %v1105_v52 = vmax.f32 %v800_v55, 0.0 }
 0x117   :  { %v873_v47 = vpop.f32.mrf.mxu0  ;;  %2133 = vmatpush1.bf16.msra.mxu1 %v5034_v63  ;;  %v5030_v56 = vpack.c.bf16 %v1110_v13, %v1108_v4 }
 0x118   :  { %v1134_v50 = vmax.f32 %v872_v17, 0.0  ;;  %v874_v34 = vadd.f32 %v873_v47, %v5962_v54  ;;  %2134 = vmatprep.subr.bf16.mxu1 %v5033_v12  ;;  %v5029_v28 = vpack.c.bf16 %v1107_v61, %v1105_v52 }
 0x119   :  { %v6047_v9 = vpop.f32.mrf.mxu0  ;;  %v6082_v8 = vpop.permute.xlu0 %332 }
 0x11a   :  { %v6049_v21 = vpack.c.bf16 %v1134_v50, %v1132_v22  ;;  %v1135_v45 = vmax.f32 %v874_v34, 0.0  ;;  %v7032_v34 = vld [vmem:[#allocation6_spill] sm:$0xff] }
 0x11b   :  { %v6051_v62 = vpop.f32.mrf.mxu0  ;;  %2135 = vmatpush1.bf16.msra.mxu1 %v5032_v26 }
 0x11c   :  { %v6053_v54 = vpack.c.bf16 %v1135_v45, %v1133_v59  ;;  %2136 = vmatprep.subr.bf16.mxu1 %v5031_v16 }
 0x11d   :  { %v6055_v25 = vpop.f32.mrf.mxu0  ;;  %v6086_v51 = vpop.permute.xlu0 %322 }
 0x11f   :  { %v6057_v24 = vpop.f32.mrf.mxu0  ;;  %2137 = vmatpush1.bf16.msra.mxu1 %v5030_v56 }
 0x120   :  { %2138 = vmatprep.subr.bf16.mxu1 %v5029_v28 }
 0x121   :  { %v6059_v27 = vpop.f32.mrf.mxu0  ;;  %v313_v59 = vpop.permute.xlu0 %312 }
 0x123   :  { %v6061_v37 = vpop.f32.mrf.mxu0  ;;  %2139 = vmatpush1.bf16.msra.mxu1 %v5905_v46 }
 0x124   :  { %2140 = vmatprep.subr.bf16.mxu1 %v5888_v30  ;;  %v6076_v30 = vpop.permute.xlu1 %357 }
 0x125   :  { %v6065_v18 = vpop.f32.mrf.mxu0 }
 0x127   :  { %v893_v5 = vpop.f32.mrf.mxu0  ;;  %2141 = vmatpush1.bf16.msra.mxu1 %v5880_v36 }
 0x128   :  { %2142 = vmatprep.subr.bf16.mxu1 %v5868_v2  ;;  %v6080_v2 = vpop.permute.xlu1 %347 }
 0x129   :  { %v6069_v10 = vpop.f32.mrf.mxu0 }
 0x12b   :  { %v899_v14 = vpop.f32.mrf.mxu0  ;;  %2143 = vmatpush1.bf16.msra.mxu1 %v5861_v38 }
 0x12c   :  { %v6084_v23 = vpop.permute.xlu1 %337 }
 0x12d   :  { %v6072_v20 = vpop.f32.mrf.mxu0 }
 0x12f   :  { %v903_v53 = vpop.f32.mrf.mxu0 }
 0x130   :  { %v6091_v3 = vpop.permute.xlu1 %327 }
 0x131   :  { %v907_v40 = vpop.f32.mrf.mxu0 }
 0x133   :  { %v909_v46 = vpop.f32.mrf.mxu0 }
 0x135   :  { %v911_v57 = vpop.f32.mrf.mxu0 }
 0x137   :  { %v913_v43 = vpop.f32.mrf.mxu0 }
 0x138   :  { %v914_v55 = vadd.f32 %v913_v43, %v7032_v34 }
 0x139   :  { %v917_v36 = vpop.f32.mrf.mxu0 }
 0x13a   :  { %v918_v45 = vadd.f32 %v917_v36, %v5877_v32 }
 0x13b   :  { %v919_v6 = vpop.f32.mrf.mxu0 }
 0x13c   :  { %v920_v47 = vadd.f32 %v919_v6, %v5877_v32  ;;  %v7034_v6 = vld [vmem:[#allocation8_spill] sm:$0xff]  ;;  %v7035_v32 = vld [vmem:[#allocation10_spill] sm:$0xff] }
 0x13d   :  { %v921_v58 = vpop.f32.mrf.mxu0  ;;  %v894_v36 = vadd.f32 %v893_v5, %v7035_v32 }
 0x13e   :  { %v922_v15 = vadd.f32 %v921_v58, %v5875_v29  ;;  %v1153_v52 = vmax.f32 %v920_v47, 0.0  ;;  %v912_v58 = vadd.f32 %v911_v57, %v7032_v34 }
 0x13f   :  { %v923_v38 = vpop.f32.mrf.mxu0 }
 0x140   :  { %v924_v63 = vadd.f32 %v923_v38, %v5875_v29  ;;  %v904_v29 = vadd.f32 %v903_v53, %v7034_v6  ;;  %v1154_v38 = vmax.f32 %v922_v15, 0.0  ;;  %v1150_v34 = vmax.f32 %v912_v58, 0.0 }
 0x141   :  { %v927_v31 = vpop.f32.mrf.mxu0 }
 0x142   :  { %v928_v11 = vadd.f32 %v927_v31, %v5864_v1  ;;  %v1155_v35 = vmax.f32 %v924_v63, 0.0 }
 0x143   :  { %v929_v60 = vpop.f32.mrf.mxu0 }
 0x144   :  { %v930_v0 = vadd.f32 %v929_v60, %v5864_v1  ;;  %v1156_v61 = vmax.f32 %v928_v11, 0.0  ;;  %v7033_v1 = vld [vmem:[#allocation7_spill] sm:$0xff]  ;;  %v1151_v60 = vmax.f32 %v914_v55, 0.0 }
 0x145   :  { %v931_v7 = vpop.f32.mrf.mxu0  ;;  %v910_v4 = vadd.f32 %v909_v46, %v7033_v1  ;;  %v908_v11 = vadd.f32 %v907_v40, %v7033_v1 }
 0x146   :  { %v932_v17 = vadd.f32 %v931_v7, %v5859_v49  ;;  %v1157_v13 = vmax.f32 %v930_v0, 0.0  ;;  %v5053_v7 = vpack.c.bf16 %v1155_v35, %v1153_v52  ;;  %v7038_v52 = vld [vmem:[#allocation12_spill] sm:$0xff] }
 0x147   :  { %v933_v48 = vpop.f32.mrf.mxu0  ;;  %v1149_v53 = vmax.f32 %v910_v4, 0.0 }
 0x148   :  { %v934_v12 = vadd.f32 %v933_v48, %v5859_v49  ;;  %v1158_v22 = vmax.f32 %v932_v17, 0.0  ;;  %v318_v49 = vpop.permute.xlu1 %317  ;;  %v7036_v17 = vld [vmem:[#allocation9_spill] sm:$0xff]  ;;  %v1152_v48 = vmax.f32 %v918_v45, 0.0 }
 0x149   :  { %v937_v50 = vpop.f32.mrf.mxu0  ;;  %v900_v46 = vadd.f32 %v899_v14, %v7036_v17  ;;  %v5051_v5 = vpack.c.bf16 %v1151_v60, %v1149_v53 }
 0x14a   :  { %v1159_v26 = vmax.f32 %v934_v12, 0.0  ;;  %v938_v28 = vadd.f32 %v937_v50, %v313_v59  ;;  %v5054_v43 = vpack.c.bf16 %v1158_v22, %v1156_v61  ;;  %v902_v22 = vadd.f32 %v6072_v20, %v7034_v6  ;;  %v7037_v61 = vld [vmem:[#allocation11_spill] sm:$0xff] }
 0x14b   :  { %v939_v16 = vpop.f32.mrf.mxu0  ;;  %v1147_v50 = vmax.f32 %v904_v29, 0.0  ;;  %v5052_v55 = vpack.c.bf16 %v1154_v38, %v1152_v48  ;;  %v1145_v1 = vmax.f32 %v900_v46, 0.0  ;;  %v1143_v29 = vmax.f32 %v894_v36, 0.0 }
 0x14c   :  { %v5055_v56 = vpack.c.bf16 %v1159_v26, %v1157_v13  ;;  %v940_v63 = vadd.f32 %v939_v16, %v313_v59  ;;  %v1160_v12 = vmax.f32 %v938_v28, 0.0  ;;  %v898_v26 = vadd.f32 %v6069_v10, %v7036_v17 }
 0x14d   :  { %v941_v31 = vpop.f32.mrf.mxu0  ;;  %v1148_v59 = vmax.f32 %v908_v11, 0.0  ;;  %v890_v16 = vadd.f32 %v6061_v37, %v7037_v61  ;;  %v892_v28 = vadd.f32 %v6065_v18, %v7035_v32  ;;  %v5049_v58 = vpack.c.bf16 %v1147_v50, %v1145_v1 }
 0x14e   :  { %v942_v0 = vadd.f32 %v941_v31, %v318_v49  ;;  %2144 = vmatprep.subr.bf16.mxu1 %v5055_v56  ;;  %v1161_v13 = vmax.f32 %v940_v63, 0.0  ;;  %v884_v56 = vadd.f32 %v6057_v24, %v7038_v52  ;;  %v888_v60 = vadd.f32 %v6059_v27, %v7037_v61 }
 0x14f   :  { %v943_v47 = vpop.f32.mrf.mxu0  ;;  %2145 = vmatpush2.bf16.msra.mxu1 %v5054_v43  ;;  %v5050_v10 = vpack.c.bf16 %v1150_v34, %v1148_v59  ;;  %v7039_v43 = vld [vmem:[#allocation13_spill] sm:$0xff]  ;;  %v1141_v63 = vmax.f32 %v890_v16, 0.0  ;;  %v1142_v17 = vmax.f32 %v892_v28, 0.0 }
 0x150   :  { %v1162_v57 = vmax.f32 %v942_v0, 0.0  ;;  %v944_v15 = vadd.f32 %v943_v47, %v318_v49  ;;  %2146 = vmatprep.subr.bf16.mxu1 %v5053_v7  ;;  %v1146_v49 = vmax.f32 %v902_v22, 0.0  ;;  %v880_v31 = vadd.f32 %v6051_v62, %v7039_v43 }
 0x151   :  { %v947_v35 = vpop.f32.mrf.mxu0  ;;  %v1144_v7 = vmax.f32 %v898_v26, 0.0  ;;  %v1139_v36 = vmax.f32 %v884_v56, 0.0  ;;  %v5047_v62 = vpack.c.bf16 %v1143_v29, %v1141_v63  ;;  %v878_v53 = vadd.f32 %v6047_v9, %v7039_v43  ;;  %v5195_v29 = vld [vmem:[%s6950_s3 + $0xc] ss:$16 sps:$4 sm:$0xff]  }
 0x152   :  { %v6107_v14 = vpack.c.bf16 %v1162_v57, %v1160_v12  ;;  %v1163_v40 = vmax.f32 %v944_v15, 0.0  ;;  %v948_v4 = vadd.f32 %v947_v35, %v6086_v51  ;;  %v1140_v12 = vmax.f32 %v888_v60, 0.0 }
 0x153   :  { %v949_v45 = vpop.f32.mrf.mxu0  ;;  %2147 = vmatpush2.bf16.msra.mxu1 %v5052_v55  ;;  %v5048_v46 = vpack.c.bf16 %v1146_v49, %v1144_v7  ;;  %v1136_v55 = vmax.f32 %v878_v53, 0.0  ;;  %v7048_v53 = vld [vmem:[#allocation3_spill] sm:$0xff] }
 0x154   :  { %v6113_v20 = vpack.c.bf16 %v1163_v40, %v1161_v13  ;;  %2148 = vmatprep.subr.bf16.mxu1 %v5051_v5  ;;  %v950_v38 = vadd.f32 %v949_v45, %v6086_v51  ;;  %v1164_v18 = vmax.f32 %v948_v4, 0.0  ;;  %v882_v51 = vadd.f32 %v6055_v25, %v7038_v52  ;;  %v6143_v5 = vpop.permute.xlu0 %462  ;;  %v6147_v40 = vpop.permute.xlu1 %467  ;;  %v5187_v4 = vld [vmem:[%s6950_s3] ss:$16 sps:$4 sm:$0xff]  }
 0x155   :  { %v951_v6 = vpop.f32.mrf.mxu0  ;;  %v5046_v22 = vpack.c.bf16 %v1142_v17, %v1140_v12 }
 0x156   :  { %v952_v37 = vadd.f32 %v951_v6, %v6091_v3  ;;  %v1165_v48 = vmax.f32 %v950_v38, 0.0  ;;  %v1138_v25 = vmax.f32 %v882_v51, 0.0 }
 0x157   :  { %v953_v24 = vpop.f32.mrf.mxu0  ;;  %2149 = vmatpush2.bf16.msra.mxu1 %v5050_v10  ;;  %v5192_v10 = vld [vmem:[%s6950_s3 + $0x20] ss:$16 sps:$4 sm:$0xff]  }
 0x158   :  { %v1166_v0 = vmax.f32 %v952_v37, 0.0  ;;  %v954_v32 = vadd.f32 %v953_v24, %v6091_v3  ;;  %2150 = vmatprep.subr.bf16.mxu1 %v5049_v58  ;;  %v1137_v3 = vmax.f32 %v880_v31, 0.0  ;;  %v5044_v9 = vpack.c.bf16 %v1138_v25, %v1136_v55  ;;  %v6154_v45 = vpop.permute.xlu0 %452  ;;  %v6160_v16 = vpop.permute.xlu1 %457 }
 0x159   :  { %v6129_v11 = vpop.f32.mrf.mxu0 }
 0x15a   :  { %v6131_v27 = vpack.c.bf16 %v1166_v0, %v1164_v18  ;;  %v1167_v47 = vmax.f32 %v954_v32, 0.0  ;;  %v5045_v34 = vpack.c.bf16 %v1139_v36, %v1137_v3 }
 0x15b   :  { %v6135_v57 = vpop.f32.mrf.mxu0  ;;  %2151 = vmatpush2.bf16.msra.mxu1 %v5048_v46  ;;  %v7046_v46 = vld [vmem:[#allocation5_spill] sm:$0xff] }
 0x15c   :  { %v6137_v15 = vpack.c.bf16 %v1167_v47, %v1165_v48  ;;  %2152 = vmatprep.subr.bf16.mxu1 %v5047_v62  ;;  %v6173_v56 = vpop.permute.xlu0 %442  ;;  %v7047_v48 = vld [vmem:[#allocation4_spill] sm:$0xff] }
 0x15d   :  { %v6139_v50 = vpop.f32.mrf.mxu0 }
 0x15f   :  { %v6141_v35 = vpop.f32.mrf.mxu0  ;;  %2153 = vmatpush2.bf16.msra.mxu1 %v5046_v22 }
 0x160   :  { %2154 = vmatprep.subr.bf16.mxu1 %v5045_v34  ;;  %v6182_v6 = vpop.permute.xlu0 %432  ;;  %v7049_v34 = vld [vmem:[#allocation14_spill] sm:$0xff] }
 0x161   :  { %v6145_v13 = vpop.f32.mrf.mxu0  ;;  %7040 = vst [vmem:[#allocation6_spill] sm:$0xff] %v6182_v6 }
 0x163   :  { %v6149_v26 = vpop.f32.mrf.mxu0  ;;  %2155 = vmatpush2.bf16.msra.mxu1 %v5044_v9 }
 0x164   :  { %2156 = vmatprep.subr.bf16.mxu1 %v6053_v54  ;;  %v5190_v54 = vld [vmem:[%s6950_s3 + $0x24] ss:$16 sps:$4 sm:$0xff]   ;;  %v6189_v43 = vpop.permute.xlu0 %422 }
 0x165   :  { %v6152_v59 = vpop.f32.mrf.mxu0  ;;  %7042 = vst [vmem:[#allocation8_spill] sm:$0xff] %v6189_v43 }
 0x167   :  { %v6156_v61 = vpop.f32.mrf.mxu0  ;;  %2157 = vmatpush2.bf16.msra.mxu1 %v6049_v21 }
 0x168   :  { %2158 = vmatprep.subr.bf16.mxu1 %v6031_v19  ;;  %v6177_v19 = vpop.permute.xlu1 %447  ;;  %v6193_v63 = vpop.permute.xlu0 %412 }
 0x169   :  { %v6162_v1 = vpop.f32.mrf.mxu0  ;;  %7044 = vst [vmem:[#allocation9_spill] sm:$0xff] %v6193_v63 }
 0x16b   :  { %v6167_v52 = vpop.f32.mrf.mxu0  ;;  %2159 = vmatpush2.bf16.msra.mxu1 %v6025_v33 }
 0x16c   :  { %v6187_v58 = vpop.permute.xlu1 %437  ;;  %v6197_v36 = vpop.permute.xlu0 %402 }
 0x16d   :  { %v6175_v21 = vpop.f32.mrf.mxu0  ;;  %7041 = vst [vmem:[#allocation7_spill] sm:$0xff] %v6187_v58 }
 0x16e   :  { %2161 = vmatmul.mubr.bf16.vlgmr.msra.gmra.mxu1 %v5187_v4 }
 0x16f   :  { %v983_v28 = vpop.f32.mrf.mxu0  ;;  %2170 = vmatprep.mubr.bf16.mxu1 %v5190_v54 }
 0x170   :  { %v6191_v60 = vpop.permute.xlu1 %427 }
 0x171   :  { %v987_v49 = vpop.f32.mrf.mxu0  ;;  %7043 = vst [vmem:[#allocation10_spill] sm:$0xff] %v6191_v60 }
 0x173   :  { %v989_v33 = vpop.f32.mrf.mxu0 }
 0x174   :  { %v6195_v0 = vpop.permute.xlu1 %417 }
 0x175   :  { %v991_v38 = vpop.f32.mrf.mxu0  ;;  %7045 = vst [vmem:[#allocation11_spill] sm:$0xff] %v6195_v0  ;;  %v393_v0 = vpop.permute.xlu0 %392 }
 0x176   :  { %2171 = vmatmul.mubr.bf16.gmra.mxu1 %v5192_v10 }
 0x177   :  { %v993_v37 = vpop.f32.mrf.mxu0  ;;  %2213 = vmatprep.mubr.bf16.mxu1 %v5195_v29 }
 0x178   :  { %v6202_v3 = vpop.permute.xlu1 %407  ;;  %v994_v29 = vadd.f32 %v993_v37, %v6011_v39 }
 0x179   :  { %v997_v31 = vpop.f32.mrf.mxu0 }
 0x17b   :  { %v999_v7 = vpop.f32.mrf.mxu0 }
 0x17c   :  { %v1000_v55 = vadd.f32 %v999_v7, %v7049_v34 }
 0x17d   :  { %v1001_v24 = vpop.f32.mrf.mxu0 }
 0x17e   :  { %v1002_v4 = vadd.f32 %v1001_v24, %v7046_v46  ;;  %v984_v24 = vadd.f32 %v983_v28, %v6076_v30 }
 0x17f   :  { %v1003_v18 = vpop.f32.mrf.mxu0 }
 0x180   :  { %v1004_v62 = vadd.f32 %v1003_v18, %v7046_v46  ;;  %v992_v46 = vadd.f32 %v991_v38, %v6011_v39 }
 0x181   :  { %v1007_v32 = vpop.f32.mrf.mxu0 }
 0x182   :  { %v1008_v25 = vadd.f32 %v1007_v32, %v7047_v48  ;;  %v1187_v18 = vmax.f32 %v1004_v62, 0.0  ;;  %v990_v32 = vadd.f32 %v989_v33, %v6014_v44  ;;  %v980_v33 = vadd.f32 %v6167_v52, %v6074_v42 }
 0x183   :  { %v1009_v51 = vpop.f32.mrf.mxu0 }
 0x184   :  { %v1010_v47 = vadd.f32 %v1009_v51, %v7047_v48  ;;  %v1188_v43 = vmax.f32 %v1008_v25, 0.0  ;;  %v1185_v48 = vmax.f32 %v1000_v55, 0.0  ;;  %v1181_v39 = vmax.f32 %v990_v32, 0.0 }
 0x185   :  { %v1011_v17 = vpop.f32.mrf.mxu0  ;;  %v1182_v55 = vmax.f32 %v992_v46, 0.0  ;;  %v968_v46 = vadd.f32 %v6145_v13, %v6078_v41 }
 0x186   :  { %v1012_v12 = vadd.f32 %v1011_v17, %v7048_v53  ;;  %v1189_v63 = vmax.f32 %v1010_v47, 0.0  ;;  %v998_v17 = vadd.f32 %v997_v31, %v7049_v34  ;;  %v1183_v47 = vmax.f32 %v994_v29, 0.0 }
 0x187   :  { %v1013_v22 = vpop.f32.mrf.mxu0  ;;  %v974_v31 = vadd.f32 %v6156_v61, %v6080_v2 }
 0x188   :  { %v1014_v9 = vadd.f32 %v1013_v22, %v7048_v53  ;;  %v1190_v54 = vmax.f32 %v1012_v12, 0.0  ;;  %v398_v53 = vpop.permute.xlu1 %397  ;;  %v1186_v12 = vmax.f32 %v1002_v4, 0.0  ;;  %v5069_v22 = vpack.c.bf16 %v1187_v18, %v1185_v48 }
 0x189   :  { %v1017_v10 = vpop.f32.mrf.mxu0  ;;  %v1184_v25 = vmax.f32 %v998_v17, 0.0  ;;  %v1177_v18 = vmax.f32 %v980_v33, 0.0  ;;  %v972_v17 = vadd.f32 %v6152_v59, %v6080_v2  ;;  %v1175_v48 = vmax.f32 %v974_v31, 0.0 }
 0x18a   :  { %v1191_v51 = vmax.f32 %v1014_v9, 0.0  ;;  %v1018_v6 = vadd.f32 %v1017_v10, %v393_v0  ;;  %v5070_v37 = vpack.c.bf16 %v1190_v54, %v1188_v43  ;;  %v5067_v54 = vpack.c.bf16 %v1183_v47, %v1181_v39 }
 0x18b   :  { %v1019_v60 = vpop.f32.mrf.mxu0  ;;  %v5068_v4 = vpack.c.bf16 %v1186_v12, %v1184_v25  ;;  %v1172_v25 = vmax.f32 %v968_v46, 0.0 }
 0x18c   :  { %v5071_v7 = vpack.c.bf16 %v1191_v51, %v1189_v63  ;;  %v1020_v9 = vadd.f32 %v1019_v60, %v393_v0  ;;  %v988_v63 = vadd.f32 %v987_v49, %v6014_v44  ;;  %v1192_v38 = vmax.f32 %v1018_v6, 0.0 }
 0x18d   :  { %v1021_v62 = vpop.f32.mrf.mxu0  ;;  %v982_v60 = vadd.f32 %v6175_v21, %v6076_v30  ;;  %v1179_v0 = vmax.f32 %v984_v24, 0.0  ;;  %v978_v49 = vadd.f32 %v6162_v1, %v6074_v42  ;;  %v964_v51 = vadd.f32 %v6141_v35, %v6084_v23 }
 0x18e   :  { %v1022_v58 = vadd.f32 %v1021_v62, %v398_v53  ;;  %2181 = vmatprep.subr.bf16.mxu1 %v5071_v7  ;;  %v1193_v10 = vmax.f32 %v1020_v9, 0.0  ;;  %v1180_v29 = vmax.f32 %v988_v63, 0.0  ;;  %v960_v24 = vadd.f32 %v6135_v57, %v6082_v8 }
 0x18f   :  { %v1023_v28 = vpop.f32.mrf.mxu0  ;;  %2182 = vmatpush1.bf16.msra.mxu1 %v5070_v37  ;;  %v1178_v32 = vmax.f32 %v982_v60, 0.0  ;;  %v5065_v7 = vpack.c.bf16 %v1179_v0, %v1177_v18  ;;  %v1176_v12 = vmax.f32 %v978_v49, 0.0  ;;  %v1171_v47 = vmax.f32 %v964_v51, 0.0 }
 0x190   :  { %v1194_v43 = vmax.f32 %v1022_v58, 0.0  ;;  %v1024_v34 = vadd.f32 %v1023_v28, %v398_v53  ;;  %2183 = vmatprep.subr.bf16.mxu1 %v5069_v22  ;;  %v970_v58 = vadd.f32 %v6149_v26, %v6078_v41  ;;  %v5066_v42 = vpack.c.bf16 %v1182_v55, %v1180_v29 }
 0x191   :  { %v1027_v61 = vpop.f32.mrf.mxu0  ;;  %v1174_v22 = vmax.f32 %v972_v17, 0.0  ;;  %v5064_v9 = vpack.c.bf16 %v1178_v32, %v1176_v12  ;;  %v958_v63 = vadd.f32 %v6129_v11, %v6082_v8 }
 0x192   :  { %v6220_v52 = vpack.c.bf16 %v1194_v43, %v1192_v38  ;;  %v1195_v44 = vmax.f32 %v1024_v34, 0.0  ;;  %v1028_v21 = vadd.f32 %v1027_v61, %v6197_v36  ;;  %v1173_v37 = vmax.f32 %v970_v58, 0.0 }
 0x193   :  { %v1029_v6 = vpop.f32.mrf.mxu0  ;;  %2184 = vmatpush1.bf16.msra.mxu1 %v5068_v4  ;;  %v1168_v34 = vmax.f32 %v958_v63, 0.0 }
 0x194   :  { %v6226_v30 = vpack.c.bf16 %v1195_v44, %v1193_v10  ;;  %2185 = vmatprep.subr.bf16.mxu1 %v5067_v54  ;;  %v1030_v53 = vadd.f32 %v1029_v6, %v6197_v36  ;;  %v1196_v2 = vmax.f32 %v1028_v21, 0.0  ;;  %v962_v36 = vadd.f32 %v6139_v50, %v6084_v23 }
 0x195   :  { %v1031_v1 = vpop.f32.mrf.mxu0  ;;  %v5063_v57 = vpack.c.bf16 %v1175_v48, %v1173_v37  ;;  %v5062_v50 = vpack.c.bf16 %v1174_v22, %v1172_v25  ;;  %v7051_v25 = vld [vmem:[#allocation6_spill] sm:$0xff] }
 0x196   :  { %v1032_v26 = vadd.f32 %v1031_v1, %v6202_v3  ;;  %v1197_v33 = vmax.f32 %v1030_v53, 0.0  ;;  %v1170_v23 = vmax.f32 %v962_v36, 0.0 }
 0x197   :  { %v1033_v35 = vpop.f32.mrf.mxu0  ;;  %2186 = vmatpush1.bf16.msra.mxu1 %v5066_v42 }
 0x198   :  { %v1198_v59 = vmax.f32 %v1032_v26, 0.0  ;;  %v1034_v62 = vadd.f32 %v1033_v35, %v6202_v3  ;;  %2187 = vmatprep.subr.bf16.mxu1 %v5065_v7  ;;  %v1169_v3 = vmax.f32 %v960_v24, 0.0  ;;  %v5060_v0 = vpack.c.bf16 %v1170_v23, %v1168_v34 }
 0x199   :  { %v6242_v31 = vpop.f32.mrf.mxu0 }
 0x19a   :  { %v6244_v41 = vpack.c.bf16 %v1198_v59, %v1196_v2  ;;  %v1199_v13 = vmax.f32 %v1034_v62, 0.0  ;;  %v5061_v43 = vpack.c.bf16 %v1171_v47, %v1169_v3 }
 0x19b   :  { %v6248_v28 = vpop.f32.mrf.mxu0  ;;  %2188 = vmatpush1.bf16.msra.mxu1 %v5064_v9 }
 0x19c   :  { %v6250_v39 = vpack.c.bf16 %v1199_v13, %v1197_v33  ;;  %2189 = vmatprep.subr.bf16.mxu1 %v5063_v57 }
 0x19d   :  { %v6252_v38 = vpop.f32.mrf.mxu0 }
 0x19f   :  { %v6254_v60 = vpop.f32.mrf.mxu0  ;;  %2190 = vmatpush1.bf16.msra.mxu1 %v5062_v50 }
 0x1a0   :  { %2191 = vmatprep.subr.bf16.mxu1 %v5061_v43 }
 0x1a1   :  { %v6256_v8 = vpop.f32.mrf.mxu0 }
 0x1a3   :  { %v6258_v11 = vpop.f32.mrf.mxu0  ;;  %2192 = vmatpush1.bf16.msra.mxu1 %v5060_v0 }
 0x1a4   :  { %2193 = vmatprep.subr.bf16.mxu1 %v6137_v15 }
 0x1a5   :  { %v6261_v55 = vpop.f32.mrf.mxu0 }
 0x1a7   :  { %v1053_v4 = vpop.f32.mrf.mxu0  ;;  %2194 = vmatpush1.bf16.msra.mxu1 %v6131_v27 }
 0x1a8   :  { %2195 = vmatprep.subr.bf16.mxu1 %v6113_v20 }
 0x1a9   :  { %v1057_v61 = vpop.f32.mrf.mxu0 }
 0x1ab   :  { %v1059_v54 = vpop.f32.mrf.mxu0  ;;  %2196 = vmatpush1.bf16.msra.mxu1 %v6107_v14 }
 0x1ad   :  { %v1061_v10 = vpop.f32.mrf.mxu0 }
 0x1af   :  { %v1063_v44 = vpop.f32.mrf.mxu0 }
 0x1b1   :  { %v1067_v49 = vpop.f32.mrf.mxu0 }
 0x1b2   :  { %v1068_v13 = vadd.f32 %v1067_v49, %v6173_v56 }
 0x1b3   :  { %v1069_v29 = vpop.f32.mrf.mxu0 }
 0x1b4   :  { %v1070_v62 = vadd.f32 %v1069_v29, %v6173_v56 }
 0x1b5   :  { %v1071_v6 = vpop.f32.mrf.mxu0 }
 0x1b6   :  { %v1072_v47 = vadd.f32 %v1071_v6, %v6177_v19  ;;  %v1213_v3 = vmax.f32 %v1070_v62, 0.0  ;;  %v1212_v6 = vmax.f32 %v1068_v13, 0.0  ;;  %v5199_v62 = vld [vmem:[%s6949_s1] sm:$0xff]  }
 0x1b7   :  { %v1073_v58 = vpop.f32.mrf.mxu0 }
 0x1b8   :  { %v1074_v46 = vadd.f32 %v1073_v58, %v6177_v19  ;;  %v1214_v50 = vmax.f32 %v1072_v47, 0.0  ;;  %v7052_v19 = vld [vmem:[#allocation10_spill] sm:$0xff]  ;;  %v7053_v58 = vld [vmem:[#allocation8_spill] sm:$0xff] }
 0x1b9   :  { %v1077_v18 = vpop.f32.mrf.mxu0  ;;  %v1054_v34 = vadd.f32 %v1053_v4, %v7052_v19  ;;  %v1050_v56 = vadd.f32 %v6258_v11, %v7053_v58 }
 0x1ba   :  { %v1078_v2 = vadd.f32 %v1077_v18, %v6154_v45 }
 0x1bb   :  { %v1079_v21 = vpop.f32.mrf.mxu0  ;;  %v1207_v4 = vmax.f32 %v1054_v34, 0.0  ;;  %v5204_v34 = vld [vmem:[%s6949_s1 + $0x28] sm:$0xff]  }
 0x1bc   :  { %v1080_v7 = vadd.f32 %v1079_v21, %v6154_v45  ;;  %v1216_v63 = vmax.f32 %v1078_v2, 0.0  ;;  %v1060_v45 = vadd.f32 %v1059_v54, %v7051_v25  ;;  %v1052_v54 = vadd.f32 %v6261_v55, %v7052_v19  ;;  %v7054_v21 = vld [vmem:[#allocation11_spill] sm:$0xff] }
 0x1bd   :  { %v1081_v15 = vpop.f32.mrf.mxu0  ;;  %v1042_v55 = vadd.f32 %v6252_v38, %v7054_v21  ;;  %v4718_v38 = vld.sshfl [vmem:[%s6948_s0 + $0x4] sm:$0x33 pattern:$0x76325410]  ;;  %v7056_v2 = vmov 0  }
 0x1be   :  { %v1082_v26 = vadd.f32 %v1081_v15, %v6160_v16  ;;  %v1217_v36 = vmax.f32 %v1080_v7, 0.0  ;;  %v1209_v49 = vmax.f32 %v1060_v45, 0.0  ;;  %v1044_v15 = vadd.f32 %v6254_v60, %v7054_v21  ;;  %v5207_v21 = vld [vmem:[%s6949_s1 + $0x40] sm:$0xff]  }
 0x1bf   :  { %v1083_v51 = vpop.f32.mrf.mxu0  ;;  %v1202_v7 = vmax.f32 %v1042_v55, 0.0 }
 0x1c0   :  { %v1084_v27 = vadd.f32 %v1083_v51, %v6160_v16  ;;  %v1218_v22 = vmax.f32 %v1082_v26, 0.0  ;;  %v1215_v16 = vmax.f32 %v1074_v46, 0.0  ;;  %v5193_v46 = vld [vmem:[%s6950_s3 + $0x8] ss:$16 sps:$4 sm:$0xff]  }
 0x1c1   :  { %v1087_v17 = vpop.f32.mrf.mxu0 }
 0x1c2   :  { %v1088_v14 = vadd.f32 %v1087_v17, %v6143_v5  ;;  %v1219_v12 = vmax.f32 %v1084_v27, 0.0  ;;  %v5084_v43 = vpack.c.bf16 %v1218_v22, %v1216_v63  ;;  %v5083_v29 = vpack.c.bf16 %v1215_v16, %v1213_v3  ;;  %v5200_v22 = vld [vmem:[%s6949_s1 + $0x8] sm:$0xff]   ;;  %v5201_v16 = vld [vmem:[%s6949_s1 + $0x10] sm:$0xff]   ;;  %v5202_v63 = vld [vmem:[%s6949_s1 + $0x18] sm:$0xff]  }
 0x1c3   :  { %v1089_v32 = vpop.f32.mrf.mxu0  ;;  %v1206_v27 = vmax.f32 %v1052_v54, 0.0 }
 0x1c4   :  { %v1090_v20 = vadd.f32 %v1089_v32, %v6143_v5  ;;  %v1220_v59 = vmax.f32 %v1088_v14, 0.0  ;;  %v5085_v33 = vpack.c.bf16 %v1219_v12, %v1217_v36  ;;  %v7055_v32 = vld [vmem:[#allocation9_spill] sm:$0xff]  ;;  %v5196_v12 = vld [vmem:[%s6950_s3 + $0x2c] ss:$16 sps:$4 sm:$0xff]  }
 0x1c5   :  { %v1091_v42 = vpop.f32.mrf.mxu0  ;;  %v1040_v11 = vadd.f32 %v6248_v28, %v7055_v32  ;;  %v1038_v60 = vadd.f32 %v6242_v31, %v7055_v32  ;;  %v2868_v31 = vcombine.high %v4718_v38, %v4718_v38 }
 0x1c6   :  { %v1092_v1 = vadd.f32 %v1091_v42, %v6147_v40  ;;  %v1221_v35 = vmax.f32 %v1090_v20, 0.0  ;;  %v1205_v42 = vmax.f32 %v1050_v56, 0.0 }
 0x1c7   :  { %v1093_v48 = vpop.f32.mrf.mxu0  ;;  %v1200_v28 = vmax.f32 %v1038_v60, 0.0  ;;  %v5211_v60 = vld [vmem:[%s6949_s1 + $0x60] sm:$0xff]  }
 0x1c8   :  { %v1094_v53 = vadd.f32 %v1093_v48, %v6147_v40  ;;  %v1222_v24 = vmax.f32 %v1092_v1, 0.0  ;;  %v7050_v40 = vld [vmem:[#allocation7_spill] sm:$0xff]  ;;  %v1203_v1 = vmax.f32 %v1044_v15, 0.0  ;;  %v5079_v14 = vpack.c.bf16 %v1207_v4, %v1205_v42 }
 0x1c9   :  { %v1064_v57 = vadd.f32 %v1063_v44, %v7050_v40  ;;  %v1062_v23 = vadd.f32 %v1061_v10, %v7050_v40  ;;  %v1058_v44 = vadd.f32 %v1057_v61, %v7051_v25  ;;  %v5082_v10 = vpack.c.bf16 %v1214_v50, %v1212_v6 }
 0x1ca   :  { %v1223_v37 = vmax.f32 %v1094_v53, 0.0  ;;  %v5086_v9 = vpack.c.bf16 %v1222_v24, %v1220_v59  ;;  %v1048_v61 = vadd.f32 %v6256_v8, %v7053_v58  ;;  %v1201_v8 = vmax.f32 %v1040_v11, 0.0  ;;  %v5209_v11 = vld [vmem:[%s6949_s1 + $0x50] sm:$0xff]  }
 0x1cb   :  { %v1211_v0 = vmax.f32 %v1064_v57, 0.0  ;;  %v1210_v18 = vmax.f32 %v1062_v23, 0.0  ;;  %v1208_v17 = vmax.f32 %v1058_v44, 0.0  ;;  %v5076_v24 = vpack.c.bf16 %v1202_v7, %v1200_v28  ;;  %v5203_v23 = vld [vmem:[%s6949_s1 + $0x20] sm:$0xff]   ;;  %v5205_v44 = vld [vmem:[%s6949_s1 + $0x30] sm:$0xff]  }
 0x1cc   :  { %v5087_v5 = vpack.c.bf16 %v1223_v37, %v1221_v35  ;;  %v1204_v48 = vmax.f32 %v1048_v61, 0.0  ;;  %v5077_v26 = vpack.c.bf16 %v1203_v1, %v1201_v8  ;;  %v2966_v35 = vsel %vm736_vm0, %v4718_v38, 0  ;;  %v5213_v38 = vld [vmem:[%s6949_s1 + $0x70] sm:$0xff]  }
 0x1cd   :  { %v5081_v51 = vpack.c.bf16 %v1211_v0, %v1209_v49  ;;  %v5080_v20 = vpack.c.bf16 %v1210_v18, %v1208_v17  ;;  %v5206_v49 = vld [vmem:[%s6949_s1 + $0x38] sm:$0xff]  }
 0x1ce   :  { %2197 = vmatprep.subr.bf16.mxu1 %v5087_v5  ;;  %v5078_v53 = vpack.c.bf16 %v1206_v27, %v1204_v48 }
 0x1cf   :  { %2198 = vmatpush2.bf16.msra.mxu1 %v5086_v9 }
 0x1d0   :  { %2199 = vmatprep.subr.bf16.mxu1 %v5085_v33 }
 0x1d3   :  { %2200 = vmatpush2.bf16.msra.mxu1 %v5084_v43 }
 0x1d4   :  { %2201 = vmatprep.subr.bf16.mxu1 %v5083_v29 }
 0x1d7   :  { %2202 = vmatpush2.bf16.msra.mxu1 %v5082_v10 }
 0x1d8   :  { %2203 = vmatprep.subr.bf16.mxu1 %v5081_v51  ;;  %v5208_v51 = vld [vmem:[%s6949_s1 + $0x48] sm:$0xff]  }
 0x1db   :  { %2204 = vmatpush2.bf16.msra.mxu1 %v5080_v20  ;;  %v5210_v20 = vld [vmem:[%s6949_s1 + $0x58] sm:$0xff]  }
 0x1dc   :  { %2205 = vmatprep.subr.bf16.mxu1 %v5079_v14 }
 0x1df   :  { %2206 = vmatpush2.bf16.msra.mxu1 %v5078_v53  ;;  %v5212_v53 = vld [vmem:[%s6949_s1 + $0x68] sm:$0xff]  }
 0x1e0   :  { %2207 = vmatprep.subr.bf16.mxu1 %v5077_v26 }
 0x1e3   :  { %2208 = vmatpush2.bf16.msra.mxu1 %v5076_v24 }
 0x1e4   :  { %2209 = vmatprep.subr.bf16.mxu1 %v6250_v39  ;;  %v6310_v39 = vpop.permute.xlu0 %2452 }
 0x1e7   :  { %2210 = vmatpush2.bf16.msra.mxu1 %v6244_v41 }
 0x1e8   :  { %2211 = vmatprep.subr.bf16.mxu1 %v6226_v30  ;;  %v6314_v30 = vpop.permute.xlu1 %2457  ;;  %v6316_v41 = vpop.permute.xlu0 %2442 }
 0x1eb   :  { %2212 = vmatpush2.bf16.msra.mxu1 %v6220_v52  ;;  %v5198_v52 = vld [vmem:[%s6950_s3 + $0x28] ss:$16 sps:$4 sm:$0xff]  }
 0x1ec   :  { %4719 = vmatprep.subr.msk.bf16.mxu1 %vm736_vm0, %v2868_v31  ;;  %v6321_v37 = vpop.permute.xlu1 %2447  ;;  %v6324_v59 = vpop.permute.xlu0 %2432 }
 0x1ee   :  { %2214 = vmatmul.mubr.bf16.vlgmr.msra.gmra.mxu1 %v5193_v46 }
 0x1ef   :  { %2223 = vmatprep.mubr.bf16.mxu1 %v5196_v12  ;;  %2986 = vmatpush1.bf16.msra.mxu1 %v2966_v35  ;;  %v5214_v12 = vld [vmem:[%s6949_s1 + $0x78] sm:$0xff]  }
 0x1f0   :  { %v6329_v36 = vpop.permute.xlu1 %2437  ;;  %v6331_v5 = vpop.permute.xlu0 %2422 }
 0x1f4   :  { %v6335_v47 = vpop.permute.xlu1 %2427  ;;  %v6340_v9 = vpop.permute.xlu0 %2412 }
 0x1f6   :  { %2224 = vmatmul.mubr.bf16.gmra.mxu1 %v5198_v52 }
 0x1f7   :  { %3003 = vmatprep.mubr.bf16.mxu1 %v7056_v2 }
 0x1f8   :  { %v6344_v40 = vpop.permute.xlu1 %2417  ;;  %v6346_v57 = vpop.permute.xlu0 %2402 }
 0x1fc   :  { %v6351_v33 = vpop.permute.xlu1 %2407  ;;  %v6355_v13 = vpop.permute.xlu0 %2392 }
 0x1fe   :  { %4720 = vmatmul.mubr.msk.bf16.vlgmr.msra.gmra.mxu1 %vm639_vm1, %v5199_v62 }
 0x1ff   :  { %3013 = vmatprep.mubr.bf16.mxu1 %v7056_v2 }
 0x200   :  { %v6360_v25 = vpop.permute.xlu1 %2397  ;;  %v6362_v45 = vpop.permute.xlu0 %2382 }
 0x204   :  { %v6366_v3 = vpop.permute.xlu1 %2387  ;;  %v6371_v50 = vpop.permute.xlu0 %2532 }
 0x206   :  { %4721 = vmatmul.mubr.msk.bf16.gmra.mxu1 %vm639_vm1, %v5200_v22  ;;  %v5215_v22 = vld [vmem:[%s6949_s1 + $0x80] sm:$0xff]  }
 0x207   :  { %3023 = vmatprep.mubr.bf16.mxu1 %v7056_v2 }
 0x208   :  { %v6375_v43 = vpop.permute.xlu1 %2537  ;;  %v6377_v19 = vpop.permute.xlu0 %2522 }
 0x20c   :  { %v6382_v0 = vpop.permute.xlu1 %2527  ;;  %v6386_v29 = vpop.permute.xlu0 %2512 }
 0x20e   :  { %4722 = vmatmul.mubr.msk.bf16.gmra.mxu1 %vm639_vm1, %v5201_v16 }
 0x20f   :  { %3033 = vmatprep.mubr.bf16.mxu1 %v7056_v2 }
 0x210   :  { %v6391_v6 = vpop.permute.xlu1 %2517  ;;  %v6393_v58 = vpop.permute.xlu0 %2502 }
 0x211   :  { %7057 = vst [vmem:[#allocation12_spill] sm:$0xff] %v6393_v58 }
 0x214   :  { %v6397_v56 = vpop.permute.xlu1 %2507  ;;  %v6402_v54 = vpop.permute.xlu0 %2492 }
 0x215   :  { %7058 = vst [vmem:[#allocation13_spill] sm:$0xff] %v6397_v56  ;;  %7059 = vst [vmem:[#allocation5_spill] sm:$0xff] %v6402_v54 }
 0x216   :  { %4723 = vmatmul.mubr.msk.bf16.gmra.mxu1 %vm639_vm1, %v5202_v63 }
 0x217   :  { %3043 = vmatprep.mubr.bf16.mxu1 %v7056_v2 }
 0x218   :  { %v6406_v18 = vpop.permute.xlu1 %2497  ;;  %v6408_v10 = vpop.permute.xlu0 %2482 }
 0x219   :  { %7060 = vst [vmem:[#allocation4_spill] sm:$0xff] %v6406_v18  ;;  %7061 = vst [vmem:[#allocation3_spill] sm:$0xff] %v6408_v10 }
 0x21c   :  { %v6413_v15 = vpop.permute.xlu1 %2487  ;;  %v6417_v4 = vpop.permute.xlu0 %2472 }
 0x21d   :  { %7062 = vst [vmem:[#allocation14_spill] sm:$0xff] %v6413_v15 }
 0x21e   :  { %4724 = vmatmul.mubr.msk.bf16.gmra.mxu1 %vm639_vm1, %v5203_v23 }
 0x21f   :  { %3053 = vmatprep.mubr.bf16.mxu1 %v7056_v2 }
 0x220   :  { %v6422_v61 = vpop.permute.xlu1 %2477  ;;  %v6424_v17 = vpop.permute.xlu0 %2462 }
 0x224   :  { %v6428_v32 = vpop.permute.xlu1 %2467  ;;  %v6433_v42 = vpop.permute.xlu0 %2612 }
 0x225   :  { %7063 = vst [vmem:[#allocation7_spill] sm:$0xff] %v6433_v42 }
 0x226   :  { %4725 = vmatmul.mubr.msk.bf16.gmra.mxu1 %vm639_vm1, %v5204_v34  ;;  %v5216_v34 = vld [vmem:[%s6949_s1 + $0x88] sm:$0xff]  }
 0x227   :  { %3063 = vmatprep.mubr.bf16.mxu1 %v7056_v2 }
 0x228   :  { %v6437_v55 = vpop.permute.xlu1 %2617  ;;  %v6439_v27 = vpop.permute.xlu0 %2602 }
 0x229   :  { %7064 = vst [vmem:[#allocation6_spill] sm:$0xff] %v6437_v55  ;;  %7065 = vst [vmem:[#allocation10_spill] sm:$0xff] %v6439_v27 }
 0x22c   :  { %v6444_v1 = vpop.permute.xlu1 %2607  ;;  %v6448_v14 = vpop.permute.xlu0 %2592 }
 0x22d   :  { %7066 = vst [vmem:[#allocation8_spill] sm:$0xff] %v6444_v1  ;;  %7067 = vst [vmem:[#allocation11_spill] sm:$0xff] %v6448_v14 }
 0x22e   :  { %4726 = vmatmul.mubr.msk.bf16.gmra.mxu1 %vm639_vm1, %v5205_v44 }
 0x22f   :  { %3073 = vmatprep.mubr.bf16.mxu1 %v7056_v2 }
 0x230   :  { %v6453_v48 = vpop.permute.xlu1 %2597  ;;  %v6455_v8 = vpop.permute.xlu0 %2582 }
 0x231   :  { %7068 = vst [vmem:[#allocation9_spill] sm:$0xff] %v6453_v48  ;;  %7069 = vst [vmem:[#allocation15_spill] sm:$0xff] %v6455_v8 }
 0x234   :  { %v6459_v7 = vpop.permute.xlu1 %2587  ;;  %v6464_v26 = vpop.permute.xlu0 %2572 }
 0x235   :  { %7070 = vst [vmem:[#allocation16_spill] sm:$0xff] %v6459_v7  ;;  %7071 = vst [vmem:[#allocation17_spill] sm:$0xff] %v6464_v26 }
 0x236   :  { %4727 = vmatmul.mubr.msk.bf16.gmra.mxu1 %vm639_vm1, %v5206_v49 }
 0x237   :  { %3083 = vmatprep.mubr.bf16.mxu1 %v7056_v2 }
 0x238   :  { %v6468_v28 = vpop.permute.xlu1 %2577  ;;  %v6470_v24 = vpop.permute.xlu0 %2562 }
 0x239   :  { %7072 = vst [vmem:[#allocation18_spill] sm:$0xff] %v6468_v28  ;;  %7073 = vst [vmem:[#allocation19_spill] sm:$0xff] %v6470_v24 }
 0x23c   :  { %v6475_v31 = vpop.permute.xlu1 %2567  ;;  %v6479_v46 = vpop.permute.xlu0 %2552 }
 0x23d   :  { %7074 = vst [vmem:[#allocation20_spill] sm:$0xff] %v6475_v31  ;;  %7075 = vst [vmem:[#allocation21_spill] sm:$0xff] %v6479_v46 }
 0x23e   :  { %4728 = vmatmul.mubr.msk.bf16.gmra.mxu1 %vm639_vm1, %v5207_v21  ;;  %v5217_v21 = vld [vmem:[%s6949_s1 + $0x90] sm:$0xff]  }
 0x23f   :  { %3093 = vmatprep.mubr.bf16.mxu1 %v7056_v2 }
 0x240   :  { %v6484_v35 = vpop.permute.xlu1 %2557  ;;  %v6486_v52 = vpop.permute.xlu0 %2542 }
 0x241   :  { %7076 = vst [vmem:[#allocation22_spill] sm:$0xff] %v6484_v35  ;;  %7077 = vst [vmem:[#allocation23_spill] sm:$0xff] %v6486_v52 }
 0x244   :  { %v6490_v62 = vpop.permute.xlu1 %2547  ;;  %v6495_v16 = vpop.permute.xlu0 %2692 }
 0x245   :  { %7078 = vst [vmem:[#allocation24_spill] sm:$0xff] %v6490_v62  ;;  %7079 = vst [vmem:[#allocation25_spill] sm:$0xff] %v6495_v16 }
 0x246   :  { %4729 = vmatmul.mubr.msk.bf16.gmra.mxu1 %vm639_vm1, %v5208_v51 }
 0x247   :  { %3103 = vmatprep.mubr.bf16.mxu1 %v7056_v2 }
 0x248   :  { %v6499_v63 = vpop.permute.xlu1 %2697  ;;  %v6501_v23 = vpop.permute.xlu0 %2682 }
 0x249   :  { %7080 = vst [vmem:[#allocation26_spill] sm:$0xff] %v6499_v63  ;;  %7081 = vst [vmem:[#allocation27_spill] sm:$0xff] %v6501_v23  ;;  %v5221_v63 = vld [vmem:[%s6949_s1 + $0xb0] sm:$0xff]  }
 0x24c   :  { %v6506_v44 = vpop.permute.xlu1 %2687  ;;  %v6510_v49 = vpop.permute.xlu0 %2672 }
 0x24d   :  { %7082 = vst [vmem:[#allocation28_spill] sm:$0xff] %v6506_v44  ;;  %7083 = vst [vmem:[#allocation29_spill] sm:$0xff] %v6510_v49 }
 0x24e   :  { %4730 = vmatmul.mubr.msk.bf16.gmra.mxu1 %vm639_vm1, %v5209_v11 }
 0x24f   :  { %3113 = vmatprep.mubr.bf16.mxu1 %v7056_v2 }
 0x250   :  { %v6515_v51 = vpop.permute.xlu1 %2677  ;;  %v6517_v11 = vpop.permute.xlu0 %2662 }
 0x251   :  { %7084 = vst [vmem:[#allocation30_spill] sm:$0xff] %v6515_v51  ;;  %7085 = vst [vmem:[#allocation31_spill] sm:$0xff] %v6517_v11  ;;  %v5219_v11 = vld [vmem:[%s6949_s1 + $0xa0] sm:$0xff]  }
 0x256   :  { %4731 = vmatmul.mubr.msk.bf16.gmra.mxu1 %vm639_vm1, %v5210_v20  ;;  %v2162_v20 = vpop.f32.mrf.mxu1 }
 0x257   :  { %3123 = vmatprep.mubr.bf16.mxu1 %v7056_v2 }
 0x25e   :  { %4732 = vmatmul.mubr.msk.bf16.gmra.mxu1 %vm639_vm1, %v5211_v60  ;;  %v6521_v60 = vpop.permute.xlu1 %2667 }
 0x25f   :  { %3133 = vmatprep.mubr.bf16.mxu1 %v7056_v2  ;;  %7086 = vst [vmem:[#allocation32_spill] sm:$0xff] %v6521_v60 }
 0x266   :  { %4733 = vmatmul.mubr.msk.bf16.gmra.mxu1 %vm639_vm1, %v5212_v53  ;;  %v5218_v53 = vld [vmem:[%s6949_s1 + $0x98] sm:$0xff]  }
 0x267   :  { %3143 = vmatprep.mubr.bf16.mxu1 %v7056_v2 }
 0x26e   :  { %4734 = vmatmul.mubr.msk.bf16.gmra.mxu1 %vm639_vm1, %v5213_v38  ;;  %v6526_v38 = vpop.permute.xlu0 %2652 }
 0x26f   :  { %3153 = vmatprep.mubr.bf16.mxu1 %v7056_v2  ;;  %7087 = vst [vmem:[#allocation33_spill] sm:$0xff] %v6526_v38 }
 0x276   :  { %4735 = vmatmul.mubr.msk.bf16.gmra.mxu1 %vm639_vm1, %v5214_v12  ;;  %v2164_v12 = vpop.f32.mrf.mxu1 }
 0x277   :  { %3163 = vmatprep.mubr.bf16.mxu1 %v7056_v2 }
 0x27e   :  { %4736 = vmatmul.mubr.msk.bf16.gmra.mxu1 %vm639_vm1, %v5215_v22  ;;  %v6530_v22 = vpop.permute.xlu1 %2657 }
 0x27f   :  { %3173 = vmatprep.mubr.bf16.mxu1 %v7056_v2  ;;  %7088 = vst [vmem:[#allocation34_spill] sm:$0xff] %v6530_v22  ;;  %v5220_v22 = vld [vmem:[%s6949_s1 + $0xa8] sm:$0xff]  }
 0x282   :  { %v6537_v49 = vpop.permute.xlu1 %2647 }
 0x283   :  { %7090 = vst [vmem:[#allocation36_spill] sm:$0xff] %v6537_v49 }
 0x286   :  { %4737 = vmatmul.mubr.msk.bf16.gmra.mxu1 %vm639_vm1, %v5216_v34  ;;  %v2166_v34 = vpop.f32.mrf.mxu1  ;;  %v6546_v51 = vpop.permute.xlu1 %2637 }
 0x287   :  { %3183 = vmatprep.mubr.bf16.mxu1 %v7056_v2  ;;  %7092 = vst [vmem:[#allocation38_spill] sm:$0xff] %v6546_v51 }
 0x288   :  { %v2168_v60 = vpop.f32.mrf.mxu1 }
 0x28e   :  { %4738 = vmatmul.mubr.msk.bf16.gmra.mxu1 %vm639_vm1, %v5217_v21  ;;  %v6532_v21 = vpop.permute.xlu0 %2642 }
 0x28f   :  { %3193 = vmatprep.mubr.bf16.mxu1 %v7056_v2  ;;  %7089 = vst [vmem:[#allocation35_spill] sm:$0xff] %v6532_v21 }
 0x292   :  { %v6541_v38 = vpop.permute.xlu0 %2632 }
 0x293   :  { %7091 = vst [vmem:[#allocation37_spill] sm:$0xff] %v6541_v38 }
 0x296   :  { %4739 = vmatmul.mubr.msk.bf16.gmra.mxu1 %vm639_vm1, %v5218_v53  ;;  %v2172_v53 = vpop.f32.mrf.mxu1  ;;  %v6548_v23 = vpop.permute.xlu0 %2622 }
 0x297   :  { %3203 = vmatprep.mubr.bf16.mxu1 %v7056_v2  ;;  %7093 = vst [vmem:[#allocation39_spill] sm:$0xff] %v6548_v23  ;;  %v5222_v23 = vld [vmem:[%s6949_s1 + $0xb8] sm:$0xff]  }
 0x298   :  { %v2174_v21 = vpop.f32.mrf.mxu1 }
 0x29a   :  { %v2176_v49 = vpop.f32.mrf.mxu1  ;;  %v1751_v16 = vpop.permute.xlu0 %1750 }
 0x29b   :  { %v2163_v24 = vadd.f32 %v2162_v20, %v1751_v16  ;;  %v2165_v51 = vadd.f32 %v2164_v12, %v1751_v16 }
 0x29c   :  { %v2178_v44 = vpop.f32.mrf.mxu1 }
 0x29e   :  { %4740 = vmatmul.mubr.msk.bf16.gmra.mxu1 %vm639_vm1, %v5219_v11  ;;  %v6552_v11 = vpop.permute.xlu1 %2627 }
 0x29f   :  { %3213 = vmatprep.mubr.bf16.mxu1 %v7056_v2  ;;  %7094 = vst [vmem:[#allocation40_spill] sm:$0xff] %v6552_v11 }
 0x2a6   :  { %4741 = vmatmul.mubr.msk.bf16.gmra.mxu1 %vm639_vm1, %v5220_v22  ;;  %v1756_v22 = vpop.permute.xlu1 %1755 }
 0x2a7   :  { %3223 = vmatprep.mubr.bf16.mxu1 %v7056_v2  ;;  %v2167_v8 = vadd.f32 %v2166_v34, %v1756_v22  ;;  %v2169_v14 = vadd.f32 %v2168_v60, %v1756_v22 }
 0x2ae   :  { %v2215_v31 = vpop.f32.mrf.mxu1  ;;  %4742 = vmatmul.mubr.msk.bf16.gmra.mxu1 %vm639_vm1, %v5221_v63 }
 0x2af   :  { %v2216_v38 = vadd.f32 %v2215_v31, %v2163_v24  ;;  %3233 = vmatprep.mubr.bf16.mxu1 %v7056_v2  ;;  %v1761_v24 = vpop.permute.xlu0 %1760 }
 0x2b0   :  { %v2217_v26 = vpop.f32.mrf.mxu1  ;;  %v2173_v20 = vadd.f32 %v2172_v53, %v1761_v24  ;;  %v2175_v12 = vadd.f32 %v2174_v21, %v1761_v24 }
 0x2b1   :  { %v2234_v28 = vmax.f32 %v2216_v38, 0.0  ;;  %v2218_v7 = vadd.f32 %v2217_v26, %v2165_v51 }
 0x2b2   :  { %v2219_v11 = vpop.f32.mrf.mxu1 }
 0x2b3   :  { %2242 = vst [vmem:[%s6952_s5] sm:$0xff] %v2234_v28  ;;  %v2235_v63 = vmax.f32 %v2218_v7, 0.0  ;;  %v2220_v16 = vadd.f32 %v2219_v11, %v2167_v8  ;;  %v1766_v8 = vpop.permute.xlu1 %1765 }
 0x2b4   :  { %v2221_v31 = vpop.f32.mrf.mxu1  ;;  %v2177_v34 = vadd.f32 %v2176_v49, %v1766_v8  ;;  %v2179_v21 = vadd.f32 %v2178_v44, %v1766_v8 }
 0x2b5   :  { %2243 = vst [vmem:[%s6952_s5 + $0x8] sm:$0xff] %v2235_v63  ;;  %v2236_v26 = vmax.f32 %v2220_v16, 0.0  ;;  %v2222_v51 = vadd.f32 %v2221_v31, %v2169_v14 }
 0x2b6   :  { %v2225_v38 = vpop.f32.mrf.mxu1  ;;  %4743 = vmatmul.mubr.msk.bf16.gmra.mxu1 %vm639_vm1, %v5222_v23  ;;  %v5223_v23 = vld [vmem:[%s6949_s1 + $0xc0] sm:$0xff]  }
 0x2b7   :  { %2244 = vst [vmem:[%s6952_s5 + $0x10] sm:$0xff] %v2236_v26  ;;  %v2237_v28 = vmax.f32 %v2222_v51, 0.0  ;;  %v2226_v7 = vadd.f32 %v2225_v38, %v2173_v20  ;;  %3243 = vmatprep.mubr.bf16.mxu1 %v7056_v2  ;;  %v5224_v38 = vld [vmem:[%s6949_s1 + $0xc8] sm:$0xff]  }
 0x2b8   :  { %v2227_v60 = vpop.f32.mrf.mxu1 }
 0x2b9   :  { %2245 = vst [vmem:[%s6952_s5 + $0x18] sm:$0xff] %v2237_v28  ;;  %v2238_v14 = vmax.f32 %v2226_v7, 0.0  ;;  %v2228_v53 = vadd.f32 %v2227_v60, %v2175_v12 }
 0x2ba   :  { %v2229_v11 = vpop.f32.mrf.mxu1 }
 0x2bb   :  { %2246 = vst [vmem:[%s6952_s5 + $0x20] sm:$0xff] %v2238_v14  ;;  %v2239_v22 = vmax.f32 %v2228_v53, 0.0  ;;  %v2230_v63 = vadd.f32 %v2229_v11, %v2177_v34 }
 0x2bc   :  { %v2231_v16 = vpop.f32.mrf.mxu1 }
 0x2bd   :  { %2247 = vst [vmem:[%s6952_s5 + $0x28] sm:$0xff] %v2239_v22  ;;  %v2240_v49 = vmax.f32 %v2230_v63, 0.0  ;;  %v2232_v24 = vadd.f32 %v2231_v16, %v2179_v21  ;;  %v5225_v16 = vld [vmem:[%s6949_s1 + $0xd0] sm:$0xff]  }
 0x2be   :  { %v3005_v31 = vpop.f32.mrf.mxu1  ;;  %4744 = vmatmul.mubr.msk.bf16.gmra.mxu1 %vm639_vm1, %v5223_v23 }
 0x2bf   :  { %2248 = vst [vmem:[%s6952_s5 + $0x30] sm:$0xff] %v2240_v49  ;;  %v2241_v44 = vmax.f32 %v2232_v24, 0.0  ;;  %3253 = vmatprep.mubr.bf16.mxu1 %v7056_v2  ;;  %v3006_v26 = vadd.f32 %v3005_v31, %v6362_v45 }
 0x2c0   :  { %v3007_v20 = vpop.f32.mrf.mxu1 }
 0x2c1   :  { %2249 = vst [vmem:[%s6952_s5 + $0x38] sm:$0xff] %v2241_v44  ;;  %v3008_v12 = vadd.f32 %v3007_v20, %v6362_v45  ;;  %v3324_v8 = vmax.f32 %v3006_v26, 0.0 }
 0x2c2   :  { %v3009_v51 = vpop.f32.mrf.mxu1 }
 0x2c3   :  { %v3010_v28 = vadd.f32 %v3009_v51, %v6366_v3  ;;  %v3325_v53 = vmax.f32 %v3008_v12, 0.0 }
 0x2c4   :  { %v3011_v7 = vpop.f32.mrf.mxu1 }
 0x2c5   :  { %v3326_v60 = vmax.f32 %v3010_v28, 0.0  ;;  %v3012_v34 = vadd.f32 %v3011_v7, %v6366_v3 }
 0x2c6   :  { %v3015_v14 = vpop.f32.mrf.mxu1  ;;  %4745 = vmatmul.mubr.msk.bf16.gmra.mxu1 %vm639_vm1, %v5224_v38 }
 0x2c7   :  { %v6601_v11 = vpack.c.bf16 %v3326_v60, %v3324_v8  ;;  %v3327_v23 = vmax.f32 %v3012_v34, 0.0  ;;  %3263 = vmatprep.mubr.bf16.mxu1 %v7056_v2  ;;  %v3016_v22 = vadd.f32 %v3015_v14, %v6355_v13 }
 0x2c8   :  { %v3017_v21 = vpop.f32.mrf.mxu1 }
 0x2c9   :  { %v6605_v45 = vpack.c.bf16 %v3327_v23, %v3325_v53  ;;  %v3018_v3 = vadd.f32 %v3017_v21, %v6355_v13  ;;  %v3328_v31 = vmax.f32 %v3016_v22, 0.0  ;;  %v5227_v53 = vld [vmem:[%s6949_s1 + $0xe0] sm:$0xff]  }
 0x2ca   :  { %v3019_v63 = vpop.f32.mrf.mxu1 }
 0x2cb   :  { %v3020_v49 = vadd.f32 %v3019_v63, %v6360_v25  ;;  %v3329_v51 = vmax.f32 %v3018_v3, 0.0  ;;  %v5233_v63 = vld [vmem:[%s6950_s3 + $0x4] ss:$16 sps:$4 sm:$0xff]   ;;  %v5228_v3 = vld [vmem:[%s6949_s1 + $0xe8] sm:$0xff]  }
 0x2cc   :  { %v3021_v24 = vpop.f32.mrf.mxu1  ;;  %4388 = vmatprep.mubr.bf16.mxu0 %v5233_v63  ;;  %v5230_v63 = vld [vmem:[%s6949_s1 + $0xf8] sm:$0xff]  }
 0x2cd   :  { %v3330_v44 = vmax.f32 %v3020_v49, 0.0  ;;  %v3022_v20 = vadd.f32 %v3021_v24, %v6360_v25  ;;  %v5226_v25 = vld [vmem:[%s6949_s1 + $0xd8] sm:$0xff]  }
 0x2ce   :  { %v6613_v26 = vpop.f32.mrf.mxu1  ;;  %4746 = vmatmul.mubr.msk.bf16.gmra.mxu1 %vm639_vm1, %v5225_v16 }
 0x2cf   :  { %v6616_v38 = vpack.c.bf16 %v3330_v44, %v3328_v31  ;;  %v3331_v12 = vmax.f32 %v3022_v20, 0.0  ;;  %3273 = vmatprep.mubr.bf16.mxu1 %v7056_v2  ;;  %v5229_v20 = vld [vmem:[%s6949_s1 + $0xf0] sm:$0xff]  }
 0x2d0   :  { %v6619_v28 = vpop.f32.mrf.mxu1 }
 0x2d1   :  { %v6621_v13 = vpack.c.bf16 %v3331_v12, %v3329_v51 }
 0x2d2   :  { %v6623_v7 = vpop.f32.mrf.mxu1 }
 0x2d4   :  { %v6628_v8 = vpop.f32.mrf.mxu1 }
 0x2d6   :  { %v6630_v60 = vpop.f32.mrf.mxu1  ;;  %4747 = vmatmul.mubr.msk.bf16.gmra.mxu1 %vm639_vm1, %v5226_v25 }
 0x2d7   :  { %3283 = vmatprep.mubr.bf16.mxu1 %v7056_v2 }
 0x2d8   :  { %v6634_v34 = vpop.f32.mrf.mxu1 }
 0x2da   :  { %v6636_v14 = vpop.f32.mrf.mxu1 }
 0x2dc   :  { %v3041_v23 = vpop.f32.mrf.mxu1 }
 0x2de   :  { %v6641_v21 = vpop.f32.mrf.mxu1  ;;  %4748 = vmatmul.mubr.msk.bf16.gmra.mxu1 %vm639_vm1, %v5227_v53 }
 0x2df   :  { %3293 = vmatprep.mubr.bf16.mxu1 %v7056_v2 }
 0x2e0   :  { %v3047_v22 = vpop.f32.mrf.mxu1 }
 0x2e2   :  { %v6648_v16 = vpop.f32.mrf.mxu1 }
 0x2e4   :  { %v3051_v49 = vpop.f32.mrf.mxu1 }
 0x2e6   :  { %v3055_v24 = vpop.f32.mrf.mxu1  ;;  %4749 = vmatmul.mubr.msk.bf16.gmra.mxu1 %vm639_vm1, %v5228_v3 }
 0x2e7   :  { %3303 = vmatprep.mubr.bf16.mxu1 %v7056_v2 }
 0x2e8   :  { %v3057_v31 = vpop.f32.mrf.mxu1 }
 0x2ea   :  { %v3059_v44 = vpop.f32.mrf.mxu1 }
 0x2ec   :  { %v3061_v51 = vpop.f32.mrf.mxu1 }
 0x2ee   :  { %v3065_v12 = vpop.f32.mrf.mxu1  ;;  %4750 = vmatmul.mubr.msk.bf16.gmra.mxu1 %vm639_vm1, %v5229_v20 }
 0x2ef   :  { %3313 = vmatprep.mubr.bf16.mxu1 %v7056_v2 }
 0x2f0   :  { %v3067_v25 = vpop.f32.mrf.mxu1 }
 0x2f1   :  { %v3068_v35 = vadd.f32 %v3067_v25, %v6316_v41 }
 0x2f2   :  { %v3069_v53 = vpop.f32.mrf.mxu1 }
 0x2f3   :  { %v3070_v46 = vadd.f32 %v3069_v53, %v6321_v37 }
 0x2f4   :  { %v3071_v3 = vpop.f32.mrf.mxu1 }
 0x2f5   :  { %v3072_v42 = vadd.f32 %v3071_v3, %v6321_v37  ;;  %v3060_v37 = vadd.f32 %v3059_v44, %v6329_v36 }
 0x2f6   :  { %v3075_v48 = vpop.f32.mrf.mxu1  ;;  %4751 = vmatmul.mubr.msk.bf16.gmra.mxu1 %vm639_vm1, %v5230_v63  ;;  %v3062_v63 = vadd.f32 %v3061_v51, %v6329_v36 }
 0x2f7   :  { %v3076_v2 = vadd.f32 %v3075_v48, %v6310_v39  ;;  %v3351_v18 = vmax.f32 %v3072_v42, 0.0  ;;  %v3349_v48 = vmax.f32 %v3068_v35, 0.0  ;;  %v3048_v35 = vadd.f32 %v3047_v22, %v6331_v5 }
 0x2f8   :  { %v3077_v27 = vpop.f32.mrf.mxu1  ;;  %v3347_v42 = vmax.f32 %v3062_v63, 0.0 }
 0x2f9   :  { %v3078_v1 = vadd.f32 %v3077_v27, %v6310_v39  ;;  %v3066_v27 = vadd.f32 %v3065_v12, %v6316_v41  ;;  %v3352_v56 = vmax.f32 %v3076_v2, 0.0  ;;  %v3058_v39 = vadd.f32 %v3057_v31, %v6324_v59 }
 0x2fa   :  { %v3079_v55 = vpop.f32.mrf.mxu1  ;;  %v3042_v31 = vadd.f32 %v3041_v23, %v6344_v40 }
 0x2fb   :  { %v3080_v20 = vadd.f32 %v3079_v55, %v6314_v30  ;;  %v3353_v62 = vmax.f32 %v3078_v1, 0.0  ;;  %v5101_v1 = vpack.c.bf16 %v3351_v18, %v3349_v48  ;;  %v3345_v36 = vmax.f32 %v3058_v39, 0.0 }
 0x2fc   :  { %v3081_v10 = vpop.f32.mrf.mxu1  ;;  %v3050_v18 = vadd.f32 %v6648_v16, %v6335_v47  ;;  %v3339_v48 = vmax.f32 %v3042_v31, 0.0 }
 0x2fd   :  { %v3082_v15 = vadd.f32 %v3081_v10, %v6314_v30  ;;  %v3354_v54 = vmax.f32 %v3080_v20, 0.0  ;;  %v3052_v30 = vadd.f32 %v3051_v49, %v6335_v47  ;;  %v3350_v10 = vmax.f32 %v3070_v46, 0.0 }
 0x2fe   :  { %v3085_v58 = vpop.f32.mrf.mxu1  ;;  %v5099_v12 = vpack.c.bf16 %v3347_v42, %v3345_v36  ;;  %v3342_v39 = vmax.f32 %v3050_v18, 0.0 }
 0x2ff   :  { %v3355_v3 = vmax.f32 %v3082_v15, 0.0  ;;  %v3086_v25 = vadd.f32 %v3085_v58, %v6424_v17  ;;  %v5102_v53 = vpack.c.bf16 %v3354_v54, %v3352_v56  ;;  %v3056_v58 = vadd.f32 %v3055_v24, %v6324_v59 }
 0x300   :  { %v3087_v55 = vpop.f32.mrf.mxu1  ;;  %v3046_v24 = vadd.f32 %v6641_v21, %v6331_v5 }
 0x301   :  { %v5103_v52 = vpack.c.bf16 %v3355_v3, %v3353_v62  ;;  %v3088_v15 = vadd.f32 %v3087_v55, %v6424_v17  ;;  %v3348_v62 = vmax.f32 %v3066_v27, 0.0  ;;  %v3356_v46 = vmax.f32 %v3086_v25, 0.0 }
 0x302   :  { %v3089_v51 = vpop.f32.mrf.mxu1  ;;  %v3343_v17 = vmax.f32 %v3052_v30, 0.0  ;;  %v3344_v2 = vmax.f32 %v3056_v58, 0.0  ;;  %v3341_v3 = vmax.f32 %v3048_v35, 0.0  ;;  %v3032_v27 = vadd.f32 %v6628_v8, %v6351_v33 }
 0x303   :  { %v3090_v41 = vadd.f32 %v3089_v51, %v6428_v32  ;;  %4356 = vmatprep.subr.bf16.mxu0 %v5103_v52  ;;  %v3346_v52 = vmax.f32 %v3060_v37, 0.0  ;;  %v5100_v44 = vpack.c.bf16 %v3350_v10, %v3348_v62  ;;  %v3357_v22 = vmax.f32 %v3088_v15, 0.0 }
 0x304   :  { %v3091_v49 = vpop.f32.mrf.mxu1  ;;  %4357 = vmatpush1.bf16.msra.mxu0 %v5102_v53  ;;  %v3040_v55 = vadd.f32 %v6636_v14, %v6344_v40  ;;  %v5097_v25 = vpack.c.bf16 %v3343_v17, %v3341_v3  ;;  %v3028_v37 = vadd.f32 %v6619_v28, %v6346_v57  ;;  %v3036_v10 = vadd.f32 %v6630_v60, %v6340_v9 }
 0x305   :  { %v3358_v56 = vmax.f32 %v3090_v41, 0.0  ;;  %v3092_v54 = vadd.f32 %v3091_v49, %v6428_v32  ;;  %4358 = vmatprep.subr.bf16.mxu0 %v5101_v1  ;;  %v3038_v32 = vadd.f32 %v6634_v34, %v6340_v9  ;;  %v5098_v5 = vpack.c.bf16 %v3346_v52, %v3344_v2 }
 0x306   :  { %v3095_v23 = vpop.f32.mrf.mxu1  ;;  %v3340_v53 = vmax.f32 %v3046_v24, 0.0  ;;  %v3335_v1 = vmax.f32 %v3032_v27, 0.0  ;;  %v3338_v15 = vmax.f32 %v3040_v55, 0.0  ;;  %v3026_v58 = vadd.f32 %v6613_v26, %v6346_v57 }
 0x307   :  { %v6685_v20 = vpack.c.bf16 %v3358_v56, %v3356_v46  ;;  %v3359_v59 = vmax.f32 %v3092_v54, 0.0  ;;  %v3096_v16 = vadd.f32 %v3095_v23, %v6417_v4  ;;  %v3337_v51 = vmax.f32 %v3038_v32, 0.0 }
 0x308   :  { %v3097_v63 = vpop.f32.mrf.mxu1  ;;  %4359 = vmatpush1.bf16.msra.mxu0 %v5100_v44  ;;  %v5096_v41 = vpack.c.bf16 %v3342_v39, %v3340_v53  ;;  %v3336_v62 = vmax.f32 %v3036_v10, 0.0  ;;  %v3332_v54 = vmax.f32 %v3026_v58, 0.0 }
 0x309   :  { %v6691_v47 = vpack.c.bf16 %v3359_v59, %v3357_v22  ;;  %4360 = vmatprep.subr.bf16.mxu0 %v5099_v12  ;;  %v3098_v30 = vadd.f32 %v3097_v63, %v6417_v4  ;;  %v3360_v40 = vmax.f32 %v3096_v16, 0.0  ;;  %v3030_v4 = vadd.f32 %v6623_v7, %v6351_v33 }
 0x30a   :  { %v3099_v21 = vpop.f32.mrf.mxu1  ;;  %v5095_v60 = vpack.c.bf16 %v3339_v48, %v3337_v51  ;;  %v5094_v7 = vpack.c.bf16 %v3338_v15, %v3336_v62 }
 0x30b   :  { %v3100_v34 = vadd.f32 %v3099_v21, %v6422_v61  ;;  %v3361_v28 = vmax.f32 %v3098_v30, 0.0  ;;  %v3334_v33 = vmax.f32 %v3030_v4, 0.0 }
 0x30c   :  { %v3101_v8 = vpop.f32.mrf.mxu1  ;;  %4361 = vmatpush1.bf16.msra.mxu0 %v5098_v5 }
 0x30d   :  { %v3362_v14 = vmax.f32 %v3100_v34, 0.0  ;;  %v3102_v42 = vadd.f32 %v3101_v8, %v6422_v61  ;;  %4362 = vmatprep.subr.bf16.mxu0 %v5097_v25  ;;  %v3333_v61 = vmax.f32 %v3028_v37, 0.0  ;;  %v5092_v17 = vpack.c.bf16 %v3334_v33, %v3332_v54  ;;  %v7098_v54 = vld [vmem:[#allocation4_spill] sm:$0xff] }
 0x30e   :  { %v6707_v31 = vpop.f32.mrf.mxu1 }
 0x30f   :  { %v6709_v35 = vpack.c.bf16 %v3362_v14, %v3360_v40  ;;  %v3363_v9 = vmax.f32 %v3102_v42, 0.0  ;;  %v5093_v56 = vpack.c.bf16 %v3335_v1, %v3333_v61 }
 0x310   :  { %v6713_v49 = vpop.f32.mrf.mxu1  ;;  %4363 = vmatpush1.bf16.msra.mxu0 %v5096_v41  ;;  %v7095_v41 = vld [vmem:[#allocation23_spill] sm:$0xff] }
 0x311   :  { %v6715_v36 = vpack.c.bf16 %v3363_v9, %v3361_v28  ;;  %4364 = vmatprep.subr.bf16.mxu0 %v5095_v60 }
 0x312   :  { %v6717_v46 = vpop.f32.mrf.mxu1 }
 0x314   :  { %v6719_v18 = vpop.f32.mrf.mxu1  ;;  %4365 = vmatpush1.bf16.msra.mxu0 %v5094_v7 }
 0x315   :  { %4366 = vmatprep.subr.bf16.mxu0 %v5093_v56 }
 0x316   :  { %v6721_v57 = vpop.f32.mrf.mxu1 }
 0x318   :  { %v6723_v26 = vpop.f32.mrf.mxu1  ;;  %4367 = vmatpush1.bf16.msra.mxu0 %v5092_v17 }
 0x319   :  { %4368 = vmatprep.subr.bf16.mxu0 %v6621_v13 }
 0x31a   :  { %v6726_v52 = vpop.f32.mrf.mxu1 }
 0x31c   :  { %v3121_v44 = vpop.f32.mrf.mxu1  ;;  %4369 = vmatpush1.bf16.msra.mxu0 %v6616_v38 }
 0x31d   :  { %4370 = vmatprep.subr.bf16.mxu0 %v6605_v45  ;;  %v3122_v17 = vadd.f32 %v3121_v44, %v7098_v54 }
 0x31e   :  { %v6730_v23 = vpop.f32.mrf.mxu1 }
 0x320   :  { %v3127_v12 = vpop.f32.mrf.mxu1  ;;  %4371 = vmatpush1.bf16.msra.mxu0 %v6601_v11 }
 0x322   :  { %v3129_v22 = vpop.f32.mrf.mxu1 }
 0x324   :  { %v3131_v59 = vpop.f32.mrf.mxu1 }
 0x326   :  { %v3135_v24 = vpop.f32.mrf.mxu1 }
 0x328   :  { %v3137_v2 = vpop.f32.mrf.mxu1 }
 0x32a   :  { %v3139_v63 = vpop.f32.mrf.mxu1 }
 0x32c   :  { %v3141_v32 = vpop.f32.mrf.mxu1 }
 0x32d   :  { %v3142_v53 = vadd.f32 %v3141_v32, %v6391_v6 }
 0x32e   :  { %v3145_v3 = vpop.f32.mrf.mxu1 }
 0x32f   :  { %v3146_v14 = vadd.f32 %v3145_v3, %v6377_v19  ;;  %v3379_v61 = vmax.f32 %v3142_v53, 0.0  ;;  %v3136_v3 = vadd.f32 %v3135_v24, %v6386_v29  ;;  %v7102_v53 = vld [vmem:[#allocation14_spill] sm:$0xff] }
 0x330   :  { %v3147_v13 = vpop.f32.mrf.mxu1 }
 0x331   :  { %v3148_v25 = vadd.f32 %v3147_v13, %v6377_v19  ;;  %v7097_v19 = vld [vmem:[#allocation24_spill] sm:$0xff]  ;;  %v3380_v13 = vmax.f32 %v3146_v14, 0.0 }
 0x332   :  { %v3149_v16 = vpop.f32.mrf.mxu1 }
 0x333   :  { %v3150_v34 = vadd.f32 %v3149_v16, %v6382_v0  ;;  %v3381_v1 = vmax.f32 %v3148_v25, 0.0  ;;  %v7100_v25 = vld [vmem:[#allocation5_spill] sm:$0xff] }
 0x334   :  { %v3151_v27 = vpop.f32.mrf.mxu1 }
 0x335   :  { %v3152_v45 = vadd.f32 %v3151_v27, %v6382_v0  ;;  %v3140_v0 = vadd.f32 %v3139_v63, %v6391_v6  ;;  %v3382_v60 = vmax.f32 %v3150_v34, 0.0 }
 0x336   :  { %v3155_v55 = vpop.f32.mrf.mxu1 }
 0x337   :  { %v3156_v11 = vadd.f32 %v3155_v55, %v6371_v50  ;;  %v3383_v8 = vmax.f32 %v3152_v45, 0.0  ;;  %v5116_v45 = vpack.c.bf16 %v3382_v60, %v3380_v13 }
 0x338   :  { %v3157_v39 = vpop.f32.mrf.mxu1 }
 0x339   :  { %v3158_v5 = vadd.f32 %v3157_v39, %v6371_v50  ;;  %v3384_v42 = vmax.f32 %v3156_v11, 0.0  ;;  %v3138_v50 = vadd.f32 %v3137_v2, %v6386_v29  ;;  %v5117_v33 = vpack.c.bf16 %v3383_v8, %v3381_v1  ;;  %v7099_v2 = vld [vmem:[#allocation12_spill] sm:$0xff] }
 0x33a   :  { %v3159_v38 = vpop.f32.mrf.mxu1  ;;  %v3128_v32 = vadd.f32 %v3127_v12, %v7099_v2  ;;  %v3126_v24 = vadd.f32 %v6730_v23, %v7099_v2  ;;  %v3376_v11 = vmax.f32 %v3136_v3, 0.0  ;;  %v3112_v8 = vadd.f32 %v6719_v18, %v7102_v53 }
 0x33b   :  { %v3160_v21 = vadd.f32 %v3159_v38, %v6375_v43  ;;  %v3385_v51 = vmax.f32 %v3158_v5, 0.0  ;;  %v3377_v6 = vmax.f32 %v3138_v50, 0.0  ;;  %v3378_v38 = vmax.f32 %v3140_v0, 0.0 }
 0x33c   :  { %v3161_v48 = vpop.f32.mrf.mxu1  ;;  %v3373_v34 = vmax.f32 %v3128_v32, 0.0 }
 0x33d   :  { %v3162_v30 = vadd.f32 %v3161_v48, %v6375_v43  ;;  %v3386_v37 = vmax.f32 %v3160_v21, 0.0  ;;  %v7096_v43 = vld [vmem:[#allocation13_spill] sm:$0xff]  ;;  %v5115_v44 = vpack.c.bf16 %v3379_v61, %v3377_v6  ;;  %v5114_v23 = vpack.c.bf16 %v3378_v38, %v3376_v11  ;;  %v5239_v11 = vld [vmem:[%s6950_s3 + $0xc] ss:$16 sps:$4 sm:$0xff]  }
 0x33e   :  { %v3165_v10 = vpop.f32.mrf.mxu1  ;;  %v3132_v9 = vadd.f32 %v3131_v59, %v7096_v43  ;;  %v3130_v55 = vadd.f32 %v3129_v22, %v7096_v43  ;;  %v3372_v43 = vmax.f32 %v3126_v24, 0.0 }
 0x33f   :  { %v3387_v40 = vmax.f32 %v3162_v30, 0.0  ;;  %v3166_v28 = vadd.f32 %v3165_v10, %v7095_v41  ;;  %v5118_v58 = vpack.c.bf16 %v3386_v37, %v3384_v42  ;;  %v3118_v30 = vadd.f32 %v6723_v26, %v7100_v25  ;;  %v7101_v37 = vld [vmem:[#allocation21_spill] sm:$0xff]  ;;  %v7103_v26 = vld [vmem:[#allocation22_spill] sm:$0xff] }
 0x340   :  { %v3167_v4 = vpop.f32.mrf.mxu1  ;;  %v3375_v39 = vmax.f32 %v3132_v9, 0.0  ;;  %v3371_v42 = vmax.f32 %v3122_v17, 0.0 }
 0x341   :  { %v5119_v15 = vpack.c.bf16 %v3387_v40, %v3385_v51  ;;  %v3168_v7 = vadd.f32 %v3167_v4, %v7095_v41  ;;  %v3388_v63 = vmax.f32 %v3166_v28, 0.0  ;;  %v3120_v51 = vadd.f32 %v6726_v52, %v7098_v54 }
 0x342   :  { %v3169_v62 = vpop.f32.mrf.mxu1  ;;  %v3374_v40 = vmax.f32 %v3130_v55, 0.0  ;;  %v5113_v4 = vpack.c.bf16 %v3375_v39, %v3373_v34  ;;  %v3116_v28 = vadd.f32 %v6721_v57, %v7100_v25  ;;  %v3369_v9 = vmax.f32 %v3118_v30, 0.0 }
 0x343   :  { %v3170_v56 = vadd.f32 %v3169_v62, %v7097_v19  ;;  %4372 = vmatprep.subr.bf16.mxu0 %v5119_v15  ;;  %v3389_v21 = vmax.f32 %v3168_v7, 0.0  ;;  %v7104_v15 = vld [vmem:[#allocation3_spill] sm:$0xff]  ;;  %v3367_v62 = vmax.f32 %v3112_v8, 0.0  ;;  %v3370_v61 = vmax.f32 %v3120_v51, 0.0  ;;  %v7105_v51 = vld [vmem:[#allocation8_spill] sm:$0xff] }
 0x344   :  { %v3171_v59 = vpop.f32.mrf.mxu1  ;;  %4373 = vmatpush2.bf16.msra.mxu0 %v5118_v58  ;;  %v3108_v41 = vadd.f32 %v6713_v49, %v7104_v15  ;;  %v3110_v58 = vadd.f32 %v6717_v46, %v7102_v53  ;;  %v5111_v49 = vpack.c.bf16 %v3371_v42, %v3369_v9  ;;  %v3106_v54 = vadd.f32 %v6707_v31, %v7104_v15  ;;  %v7107_v42 = vld [vmem:[#allocation6_spill] sm:$0xff]  ;;  %v7109_v9 = vld [vmem:[#allocation9_spill] sm:$0xff] }
 0x345   :  { %v3390_v16 = vmax.f32 %v3170_v56, 0.0  ;;  %v3172_v27 = vadd.f32 %v3171_v59, %v7097_v19  ;;  %4374 = vmatprep.subr.bf16.mxu0 %v5117_v33  ;;  %v5112_v33 = vpack.c.bf16 %v3374_v40, %v3372_v43  ;;  %v3368_v17 = vmax.f32 %v3116_v28, 0.0 }
 0x346   :  { %v3175_v5 = vpop.f32.mrf.mxu1  ;;  %v3365_v32 = vmax.f32 %v3108_v41, 0.0  ;;  %v3366_v46 = vmax.f32 %v3110_v58, 0.0 }
 0x347   :  { %v6753_v12 = vpack.c.bf16 %v3390_v16, %v3388_v63  ;;  %v3391_v29 = vmax.f32 %v3172_v27, 0.0  ;;  %v3176_v10 = vadd.f32 %v3175_v5, %v7101_v37  ;;  %v5110_v13 = vpack.c.bf16 %v3370_v61, %v3368_v17  ;;  %v5231_v5 = vld [vmem:[%s6950_s3] ss:$16 sps:$4 sm:$0xff]  }
 0x348   :  { %v3177_v48 = vpop.f32.mrf.mxu1  ;;  %4375 = vmatpush2.bf16.msra.mxu0 %v5116_v45  ;;  %v5109_v6 = vpack.c.bf16 %v3367_v62, %v3365_v32  ;;  %v3364_v63 = vmax.f32 %v3106_v54, 0.0  ;;  %v7111_v17 = vld [vmem:[#allocation39_spill] sm:$0xff] }
 0x349   :  { %v6759_v22 = vpack.c.bf16 %v3391_v29, %v3389_v21  ;;  %4376 = vmatprep.subr.bf16.mxu0 %v5115_v44  ;;  %v3178_v50 = vadd.f32 %v3177_v48, %v7101_v37  ;;  %v3392_v52 = vmax.f32 %v3176_v10, 0.0 }
 0x34a   :  { %v3179_v14 = vpop.f32.mrf.mxu1  ;;  %v5108_v27 = vpack.c.bf16 %v3366_v46, %v3364_v63  ;;  %v7112_v46 = vld [vmem:[#allocation16_spill] sm:$0xff] }
 0x34b   :  { %v3180_v1 = vadd.f32 %v3179_v14, %v7103_v26  ;;  %v3393_v19 = vmax.f32 %v3178_v50, 0.0 }
 0x34c   :  { %v3181_v18 = vpop.f32.mrf.mxu1  ;;  %4377 = vmatpush2.bf16.msra.mxu0 %v5114_v23  ;;  %v7106_v23 = vld [vmem:[#allocation7_spill] sm:$0xff] }
 0x34d   :  { %v3394_v0 = vmax.f32 %v3180_v1, 0.0  ;;  %v3182_v60 = vadd.f32 %v3181_v18, %v7103_v26  ;;  %4378 = vmatprep.subr.bf16.mxu0 %v5113_v4  ;;  %v7108_v1 = vld [vmem:[#allocation10_spill] sm:$0xff] }
 0x34e   :  { %v6775_v7 = vpop.f32.mrf.mxu1 }
 0x34f   :  { %v6777_v57 = vpack.c.bf16 %v3394_v0, %v3392_v52  ;;  %v3395_v56 = vmax.f32 %v3182_v60, 0.0 }
 0x350   :  { %v6781_v2 = vpop.f32.mrf.mxu1  ;;  %4379 = vmatpush2.bf16.msra.mxu0 %v5112_v33 }
 0x351   :  { %v6783_v3 = vpack.c.bf16 %v3395_v56, %v3393_v19  ;;  %4380 = vmatprep.subr.bf16.mxu0 %v5111_v49  ;;  %v7110_v49 = vld [vmem:[#allocation11_spill] sm:$0xff] }
 0x352   :  { %v6785_v59 = vpop.f32.mrf.mxu1 }
 0x354   :  { %v6787_v16 = vpop.f32.mrf.mxu1  ;;  %4381 = vmatpush2.bf16.msra.mxu0 %v5110_v13 }
 0x355   :  { %4382 = vmatprep.subr.bf16.mxu0 %v5109_v6 }
 0x356   :  { %v6789_v31 = vpop.f32.mrf.mxu1 }
 0x358   :  { %v6791_v55 = vpop.f32.mrf.mxu1  ;;  %4383 = vmatpush2.bf16.msra.mxu0 %v5108_v27 }
 0x359   :  { %4384 = vmatprep.subr.bf16.mxu0 %v6715_v36  ;;  %v5236_v36 = vld [vmem:[%s6950_s3 + $0x24] ss:$16 sps:$4 sm:$0xff]  }
 0x35a   :  { %v6794_v39 = vpop.f32.mrf.mxu1 }
 0x35c   :  { %v3201_v38 = vpop.f32.mrf.mxu1  ;;  %4385 = vmatpush2.bf16.msra.mxu0 %v6709_v35 }
 0x35d   :  { %4386 = vmatprep.subr.bf16.mxu0 %v6691_v47  ;;  %v5234_v47 = vld [vmem:[%s6950_s3 + $0x20] ss:$16 sps:$4 sm:$0xff]  }
 0x35e   :  { %v6798_v45 = vpop.f32.mrf.mxu1 }
 0x360   :  { %v3207_v44 = vpop.f32.mrf.mxu1  ;;  %4387 = vmatpush2.bf16.msra.mxu0 %v6685_v20 }
 0x362   :  { %v3209_v21 = vpop.f32.mrf.mxu1 }
 0x363   :  { %4389 = vmatmul.mubr.bf16.vlgmr.msra.gmra.mxu0 %v5231_v5 }
 0x364   :  { %v3211_v29 = vpop.f32.mrf.mxu1  ;;  %4398 = vmatprep.mubr.bf16.mxu0 %v5236_v36 }
 0x365   :  { %v3212_v13 = vadd.f32 %v3211_v29, %v7112_v46 }
 0x366   :  { %v3215_v35 = vpop.f32.mrf.mxu1 }
 0x368   :  { %v3217_v24 = vpop.f32.mrf.mxu1 }
 0x369   :  { %v3218_v19 = vadd.f32 %v3217_v24, %v7110_v49 }
 0x36a   :  { %v3219_v48 = vpop.f32.mrf.mxu1 }
 0x36b   :  { %4399 = vmatmul.mubr.bf16.gmra.mxu0 %v5234_v47  ;;  %v3220_v6 = vadd.f32 %v3219_v48, %v7109_v9  ;;  %v3409_v48 = vmax.f32 %v3218_v19, 0.0 }
 0x36c   :  { %v3221_v20 = vpop.f32.mrf.mxu1  ;;  %4441 = vmatprep.mubr.bf16.mxu0 %v5239_v11 }
 0x36d   :  { %v3222_v52 = vadd.f32 %v3221_v20, %v7109_v9  ;;  %v7113_v20 = vld [vmem:[#allocation40_spill] sm:$0xff]  ;;  %v7117_v9 = vld [vmem:[#allocation37_spill] sm:$0xff] }
 0x36e   :  { %v3225_v25 = vpop.f32.mrf.mxu1 }
 0x36f   :  { %v3226_v62 = vadd.f32 %v3225_v25, %v7108_v1  ;;  %v3411_v36 = vmax.f32 %v3222_v52, 0.0 }
 0x370   :  { %v3227_v30 = vpop.f32.mrf.mxu1 }
 0x371   :  { %v3228_v15 = vadd.f32 %v3227_v30, %v7108_v1  ;;  %v7114_v30 = vld [vmem:[#allocation18_spill] sm:$0xff] }
 0x372   :  { %v3229_v34 = vpop.f32.mrf.mxu1  ;;  %v3202_v24 = vadd.f32 %v3201_v38, %v7114_v30  ;;  %v5131_v38 = vpack.c.bf16 %v3411_v36, %v3409_v48 }
 0x373   :  { %v3230_v28 = vadd.f32 %v3229_v34, %v7105_v51  ;;  %v3413_v56 = vmax.f32 %v3228_v15, 0.0  ;;  %v7115_v34 = vld [vmem:[#allocation15_spill] sm:$0xff] }
 0x374   :  { %v3231_v37 = vpop.f32.mrf.mxu1  ;;  %v3206_v1 = vadd.f32 %v6798_v45, %v7115_v34 }
 0x375   :  { %v3232_v40 = vadd.f32 %v3231_v37, %v7105_v51  ;;  %v3414_v63 = vmax.f32 %v3230_v28, 0.0  ;;  %v3208_v37 = vadd.f32 %v3207_v44, %v7115_v34  ;;  %v7116_v28 = vld [vmem:[#allocation17_spill] sm:$0xff] }
 0x376   :  { %v3235_v10 = vpop.f32.mrf.mxu1 }
 0x377   :  { %v3236_v50 = vadd.f32 %v3235_v10, %v7106_v23  ;;  %v3415_v0 = vmax.f32 %v3232_v40, 0.0  ;;  %v3216_v10 = vadd.f32 %v3215_v35, %v7110_v49 }
 0x378   :  { %v3237_v53 = vpop.f32.mrf.mxu1 }
 0x379   :  { %v3238_v14 = vadd.f32 %v3237_v53, %v7106_v23  ;;  %v3416_v61 = vmax.f32 %v3236_v50, 0.0  ;;  %v5133_v47 = vpack.c.bf16 %v3415_v0, %v3413_v56  ;;  %v3412_v53 = vmax.f32 %v3226_v62, 0.0  ;;  %v7118_v0 = vld [vmem:[#allocation20_spill] sm:$0xff] }
 0x37a   :  { %v3239_v8 = vpop.f32.mrf.mxu1  ;;  %v3210_v23 = vadd.f32 %v3209_v21, %v7112_v46  ;;  %v3408_v15 = vmax.f32 %v3216_v10, 0.0  ;;  %v3404_v46 = vmax.f32 %v3206_v1, 0.0 }
 0x37b   :  { %v3240_v4 = vadd.f32 %v3239_v8, %v7107_v42  ;;  %v3417_v60 = vmax.f32 %v3238_v14, 0.0  ;;  %v3407_v14 = vmax.f32 %v3212_v13, 0.0 }
 0x37c   :  { %v3241_v26 = vpop.f32.mrf.mxu1  ;;  %v3406_v62 = vmax.f32 %v3210_v23, 0.0 }
 0x37d   :  { %v3242_v41 = vadd.f32 %v3241_v26, %v7107_v42  ;;  %v3418_v43 = vmax.f32 %v3240_v4, 0.0  ;;  %v3410_v42 = vmax.f32 %v3220_v6, 0.0  ;;  %v5132_v4 = vpack.c.bf16 %v3414_v63, %v3412_v53 }
 0x37e   :  { %v3245_v18 = vpop.f32.mrf.mxu1 }
 0x37f   :  { %v3419_v58 = vmax.f32 %v3242_v41, 0.0  ;;  %v3246_v32 = vadd.f32 %v3245_v18, %v7111_v17  ;;  %v5134_v27 = vpack.c.bf16 %v3418_v43, %v3416_v61  ;;  %v3198_v43 = vadd.f32 %v6791_v55, %v7116_v28  ;;  %v7119_v55 = vld [vmem:[#allocation38_spill] sm:$0xff] }
 0x380   :  { %v3247_v33 = vpop.f32.mrf.mxu1  ;;  %v3405_v18 = vmax.f32 %v3208_v37, 0.0  ;;  %v5130_v45 = vpack.c.bf16 %v3410_v42, %v3408_v15 }
 0x381   :  { %v5135_v54 = vpack.c.bf16 %v3419_v58, %v3417_v60  ;;  %v3248_v11 = vadd.f32 %v3247_v33, %v7111_v17  ;;  %v3420_v8 = vmax.f32 %v3246_v32, 0.0  ;;  %v3192_v60 = vadd.f32 %v6787_v16, %v7118_v0 }
 0x382   :  { %v3249_v5 = vpop.f32.mrf.mxu1  ;;  %v3200_v58 = vadd.f32 %v6794_v39, %v7114_v30  ;;  %v3403_v33 = vmax.f32 %v3202_v24, 0.0  ;;  %v5129_v49 = vpack.c.bf16 %v3407_v14, %v3405_v18  ;;  %v3196_v32 = vadd.f32 %v6789_v31, %v7116_v28 }
 0x383   :  { %v3250_v25 = vadd.f32 %v3249_v5, %v7113_v20  ;;  %4409 = vmatprep.subr.bf16.mxu0 %v5135_v54  ;;  %v3421_v26 = vmax.f32 %v3248_v11, 0.0  ;;  %v7120_v54 = vld [vmem:[#allocation19_spill] sm:$0xff]  ;;  %v3401_v13 = vmax.f32 %v3198_v43, 0.0  ;;  %v3399_v5 = vmax.f32 %v3192_v60, 0.0 }
 0x384   :  { %v3251_v29 = vpop.f32.mrf.mxu1  ;;  %4410 = vmatpush1.bf16.msra.mxu0 %v5134_v27  ;;  %v3188_v17 = vadd.f32 %v6781_v2, %v7120_v54  ;;  %v3190_v27 = vadd.f32 %v6785_v59, %v7118_v0  ;;  %v3402_v36 = vmax.f32 %v3200_v58, 0.0  ;;  %v3186_v30 = vadd.f32 %v6775_v7, %v7120_v54  ;;  %v7125_v54 = vld [vmem:[#allocation30_spill] sm:$0xff] }
 0x385   :  { %v3422_v51 = vmax.f32 %v3250_v25, 0.0  ;;  %v3252_v40 = vadd.f32 %v3251_v29, %v7113_v20  ;;  %4411 = vmatprep.subr.bf16.mxu0 %v5133_v47  ;;  %v5128_v47 = vpack.c.bf16 %v3406_v62, %v3404_v46  ;;  %v5127_v2 = vpack.c.bf16 %v3403_v33, %v3401_v13  ;;  %v7123_v62 = vld [vmem:[#allocation26_spill] sm:$0xff]  ;;  %v7124_v33 = vld [vmem:[#allocation27_spill] sm:$0xff] }
 0x386   :  { %v3255_v50 = vpop.f32.mrf.mxu1  ;;  %v3400_v24 = vmax.f32 %v3196_v32, 0.0  ;;  %v3397_v37 = vmax.f32 %v3188_v17, 0.0  ;;  %v3398_v59 = vmax.f32 %v3190_v27, 0.0 }
 0x387   :  { %v6833_v44 = vpack.c.bf16 %v3422_v51, %v3420_v8  ;;  %v3423_v35 = vmax.f32 %v3252_v40, 0.0  ;;  %v3256_v52 = vadd.f32 %v3255_v50, %v7117_v9  ;;  %v3396_v8 = vmax.f32 %v3186_v30, 0.0 }
 0x388   :  { %v3257_v41 = vpop.f32.mrf.mxu1  ;;  %4412 = vmatpush1.bf16.msra.mxu0 %v5132_v4  ;;  %v5126_v53 = vpack.c.bf16 %v3402_v36, %v3400_v24  ;;  %v5125_v48 = vpack.c.bf16 %v3399_v5, %v3397_v37 }
 0x389   :  { %v6839_v21 = vpack.c.bf16 %v3423_v35, %v3421_v26  ;;  %4413 = vmatprep.subr.bf16.mxu0 %v5131_v38  ;;  %v3258_v19 = vadd.f32 %v3257_v41, %v7117_v9  ;;  %v3424_v39 = vmax.f32 %v3256_v52, 0.0  ;;  %v5124_v40 = vpack.c.bf16 %v3398_v59, %v3396_v8 }
 0x38a   :  { %v3259_v61 = vpop.f32.mrf.mxu1 }
 0x38b   :  { %v3260_v56 = vadd.f32 %v3259_v61, %v7119_v55  ;;  %v3425_v20 = vmax.f32 %v3258_v19, 0.0 }
 0x38c   :  { %v3261_v16 = vpop.f32.mrf.mxu1  ;;  %4414 = vmatpush1.bf16.msra.mxu0 %v5130_v45 }
 0x38d   :  { %v3426_v6 = vmax.f32 %v3260_v56, 0.0  ;;  %v3262_v63 = vadd.f32 %v3261_v16, %v7119_v55  ;;  %4415 = vmatprep.subr.bf16.mxu0 %v5129_v49 }
 0x38e   :  { %v6855_v11 = vpop.f32.mrf.mxu1 }
 0x38f   :  { %v6857_v31 = vpack.c.bf16 %v3426_v6, %v3424_v39  ;;  %v3427_v25 = vmax.f32 %v3262_v63, 0.0  ;;  %v7126_v6 = vld [vmem:[#allocation29_spill] sm:$0xff] }
 0x390   :  { %v6861_v34 = vpop.f32.mrf.mxu1  ;;  %4416 = vmatpush1.bf16.msra.mxu0 %v5128_v47 }
 0x391   :  { %v6863_v10 = vpack.c.bf16 %v3427_v25, %v3425_v20  ;;  %4417 = vmatprep.subr.bf16.mxu0 %v5127_v2  ;;  %v7127_v20 = vld [vmem:[#allocation32_spill] sm:$0xff] }
 0x392   :  { %v6865_v29 = vpop.f32.mrf.mxu1 }
 0x394   :  { %v6867_v51 = vpop.f32.mrf.mxu1  ;;  %4418 = vmatpush1.bf16.msra.mxu0 %v5126_v53  ;;  %v7128_v53 = vld [vmem:[#allocation31_spill] sm:$0xff] }
 0x395   :  { %4419 = vmatprep.subr.bf16.mxu0 %v5125_v48 }
 0x396   :  { %v6869_v7 = vpop.f32.mrf.mxu1 }
 0x398   :  { %v6871_v23 = vpop.f32.mrf.mxu1  ;;  %4420 = vmatpush1.bf16.msra.mxu0 %v5124_v40 }
 0x399   :  { %4421 = vmatprep.subr.bf16.mxu0 %v6783_v3 }
 0x39a   :  { %v6874_v14 = vpop.f32.mrf.mxu1 }
 0x39c   :  { %v3281_v42 = vpop.f32.mrf.mxu1  ;;  %4422 = vmatpush1.bf16.msra.mxu0 %v6777_v57  ;;  %v7121_v57 = vld [vmem:[#allocation28_spill] sm:$0xff] }
 0x39d   :  { %4423 = vmatprep.subr.bf16.mxu0 %v6759_v22  ;;  %v7122_v22 = vld [vmem:[#allocation25_spill] sm:$0xff] }
 0x39e   :  { %v3285_v4 = vpop.f32.mrf.mxu1 }
 0x3a0   :  { %v3287_v50 = vpop.f32.mrf.mxu1  ;;  %4424 = vmatpush1.bf16.msra.mxu0 %v6753_v12 }
 0x3a1   :  { %v3288_v48 = vadd.f32 %v3287_v50, %v7128_v53 }
 0x3a2   :  { %v3289_v38 = vpop.f32.mrf.mxu1 }
 0x3a3   :  { %v3290_v40 = vadd.f32 %v3289_v38, %v7127_v20 }
 0x3a4   :  { %v3291_v26 = vpop.f32.mrf.mxu1 }
 0x3a5   :  { %v3292_v25 = vadd.f32 %v3291_v26, %v7127_v20  ;;  %v3286_v26 = vadd.f32 %v3285_v4, %v7128_v53 }
 0x3a6   :  { %v3295_v35 = vpop.f32.mrf.mxu1 }
 0x3a7   :  { %v3296_v37 = vadd.f32 %v3295_v35, %v7126_v6 }
 0x3a8   :  { %v3297_v1 = vpop.f32.mrf.mxu1 }
 0x3a9   :  { %v3298_v63 = vadd.f32 %v3297_v1, %v7126_v6  ;;  %v3979_v6 = vpop.permute.xlu0 %3978 }
 0x3aa   :  { %v3299_v15 = vpop.f32.mrf.mxu1 }
 0x3ab   :  { %v3300_v36 = vadd.f32 %v3299_v15, %v7125_v54  ;;  %v3441_v8 = vmax.f32 %v3298_v63, 0.0  ;;  %v7129_v15 = vld [vmem:[#allocation34_spill] sm:$0xff] }
 0x3ac   :  { %v3301_v41 = vpop.f32.mrf.mxu1  ;;  %v3280_v50 = vadd.f32 %v6874_v14, %v7129_v15 }
 0x3ad   :  { %v3302_v17 = vadd.f32 %v3301_v41, %v7125_v54  ;;  %v3442_v1 = vmax.f32 %v3300_v36, 0.0 }
 0x3ae   :  { %v3305_v28 = vpop.f32.mrf.mxu1 }
 0x3af   :  { %v3306_v13 = vadd.f32 %v3305_v28, %v7124_v33  ;;  %v3443_v30 = vmax.f32 %v3302_v17, 0.0  ;;  %v3282_v28 = vadd.f32 %v3281_v42, %v7129_v15 }
 0x3b0   :  { %v3307_v43 = vpop.f32.mrf.mxu1 }
 0x3b1   :  { %v3308_v49 = vadd.f32 %v3307_v43, %v7124_v33  ;;  %v3444_v59 = vmax.f32 %v3306_v13, 0.0  ;;  %v3439_v43 = vmax.f32 %v3292_v25, 0.0  ;;  %v3435_v42 = vmax.f32 %v3282_v28, 0.0 }
 0x3b2   :  { %v3309_v3 = vpop.f32.mrf.mxu1 }
 0x3b3   :  { %v3310_v55 = vadd.f32 %v3309_v3, %v7121_v57  ;;  %v3445_v27 = vmax.f32 %v3308_v49, 0.0  ;;  %v5147_v3 = vpack.c.bf16 %v3443_v30, %v3441_v8 }
 0x3b4   :  { %v3311_v18 = vpop.f32.mrf.mxu1 }
 0x3b5   :  { %v3312_v60 = vadd.f32 %v3311_v18, %v7121_v57  ;;  %v3446_v47 = vmax.f32 %v3310_v55, 0.0  ;;  %v3440_v18 = vmax.f32 %v3296_v37, 0.0  ;;  %v7131_v57 = vld [vmem:[#allocation36_spill] sm:$0xff] }
 0x3b6   :  { %v3315_v9 = vpop.f32.mrf.mxu1  ;;  %v3270_v14 = vadd.f32 %v6865_v29, %v7131_v57  ;;  %v5242_v29 = vld [vmem:[%s6950_s3 + $0x2c] ss:$16 sps:$4 sm:$0xff]  }
 0x3b7   :  { %v3316_v12 = vadd.f32 %v3315_v9, %v7122_v22  ;;  %v3447_v32 = vmax.f32 %v3312_v60, 0.0  ;;  %v5148_v41 = vpack.c.bf16 %v3446_v47, %v3444_v59  ;;  %v7130_v9 = vld [vmem:[#allocation33_spill] sm:$0xff]  ;;  %v5146_v38 = vpack.c.bf16 %v3442_v1, %v3440_v18  ;;  %v3984_v47 = vpop.permute.xlu1 %3983 }
 0x3b8   :  { %v3317_v52 = vpop.f32.mrf.mxu1  ;;  %v3278_v35 = vadd.f32 %v6871_v23, %v7130_v9  ;;  %v3272_v60 = vadd.f32 %v6867_v51, %v7131_v57  ;;  %v3276_v4 = vadd.f32 %v6869_v7, %v7130_v9  ;;  %v3430_v55 = vmax.f32 %v3270_v14, 0.0 }
 0x3b9   :  { %v3318_v58 = vadd.f32 %v3317_v52, %v7122_v22  ;;  %v3448_v39 = vmax.f32 %v3316_v12, 0.0  ;;  %v5149_v24 = vpack.c.bf16 %v3447_v32, %v3445_v27  ;;  %v3437_v52 = vmax.f32 %v3288_v48, 0.0  ;;  %v3989_v48 = vpop.permute.xlu0 %3988 }
 0x3ba   :  { %v3319_v0 = vpop.f32.mrf.mxu1  ;;  %v3434_v12 = vmax.f32 %v3280_v50, 0.0  ;;  %v3431_v33 = vmax.f32 %v3272_v60, 0.0 }
 0x3bb   :  { %v3320_v45 = vadd.f32 %v3319_v0, %v7123_v62  ;;  %v3449_v46 = vmax.f32 %v3318_v58, 0.0  ;;  %v3438_v0 = vmax.f32 %v3290_v40, 0.0  ;;  %v5145_v22 = vpack.c.bf16 %v3439_v43, %v3437_v52 }
 0x3bc   :  { %v3321_v61 = vpop.f32.mrf.mxu1  ;;  %v3436_v58 = vmax.f32 %v3286_v26, 0.0  ;;  %v3994_v26 = vpop.permute.xlu1 %3993 }
 0x3bd   :  { %v3322_v19 = vadd.f32 %v3321_v61, %v7123_v62  ;;  %v3450_v56 = vmax.f32 %v3320_v45, 0.0  ;;  %v7132_v62 = vld [vmem:[#allocation35_spill] sm:$0xff]  ;;  %v3433_v45 = vmax.f32 %v3278_v35, 0.0 }
 0x3be   :  { %v3268_v23 = vadd.f32 %v6861_v34, %v7132_v62  ;;  %v5144_v61 = vpack.c.bf16 %v3438_v0, %v3436_v58  ;;  %v3266_v51 = vadd.f32 %v6855_v11, %v7132_v62  ;;  %v5237_v11 = vld [vmem:[%s6950_s3 + $0x8] ss:$16 sps:$4 sm:$0xff]  }
 0x3bf   :  { %v3451_v16 = vmax.f32 %v3322_v19, 0.0  ;;  %v5150_v2 = vpack.c.bf16 %v3450_v56, %v3448_v39  ;;  %v5143_v49 = vpack.c.bf16 %v3435_v42, %v3433_v45  ;;  %v3432_v19 = vmax.f32 %v3276_v4, 0.0 }
 0x3c0   :  { %v3429_v7 = vmax.f32 %v3268_v23, 0.0  ;;  %v3428_v34 = vmax.f32 %v3266_v51, 0.0 }
 0x3c1   :  { %v5151_v5 = vpack.c.bf16 %v3451_v16, %v3449_v46  ;;  %v5142_v56 = vpack.c.bf16 %v3434_v12, %v3432_v19 }
 0x3c2   :  { %v5141_v54 = vpack.c.bf16 %v3431_v33, %v3429_v7  ;;  %v5140_v17 = vpack.c.bf16 %v3430_v55, %v3428_v34 }
 0x3c3   :  { %4425 = vmatprep.subr.bf16.mxu0 %v5151_v5 }
 0x3c4   :  { %4426 = vmatpush2.bf16.msra.mxu0 %v5150_v2 }
 0x3c5   :  { %4427 = vmatprep.subr.bf16.mxu0 %v5149_v24 }
 0x3c8   :  { %4428 = vmatpush2.bf16.msra.mxu0 %v5148_v41 }
 0x3c9   :  { %4429 = vmatprep.subr.bf16.mxu0 %v5147_v3 }
 0x3cc   :  { %4430 = vmatpush2.bf16.msra.mxu0 %v5146_v38 }
 0x3cd   :  { %4431 = vmatprep.subr.bf16.mxu0 %v5145_v22 }
 0x3d0   :  { %4432 = vmatpush2.bf16.msra.mxu0 %v5144_v61 }
 0x3d1   :  { %4433 = vmatprep.subr.bf16.mxu0 %v5143_v49 }
 0x3d4   :  { %4434 = vmatpush2.bf16.msra.mxu0 %v5142_v56 }
 0x3d5   :  { %4435 = vmatprep.subr.bf16.mxu0 %v5141_v54 }
 0x3d8   :  { %4436 = vmatpush2.bf16.msra.mxu0 %v5140_v17 }
 0x3d9   :  { %4437 = vmatprep.subr.bf16.mxu0 %v6863_v10  ;;  %v5240_v10 = vld [vmem:[%s6950_s3 + $0x28] ss:$16 sps:$4 sm:$0xff]  }
 0x3dc   :  { %4438 = vmatpush2.bf16.msra.mxu0 %v6857_v31 }
 0x3dd   :  { %4439 = vmatprep.subr.bf16.mxu0 %v6839_v21 }
 0x3e0   :  { %4440 = vmatpush2.bf16.msra.mxu0 %v6833_v44 }
 0x3e3   :  { %4442 = vmatmul.mubr.bf16.vlgmr.msra.gmra.mxu0 %v5237_v11 }
 0x3e4   :  { %4451 = vmatprep.mubr.bf16.mxu0 %v5242_v29 }
 0x3eb   :  { %4452 = vmatmul.mubr.bf16.gmra.mxu0 %v5240_v10 }
 0x423   :  { %v4390_v31 = vpop.f32.mrf.mxu0 }
 0x424   :  { %v4391_v63 = vadd.f32 %v4390_v31, %v3979_v6 }
 0x425   :  { %v4392_v32 = vpop.f32.mrf.mxu0 }
 0x426   :  { %v4393_v5 = vadd.f32 %v4392_v32, %v3979_v6 }
 0x427   :  { %v4394_v21 = vpop.f32.mrf.mxu0 }
 0x428   :  { %v4395_v20 = vadd.f32 %v4394_v21, %v3984_v47 }
 0x429   :  { %v4396_v46 = vpop.f32.mrf.mxu0 }
 0x42a   :  { %v4397_v37 = vadd.f32 %v4396_v46, %v3984_v47 }
 0x42b   :  { %v4400_v16 = vpop.f32.mrf.mxu0 }
 0x42c   :  { %v4401_v40 = vadd.f32 %v4400_v16, %v3989_v48 }
 0x42d   :  { %v4402_v13 = vpop.f32.mrf.mxu0 }
 0x42e   :  { %v4403_v28 = vadd.f32 %v4402_v13, %v3989_v48 }
 0x42f   :  { %v4404_v39 = vpop.f32.mrf.mxu0 }
 0x430   :  { %v4405_v9 = vadd.f32 %v4404_v39, %v3994_v26 }
 0x431   :  { %v4406_v44 = vpop.f32.mrf.mxu0 }
 0x432   :  { %v4407_v0 = vadd.f32 %v4406_v44, %v3994_v26 }
 0x4a3   :  { %v4443_v27 = vpop.f32.mrf.mxu0 }
 0x4a4   :  { %v4444_v36 = vadd.f32 %v4443_v27, %v4391_v63 }
 0x4a5   :  { %v4445_v2 = vpop.f32.mrf.mxu0 }
 0x4a6   :  { %v4462_v25 = vmax.f32 %v4444_v36, 0.0  ;;  %v4446_v30 = vadd.f32 %v4445_v2, %v4393_v5 }
 0x4a7   :  { %v4447_v24 = vpop.f32.mrf.mxu0 }
 0x4a8   :  { %4888 = vst [vmem:[%s6952_s5 + $0x40] sm:$0xff] %v4462_v25  ;;  %v4463_v59 = vmax.f32 %v4446_v30, 0.0  ;;  %v4448_v53 = vadd.f32 %v4447_v24, %v4395_v20 }
 0x4a9   :  { %v4449_v8 = vpop.f32.mrf.mxu0 }
 0x4aa   :  { %4889 = vst [vmem:[%s6952_s5 + $0x48] sm:$0xff] %v4463_v59  ;;  %v4464_v1 = vmax.f32 %v4448_v53, 0.0  ;;  %v4450_v41 = vadd.f32 %v4449_v8, %v4397_v37 }
 0x4ab   :  { %v4453_v15 = vpop.f32.mrf.mxu0 }
 0x4ac   :  { %4890 = vst [vmem:[%s6952_s5 + $0x50] sm:$0xff] %v4464_v1  ;;  %v4465_v43 = vmax.f32 %v4450_v41, 0.0  ;;  %v4454_v3 = vadd.f32 %v4453_v15, %v4401_v40 }
 0x4ad   :  { %v4455_v18 = vpop.f32.mrf.mxu0 }
 0x4ae   :  { %4891 = vst [vmem:[%s6952_s5 + $0x58] sm:$0xff] %v4465_v43  ;;  %v4466_v35 = vmax.f32 %v4454_v3, 0.0  ;;  %v4456_v52 = vadd.f32 %v4455_v18, %v4403_v28 }
 0x4af   :  { %v4457_v50 = vpop.f32.mrf.mxu0 }
 0x4b0   :  { %4892 = vst [vmem:[%s6952_s5 + $0x60] sm:$0xff] %v4466_v35  ;;  %v4467_v38 = vmax.f32 %v4456_v52, 0.0  ;;  %v4458_v57 = vadd.f32 %v4457_v50, %v4405_v9 }
 0x4b1   :  { %v4459_v60 = vpop.f32.mrf.mxu0 }
 0x4b2   :  { %4893 = vst [vmem:[%s6952_s5 + $0x68] sm:$0xff] %v4467_v38  ;;  %v4468_v42 = vmax.f32 %v4458_v57, 0.0  ;;  %v4460_v22 = vadd.f32 %v4459_v60, %v4407_v0 }
 0x4b4   :  { %4894 = vst [vmem:[%s6952_s5 + $0x70] sm:$0xff] %v4468_v42  ;;  %v4469_v4 = vmax.f32 %v4460_v22, 0.0 }
 0x4b6   :  { %4895 = vst [vmem:[%s6952_s5 + $0x78] sm:$0xff] %v4469_v4 }

// kernel: attention_forward.1
= control target key start
LH: loop header
LB: loop body
LE: loop exit
PB: predicated region body
PF: predicated region fallthrough
CT: control target
= control target key end

     0   :  { %v6954_v0 = vmov 0   ;;  %vm732_vm0 = vcmask 1043456   ;;  %vm635_vm1 = vcmask 64512   ;;  %s6945_s2 = inlined_call_operand.vmem [shape: f32[512,1], index: 2, kind: input, shape index: {}]   ;;  %s6946_s0 = inlined_call_operand.vmem [shape: bf16[2,8,256], index: 0, kind: input, shape index: {}]   ;;  %s6947_s1 = inlined_call_operand.vmem [shape: bf16[512,8], index: 1, kind: input, shape index: {}]   ;;  %s6948_s3 = inlined_call_operand.vmem [shape: bf16[32,512], index: 3, kind: input, shape index: {}]   ;;  %s6949_s4 = inlined_call_operand.vmem [shape: f32[32,1], index: 4, kind: input, shape index: {}]   ;;  %s6950_s5 = inlined_call_operand.vmem [shape: f32[2,32,256], index: 5, kind: output, shape index: {}]  }
   0x1   :  { %5148 = vset.pattern.permute.xlu1 %v6954_v0  ;;  %5147 = vset.pattern.permute.xlu0 %v6954_v0  ;;  %v5277_v1 = vld [vmem:[%s6945_s2 + $0x70] sm:$0xff]  ;;  %v5282_v2 = vld [vmem:[%s6945_s2 + $0x60] sm:$0xff]  ;;  %v5292_v6 = vld [vmem:[%s6945_s2 + $0x78] sm:$0xff] }
   0x2   :  { %v85_v3 = vld [vmem:[%s6946_s0] sm:$0xff]  ;;  %222 = vperm.xlu0 %5147, %v5277_v1   ;;  %212 = vperm.xlu1 %5148, %v5282_v2   ;;  %v5297_v7 = vld [vmem:[%s6945_s2 + $0x68] sm:$0xff]  ;;  %v5310_v10 = vld [vmem:[%s6945_s2 + $0x58] sm:$0xff] }
   0x3   :  { %v4508_v4 = vcombine.high %v85_v3, %v85_v3  ;;  %v4507_v5 = vcombine.low %v85_v3, %v85_v3  ;;  %771 = vmatprep.mubr.bf16.mxu0 %v6954_v0  ;;  %v5152_v9 = vld [vmem:[%s6947_s1] sm:$0xff]   ;;  %v5315_v11 = vld [vmem:[%s6945_s2 + $0x50] sm:$0xff]  ;;  %v5324_v12 = vld [vmem:[%s6945_s2 + $0x48] sm:$0xff] }
   0x4   :  { %v5329_v13 = vld [vmem:[%s6945_s2 + $0x40] sm:$0xff]  ;;  %v5153_v14 = vld [vmem:[%s6947_s1 + $0x8] sm:$0xff]   ;;  %v5339_v15 = vld [vmem:[%s6945_s2 + $0x38] sm:$0xff] }
   0x5   :  { %4509 = vmatprep.subr.msk.bf16.mxu0 %vm732_vm0, %v4508_v4  ;;  %v734_v8 = vsel %vm732_vm0, %v4507_v5, 0  ;;  %v5344_v16 = vld [vmem:[%s6945_s2 + $0x30] sm:$0xff]  ;;  %v5353_v17 = vld [vmem:[%s6945_s2 + $0x28] sm:$0xff]  ;;  %v5358_v18 = vld [vmem:[%s6945_s2 + $0x20] sm:$0xff] }
   0x6   :  { %754 = vmatpush1.bf16.msra.mxu0 %v734_v8  ;;  %227 = vperm.xlu0 %5147, %v5292_v6   ;;  %v5154_v19 = vld [vmem:[%s6947_s1 + $0x10] sm:$0xff]   ;;  %v5368_v20 = vld [vmem:[%s6945_s2 + $0x18] sm:$0xff]  ;;  %v5382_v22 = vld [vmem:[%s6945_s2 + $0x8] sm:$0xff] }
   0x7   :  { %217 = vperm.xlu1 %5148, %v5297_v7   ;;  %v5373_v21 = vld [vmem:[%s6945_s2 + $0x10] sm:$0xff]  ;;  %v5387_v23 = vld [vmem:[%s6945_s2] sm:$0xff]  ;;  %v5155_v24 = vld [vmem:[%s6947_s1 + $0x18] sm:$0xff]  }
   0x8   :  { %v5397_v25 = vld [vmem:[%s6945_s2 + $0xf8] sm:$0xff]  ;;  %v5402_v26 = vld [vmem:[%s6945_s2 + $0xf0] sm:$0xff]  ;;  %v5411_v27 = vld [vmem:[%s6945_s2 + $0xe8] sm:$0xff] }
   0x9   :  { %4510 = vmatmul.mubr.msk.bf16.vlgmr.msra.gmra.mxu0 %vm635_vm1, %v5152_v9  ;;  %v5416_v28 = vld [vmem:[%s6945_s2 + $0xe0] sm:$0xff]  ;;  %v5426_v30 = vld [vmem:[%s6945_s2 + $0xd8] sm:$0xff]  ;;  %v5431_v31 = vld [vmem:[%s6945_s2 + $0xd0] sm:$0xff] }
   0xa   :  { %781 = vmatprep.mubr.bf16.mxu0 %v6954_v0  ;;  %202 = vperm.xlu0 %5147, %v5315_v11   ;;  %v5156_v29 = vld [vmem:[%s6947_s1 + $0x20] sm:$0xff]   ;;  %v5437_v32 = vld [vmem:[%s6945_s2 + $0xc8] sm:$0xff]  ;;  %v5453_v35 = vld [vmem:[%s6945_s2 + $0xb8] sm:$0xff] }
   0xb   :  { %207 = vperm.xlu1 %5148, %v5310_v10   ;;  %v5445_v33 = vld [vmem:[%s6945_s2 + $0xc0] sm:$0xff]  ;;  %v5157_v34 = vld [vmem:[%s6947_s1 + $0x28] sm:$0xff]   ;;  %v5460_v36 = vld [vmem:[%s6945_s2 + $0xb0] sm:$0xff] }
   0xc   :  { %v5466_v37 = vld [vmem:[%s6945_s2 + $0xa8] sm:$0xff]  ;;  %v5471_v38 = vld [vmem:[%s6945_s2 + $0xa0] sm:$0xff]  ;;  %v5158_v39 = vld [vmem:[%s6947_s1 + $0x30] sm:$0xff]  }
   0xd   :  { %v5482_v40 = vld [vmem:[%s6945_s2 + $0x98] sm:$0xff]  ;;  %v5489_v41 = vld [vmem:[%s6945_s2 + $0x90] sm:$0xff]  ;;  %v5495_v42 = vld [vmem:[%s6945_s2 + $0x88] sm:$0xff] }
   0xe   :  { %192 = vperm.xlu0 %5147, %v5329_v13   ;;  %v5500_v43 = vld [vmem:[%s6945_s2 + $0x80] sm:$0xff]  ;;  %v5159_v44 = vld [vmem:[%s6947_s1 + $0x38] sm:$0xff]   ;;  %v5518_v46 = vld [vmem:[%s6945_s2 + $0x170] sm:$0xff] }
   0xf   :  { %197 = vperm.xlu1 %5148, %v5324_v12   ;;  %v5511_v45 = vld [vmem:[%s6945_s2 + $0x178] sm:$0xff]  ;;  %v5524_v47 = vld [vmem:[%s6945_s2 + $0x168] sm:$0xff]  ;;  %v5529_v48 = vld [vmem:[%s6945_s2 + $0x160] sm:$0xff] }
  0x10   :  { %v5160_v49 = vld [vmem:[%s6947_s1 + $0x40] sm:$0xff]   ;;  %v5540_v50 = vld [vmem:[%s6945_s2 + $0x158] sm:$0xff]  ;;  %v5547_v51 = vld [vmem:[%s6945_s2 + $0x150] sm:$0xff] }
  0x11   :  { %4511 = vmatmul.mubr.msk.bf16.gmra.mxu0 %vm635_vm1, %v5153_v14  ;;  %v5556_v52 = vld [vmem:[%s6945_s2 + $0x148] sm:$0xff]  ;;  %v5561_v53 = vld [vmem:[%s6945_s2 + $0x140] sm:$0xff]  ;;  %v5571_v55 = vld [vmem:[%s6945_s2 + $0x138] sm:$0xff] }
  0x12   :  { %791 = vmatprep.mubr.bf16.mxu0 %v6954_v0  ;;  %182 = vperm.xlu0 %5147, %v5344_v16   ;;  %v5161_v54 = vld [vmem:[%s6947_s1 + $0x48] sm:$0xff]   ;;  %v5576_v56 = vld [vmem:[%s6945_s2 + $0x130] sm:$0xff]  ;;  %v5590_v58 = vld [vmem:[%s6945_s2 + $0x120] sm:$0xff] }
  0x13   :  { %187 = vperm.xlu1 %5148, %v5339_v15   ;;  %v5585_v57 = vld [vmem:[%s6945_s2 + $0x128] sm:$0xff]  ;;  %v5162_v59 = vld [vmem:[%s6947_s1 + $0x50] sm:$0xff]   ;;  %v5600_v60 = vld [vmem:[%s6945_s2 + $0x118] sm:$0xff] }
  0x14   :  { %v5605_v61 = vld [vmem:[%s6945_s2 + $0x110] sm:$0xff]  ;;  %v5614_v62 = vld [vmem:[%s6945_s2 + $0x108] sm:$0xff]  ;;  %v5619_v63 = vld [vmem:[%s6945_s2 + $0x100] sm:$0xff] }
  0x15   :  { %v5163_v3 = vld [vmem:[%s6947_s1 + $0x58] sm:$0xff]   ;;  %v5634_v5 = vld [vmem:[%s6945_s2 + $0x1f0] sm:$0xff]  ;;  %v5643_v8 = vld [vmem:[%s6945_s2 + $0x1e8] sm:$0xff] }
  0x16   :  { %172 = vperm.xlu0 %5147, %v5358_v18   ;;  %v5629_v4 = vld [vmem:[%s6945_s2 + $0x1f8] sm:$0xff]  ;;  %v5648_v9 = vld [vmem:[%s6945_s2 + $0x1e0] sm:$0xff] }
  0x17   :  { %177 = vperm.xlu1 %5148, %v5353_v17   ;;  %v5164_v14 = vld [vmem:[%s6947_s1 + $0x60] sm:$0xff]  }
  0x19   :  { %4512 = vmatmul.mubr.msk.bf16.gmra.mxu0 %vm635_vm1, %v5154_v19  ;;  %v5658_v19 = vld [vmem:[%s6945_s2 + $0x1d8] sm:$0xff] }
  0x1a   :  { %801 = vmatprep.mubr.bf16.mxu0 %v6954_v0  ;;  %162 = vperm.xlu0 %5147, %v5373_v21  }
  0x1b   :  { %167 = vperm.xlu1 %5148, %v5368_v20  }
  0x1e   :  { %152 = vperm.xlu0 %5147, %v5387_v23  }
  0x1f   :  { %157 = vperm.xlu1 %5148, %v5382_v22  }
  0x21   :  { %4513 = vmatmul.mubr.msk.bf16.gmra.mxu0 %vm635_vm1, %v5155_v24  ;;  %v5663_v24 = vld [vmem:[%s6945_s2 + $0x1d0] sm:$0xff] }
  0x22   :  { %811 = vmatprep.mubr.bf16.mxu0 %v6954_v0  ;;  %302 = vperm.xlu0 %5147, %v5402_v26  }
  0x23   :  { %307 = vperm.xlu1 %5148, %v5397_v25  }
  0x26   :  { %292 = vperm.xlu0 %5147, %v5416_v28  }
  0x27   :  { %297 = vperm.xlu1 %5148, %v5411_v27  }
  0x29   :  { %4514 = vmatmul.mubr.msk.bf16.gmra.mxu0 %vm635_vm1, %v5156_v29  ;;  %v5672_v29 = vld [vmem:[%s6945_s2 + $0x1c8] sm:$0xff] }
  0x2a   :  { %821 = vmatprep.mubr.bf16.mxu0 %v6954_v0  ;;  %282 = vperm.xlu0 %5147, %v5431_v31  }
  0x2b   :  { %287 = vperm.xlu1 %5148, %v5426_v30  }
  0x2e   :  { %272 = vperm.xlu0 %5147, %v5445_v33  }
  0x2f   :  { %277 = vperm.xlu1 %5148, %v5437_v32  }
  0x31   :  { %4515 = vmatmul.mubr.msk.bf16.gmra.mxu0 %vm635_vm1, %v5157_v34  ;;  %v5677_v34 = vld [vmem:[%s6945_s2 + $0x1c0] sm:$0xff] }
  0x32   :  { %831 = vmatprep.mubr.bf16.mxu0 %v6954_v0  ;;  %262 = vperm.xlu0 %5147, %v5460_v36  }
  0x33   :  { %267 = vperm.xlu1 %5148, %v5453_v35  }
  0x36   :  { %252 = vperm.xlu0 %5147, %v5471_v38  }
  0x37   :  { %257 = vperm.xlu1 %5148, %v5466_v37  }
  0x39   :  { %4516 = vmatmul.mubr.msk.bf16.gmra.mxu0 %vm635_vm1, %v5158_v39  ;;  %v5165_v39 = vld [vmem:[%s6947_s1 + $0x68] sm:$0xff]  }
  0x3a   :  { %841 = vmatprep.mubr.bf16.mxu0 %v6954_v0  ;;  %242 = vperm.xlu0 %5147, %v5489_v41  }
  0x3b   :  { %247 = vperm.xlu1 %5148, %v5482_v40  }
  0x3e   :  { %232 = vperm.xlu0 %5147, %v5500_v43  }
  0x3f   :  { %237 = vperm.xlu1 %5148, %v5495_v42  }
  0x41   :  { %4517 = vmatmul.mubr.msk.bf16.gmra.mxu0 %vm635_vm1, %v5159_v44  ;;  %v5687_v44 = vld [vmem:[%s6945_s2 + $0x1b8] sm:$0xff] }
  0x42   :  { %851 = vmatprep.mubr.bf16.mxu0 %v6954_v0  ;;  %382 = vperm.xlu0 %5147, %v5518_v46  }
  0x43   :  { %387 = vperm.xlu1 %5148, %v5511_v45  }
  0x46   :  { %372 = vperm.xlu0 %5147, %v5529_v48  }
  0x47   :  { %377 = vperm.xlu1 %5148, %v5524_v47  }
  0x49   :  { %4518 = vmatmul.mubr.msk.bf16.gmra.mxu0 %vm635_vm1, %v5160_v49  ;;  %v5692_v49 = vld [vmem:[%s6945_s2 + $0x1b0] sm:$0xff] }
  0x4a   :  { %861 = vmatprep.mubr.bf16.mxu0 %v6954_v0  ;;  %362 = vperm.xlu0 %5147, %v5547_v51  }
  0x4b   :  { %367 = vperm.xlu1 %5148, %v5540_v50  }
  0x4e   :  { %352 = vperm.xlu0 %5147, %v5561_v53  }
  0x4f   :  { %357 = vperm.xlu1 %5148, %v5556_v52  }
  0x51   :  { %4519 = vmatmul.mubr.msk.bf16.gmra.mxu0 %vm635_vm1, %v5161_v54  ;;  %v5701_v54 = vld [vmem:[%s6945_s2 + $0x1a8] sm:$0xff] }
  0x52   :  { %871 = vmatprep.mubr.bf16.mxu0 %v6954_v0  ;;  %342 = vperm.xlu0 %5147, %v5576_v56   ;;  %7012 = vst [vmem:[#allocation3_spill] sm:$0xff] %v5701_v54 }
  0x53   :  { %347 = vperm.xlu1 %5148, %v5571_v55  }
  0x56   :  { %332 = vperm.xlu0 %5147, %v5590_v58  }
  0x57   :  { %337 = vperm.xlu1 %5148, %v5585_v57  }
  0x59   :  { %4520 = vmatmul.mubr.msk.bf16.gmra.mxu0 %vm635_vm1, %v5162_v59  ;;  %v5706_v59 = vld [vmem:[%s6945_s2 + $0x1a0] sm:$0xff] }
  0x5a   :  { %881 = vmatprep.mubr.bf16.mxu0 %v6954_v0  ;;  %322 = vperm.xlu0 %5147, %v5605_v61   ;;  %7013 = vst [vmem:[#allocation4_spill] sm:$0xff] %v5706_v59 }
  0x5b   :  { %327 = vperm.xlu1 %5148, %v5600_v60  }
  0x5e   :  { %312 = vperm.xlu0 %5147, %v5619_v63  }
  0x5f   :  { %317 = vperm.xlu1 %5148, %v5614_v62  }
  0x61   :  { %4521 = vmatmul.mubr.msk.bf16.gmra.mxu0 %vm635_vm1, %v5163_v3  ;;  %v5166_v3 = vld [vmem:[%s6947_s1 + $0x70] sm:$0xff]  }
  0x62   :  { %891 = vmatprep.mubr.bf16.mxu0 %v6954_v0  ;;  %462 = vperm.xlu0 %5147, %v5634_v5  }
  0x63   :  { %467 = vperm.xlu1 %5148, %v5629_v4  }
  0x66   :  { %452 = vperm.xlu0 %5147, %v5648_v9  }
  0x67   :  { %457 = vperm.xlu1 %5148, %v5643_v8  }
  0x69   :  { %4522 = vmatmul.mubr.msk.bf16.gmra.mxu0 %vm635_vm1, %v5164_v14  ;;  %v5716_v14 = vld [vmem:[%s6945_s2 + $0x198] sm:$0xff] }
  0x6a   :  { %901 = vmatprep.mubr.bf16.mxu0 %v6954_v0  ;;  %442 = vperm.xlu0 %5147, %v5663_v24  }
  0x6b   :  { %447 = vperm.xlu1 %5148, %v5658_v19  }
  0x6e   :  { %432 = vperm.xlu0 %5147, %v5677_v34  }
  0x6f   :  { %437 = vperm.xlu1 %5148, %v5672_v29  }
  0x71   :  { %4523 = vmatmul.mubr.msk.bf16.gmra.mxu0 %vm635_vm1, %v5165_v39  ;;  %v5721_v39 = vld [vmem:[%s6945_s2 + $0x190] sm:$0xff] }
  0x72   :  { %911 = vmatprep.mubr.bf16.mxu0 %v6954_v0  ;;  %422 = vperm.xlu0 %5147, %v5692_v49   ;;  %7014 = vst [vmem:[#allocation5_spill] sm:$0xff] %v5721_v39 }
  0x73   :  { %427 = vperm.xlu1 %5148, %v5687_v44  }
  0x76   :  { %412 = vperm.xlu0 %5147, %v5706_v59   ;;  %v5730_v59 = vld [vmem:[%s6945_s2 + $0x188] sm:$0xff] }
  0x77   :  { %417 = vperm.xlu1 %5148, %v5701_v54   ;;  %v5735_v54 = vld [vmem:[%s6945_s2 + $0x180] sm:$0xff] }
  0x79   :  { %4524 = vmatmul.mubr.msk.bf16.gmra.mxu0 %vm635_vm1, %v5166_v3  ;;  %v5167_v3 = vld [vmem:[%s6947_s1 + $0x78] sm:$0xff]  }
  0x7a   :  { %921 = vmatprep.mubr.bf16.mxu0 %v6954_v0  ;;  %402 = vperm.xlu0 %5147, %v5721_v39   ;;  %v5168_v39 = vld [vmem:[%s6947_s1 + $0x80] sm:$0xff]  }
  0x7b   :  { %407 = vperm.xlu1 %5148, %v5716_v14  }
  0x7e   :  { %392 = vperm.xlu0 %5147, %v5735_v54  }
  0x7f   :  { %397 = vperm.xlu1 %5148, %v5730_v59  }
  0x81   :  { %4525 = vmatmul.mubr.msk.bf16.gmra.mxu0 %vm635_vm1, %v5167_v3 }
  0x82   :  { %931 = vmatprep.mubr.bf16.mxu0 %v6954_v0  ;;  %2448 = vperm.xlu0 %5147, %v5277_v1   ;;  %v5169_v1 = vld [vmem:[%s6947_s1 + $0x88] sm:$0xff]  }
  0x83   :  { %2453 = vperm.xlu1 %5148, %v5292_v6   ;;  %v5171_v6 = vld [vmem:[%s6947_s1 + $0x98] sm:$0xff]  }
  0x86   :  { %2438 = vperm.xlu0 %5147, %v5282_v2   ;;  %v5170_v2 = vld [vmem:[%s6947_s1 + $0x90] sm:$0xff]  }
  0x87   :  { %2443 = vperm.xlu1 %5148, %v5297_v7   ;;  %v5778_v7 = vpop.permute.xlu0 %222 }
  0x89   :  { %4526 = vmatmul.mubr.msk.bf16.gmra.mxu0 %vm635_vm1, %v5168_v39 }
  0x8a   :  { %941 = vmatprep.mubr.bf16.mxu0 %v6954_v0  ;;  %2428 = vperm.xlu0 %5147, %v5315_v11   ;;  %v5172_v11 = vld [vmem:[%s6947_s1 + $0xa0] sm:$0xff]  }
  0x8b   :  { %2433 = vperm.xlu1 %5148, %v5310_v10   ;;  %v5781_v10 = vpop.permute.xlu1 %212 }
  0x8e   :  { %2418 = vperm.xlu0 %5147, %v5329_v13  }
  0x8f   :  { %2423 = vperm.xlu1 %5148, %v5324_v12   ;;  %v5789_v12 = vpop.permute.xlu0 %227  ;;  %v5793_v13 = vpop.permute.xlu1 %217 }
  0x91   :  { %4527 = vmatmul.mubr.msk.bf16.gmra.mxu0 %vm635_vm1, %v5169_v1 }
  0x92   :  { %951 = vmatprep.mubr.bf16.mxu0 %v6954_v0  ;;  %2408 = vperm.xlu0 %5147, %v5344_v16   ;;  %v5173_v16 = vld [vmem:[%s6947_s1 + $0xa8] sm:$0xff]  }
  0x93   :  { %2413 = vperm.xlu1 %5148, %v5339_v15   ;;  %v5799_v15 = vpop.permute.xlu0 %202 }
  0x96   :  { %2398 = vperm.xlu0 %5147, %v5358_v18  }
  0x97   :  { %2403 = vperm.xlu1 %5148, %v5353_v17   ;;  %v5804_v17 = vpop.permute.xlu1 %207  ;;  %v5810_v18 = vpop.permute.xlu0 %192 }
  0x99   :  { %4528 = vmatmul.mubr.msk.bf16.gmra.mxu0 %vm635_vm1, %v5170_v2 }
  0x9a   :  { %961 = vmatprep.mubr.bf16.mxu0 %v6954_v0  ;;  %2388 = vperm.xlu0 %5147, %v5373_v21   ;;  %v5174_v21 = vld [vmem:[%s6947_s1 + $0xb0] sm:$0xff]  }
  0x9b   :  { %2393 = vperm.xlu1 %5148, %v5368_v20   ;;  %v5814_v20 = vpop.permute.xlu1 %197 }
  0x9e   :  { %2378 = vperm.xlu0 %5147, %v5387_v23  }
  0x9f   :  { %2383 = vperm.xlu1 %5148, %v5382_v22   ;;  %v5821_v22 = vpop.permute.xlu0 %182  ;;  %v5824_v23 = vpop.permute.xlu1 %187 }
  0xa1   :  { %4529 = vmatmul.mubr.msk.bf16.gmra.mxu0 %vm635_vm1, %v5171_v6 }
  0xa2   :  { %971 = vmatprep.mubr.bf16.mxu0 %v6954_v0  ;;  %2528 = vperm.xlu0 %5147, %v5402_v26  }
  0xa3   :  { %2533 = vperm.xlu1 %5148, %v5397_v25   ;;  %v5175_v25 = vld [vmem:[%s6947_s1 + $0xb8] sm:$0xff]   ;;  %v5832_v26 = vpop.permute.xlu0 %172 }
  0xa6   :  { %2518 = vperm.xlu0 %5147, %v5416_v28  }
  0xa7   :  { %2523 = vperm.xlu1 %5148, %v5411_v27   ;;  %v5836_v27 = vpop.permute.xlu1 %177  ;;  %v163_v28 = vpop.permute.xlu0 %162 }
  0xa9   :  { %4530 = vmatmul.mubr.msk.bf16.gmra.mxu0 %vm635_vm1, %v5172_v11  ;;  %v5178_v11 = vld [vmem:[%s6947_s1 + $0xd0] sm:$0xff]  }
  0xaa   :  { %981 = vmatprep.mubr.bf16.mxu0 %v6954_v0  ;;  %2508 = vperm.xlu0 %5147, %v5431_v31  }
  0xab   :  { %2513 = vperm.xlu1 %5148, %v5426_v30   ;;  %v5176_v30 = vld [vmem:[%s6947_s1 + $0xc0] sm:$0xff]   ;;  %v168_v31 = vpop.permute.xlu1 %167 }
  0xae   :  { %2498 = vperm.xlu0 %5147, %v5445_v33   ;;  %v153_v33 = vpop.permute.xlu0 %152 }
  0xaf   :  { %2503 = vperm.xlu1 %5148, %v5437_v32  }
  0xb1   :  { %4531 = vmatmul.mubr.msk.bf16.gmra.mxu0 %vm635_vm1, %v5173_v16 }
  0xb2   :  { %991 = vmatprep.mubr.bf16.mxu0 %v6954_v0  ;;  %2488 = vperm.xlu0 %5147, %v5460_v36   ;;  %v158_v36 = vpop.permute.xlu1 %157  ;;  %v5862_v1 = vpop.permute.xlu0 %302 }
  0xb3   :  { %2493 = vperm.xlu1 %5148, %v5453_v35  }
  0xb6   :  { %2478 = vperm.xlu0 %5147, %v5471_v38  }
  0xb7   :  { %2483 = vperm.xlu1 %5148, %v5466_v37  }
  0xb9   :  { %4532 = vmatmul.mubr.msk.bf16.gmra.mxu0 %vm635_vm1, %v5174_v21 }
  0xba   :  { %1001 = vmatprep.mubr.bf16.mxu0 %v6954_v0  ;;  %2468 = vperm.xlu0 %5147, %v5489_v41  }
  0xbb   :  { %2473 = vperm.xlu1 %5148, %v5482_v40   ;;  %v5177_v40 = vld [vmem:[%s6947_s1 + $0xc8] sm:$0xff]  }
  0xbe   :  { %2458 = vperm.xlu0 %5147, %v5500_v43  }
  0xbf   :  { %2463 = vperm.xlu1 %5148, %v5495_v42  }
  0xc1   :  { %4533 = vmatmul.mubr.msk.bf16.gmra.mxu0 %vm635_vm1, %v5175_v25 }
  0xc2   :  { %1011 = vmatprep.mubr.bf16.mxu0 %v6954_v0  ;;  %2608 = vperm.xlu0 %5147, %v5518_v46  }
  0xc3   :  { %2613 = vperm.xlu1 %5148, %v5511_v45  }
  0xc6   :  { %2598 = vperm.xlu0 %5147, %v5529_v48  }
  0xc7   :  { %2603 = vperm.xlu1 %5148, %v5524_v47  }
  0xc9   :  { %v773_v32 = vpop.f32.mrf.mxu0  ;;  %4534 = vmatmul.mubr.msk.bf16.gmra.mxu0 %vm635_vm1, %v5176_v30 }
  0xca   :  { %1021 = vmatprep.mubr.bf16.mxu0 %v6954_v0  ;;  %2588 = vperm.xlu0 %5147, %v5547_v51   ;;  %v774_v37 = vadd.f32 %v773_v32, %v153_v33 }
  0xcb   :  { %2593 = vperm.xlu1 %5148, %v5540_v50   ;;  %v775_v35 = vpop.f32.mrf.mxu0  ;;  %v5857_v50 = vpop.permute.xlu1 %307 }
  0xcc   :  { %v776_v41 = vadd.f32 %v775_v35, %v153_v33  ;;  %v1092_v45 = vmax.f32 %v774_v37, 0.0  ;;  %v5875_v33 = vpop.permute.xlu0 %292 }
  0xcd   :  { %v777_v38 = vpop.f32.mrf.mxu0 }
  0xce   :  { %v778_v42 = vadd.f32 %v777_v38, %v158_v36  ;;  %2578 = vperm.xlu0 %5147, %v5561_v53   ;;  %v1093_v51 = vmax.f32 %v776_v41, 0.0 }
  0xcf   :  { %2583 = vperm.xlu1 %5148, %v5556_v52   ;;  %v779_v43 = vpop.f32.mrf.mxu0  ;;  %v5873_v30 = vpop.permute.xlu1 %297 }
  0xd0   :  { %v1094_v46 = vmax.f32 %v778_v42, 0.0  ;;  %v780_v47 = vadd.f32 %v779_v43, %v158_v36  ;;  %v5894_v43 = vpop.permute.xlu0 %282 }
  0xd1   :  { %v783_v48 = vpop.f32.mrf.mxu0  ;;  %4535 = vmatmul.mubr.msk.bf16.gmra.mxu0 %vm635_vm1, %v5177_v40  ;;  %v5179_v40 = vld [vmem:[%s6947_s1 + $0xd8] sm:$0xff]   ;;  %7016 = vst [vmem:[#allocation7_spill] sm:$0xff] %v5894_v43 }
  0xd2   :  { %v5859_v39 = vpack.c.bf16 %v1094_v46, %v1092_v45  ;;  %v1095_v3 = vmax.f32 %v780_v47, 0.0  ;;  %1031 = vmatprep.mubr.bf16.mxu0 %v6954_v0  ;;  %2568 = vperm.xlu0 %5147, %v5576_v56   ;;  %v784_v53 = vadd.f32 %v783_v48, %v163_v28 }
  0xd3   :  { %2573 = vperm.xlu1 %5148, %v5571_v55   ;;  %v785_v52 = vpop.f32.mrf.mxu0  ;;  %v5891_v41 = vpop.permute.xlu1 %287 }
  0xd4   :  { %v5866_v2 = vpack.c.bf16 %v1095_v3, %v1093_v51  ;;  %v786_v16 = vadd.f32 %v785_v52, %v163_v28  ;;  %v1096_v55 = vmax.f32 %v784_v53, 0.0  ;;  %7015 = vst [vmem:[#allocation6_spill] sm:$0xff] %v5891_v41  ;;  %v5180_v3 = vld [vmem:[%s6947_s1 + $0xe0] sm:$0xff]  }
  0xd5   :  { %v787_v6 = vpop.f32.mrf.mxu0 }
  0xd6   :  { %v788_v21 = vadd.f32 %v787_v6, %v168_v31  ;;  %2558 = vperm.xlu0 %5147, %v5590_v58   ;;  %v1097_v36 = vmax.f32 %v786_v16, 0.0 }
  0xd7   :  { %2563 = vperm.xlu1 %5148, %v5585_v57   ;;  %v789_v25 = vpop.f32.mrf.mxu0 }
  0xd8   :  { %v1098_v56 = vmax.f32 %v788_v21, 0.0  ;;  %v790_v32 = vadd.f32 %v789_v25, %v168_v31 }
  0xd9   :  { %v793_v35 = vpop.f32.mrf.mxu0  ;;  %4536 = vmatmul.mubr.msk.bf16.gmra.mxu0 %vm635_vm1, %v5178_v11  ;;  %v5181_v11 = vld [vmem:[%s6947_s1 + $0xe8] sm:$0xff]  }
  0xda   :  { %v5878_v37 = vpack.c.bf16 %v1098_v56, %v1096_v55  ;;  %v1099_v28 = vmax.f32 %v790_v32, 0.0  ;;  %1041 = vmatprep.mubr.bf16.mxu0 %v6954_v0  ;;  %2548 = vperm.xlu0 %5147, %v5605_v61   ;;  %v794_v58 = vadd.f32 %v793_v35, %v5832_v26  ;;  %v7023_v32 = vld [vmem:[#allocation3_spill] sm:$0xff]  ;;  %v7024_v35 = vld [vmem:[#allocation4_spill] sm:$0xff] }
  0xdb   :  { %2553 = vperm.xlu1 %5148, %v5600_v60   ;;  %v5883_v57 = vpop.f32.mrf.mxu0 }
  0xdc   :  { %v5886_v31 = vpack.c.bf16 %v1099_v28, %v1097_v36  ;;  %v1100_v61 = vmax.f32 %v794_v58, 0.0 }
  0xdd   :  { %v797_v38 = vpop.f32.mrf.mxu0 }
  0xde   :  { %v798_v42 = vadd.f32 %v797_v38, %v5836_v27  ;;  %2538 = vperm.xlu0 %5147, %v5619_v63   ;;  %v5912_v63 = vpop.permute.xlu0 %272 }
  0xdf   :  { %2543 = vperm.xlu1 %5148, %v5614_v62   ;;  %v5898_v60 = vpop.f32.mrf.mxu0  ;;  %v5910_v62 = vpop.permute.xlu1 %277  ;;  %7018 = vst [vmem:[#allocation9_spill] sm:$0xff] %v5912_v63 }
  0xe0   :  { %v1102_v45 = vmax.f32 %v798_v42, 0.0  ;;  %7017 = vst [vmem:[#allocation8_spill] sm:$0xff] %v5910_v62  ;;  %v5183_v42 = vld [vmem:[%s6947_s1 + $0xf8] sm:$0xff]  }
  0xe1   :  { %v5900_v46 = vpop.f32.mrf.mxu0  ;;  %4537 = vmatmul.mubr.msk.bf16.gmra.mxu0 %vm635_vm1, %v5179_v40 }
  0xe2   :  { %v5903_v47 = vpack.c.bf16 %v1102_v45, %v1100_v61  ;;  %1051 = vmatprep.mubr.bf16.mxu0 %v6954_v0  ;;  %2688 = vperm.xlu0 %5147, %v5634_v5   ;;  %v5929_v53 = vpop.permute.xlu0 %262  ;;  %v1740_v45 = vld [vmem:[%s6949_s4] sm:$0xff] }
  0xe3   :  { %2693 = vperm.xlu1 %5148, %v5629_v4   ;;  %v5908_v48 = vpop.f32.mrf.mxu0  ;;  %v5926_v5 = vpop.permute.xlu1 %267  ;;  %7020 = vst [vmem:[#allocation11_spill] sm:$0xff] %v5929_v53 }
  0xe4   :  { %7019 = vst [vmem:[#allocation10_spill] sm:$0xff] %v5926_v5 }
  0xe5   :  { %v5914_v51 = vpop.f32.mrf.mxu0 }
  0xe6   :  { %2678 = vperm.xlu0 %5147, %v5648_v9   ;;  %v5949_v16 = vpop.permute.xlu0 %252 }
  0xe7   :  { %2683 = vperm.xlu1 %5148, %v5643_v8   ;;  %v5921_v52 = vpop.f32.mrf.mxu0  ;;  %v5186_v8 = vld [vmem:[%s6948_s3 + $0x4] ss:$16 sps:$4 sm:$0xff]   ;;  %7022 = vst [vmem:[#allocation13_spill] sm:$0xff] %v5949_v16 }
  0xe8   :  { %2156 = vmatprep.mubr.bf16.mxu1 %v5186_v8 }
  0xe9   :  { %v5923_v4 = vpop.f32.mrf.mxu0  ;;  %4538 = vmatmul.mubr.msk.bf16.gmra.mxu0 %vm635_vm1, %v5180_v3 }
  0xea   :  { %1061 = vmatprep.mubr.bf16.mxu0 %v6954_v0  ;;  %2668 = vperm.xlu0 %5147, %v5663_v24   ;;  %v5947_v24 = vpop.permute.xlu1 %257  ;;  %v5962_v56 = vpop.permute.xlu0 %242 }
  0xeb   :  { %2673 = vperm.xlu1 %5148, %v5658_v19   ;;  %v5933_v6 = vpop.f32.mrf.mxu0  ;;  %7021 = vst [vmem:[#allocation12_spill] sm:$0xff] %v5947_v24 }
  0xed   :  { %v5938_v9 = vpop.f32.mrf.mxu0 }
  0xee   :  { %2658 = vperm.xlu0 %5147, %v5677_v34   ;;  %v5182_v34 = vld [vmem:[%s6947_s1 + $0xf0] sm:$0xff]   ;;  %v5960_v55 = vpop.permute.xlu1 %247  ;;  %v233_v38 = vpop.permute.xlu0 %232 }
  0xef   :  { %2663 = vperm.xlu1 %5148, %v5672_v29   ;;  %v5945_v19 = vpop.f32.mrf.mxu0 }
  0xf1   :  { %v5951_v21 = vpop.f32.mrf.mxu0  ;;  %4539 = vmatmul.mubr.msk.bf16.gmra.mxu0 %vm635_vm1, %v5181_v11 }
  0xf2   :  { %1071 = vmatprep.mubr.bf16.mxu0 %v6954_v0  ;;  %2648 = vperm.xlu0 %5147, %v5692_v49   ;;  %v5970_v58 = vpop.permute.xlu1 %237  ;;  %v5986_v11 = vpop.permute.xlu0 %382 }
  0xf3   :  { %2653 = vperm.xlu1 %5148, %v5687_v44   ;;  %v825_v25 = vpop.f32.mrf.mxu0  ;;  %v7025_v44 = vld [vmem:[#allocation5_spill] sm:$0xff]  ;;  %7027 = vst [vmem:[#allocation4_spill] sm:$0xff] %v5986_v11 }
  0xf5   :  { %v827_v29 = vpop.f32.mrf.mxu0 }
  0xf6   :  { %2638 = vperm.xlu0 %5147, %v7024_v35   ;;  %v5984_v8 = vpop.permute.xlu1 %387  ;;  %v6001_v24 = vpop.permute.xlu0 %372 }
  0xf7   :  { %2643 = vperm.xlu1 %5148, %v7023_v32   ;;  %v829_v36 = vpop.f32.mrf.mxu0  ;;  %7026 = vst [vmem:[#allocation3_spill] sm:$0xff] %v5984_v8  ;;  %7029 = vst [vmem:[#allocation14_spill] sm:$0xff] %v6001_v24  ;;  %v826_v24 = vadd.f32 %v825_v25, %v5799_v15 }
  0xf9   :  { %v833_v28 = vpop.f32.mrf.mxu0  ;;  %4540 = vmatmul.mubr.msk.bf16.gmra.mxu0 %vm635_vm1, %v5182_v34  ;;  %v1742_v34 = vld [vmem:[%s6949_s4 + $0x10] sm:$0xff] }
  0xfa   :  { %1081 = vmatprep.mubr.bf16.mxu0 %v6954_v0  ;;  %2628 = vperm.xlu0 %5147, %v7025_v44   ;;  %v5997_v8 = vpop.permute.xlu1 %377 }
  0xfb   :  { %2633 = vperm.xlu1 %5148, %v5716_v14   ;;  %v835_v49 = vpop.f32.mrf.mxu0  ;;  %v1741_v14 = vld [vmem:[%s6949_s4 + $0x8] sm:$0xff]  ;;  %7028 = vst [vmem:[#allocation5_spill] sm:$0xff] %v5997_v8 }
  0xfc   :  { %v836_v53 = vadd.f32 %v835_v49, %v5781_v10  ;;  %v828_v49 = vadd.f32 %v827_v29, %v5804_v17 }
  0xfd   :  { %v837_v40 = vpop.f32.mrf.mxu0 }
  0xfe   :  { %2618 = vperm.xlu0 %5147, %v5735_v54   ;;  %v1743_v54 = vld [vmem:[%s6949_s4 + $0x18] sm:$0xff]  ;;  %v1117_v41 = vmax.f32 %v836_v53, 0.0 }
  0xff   :  { %2623 = vperm.xlu1 %5148, %v5730_v59   ;;  %v839_v61 = vpop.f32.mrf.mxu0 }
 0x101   :  { %v843_v3 = vpop.f32.mrf.mxu0  ;;  %4541 = vmatmul.mubr.msk.bf16.gmra.mxu0 %vm635_vm1, %v5183_v42  ;;  %v840_v42 = vadd.f32 %v839_v61, %v5793_v13  ;;  %v830_v61 = vadd.f32 %v829_v36, %v5804_v17 }
 0x102   :  { %1746 = vperm.xlu0 %5147, %v1740_v45   ;;  %v844_v11 = vadd.f32 %v843_v3, %v5778_v7 }
 0x103   :  { %1751 = vperm.xlu1 %5148, %v1741_v14   ;;  %v845_v59 = vpop.f32.mrf.mxu0  ;;  %v1119_v43 = vmax.f32 %v840_v42, 0.0 }
 0x104   :  { %v846_v35 = vadd.f32 %v845_v59, %v5778_v7  ;;  %v838_v59 = vadd.f32 %v837_v40, %v5793_v13  ;;  %v834_v7 = vadd.f32 %v833_v28, %v5781_v10  ;;  %v1120_v3 = vmax.f32 %v844_v11, 0.0  ;;  %v6009_v40 = vpop.permute.xlu1 %367 }
 0x105   :  { %v847_v32 = vpop.f32.mrf.mxu0  ;;  %v820_v10 = vadd.f32 %v5945_v19, %v5814_v20  ;;  %v818_v19 = vadd.f32 %v5938_v9, %v5814_v20  ;;  %v1114_v11 = vmax.f32 %v828_v49, 0.0 }
 0x106   :  { %v848_v44 = vadd.f32 %v847_v32, %v5789_v12  ;;  %1756 = vperm.xlu0 %5147, %v1742_v34   ;;  %v1121_v5 = vmax.f32 %v846_v35, 0.0  ;;  %v1116_v53 = vmax.f32 %v834_v7, 0.0 }
 0x107   :  { %1761 = vperm.xlu1 %5148, %v1743_v54   ;;  %v849_v0 = vpop.f32.mrf.mxu0  ;;  %v1110_v7 = vmax.f32 %v818_v19, 0.0 }
 0x108   :  { %v850_v16 = vadd.f32 %v849_v0, %v5789_v12  ;;  %v1122_v32 = vmax.f32 %v848_v44, 0.0 }
 0x109   :  { %v853_v63 = vpop.f32.mrf.mxu0 }
 0x10a   :  { %v1123_v62 = vmax.f32 %v850_v16, 0.0  ;;  %3970 = vperm.xlu0 %5147, %v1740_v45   ;;  %v854_v0 = vadd.f32 %v853_v63, %v233_v38  ;;  %v1118_v16 = vmax.f32 %v838_v59, 0.0  ;;  %v6012_v45 = vpop.permute.xlu0 %362  ;;  %v1115_v63 = vmax.f32 %v830_v61, 0.0 }
 0x10b   :  { %3975 = vperm.xlu1 %5148, %v1741_v14   ;;  %v855_v8 = vpop.f32.mrf.mxu0  ;;  %v5032_v14 = vpack.c.bf16 %v1122_v32, %v1120_v3  ;;  %v808_v32 = vadd.f32 %v5914_v51, %v5824_v23 }
 0x10c   :  { %v5033_v12 = vpack.c.bf16 %v1123_v62, %v1121_v5  ;;  %v856_v35 = vadd.f32 %v855_v8, %v233_v38  ;;  %v824_v62 = vadd.f32 %v5951_v21, %v5799_v15  ;;  %v5031_v5 = vpack.c.bf16 %v1119_v43, %v1117_v41 }
 0x10d   :  { %v857_v13 = vpop.f32.mrf.mxu0  ;;  %v1124_v25 = vmax.f32 %v854_v0, 0.0  ;;  %v816_v38 = vadd.f32 %v5933_v6, %v5810_v18  ;;  %v1113_v8 = vmax.f32 %v826_v24, 0.0  ;;  %v5030_v21 = vpack.c.bf16 %v1118_v16, %v1116_v53 }
 0x10e   :  { %v858_v36 = vadd.f32 %v857_v13, %v5970_v58  ;;  %2124 = vmatprep.subr.bf16.mxu1 %v5033_v12  ;;  %3980 = vperm.xlu0 %5147, %v1742_v34   ;;  %v810_v43 = vadd.f32 %v5921_v52, %v5824_v23  ;;  %v814_v6 = vadd.f32 %v5923_v4, %v5810_v18  ;;  %v1112_v59 = vmax.f32 %v824_v62, 0.0 }
 0x10f   :  { %3985 = vperm.xlu1 %5148, %v1743_v54   ;;  %v859_v17 = vpop.f32.mrf.mxu0  ;;  %2125 = vmatpush1.bf16.msra.mxu1 %v5032_v14  ;;  %v1125_v54 = vmax.f32 %v856_v35, 0.0  ;;  %v5029_v42 = vpack.c.bf16 %v1115_v63, %v1113_v8  ;;  %v806_v24 = vadd.f32 %v5908_v48, %v5821_v22  ;;  %v1109_v61 = vmax.f32 %v816_v38, 0.0 }
 0x110   :  { %v1126_v29 = vmax.f32 %v858_v36, 0.0  ;;  %v860_v28 = vadd.f32 %v859_v17, %v5970_v58  ;;  %2126 = vmatprep.subr.bf16.mxu1 %v5031_v5  ;;  %v1111_v58 = vmax.f32 %v820_v10, 0.0  ;;  %v5028_v3 = vpack.c.bf16 %v1114_v11, %v1112_v59 }
 0x111   :  { %v863_v15 = vpop.f32.mrf.mxu0  ;;  %v800_v4 = vadd.f32 %v5898_v60, %v5836_v27  ;;  %v804_v12 = vadd.f32 %v5900_v46, %v5821_v22  ;;  %v1107_v49 = vmax.f32 %v810_v43, 0.0  ;;  %v1108_v16 = vmax.f32 %v814_v6, 0.0  ;;  %v6072_v43 = vpop.permute.xlu0 %352 }
 0x112   :  { %v6023_v34 = vpack.c.bf16 %v1126_v29, %v1124_v25  ;;  %v1127_v41 = vmax.f32 %v860_v28, 0.0  ;;  %v864_v9 = vadd.f32 %v863_v15, %v5962_v56  ;;  %v5027_v13 = vpack.c.bf16 %v1111_v58, %v1109_v61 }
 0x113   :  { %v865_v44 = vpop.f32.mrf.mxu0  ;;  %2127 = vmatpush1.bf16.msra.mxu1 %v5030_v21  ;;  %v1105_v36 = vmax.f32 %v806_v24, 0.0  ;;  %v1106_v14 = vmax.f32 %v808_v32, 0.0  ;;  %v5026_v27 = vpack.c.bf16 %v1110_v7, %v1108_v16  ;;  %v1103_v62 = vmax.f32 %v800_v4, 0.0 }
 0x114   :  { %v6029_v20 = vpack.c.bf16 %v1127_v41, %v1125_v54  ;;  %2128 = vmatprep.subr.bf16.mxu1 %v5029_v42  ;;  %v866_v0 = vadd.f32 %v865_v44, %v5962_v56  ;;  %v1128_v23 = vmax.f32 %v864_v9, 0.0  ;;  %v796_v56 = vadd.f32 %v5883_v57, %v5832_v26 }
 0x115   :  { %v867_v52 = vpop.f32.mrf.mxu0  ;;  %v5025_v17 = vpack.c.bf16 %v1107_v49, %v1105_v36  ;;  %v1104_v5 = vmax.f32 %v804_v12, 0.0  ;;  %v6076_v42 = vpop.permute.xlu0 %342 }
 0x116   :  { %v868_v18 = vadd.f32 %v867_v52, %v5960_v55  ;;  %v1129_v60 = vmax.f32 %v866_v0, 0.0  ;;  %v1101_v53 = vmax.f32 %v796_v56, 0.0 }
 0x117   :  { %v869_v48 = vpop.f32.mrf.mxu0  ;;  %2129 = vmatpush1.bf16.msra.mxu1 %v5028_v3  ;;  %v5024_v57 = vpack.c.bf16 %v1106_v14, %v1104_v5 }
 0x118   :  { %v1130_v51 = vmax.f32 %v868_v18, 0.0  ;;  %v870_v35 = vadd.f32 %v869_v48, %v5960_v55  ;;  %2130 = vmatprep.subr.bf16.mxu1 %v5027_v13  ;;  %v5023_v29 = vpack.c.bf16 %v1103_v62, %v1101_v53 }
 0x119   :  { %v6045_v10 = vpop.f32.mrf.mxu0  ;;  %v6080_v9 = vpop.permute.xlu0 %332 }
 0x11a   :  { %v6047_v22 = vpack.c.bf16 %v1130_v51, %v1128_v23  ;;  %v1131_v46 = vmax.f32 %v870_v35, 0.0  ;;  %v7030_v35 = vld [vmem:[#allocation6_spill] sm:$0xff] }
 0x11b   :  { %v6049_v63 = vpop.f32.mrf.mxu0  ;;  %2131 = vmatpush1.bf16.msra.mxu1 %v5026_v27 }
 0x11c   :  { %v6051_v55 = vpack.c.bf16 %v1131_v46, %v1129_v60  ;;  %2132 = vmatprep.subr.bf16.mxu1 %v5025_v17 }
 0x11d   :  { %v6053_v26 = vpop.f32.mrf.mxu0  ;;  %v6084_v52 = vpop.permute.xlu0 %322 }
 0x11f   :  { %v6055_v25 = vpop.f32.mrf.mxu0  ;;  %2133 = vmatpush1.bf16.msra.mxu1 %v5024_v57 }
 0x120   :  { %2134 = vmatprep.subr.bf16.mxu1 %v5023_v29 }
 0x121   :  { %v6057_v28 = vpop.f32.mrf.mxu0  ;;  %v313_v60 = vpop.permute.xlu0 %312 }
 0x123   :  { %v6059_v38 = vpop.f32.mrf.mxu0  ;;  %2135 = vmatpush1.bf16.msra.mxu1 %v5903_v47 }
 0x124   :  { %2136 = vmatprep.subr.bf16.mxu1 %v5886_v31  ;;  %v6074_v31 = vpop.permute.xlu1 %357 }
 0x125   :  { %v6063_v19 = vpop.f32.mrf.mxu0 }
 0x127   :  { %v889_v8 = vpop.f32.mrf.mxu0  ;;  %2137 = vmatpush1.bf16.msra.mxu1 %v5878_v37 }
 0x128   :  { %2138 = vmatprep.subr.bf16.mxu1 %v5866_v2  ;;  %v6078_v2 = vpop.permute.xlu1 %347 }
 0x129   :  { %v6067_v11 = vpop.f32.mrf.mxu0 }
 0x12b   :  { %v895_v15 = vpop.f32.mrf.mxu0  ;;  %2139 = vmatpush1.bf16.msra.mxu1 %v5859_v39 }
 0x12c   :  { %v6082_v24 = vpop.permute.xlu1 %337 }
 0x12d   :  { %v6070_v21 = vpop.f32.mrf.mxu0 }
 0x12f   :  { %v899_v54 = vpop.f32.mrf.mxu0 }
 0x130   :  { %v6089_v4 = vpop.permute.xlu1 %327 }
 0x131   :  { %v903_v41 = vpop.f32.mrf.mxu0 }
 0x133   :  { %v905_v47 = vpop.f32.mrf.mxu0 }
 0x135   :  { %v907_v58 = vpop.f32.mrf.mxu0 }
 0x137   :  { %v909_v44 = vpop.f32.mrf.mxu0 }
 0x138   :  { %v910_v56 = vadd.f32 %v909_v44, %v7030_v35 }
 0x139   :  { %v913_v37 = vpop.f32.mrf.mxu0 }
 0x13a   :  { %v914_v46 = vadd.f32 %v913_v37, %v5875_v33 }
 0x13b   :  { %v915_v6 = vpop.f32.mrf.mxu0 }
 0x13c   :  { %v916_v48 = vadd.f32 %v915_v6, %v5875_v33  ;;  %v7032_v6 = vld [vmem:[#allocation8_spill] sm:$0xff]  ;;  %v7033_v33 = vld [vmem:[#allocation10_spill] sm:$0xff] }
 0x13d   :  { %v917_v59 = vpop.f32.mrf.mxu0  ;;  %v890_v37 = vadd.f32 %v889_v8, %v7033_v33 }
 0x13e   :  { %v918_v16 = vadd.f32 %v917_v59, %v5873_v30  ;;  %v1149_v53 = vmax.f32 %v916_v48, 0.0  ;;  %v908_v59 = vadd.f32 %v907_v58, %v7030_v35 }
 0x13f   :  { %v919_v39 = vpop.f32.mrf.mxu0 }
 0x140   :  { %v920_v3 = vadd.f32 %v919_v39, %v5873_v30  ;;  %v900_v30 = vadd.f32 %v899_v54, %v7032_v6  ;;  %v1150_v39 = vmax.f32 %v918_v16, 0.0  ;;  %v1146_v35 = vmax.f32 %v908_v59, 0.0 }
 0x141   :  { %v923_v32 = vpop.f32.mrf.mxu0 }
 0x142   :  { %v924_v12 = vadd.f32 %v923_v32, %v5862_v1  ;;  %v1151_v36 = vmax.f32 %v920_v3, 0.0 }
 0x143   :  { %v925_v61 = vpop.f32.mrf.mxu0 }
 0x144   :  { %v926_v0 = vadd.f32 %v925_v61, %v5862_v1  ;;  %v1152_v62 = vmax.f32 %v924_v12, 0.0  ;;  %v7031_v1 = vld [vmem:[#allocation7_spill] sm:$0xff]  ;;  %v1147_v61 = vmax.f32 %v910_v56, 0.0 }
 0x145   :  { %v927_v7 = vpop.f32.mrf.mxu0  ;;  %v906_v5 = vadd.f32 %v905_v47, %v7031_v1  ;;  %v904_v12 = vadd.f32 %v903_v41, %v7031_v1 }
 0x146   :  { %v928_v18 = vadd.f32 %v927_v7, %v5857_v50  ;;  %v1153_v14 = vmax.f32 %v926_v0, 0.0  ;;  %v5047_v7 = vpack.c.bf16 %v1151_v36, %v1149_v53  ;;  %v7036_v53 = vld [vmem:[#allocation12_spill] sm:$0xff] }
 0x147   :  { %v929_v49 = vpop.f32.mrf.mxu0  ;;  %v1145_v54 = vmax.f32 %v906_v5, 0.0 }
 0x148   :  { %v930_v13 = vadd.f32 %v929_v49, %v5857_v50  ;;  %v1154_v23 = vmax.f32 %v928_v18, 0.0  ;;  %v318_v50 = vpop.permute.xlu1 %317  ;;  %v7034_v18 = vld [vmem:[#allocation9_spill] sm:$0xff]  ;;  %v1148_v49 = vmax.f32 %v914_v46, 0.0 }
 0x149   :  { %v933_v51 = vpop.f32.mrf.mxu0  ;;  %v896_v47 = vadd.f32 %v895_v15, %v7034_v18  ;;  %v5045_v8 = vpack.c.bf16 %v1147_v61, %v1145_v54 }
 0x14a   :  { %v1155_v27 = vmax.f32 %v930_v13, 0.0  ;;  %v934_v29 = vadd.f32 %v933_v51, %v313_v60  ;;  %v5048_v44 = vpack.c.bf16 %v1154_v23, %v1152_v62  ;;  %v898_v23 = vadd.f32 %v6070_v21, %v7032_v6  ;;  %v7035_v62 = vld [vmem:[#allocation11_spill] sm:$0xff] }
 0x14b   :  { %v935_v17 = vpop.f32.mrf.mxu0  ;;  %v1143_v51 = vmax.f32 %v900_v30, 0.0  ;;  %v5046_v56 = vpack.c.bf16 %v1150_v39, %v1148_v49  ;;  %v1141_v1 = vmax.f32 %v896_v47, 0.0  ;;  %v1139_v30 = vmax.f32 %v890_v37, 0.0 }
 0x14c   :  { %v5049_v57 = vpack.c.bf16 %v1155_v27, %v1153_v14  ;;  %v936_v3 = vadd.f32 %v935_v17, %v313_v60  ;;  %v1156_v13 = vmax.f32 %v934_v29, 0.0  ;;  %v894_v27 = vadd.f32 %v6067_v11, %v7034_v18 }
 0x14d   :  { %v937_v32 = vpop.f32.mrf.mxu0  ;;  %v1144_v60 = vmax.f32 %v904_v12, 0.0  ;;  %v886_v17 = vadd.f32 %v6059_v38, %v7035_v62  ;;  %v888_v29 = vadd.f32 %v6063_v19, %v7033_v33  ;;  %v5043_v59 = vpack.c.bf16 %v1143_v51, %v1141_v1 }
 0x14e   :  { %v938_v0 = vadd.f32 %v937_v32, %v318_v50  ;;  %2140 = vmatprep.subr.bf16.mxu1 %v5049_v57  ;;  %v1157_v14 = vmax.f32 %v936_v3, 0.0  ;;  %v880_v57 = vadd.f32 %v6055_v25, %v7036_v53  ;;  %v884_v61 = vadd.f32 %v6057_v28, %v7035_v62 }
 0x14f   :  { %v939_v48 = vpop.f32.mrf.mxu0  ;;  %2141 = vmatpush2.bf16.msra.mxu1 %v5048_v44  ;;  %v5044_v11 = vpack.c.bf16 %v1146_v35, %v1144_v60  ;;  %v7037_v44 = vld [vmem:[#allocation13_spill] sm:$0xff]  ;;  %v1137_v3 = vmax.f32 %v886_v17, 0.0  ;;  %v1138_v18 = vmax.f32 %v888_v29, 0.0 }
 0x150   :  { %v1158_v58 = vmax.f32 %v938_v0, 0.0  ;;  %v940_v16 = vadd.f32 %v939_v48, %v318_v50  ;;  %2142 = vmatprep.subr.bf16.mxu1 %v5047_v7  ;;  %v1142_v50 = vmax.f32 %v898_v23, 0.0  ;;  %v876_v32 = vadd.f32 %v6049_v63, %v7037_v44 }
 0x151   :  { %v943_v36 = vpop.f32.mrf.mxu0  ;;  %v1140_v7 = vmax.f32 %v894_v27, 0.0  ;;  %v1135_v37 = vmax.f32 %v880_v57, 0.0  ;;  %v5041_v63 = vpack.c.bf16 %v1139_v30, %v1137_v3  ;;  %v874_v54 = vadd.f32 %v6045_v10, %v7037_v44  ;;  %v5192_v30 = vld [vmem:[%s6948_s3 + $0xc] ss:$16 sps:$4 sm:$0xff]  }
 0x152   :  { %v6105_v15 = vpack.c.bf16 %v1158_v58, %v1156_v13  ;;  %v1159_v41 = vmax.f32 %v940_v16, 0.0  ;;  %v944_v5 = vadd.f32 %v943_v36, %v6084_v52  ;;  %v1136_v13 = vmax.f32 %v884_v61, 0.0 }
 0x153   :  { %v945_v46 = vpop.f32.mrf.mxu0  ;;  %2143 = vmatpush2.bf16.msra.mxu1 %v5046_v56  ;;  %v5042_v47 = vpack.c.bf16 %v1142_v50, %v1140_v7  ;;  %v1132_v56 = vmax.f32 %v874_v54, 0.0  ;;  %v7046_v54 = vld [vmem:[#allocation3_spill] sm:$0xff] }
 0x154   :  { %v6111_v21 = vpack.c.bf16 %v1159_v41, %v1157_v14  ;;  %2144 = vmatprep.subr.bf16.mxu1 %v5045_v8  ;;  %v946_v39 = vadd.f32 %v945_v46, %v6084_v52  ;;  %v1160_v19 = vmax.f32 %v944_v5, 0.0  ;;  %v878_v52 = vadd.f32 %v6053_v26, %v7036_v53  ;;  %v6141_v8 = vpop.permute.xlu0 %462  ;;  %v6145_v41 = vpop.permute.xlu1 %467  ;;  %v5184_v5 = vld [vmem:[%s6948_s3] ss:$16 sps:$4 sm:$0xff]  }
 0x155   :  { %v947_v6 = vpop.f32.mrf.mxu0  ;;  %v5040_v23 = vpack.c.bf16 %v1138_v18, %v1136_v13 }
 0x156   :  { %v948_v38 = vadd.f32 %v947_v6, %v6089_v4  ;;  %v1161_v49 = vmax.f32 %v946_v39, 0.0  ;;  %v1134_v26 = vmax.f32 %v878_v52, 0.0 }
 0x157   :  { %v949_v25 = vpop.f32.mrf.mxu0  ;;  %2145 = vmatpush2.bf16.msra.mxu1 %v5044_v11  ;;  %v5189_v11 = vld [vmem:[%s6948_s3 + $0x20] ss:$16 sps:$4 sm:$0xff]  }
 0x158   :  { %v1162_v0 = vmax.f32 %v948_v38, 0.0  ;;  %v950_v33 = vadd.f32 %v949_v25, %v6089_v4  ;;  %2146 = vmatprep.subr.bf16.mxu1 %v5043_v59  ;;  %v1133_v4 = vmax.f32 %v876_v32, 0.0  ;;  %v5038_v10 = vpack.c.bf16 %v1134_v26, %v1132_v56  ;;  %v6152_v46 = vpop.permute.xlu0 %452  ;;  %v6158_v17 = vpop.permute.xlu1 %457 }
 0x159   :  { %v6127_v12 = vpop.f32.mrf.mxu0 }
 0x15a   :  { %v6129_v28 = vpack.c.bf16 %v1162_v0, %v1160_v19  ;;  %v1163_v48 = vmax.f32 %v950_v33, 0.0  ;;  %v5039_v35 = vpack.c.bf16 %v1135_v37, %v1133_v4 }
 0x15b   :  { %v6133_v58 = vpop.f32.mrf.mxu0  ;;  %2147 = vmatpush2.bf16.msra.mxu1 %v5042_v47  ;;  %v7044_v47 = vld [vmem:[#allocation5_spill] sm:$0xff] }
 0x15c   :  { %v6135_v16 = vpack.c.bf16 %v1163_v48, %v1161_v49  ;;  %2148 = vmatprep.subr.bf16.mxu1 %v5041_v63  ;;  %v6171_v57 = vpop.permute.xlu0 %442  ;;  %v7045_v49 = vld [vmem:[#allocation4_spill] sm:$0xff] }
 0x15d   :  { %v6137_v51 = vpop.f32.mrf.mxu0 }
 0x15f   :  { %v6139_v36 = vpop.f32.mrf.mxu0  ;;  %2149 = vmatpush2.bf16.msra.mxu1 %v5040_v23 }
 0x160   :  { %2150 = vmatprep.subr.bf16.mxu1 %v5039_v35  ;;  %v6180_v6 = vpop.permute.xlu0 %432  ;;  %v7047_v35 = vld [vmem:[#allocation14_spill] sm:$0xff] }
 0x161   :  { %v6143_v14 = vpop.f32.mrf.mxu0  ;;  %7038 = vst [vmem:[#allocation6_spill] sm:$0xff] %v6180_v6 }
 0x163   :  { %v6147_v27 = vpop.f32.mrf.mxu0  ;;  %2151 = vmatpush2.bf16.msra.mxu1 %v5038_v10 }
 0x164   :  { %2152 = vmatprep.subr.bf16.mxu1 %v6051_v55  ;;  %v5187_v55 = vld [vmem:[%s6948_s3 + $0x24] ss:$16 sps:$4 sm:$0xff]   ;;  %v6187_v44 = vpop.permute.xlu0 %422 }
 0x165   :  { %v6150_v60 = vpop.f32.mrf.mxu0  ;;  %7040 = vst [vmem:[#allocation8_spill] sm:$0xff] %v6187_v44 }
 0x167   :  { %v6154_v62 = vpop.f32.mrf.mxu0  ;;  %2153 = vmatpush2.bf16.msra.mxu1 %v6047_v22 }
 0x168   :  { %2154 = vmatprep.subr.bf16.mxu1 %v6029_v20  ;;  %v6175_v20 = vpop.permute.xlu1 %447  ;;  %v6191_v3 = vpop.permute.xlu0 %412 }
 0x169   :  { %v6160_v1 = vpop.f32.mrf.mxu0  ;;  %7042 = vst [vmem:[#allocation9_spill] sm:$0xff] %v6191_v3 }
 0x16b   :  { %v6165_v53 = vpop.f32.mrf.mxu0  ;;  %2155 = vmatpush2.bf16.msra.mxu1 %v6023_v34 }
 0x16c   :  { %v6185_v59 = vpop.permute.xlu1 %437  ;;  %v6195_v37 = vpop.permute.xlu0 %402 }
 0x16d   :  { %v6173_v22 = vpop.f32.mrf.mxu0  ;;  %7039 = vst [vmem:[#allocation7_spill] sm:$0xff] %v6185_v59 }
 0x16e   :  { %2157 = vmatmul.mubr.bf16.vlgmr.msra.gmra.mxu1 %v5184_v5 }
 0x16f   :  { %v979_v29 = vpop.f32.mrf.mxu0  ;;  %2166 = vmatprep.mubr.bf16.mxu1 %v5187_v55 }
 0x170   :  { %v6189_v61 = vpop.permute.xlu1 %427 }
 0x171   :  { %v983_v50 = vpop.f32.mrf.mxu0  ;;  %7041 = vst [vmem:[#allocation10_spill] sm:$0xff] %v6189_v61 }
 0x173   :  { %v985_v34 = vpop.f32.mrf.mxu0 }
 0x174   :  { %v6193_v0 = vpop.permute.xlu1 %417 }
 0x175   :  { %v987_v39 = vpop.f32.mrf.mxu0  ;;  %7043 = vst [vmem:[#allocation11_spill] sm:$0xff] %v6193_v0  ;;  %v393_v0 = vpop.permute.xlu0 %392 }
 0x176   :  { %2167 = vmatmul.mubr.bf16.gmra.mxu1 %v5189_v11 }
 0x177   :  { %v989_v38 = vpop.f32.mrf.mxu0  ;;  %2209 = vmatprep.mubr.bf16.mxu1 %v5192_v30 }
 0x178   :  { %v6200_v4 = vpop.permute.xlu1 %407  ;;  %v990_v30 = vadd.f32 %v989_v38, %v6009_v40 }
 0x179   :  { %v993_v32 = vpop.f32.mrf.mxu0 }
 0x17b   :  { %v995_v7 = vpop.f32.mrf.mxu0 }
 0x17c   :  { %v996_v56 = vadd.f32 %v995_v7, %v7047_v35 }
 0x17d   :  { %v997_v25 = vpop.f32.mrf.mxu0 }
 0x17e   :  { %v998_v5 = vadd.f32 %v997_v25, %v7044_v47  ;;  %v980_v25 = vadd.f32 %v979_v29, %v6074_v31 }
 0x17f   :  { %v999_v19 = vpop.f32.mrf.mxu0 }
 0x180   :  { %v1000_v63 = vadd.f32 %v999_v19, %v7044_v47  ;;  %v988_v47 = vadd.f32 %v987_v39, %v6009_v40 }
 0x181   :  { %v1003_v33 = vpop.f32.mrf.mxu0 }
 0x182   :  { %v1004_v26 = vadd.f32 %v1003_v33, %v7045_v49  ;;  %v1183_v19 = vmax.f32 %v1000_v63, 0.0  ;;  %v986_v33 = vadd.f32 %v985_v34, %v6012_v45  ;;  %v976_v34 = vadd.f32 %v6165_v53, %v6072_v43 }
 0x183   :  { %v1005_v52 = vpop.f32.mrf.mxu0 }
 0x184   :  { %v1006_v48 = vadd.f32 %v1005_v52, %v7045_v49  ;;  %v1184_v44 = vmax.f32 %v1004_v26, 0.0  ;;  %v1181_v49 = vmax.f32 %v996_v56, 0.0  ;;  %v1177_v40 = vmax.f32 %v986_v33, 0.0 }
 0x185   :  { %v1007_v18 = vpop.f32.mrf.mxu0  ;;  %v1178_v56 = vmax.f32 %v988_v47, 0.0  ;;  %v964_v47 = vadd.f32 %v6143_v14, %v6076_v42 }
 0x186   :  { %v1008_v13 = vadd.f32 %v1007_v18, %v7046_v54  ;;  %v1185_v3 = vmax.f32 %v1006_v48, 0.0  ;;  %v994_v18 = vadd.f32 %v993_v32, %v7047_v35  ;;  %v1179_v48 = vmax.f32 %v990_v30, 0.0 }
 0x187   :  { %v1009_v23 = vpop.f32.mrf.mxu0  ;;  %v970_v32 = vadd.f32 %v6154_v62, %v6078_v2 }
 0x188   :  { %v1010_v10 = vadd.f32 %v1009_v23, %v7046_v54  ;;  %v1186_v55 = vmax.f32 %v1008_v13, 0.0  ;;  %v398_v54 = vpop.permute.xlu1 %397  ;;  %v1182_v13 = vmax.f32 %v998_v5, 0.0  ;;  %v5063_v23 = vpack.c.bf16 %v1183_v19, %v1181_v49 }
 0x189   :  { %v1013_v11 = vpop.f32.mrf.mxu0  ;;  %v1180_v26 = vmax.f32 %v994_v18, 0.0  ;;  %v1173_v19 = vmax.f32 %v976_v34, 0.0  ;;  %v968_v18 = vadd.f32 %v6150_v60, %v6078_v2  ;;  %v1171_v49 = vmax.f32 %v970_v32, 0.0 }
 0x18a   :  { %v1187_v52 = vmax.f32 %v1010_v10, 0.0  ;;  %v1014_v6 = vadd.f32 %v1013_v11, %v393_v0  ;;  %v5064_v38 = vpack.c.bf16 %v1186_v55, %v1184_v44  ;;  %v5061_v55 = vpack.c.bf16 %v1179_v48, %v1177_v40 }
 0x18b   :  { %v1015_v61 = vpop.f32.mrf.mxu0  ;;  %v5062_v5 = vpack.c.bf16 %v1182_v13, %v1180_v26  ;;  %v1168_v26 = vmax.f32 %v964_v47, 0.0 }
 0x18c   :  { %v5065_v7 = vpack.c.bf16 %v1187_v52, %v1185_v3  ;;  %v1016_v10 = vadd.f32 %v1015_v61, %v393_v0  ;;  %v984_v3 = vadd.f32 %v983_v50, %v6012_v45  ;;  %v1188_v39 = vmax.f32 %v1014_v6, 0.0 }
 0x18d   :  { %v1017_v63 = vpop.f32.mrf.mxu0  ;;  %v978_v61 = vadd.f32 %v6173_v22, %v6074_v31  ;;  %v1175_v0 = vmax.f32 %v980_v25, 0.0  ;;  %v974_v50 = vadd.f32 %v6160_v1, %v6072_v43  ;;  %v960_v52 = vadd.f32 %v6139_v36, %v6082_v24 }
 0x18e   :  { %v1018_v59 = vadd.f32 %v1017_v63, %v398_v54  ;;  %2177 = vmatprep.subr.bf16.mxu1 %v5065_v7  ;;  %v1189_v11 = vmax.f32 %v1016_v10, 0.0  ;;  %v1176_v30 = vmax.f32 %v984_v3, 0.0  ;;  %v956_v25 = vadd.f32 %v6133_v58, %v6080_v9 }
 0x18f   :  { %v1019_v29 = vpop.f32.mrf.mxu0  ;;  %2178 = vmatpush1.bf16.msra.mxu1 %v5064_v38  ;;  %v1174_v33 = vmax.f32 %v978_v61, 0.0  ;;  %v5059_v7 = vpack.c.bf16 %v1175_v0, %v1173_v19  ;;  %v1172_v13 = vmax.f32 %v974_v50, 0.0  ;;  %v1167_v48 = vmax.f32 %v960_v52, 0.0 }
 0x190   :  { %v1190_v44 = vmax.f32 %v1018_v59, 0.0  ;;  %v1020_v35 = vadd.f32 %v1019_v29, %v398_v54  ;;  %2179 = vmatprep.subr.bf16.mxu1 %v5063_v23  ;;  %v966_v59 = vadd.f32 %v6147_v27, %v6076_v42  ;;  %v5060_v43 = vpack.c.bf16 %v1178_v56, %v1176_v30 }
 0x191   :  { %v1023_v62 = vpop.f32.mrf.mxu0  ;;  %v1170_v23 = vmax.f32 %v968_v18, 0.0  ;;  %v5058_v10 = vpack.c.bf16 %v1174_v33, %v1172_v13  ;;  %v954_v3 = vadd.f32 %v6127_v12, %v6080_v9 }
 0x192   :  { %v6218_v53 = vpack.c.bf16 %v1190_v44, %v1188_v39  ;;  %v1191_v45 = vmax.f32 %v1020_v35, 0.0  ;;  %v1024_v22 = vadd.f32 %v1023_v62, %v6195_v37  ;;  %v1169_v38 = vmax.f32 %v966_v59, 0.0 }
 0x193   :  { %v1025_v6 = vpop.f32.mrf.mxu0  ;;  %2180 = vmatpush1.bf16.msra.mxu1 %v5062_v5  ;;  %v1164_v35 = vmax.f32 %v954_v3, 0.0 }
 0x194   :  { %v6224_v31 = vpack.c.bf16 %v1191_v45, %v1189_v11  ;;  %2181 = vmatprep.subr.bf16.mxu1 %v5061_v55  ;;  %v1026_v54 = vadd.f32 %v1025_v6, %v6195_v37  ;;  %v1192_v2 = vmax.f32 %v1024_v22, 0.0  ;;  %v958_v37 = vadd.f32 %v6137_v51, %v6082_v24 }
 0x195   :  { %v1027_v1 = vpop.f32.mrf.mxu0  ;;  %v5057_v58 = vpack.c.bf16 %v1171_v49, %v1169_v38  ;;  %v5056_v51 = vpack.c.bf16 %v1170_v23, %v1168_v26  ;;  %v7049_v26 = vld [vmem:[#allocation6_spill] sm:$0xff] }
 0x196   :  { %v1028_v27 = vadd.f32 %v1027_v1, %v6200_v4  ;;  %v1193_v34 = vmax.f32 %v1026_v54, 0.0  ;;  %v1166_v24 = vmax.f32 %v958_v37, 0.0 }
 0x197   :  { %v1029_v36 = vpop.f32.mrf.mxu0  ;;  %2182 = vmatpush1.bf16.msra.mxu1 %v5060_v43 }
 0x198   :  { %v1194_v60 = vmax.f32 %v1028_v27, 0.0  ;;  %v1030_v63 = vadd.f32 %v1029_v36, %v6200_v4  ;;  %2183 = vmatprep.subr.bf16.mxu1 %v5059_v7  ;;  %v1165_v4 = vmax.f32 %v956_v25, 0.0  ;;  %v5054_v0 = vpack.c.bf16 %v1166_v24, %v1164_v35 }
 0x199   :  { %v6240_v32 = vpop.f32.mrf.mxu0 }
 0x19a   :  { %v6242_v42 = vpack.c.bf16 %v1194_v60, %v1192_v2  ;;  %v1195_v14 = vmax.f32 %v1030_v63, 0.0  ;;  %v5055_v44 = vpack.c.bf16 %v1167_v48, %v1165_v4 }
 0x19b   :  { %v6246_v29 = vpop.f32.mrf.mxu0  ;;  %2184 = vmatpush1.bf16.msra.mxu1 %v5058_v10 }
 0x19c   :  { %v6248_v40 = vpack.c.bf16 %v1195_v14, %v1193_v34  ;;  %2185 = vmatprep.subr.bf16.mxu1 %v5057_v58 }
 0x19d   :  { %v6250_v39 = vpop.f32.mrf.mxu0 }
 0x19f   :  { %v6252_v61 = vpop.f32.mrf.mxu0  ;;  %2186 = vmatpush1.bf16.msra.mxu1 %v5056_v51 }
 0x1a0   :  { %2187 = vmatprep.subr.bf16.mxu1 %v5055_v44 }
 0x1a1   :  { %v6254_v9 = vpop.f32.mrf.mxu0 }
 0x1a3   :  { %v6256_v12 = vpop.f32.mrf.mxu0  ;;  %2188 = vmatpush1.bf16.msra.mxu1 %v5054_v0 }
 0x1a4   :  { %2189 = vmatprep.subr.bf16.mxu1 %v6135_v16 }
 0x1a5   :  { %v6259_v56 = vpop.f32.mrf.mxu0 }
 0x1a7   :  { %v1049_v5 = vpop.f32.mrf.mxu0  ;;  %2190 = vmatpush1.bf16.msra.mxu1 %v6129_v28 }
 0x1a8   :  { %2191 = vmatprep.subr.bf16.mxu1 %v6111_v21 }
 0x1a9   :  { %v1053_v62 = vpop.f32.mrf.mxu0 }
 0x1ab   :  { %v1055_v55 = vpop.f32.mrf.mxu0  ;;  %2192 = vmatpush1.bf16.msra.mxu1 %v6105_v15 }
 0x1ad   :  { %v1057_v11 = vpop.f32.mrf.mxu0 }
 0x1af   :  { %v1059_v45 = vpop.f32.mrf.mxu0 }
 0x1b1   :  { %v1063_v50 = vpop.f32.mrf.mxu0 }
 0x1b2   :  { %v1064_v14 = vadd.f32 %v1063_v50, %v6171_v57 }
 0x1b3   :  { %v1065_v30 = vpop.f32.mrf.mxu0 }
 0x1b4   :  { %v1066_v63 = vadd.f32 %v1065_v30, %v6171_v57 }
 0x1b5   :  { %v1067_v6 = vpop.f32.mrf.mxu0 }
 0x1b6   :  { %v1068_v48 = vadd.f32 %v1067_v6, %v6175_v20  ;;  %v1209_v4 = vmax.f32 %v1066_v63, 0.0  ;;  %v1208_v6 = vmax.f32 %v1064_v14, 0.0 }
 0x1b7   :  { %v1069_v59 = vpop.f32.mrf.mxu0 }
 0x1b8   :  { %v1070_v47 = vadd.f32 %v1069_v59, %v6175_v20  ;;  %v1210_v51 = vmax.f32 %v1068_v48, 0.0  ;;  %v7050_v20 = vld [vmem:[#allocation10_spill] sm:$0xff]  ;;  %v7051_v59 = vld [vmem:[#allocation8_spill] sm:$0xff] }
 0x1b9   :  { %v1073_v19 = vpop.f32.mrf.mxu0  ;;  %v1050_v35 = vadd.f32 %v1049_v5, %v7050_v20  ;;  %v1046_v57 = vadd.f32 %v6256_v12, %v7051_v59 }
 0x1ba   :  { %v1074_v2 = vadd.f32 %v1073_v19, %v6152_v46 }
 0x1bb   :  { %v1075_v22 = vpop.f32.mrf.mxu0  ;;  %v1203_v5 = vmax.f32 %v1050_v35, 0.0 }
 0x1bc   :  { %v1076_v7 = vadd.f32 %v1075_v22, %v6152_v46  ;;  %v1212_v3 = vmax.f32 %v1074_v2, 0.0  ;;  %v1056_v46 = vadd.f32 %v1055_v55, %v7049_v26  ;;  %v1048_v55 = vadd.f32 %v6259_v56, %v7050_v20  ;;  %v7052_v22 = vld [vmem:[#allocation11_spill] sm:$0xff] }
 0x1bd   :  { %v1077_v16 = vpop.f32.mrf.mxu0  ;;  %v1038_v56 = vadd.f32 %v6250_v39, %v7052_v22  ;;  %v4678_v39 = vld [vmem:[%s6946_s0 + $0x8] sm:$0xff] }
 0x1be   :  { %v1078_v27 = vadd.f32 %v1077_v16, %v6158_v17  ;;  %v1213_v37 = vmax.f32 %v1076_v7, 0.0  ;;  %v1205_v50 = vmax.f32 %v1056_v46, 0.0  ;;  %v1040_v16 = vadd.f32 %v6252_v61, %v7052_v22 }
 0x1bf   :  { %v1079_v52 = vpop.f32.mrf.mxu0  ;;  %v1198_v7 = vmax.f32 %v1038_v56, 0.0 }
 0x1c0   :  { %v1080_v28 = vadd.f32 %v1079_v52, %v6158_v17  ;;  %v1214_v23 = vmax.f32 %v1078_v27, 0.0  ;;  %v1211_v17 = vmax.f32 %v1070_v47, 0.0  ;;  %v4711_v47 = vcombine.low %v4678_v39, %v4678_v39 }
 0x1c1   :  { %v1083_v18 = vpop.f32.mrf.mxu0 }
 0x1c2   :  { %v1084_v15 = vadd.f32 %v1083_v18, %v6141_v8  ;;  %v1215_v13 = vmax.f32 %v1080_v28, 0.0  ;;  %v5078_v44 = vpack.c.bf16 %v1214_v23, %v1212_v3  ;;  %v5077_v30 = vpack.c.bf16 %v1211_v17, %v1209_v4 }
 0x1c3   :  { %v1085_v33 = vpop.f32.mrf.mxu0  ;;  %v1202_v28 = vmax.f32 %v1048_v55, 0.0  ;;  %v5204_v55 = vld [vmem:[%s6947_s1 + $0x38] sm:$0xff]  }
 0x1c4   :  { %v1086_v21 = vadd.f32 %v1085_v33, %v6141_v8  ;;  %v1216_v60 = vmax.f32 %v1084_v15, 0.0  ;;  %v5079_v34 = vpack.c.bf16 %v1215_v13, %v1213_v37  ;;  %v7053_v33 = vld [vmem:[#allocation9_spill] sm:$0xff]  ;;  %v5190_v13 = vld [vmem:[%s6948_s3 + $0x8] ss:$16 sps:$4 sm:$0xff]   ;;  %v5197_v37 = vld [vmem:[%s6947_s1] sm:$0xff]  }
 0x1c5   :  { %v1087_v43 = vpop.f32.mrf.mxu0  ;;  %v1036_v12 = vadd.f32 %v6246_v29, %v7053_v33  ;;  %v1034_v61 = vadd.f32 %v6240_v32, %v7053_v33  ;;  %v4712_v32 = vcombine.high %v4678_v39, %v4678_v39 }
 0x1c6   :  { %v1088_v1 = vadd.f32 %v1087_v43, %v6145_v41  ;;  %v1217_v36 = vmax.f32 %v1086_v21, 0.0  ;;  %v1201_v43 = vmax.f32 %v1046_v57, 0.0 }
 0x1c7   :  { %v1089_v49 = vpop.f32.mrf.mxu0  ;;  %v1196_v29 = vmax.f32 %v1034_v61, 0.0 }
 0x1c8   :  { %v1090_v54 = vadd.f32 %v1089_v49, %v6145_v41  ;;  %v1218_v25 = vmax.f32 %v1088_v1, 0.0  ;;  %v7048_v41 = vld [vmem:[#allocation7_spill] sm:$0xff]  ;;  %v1199_v1 = vmax.f32 %v1040_v16, 0.0  ;;  %v5073_v15 = vpack.c.bf16 %v1203_v5, %v1201_v43  ;;  %v5207_v43 = vld [vmem:[%s6947_s1 + $0x50] sm:$0xff]  }
 0x1c9   :  { %v1060_v58 = vadd.f32 %v1059_v45, %v7048_v41  ;;  %v1058_v24 = vadd.f32 %v1057_v11, %v7048_v41  ;;  %v1054_v45 = vadd.f32 %v1053_v62, %v7049_v26  ;;  %v5076_v11 = vpack.c.bf16 %v1210_v51, %v1208_v6  ;;  %v5200_v26 = vld [vmem:[%s6947_s1 + $0x18] sm:$0xff]   ;;  %v5201_v51 = vld [vmem:[%s6947_s1 + $0x20] sm:$0xff]   ;;  %v5203_v6 = vld [vmem:[%s6947_s1 + $0x30] sm:$0xff]  }
 0x1ca   :  { %v1219_v38 = vmax.f32 %v1090_v54, 0.0  ;;  %v5080_v10 = vpack.c.bf16 %v1218_v25, %v1216_v60  ;;  %v1044_v62 = vadd.f32 %v6254_v9, %v7051_v59  ;;  %v1197_v9 = vmax.f32 %v1036_v12, 0.0  ;;  %v5205_v16 = vld [vmem:[%s6947_s1 + $0x40] sm:$0xff]  }
 0x1cb   :  { %v1207_v0 = vmax.f32 %v1060_v58, 0.0  ;;  %v1206_v19 = vmax.f32 %v1058_v24, 0.0  ;;  %v1204_v18 = vmax.f32 %v1054_v45, 0.0  ;;  %v5070_v25 = vpack.c.bf16 %v1198_v7, %v1196_v29 }
 0x1cc   :  { %v5081_v8 = vpack.c.bf16 %v1219_v38, %v1217_v36  ;;  %v1200_v49 = vmax.f32 %v1044_v62, 0.0  ;;  %v5071_v27 = vpack.c.bf16 %v1199_v1, %v1197_v9  ;;  %v6308_v36 = vpop.permute.xlu0 %2448  ;;  %v7054_v60 = vmov 0   ;;  %v5206_v62 = vld [vmem:[%s6947_s1 + $0x48] sm:$0xff]   ;;  %v5208_v1 = vld [vmem:[%s6947_s1 + $0x58] sm:$0xff]  }
 0x1cd   :  { %v5075_v52 = vpack.c.bf16 %v1207_v0, %v1205_v50  ;;  %v5074_v21 = vpack.c.bf16 %v1206_v19, %v1204_v18  ;;  %v5202_v0 = vld [vmem:[%s6947_s1 + $0x28] sm:$0xff]  }
 0x1ce   :  { %2193 = vmatprep.subr.bf16.mxu1 %v5081_v8  ;;  %v5072_v54 = vpack.c.bf16 %v1202_v28, %v1200_v49  ;;  %v5209_v49 = vld [vmem:[%s6947_s1 + $0x60] sm:$0xff]  }
 0x1cf   :  { %2194 = vmatpush2.bf16.msra.mxu1 %v5080_v10  ;;  %v5198_v10 = vld [vmem:[%s6947_s1 + $0x8] sm:$0xff]  }
 0x1d0   :  { %2195 = vmatprep.subr.bf16.mxu1 %v5079_v34  ;;  %v6314_v38 = vpop.permute.xlu0 %2438  ;;  %v5199_v34 = vld [vmem:[%s6947_s1 + $0x10] sm:$0xff]  }
 0x1d3   :  { %2196 = vmatpush2.bf16.msra.mxu1 %v5078_v44 }
 0x1d4   :  { %2197 = vmatprep.subr.bf16.mxu1 %v5077_v30  ;;  %v6322_v63 = vpop.permute.xlu0 %2428 }
 0x1d7   :  { %2198 = vmatpush2.bf16.msra.mxu1 %v5076_v11 }
 0x1d8   :  { %2199 = vmatprep.subr.bf16.mxu1 %v5075_v52  ;;  %v6329_v48 = vpop.permute.xlu0 %2418 }
 0x1db   :  { %2200 = vmatpush2.bf16.msra.mxu1 %v5074_v21 }
 0x1dc   :  { %2201 = vmatprep.subr.bf16.mxu1 %v5073_v15  ;;  %v6338_v41 = vpop.permute.xlu0 %2408 }
 0x1df   :  { %2202 = vmatpush2.bf16.msra.mxu1 %v5072_v54 }
 0x1e0   :  { %2203 = vmatprep.subr.bf16.mxu1 %v5071_v27  ;;  %v6344_v17 = vpop.permute.xlu0 %2398  ;;  %v5210_v27 = vld [vmem:[%s6947_s1 + $0x68] sm:$0xff]  }
 0x1e3   :  { %2204 = vmatpush2.bf16.msra.mxu1 %v5070_v25 }
 0x1e4   :  { %2205 = vmatprep.subr.bf16.mxu1 %v6248_v40  ;;  %v5193_v40 = vld [vmem:[%s6948_s3 + $0x2c] ss:$16 sps:$4 sm:$0xff]   ;;  %v6353_v3 = vpop.permute.xlu0 %2388 }
 0x1e7   :  { %2206 = vmatpush2.bf16.msra.mxu1 %v6242_v42  ;;  %v2958_v42 = vsel %vm732_vm0, %v4711_v47, 0 }
 0x1e8   :  { %2207 = vmatprep.subr.bf16.mxu1 %v6224_v31  ;;  %v6312_v31 = vpop.permute.xlu1 %2453  ;;  %v6360_v4 = vpop.permute.xlu0 %2378 }
 0x1eb   :  { %2208 = vmatpush2.bf16.msra.mxu1 %v6218_v53  ;;  %v5195_v53 = vld [vmem:[%s6948_s3 + $0x28] ss:$16 sps:$4 sm:$0xff]  }
 0x1ec   :  { %4713 = vmatprep.subr.msk.bf16.mxu1 %vm732_vm0, %v4712_v32  ;;  %v6319_v2 = vpop.permute.xlu1 %2443  ;;  %v6369_v44 = vpop.permute.xlu0 %2528  ;;  %v5211_v32 = vld [vmem:[%s6947_s1 + $0x70] sm:$0xff]  }
 0x1ee   :  { %2210 = vmatmul.mubr.bf16.vlgmr.msra.gmra.mxu1 %v5190_v13 }
 0x1ef   :  { %2219 = vmatprep.mubr.bf16.mxu1 %v5193_v40  ;;  %2978 = vmatpush1.bf16.msra.mxu1 %v2958_v42  ;;  %v5212_v40 = vld [vmem:[%s6947_s1 + $0x78] sm:$0xff]  }
 0x1f0   :  { %v6327_v8 = vpop.permute.xlu1 %2433  ;;  %v6375_v35 = vpop.permute.xlu0 %2518 }
 0x1f4   :  { %v6333_v23 = vpop.permute.xlu1 %2423  ;;  %v6384_v45 = vpop.permute.xlu0 %2508 }
 0x1f6   :  { %2220 = vmatmul.mubr.bf16.gmra.mxu1 %v5195_v53 }
 0x1f7   :  { %2995 = vmatprep.mubr.bf16.mxu1 %v7054_v60 }
 0x1f8   :  { %v6342_v58 = vpop.permute.xlu1 %2413  ;;  %v6391_v57 = vpop.permute.xlu0 %2498 }
 0x1f9   :  { %7055 = vst [vmem:[#allocation12_spill] sm:$0xff] %v6391_v57 }
 0x1fc   :  { %v6349_v14 = vpop.permute.xlu1 %2403  ;;  %v6400_v19 = vpop.permute.xlu0 %2488 }
 0x1fd   :  { %7057 = vst [vmem:[#allocation5_spill] sm:$0xff] %v6400_v19 }
 0x1fe   :  { %4714 = vmatmul.mubr.msk.bf16.vlgmr.msra.gmra.mxu1 %vm635_vm1, %v5197_v37 }
 0x1ff   :  { %3005 = vmatprep.mubr.bf16.mxu1 %v7054_v60 }
 0x200   :  { %v6358_v46 = vpop.permute.xlu1 %2393  ;;  %v6406_v22 = vpop.permute.xlu0 %2478 }
 0x201   :  { %7059 = vst [vmem:[#allocation3_spill] sm:$0xff] %v6406_v22 }
 0x204   :  { %v6364_v24 = vpop.permute.xlu1 %2383  ;;  %v6415_v52 = vpop.permute.xlu0 %2468 }
 0x206   :  { %4715 = vmatmul.mubr.msk.bf16.gmra.mxu1 %vm635_vm1, %v5198_v10  ;;  %v5213_v10 = vld [vmem:[%s6947_s1 + $0x80] sm:$0xff]  }
 0x207   :  { %3015 = vmatprep.mubr.bf16.mxu1 %v7054_v60 }
 0x208   :  { %v6373_v20 = vpop.permute.xlu1 %2533  ;;  %v6422_v33 = vpop.permute.xlu0 %2458 }
 0x20c   :  { %v6380_v30 = vpop.permute.xlu1 %2523  ;;  %v6431_v56 = vpop.permute.xlu0 %2608 }
 0x20d   :  { %7061 = vst [vmem:[#allocation7_spill] sm:$0xff] %v6431_v56 }
 0x20e   :  { %4716 = vmatmul.mubr.msk.bf16.gmra.mxu1 %vm635_vm1, %v5199_v34 }
 0x20f   :  { %3025 = vmatprep.mubr.bf16.mxu1 %v7054_v60 }
 0x210   :  { %v6389_v59 = vpop.permute.xlu1 %2513  ;;  %v6437_v21 = vpop.permute.xlu0 %2598 }
 0x211   :  { %7063 = vst [vmem:[#allocation10_spill] sm:$0xff] %v6437_v21 }
 0x214   :  { %v6395_v50 = vpop.permute.xlu1 %2503  ;;  %v6446_v61 = vpop.permute.xlu0 %2588 }
 0x215   :  { %7056 = vst [vmem:[#allocation13_spill] sm:$0xff] %v6395_v50  ;;  %7065 = vst [vmem:[#allocation11_spill] sm:$0xff] %v6446_v61 }
 0x216   :  { %4717 = vmatmul.mubr.msk.bf16.gmra.mxu1 %vm635_vm1, %v5200_v26 }
 0x217   :  { %3035 = vmatprep.mubr.bf16.mxu1 %v7054_v60 }
 0x218   :  { %v6404_v11 = vpop.permute.xlu1 %2493  ;;  %v6453_v7 = vpop.permute.xlu0 %2578 }
 0x219   :  { %7058 = vst [vmem:[#allocation4_spill] sm:$0xff] %v6404_v11  ;;  %7067 = vst [vmem:[#allocation15_spill] sm:$0xff] %v6453_v7 }
 0x21c   :  { %v6411_v5 = vpop.permute.xlu1 %2483  ;;  %v6462_v29 = vpop.permute.xlu0 %2568 }
 0x21d   :  { %7060 = vst [vmem:[#allocation14_spill] sm:$0xff] %v6411_v5  ;;  %7069 = vst [vmem:[#allocation17_spill] sm:$0xff] %v6462_v29 }
 0x21e   :  { %4718 = vmatmul.mubr.msk.bf16.gmra.mxu1 %vm635_vm1, %v5201_v51 }
 0x21f   :  { %3045 = vmatprep.mubr.bf16.mxu1 %v7054_v60 }
 0x220   :  { %v6420_v18 = vpop.permute.xlu1 %2473  ;;  %v6468_v39 = vpop.permute.xlu0 %2558 }
 0x221   :  { %7071 = vst [vmem:[#allocation19_spill] sm:$0xff] %v6468_v39 }
 0x224   :  { %v6426_v12 = vpop.permute.xlu1 %2463  ;;  %v6477_v13 = vpop.permute.xlu0 %2548 }
 0x225   :  { %7073 = vst [vmem:[#allocation21_spill] sm:$0xff] %v6477_v13 }
 0x226   :  { %4719 = vmatmul.mubr.msk.bf16.gmra.mxu1 %vm635_vm1, %v5202_v0  ;;  %v5214_v0 = vld [vmem:[%s6947_s1 + $0x88] sm:$0xff]  }
 0x227   :  { %3055 = vmatprep.mubr.bf16.mxu1 %v7054_v60 }
 0x228   :  { %v6435_v28 = vpop.permute.xlu1 %2613  ;;  %v6484_v53 = vpop.permute.xlu0 %2538 }
 0x229   :  { %7062 = vst [vmem:[#allocation6_spill] sm:$0xff] %v6435_v28  ;;  %7075 = vst [vmem:[#allocation23_spill] sm:$0xff] %v6484_v53 }
 0x22c   :  { %v6442_v15 = vpop.permute.xlu1 %2603  ;;  %v6493_v34 = vpop.permute.xlu0 %2688 }
 0x22d   :  { %7064 = vst [vmem:[#allocation8_spill] sm:$0xff] %v6442_v15  ;;  %7077 = vst [vmem:[#allocation25_spill] sm:$0xff] %v6493_v34 }
 0x22e   :  { %4720 = vmatmul.mubr.msk.bf16.gmra.mxu1 %vm635_vm1, %v5203_v6 }
 0x22f   :  { %3065 = vmatprep.mubr.bf16.mxu1 %v7054_v60 }
 0x230   :  { %v6451_v9 = vpop.permute.xlu1 %2593  ;;  %v6499_v51 = vpop.permute.xlu0 %2678 }
 0x231   :  { %7066 = vst [vmem:[#allocation9_spill] sm:$0xff] %v6451_v9  ;;  %7079 = vst [vmem:[#allocation27_spill] sm:$0xff] %v6499_v51 }
 0x234   :  { %v6457_v54 = vpop.permute.xlu1 %2583 }
 0x235   :  { %7068 = vst [vmem:[#allocation16_spill] sm:$0xff] %v6457_v54 }
 0x236   :  { %4721 = vmatmul.mubr.msk.bf16.gmra.mxu1 %vm635_vm1, %v5204_v55  ;;  %v6508_v55 = vpop.permute.xlu0 %2668 }
 0x237   :  { %3075 = vmatprep.mubr.bf16.mxu1 %v7054_v60  ;;  %7081 = vst [vmem:[#allocation29_spill] sm:$0xff] %v6508_v55 }
 0x238   :  { %v6466_v25 = vpop.permute.xlu1 %2573 }
 0x239   :  { %7070 = vst [vmem:[#allocation18_spill] sm:$0xff] %v6466_v25 }
 0x23c   :  { %v6473_v47 = vpop.permute.xlu1 %2563 }
 0x23d   :  { %7072 = vst [vmem:[#allocation20_spill] sm:$0xff] %v6473_v47 }
 0x23e   :  { %4722 = vmatmul.mubr.msk.bf16.gmra.mxu1 %vm635_vm1, %v5205_v16  ;;  %v5215_v16 = vld [vmem:[%s6947_s1 + $0x90] sm:$0xff]  }
 0x23f   :  { %3085 = vmatprep.mubr.bf16.mxu1 %v7054_v60 }
 0x240   :  { %v6482_v42 = vpop.permute.xlu1 %2553 }
 0x241   :  { %7074 = vst [vmem:[#allocation22_spill] sm:$0xff] %v6482_v42 }
 0x244   :  { %v6488_v37 = vpop.permute.xlu1 %2543 }
 0x245   :  { %7076 = vst [vmem:[#allocation24_spill] sm:$0xff] %v6488_v37 }
 0x246   :  { %4723 = vmatmul.mubr.msk.bf16.gmra.mxu1 %vm635_vm1, %v5206_v62 }
 0x247   :  { %3095 = vmatprep.mubr.bf16.mxu1 %v7054_v60 }
 0x248   :  { %v6497_v26 = vpop.permute.xlu1 %2693 }
 0x249   :  { %7078 = vst [vmem:[#allocation26_spill] sm:$0xff] %v6497_v26  ;;  %v5219_v26 = vld [vmem:[%s6947_s1 + $0xb0] sm:$0xff]  }
 0x24c   :  { %v6504_v6 = vpop.permute.xlu1 %2683 }
 0x24d   :  { %7080 = vst [vmem:[#allocation28_spill] sm:$0xff] %v6504_v6 }
 0x24e   :  { %4724 = vmatmul.mubr.msk.bf16.gmra.mxu1 %vm635_vm1, %v5207_v43  ;;  %v6515_v43 = vpop.permute.xlu0 %2658 }
 0x24f   :  { %3105 = vmatprep.mubr.bf16.mxu1 %v7054_v60  ;;  %7083 = vst [vmem:[#allocation31_spill] sm:$0xff] %v6515_v43  ;;  %v5217_v43 = vld [vmem:[%s6947_s1 + $0xa0] sm:$0xff]  }
 0x250   :  { %v6513_v62 = vpop.permute.xlu1 %2673 }
 0x251   :  { %7082 = vst [vmem:[#allocation30_spill] sm:$0xff] %v6513_v62 }
 0x256   :  { %4725 = vmatmul.mubr.msk.bf16.gmra.mxu1 %vm635_vm1, %v5208_v1  ;;  %v2158_v1 = vpop.f32.mrf.mxu1 }
 0x257   :  { %3115 = vmatprep.mubr.bf16.mxu1 %v7054_v60 }
 0x25e   :  { %4726 = vmatmul.mubr.msk.bf16.gmra.mxu1 %vm635_vm1, %v5209_v49  ;;  %v6519_v49 = vpop.permute.xlu1 %2663 }
 0x25f   :  { %3125 = vmatprep.mubr.bf16.mxu1 %v7054_v60  ;;  %7084 = vst [vmem:[#allocation32_spill] sm:$0xff] %v6519_v49 }
 0x266   :  { %4727 = vmatmul.mubr.msk.bf16.gmra.mxu1 %vm635_vm1, %v5210_v27  ;;  %v5216_v27 = vld [vmem:[%s6947_s1 + $0x98] sm:$0xff]  }
 0x267   :  { %3135 = vmatprep.mubr.bf16.mxu1 %v7054_v60 }
 0x26e   :  { %4728 = vmatmul.mubr.msk.bf16.gmra.mxu1 %vm635_vm1, %v5211_v32  ;;  %v6524_v32 = vpop.permute.xlu0 %2648 }
 0x26f   :  { %3145 = vmatprep.mubr.bf16.mxu1 %v7054_v60  ;;  %7085 = vst [vmem:[#allocation33_spill] sm:$0xff] %v6524_v32 }
 0x276   :  { %4729 = vmatmul.mubr.msk.bf16.gmra.mxu1 %vm635_vm1, %v5212_v40  ;;  %v2160_v40 = vpop.f32.mrf.mxu1 }
 0x277   :  { %3155 = vmatprep.mubr.bf16.mxu1 %v7054_v60 }
 0x27e   :  { %4730 = vmatmul.mubr.msk.bf16.gmra.mxu1 %vm635_vm1, %v5213_v10  ;;  %v6528_v10 = vpop.permute.xlu1 %2653 }
 0x27f   :  { %3165 = vmatprep.mubr.bf16.mxu1 %v7054_v60  ;;  %7086 = vst [vmem:[#allocation34_spill] sm:$0xff] %v6528_v10  ;;  %v5218_v10 = vld [vmem:[%s6947_s1 + $0xa8] sm:$0xff]  }
 0x282   :  { %v6535_v55 = vpop.permute.xlu1 %2643 }
 0x283   :  { %7088 = vst [vmem:[#allocation36_spill] sm:$0xff] %v6535_v55 }
 0x286   :  { %4731 = vmatmul.mubr.msk.bf16.gmra.mxu1 %vm635_vm1, %v5214_v0  ;;  %v2162_v0 = vpop.f32.mrf.mxu1  ;;  %v6544_v62 = vpop.permute.xlu1 %2633 }
 0x287   :  { %3175 = vmatprep.mubr.bf16.mxu1 %v7054_v60  ;;  %7090 = vst [vmem:[#allocation38_spill] sm:$0xff] %v6544_v62 }
 0x288   :  { %v2164_v49 = vpop.f32.mrf.mxu1 }
 0x28e   :  { %4732 = vmatmul.mubr.msk.bf16.gmra.mxu1 %vm635_vm1, %v5215_v16  ;;  %v6530_v16 = vpop.permute.xlu0 %2638 }
 0x28f   :  { %3185 = vmatprep.mubr.bf16.mxu1 %v7054_v60  ;;  %7087 = vst [vmem:[#allocation35_spill] sm:$0xff] %v6530_v16 }
 0x292   :  { %v6539_v32 = vpop.permute.xlu0 %2628 }
 0x293   :  { %7089 = vst [vmem:[#allocation37_spill] sm:$0xff] %v6539_v32 }
 0x296   :  { %4733 = vmatmul.mubr.msk.bf16.gmra.mxu1 %vm635_vm1, %v5216_v27  ;;  %v2168_v27 = vpop.f32.mrf.mxu1  ;;  %v6546_v51 = vpop.permute.xlu0 %2618 }
 0x297   :  { %3195 = vmatprep.mubr.bf16.mxu1 %v7054_v60  ;;  %7091 = vst [vmem:[#allocation39_spill] sm:$0xff] %v6546_v51  ;;  %v5220_v51 = vld [vmem:[%s6947_s1 + $0xb8] sm:$0xff]  }
 0x298   :  { %v2170_v16 = vpop.f32.mrf.mxu1 }
 0x29a   :  { %v2172_v55 = vpop.f32.mrf.mxu1  ;;  %v1747_v34 = vpop.permute.xlu0 %1746 }
 0x29b   :  { %v2159_v39 = vadd.f32 %v2158_v1, %v1747_v34  ;;  %v2161_v62 = vadd.f32 %v2160_v40, %v1747_v34 }
 0x29c   :  { %v2174_v6 = vpop.f32.mrf.mxu1 }
 0x29e   :  { %4734 = vmatmul.mubr.msk.bf16.gmra.mxu1 %vm635_vm1, %v5217_v43  ;;  %v6550_v43 = vpop.permute.xlu1 %2623 }
 0x29f   :  { %3205 = vmatprep.mubr.bf16.mxu1 %v7054_v60  ;;  %7092 = vst [vmem:[#allocation40_spill] sm:$0xff] %v6550_v43 }
 0x2a6   :  { %4735 = vmatmul.mubr.msk.bf16.gmra.mxu1 %vm635_vm1, %v5218_v10  ;;  %v1752_v10 = vpop.permute.xlu1 %1751 }
 0x2a7   :  { %3215 = vmatprep.mubr.bf16.mxu1 %v7054_v60  ;;  %v2163_v7 = vadd.f32 %v2162_v0, %v1752_v10  ;;  %v2165_v61 = vadd.f32 %v2164_v49, %v1752_v10 }
 0x2ae   :  { %v2211_v47 = vpop.f32.mrf.mxu1  ;;  %4736 = vmatmul.mubr.msk.bf16.gmra.mxu1 %vm635_vm1, %v5219_v26 }
 0x2af   :  { %v2212_v32 = vadd.f32 %v2211_v47, %v2159_v39  ;;  %3225 = vmatprep.mubr.bf16.mxu1 %v7054_v60  ;;  %v1757_v39 = vpop.permute.xlu0 %1756 }
 0x2b0   :  { %v2213_v29 = vpop.f32.mrf.mxu1  ;;  %v2169_v1 = vadd.f32 %v2168_v27, %v1757_v39  ;;  %v2171_v40 = vadd.f32 %v2170_v16, %v1757_v39 }
 0x2b1   :  { %v2230_v25 = vmax.f32 %v2212_v32, 0.0  ;;  %v2214_v54 = vadd.f32 %v2213_v29, %v2161_v62 }
 0x2b2   :  { %v2215_v43 = vpop.f32.mrf.mxu1 }
 0x2b3   :  { %2238 = vst [vmem:[%s6950_s5] sm:$0xff] %v2230_v25  ;;  %v2231_v26 = vmax.f32 %v2214_v54, 0.0  ;;  %v2216_v34 = vadd.f32 %v2215_v43, %v2163_v7  ;;  %v1762_v7 = vpop.permute.xlu1 %1761 }
 0x2b4   :  { %v2217_v47 = vpop.f32.mrf.mxu1  ;;  %v2173_v0 = vadd.f32 %v2172_v55, %v1762_v7  ;;  %v2175_v16 = vadd.f32 %v2174_v6, %v1762_v7 }
 0x2b5   :  { %2239 = vst [vmem:[%s6950_s5 + $0x8] sm:$0xff] %v2231_v26  ;;  %v2232_v29 = vmax.f32 %v2216_v34, 0.0  ;;  %v2218_v62 = vadd.f32 %v2217_v47, %v2165_v61 }
 0x2b6   :  { %v2221_v32 = vpop.f32.mrf.mxu1  ;;  %4737 = vmatmul.mubr.msk.bf16.gmra.mxu1 %vm635_vm1, %v5220_v51  ;;  %v5221_v51 = vld [vmem:[%s6947_s1 + $0xc0] sm:$0xff]  }
 0x2b7   :  { %2240 = vst [vmem:[%s6950_s5 + $0x10] sm:$0xff] %v2232_v29  ;;  %v2233_v25 = vmax.f32 %v2218_v62, 0.0  ;;  %v2222_v54 = vadd.f32 %v2221_v32, %v2169_v1  ;;  %3235 = vmatprep.mubr.bf16.mxu1 %v7054_v60  ;;  %v5222_v32 = vld [vmem:[%s6947_s1 + $0xc8] sm:$0xff]  }
 0x2b8   :  { %v2223_v49 = vpop.f32.mrf.mxu1 }
 0x2b9   :  { %2241 = vst [vmem:[%s6950_s5 + $0x18] sm:$0xff] %v2233_v25  ;;  %v2234_v61 = vmax.f32 %v2222_v54, 0.0  ;;  %v2224_v27 = vadd.f32 %v2223_v49, %v2171_v40 }
 0x2ba   :  { %v2225_v43 = vpop.f32.mrf.mxu1 }
 0x2bb   :  { %2242 = vst [vmem:[%s6950_s5 + $0x20] sm:$0xff] %v2234_v61  ;;  %v2235_v10 = vmax.f32 %v2224_v27, 0.0  ;;  %v2226_v26 = vadd.f32 %v2225_v43, %v2173_v0 }
 0x2bc   :  { %v2227_v34 = vpop.f32.mrf.mxu1 }
 0x2bd   :  { %2243 = vst [vmem:[%s6950_s5 + $0x28] sm:$0xff] %v2235_v10  ;;  %v2236_v55 = vmax.f32 %v2226_v26, 0.0  ;;  %v2228_v39 = vadd.f32 %v2227_v34, %v2175_v16  ;;  %v5223_v34 = vld [vmem:[%s6947_s1 + $0xd0] sm:$0xff]  }
 0x2be   :  { %v2997_v47 = vpop.f32.mrf.mxu1  ;;  %4738 = vmatmul.mubr.msk.bf16.gmra.mxu1 %vm635_vm1, %v5221_v51 }
 0x2bf   :  { %2244 = vst [vmem:[%s6950_s5 + $0x30] sm:$0xff] %v2236_v55  ;;  %v2237_v6 = vmax.f32 %v2228_v39, 0.0  ;;  %3245 = vmatprep.mubr.bf16.mxu1 %v7054_v60  ;;  %v2998_v29 = vadd.f32 %v2997_v47, %v6360_v4 }
 0x2c0   :  { %v2999_v1 = vpop.f32.mrf.mxu1 }
 0x2c1   :  { %2245 = vst [vmem:[%s6950_s5 + $0x38] sm:$0xff] %v2237_v6  ;;  %v3000_v40 = vadd.f32 %v2999_v1, %v6360_v4  ;;  %v3316_v7 = vmax.f32 %v2998_v29, 0.0 }
 0x2c2   :  { %v3001_v62 = vpop.f32.mrf.mxu1 }
 0x2c3   :  { %v3002_v25 = vadd.f32 %v3001_v62, %v6364_v24  ;;  %v3317_v27 = vmax.f32 %v3000_v40, 0.0 }
 0x2c4   :  { %v3003_v54 = vpop.f32.mrf.mxu1 }
 0x2c5   :  { %v3318_v49 = vmax.f32 %v3002_v25, 0.0  ;;  %v3004_v0 = vadd.f32 %v3003_v54, %v6364_v24 }
 0x2c6   :  { %v3007_v61 = vpop.f32.mrf.mxu1  ;;  %4739 = vmatmul.mubr.msk.bf16.gmra.mxu1 %vm635_vm1, %v5222_v32 }
 0x2c7   :  { %v6599_v43 = vpack.c.bf16 %v3318_v49, %v3316_v7  ;;  %v3319_v51 = vmax.f32 %v3004_v0, 0.0  ;;  %3255 = vmatprep.mubr.bf16.mxu1 %v7054_v60  ;;  %v3008_v10 = vadd.f32 %v3007_v61, %v6353_v3 }
 0x2c8   :  { %v3009_v16 = vpop.f32.mrf.mxu1 }
 0x2c9   :  { %v6603_v4 = vpack.c.bf16 %v3319_v51, %v3317_v27  ;;  %v3010_v24 = vadd.f32 %v3009_v16, %v6353_v3  ;;  %v3320_v47 = vmax.f32 %v3008_v10, 0.0  ;;  %v5225_v27 = vld [vmem:[%s6947_s1 + $0xe0] sm:$0xff]  }
 0x2ca   :  { %v3011_v26 = vpop.f32.mrf.mxu1 }
 0x2cb   :  { %v3012_v55 = vadd.f32 %v3011_v26, %v6358_v46  ;;  %v3321_v62 = vmax.f32 %v3010_v24, 0.0  ;;  %v5231_v26 = vld [vmem:[%s6948_s3 + $0x4] ss:$16 sps:$4 sm:$0xff]   ;;  %v5226_v24 = vld [vmem:[%s6947_s1 + $0xe8] sm:$0xff]  }
 0x2cc   :  { %v3013_v39 = vpop.f32.mrf.mxu1  ;;  %4380 = vmatprep.mubr.bf16.mxu0 %v5231_v26  ;;  %v5228_v26 = vld [vmem:[%s6947_s1 + $0xf8] sm:$0xff]  }
 0x2cd   :  { %v3322_v6 = vmax.f32 %v3012_v55, 0.0  ;;  %v3014_v1 = vadd.f32 %v3013_v39, %v6358_v46  ;;  %v5224_v46 = vld [vmem:[%s6947_s1 + $0xd8] sm:$0xff]  }
 0x2ce   :  { %v6611_v29 = vpop.f32.mrf.mxu1  ;;  %4740 = vmatmul.mubr.msk.bf16.gmra.mxu1 %vm635_vm1, %v5223_v34 }
 0x2cf   :  { %v6614_v32 = vpack.c.bf16 %v3322_v6, %v3320_v47  ;;  %v3323_v40 = vmax.f32 %v3014_v1, 0.0  ;;  %3265 = vmatprep.mubr.bf16.mxu1 %v7054_v60  ;;  %v5227_v1 = vld [vmem:[%s6947_s1 + $0xf0] sm:$0xff]  }
 0x2d0   :  { %v6617_v25 = vpop.f32.mrf.mxu1 }
 0x2d1   :  { %v6619_v3 = vpack.c.bf16 %v3323_v40, %v3321_v62 }
 0x2d2   :  { %v6621_v54 = vpop.f32.mrf.mxu1 }
 0x2d4   :  { %v6626_v7 = vpop.f32.mrf.mxu1 }
 0x2d6   :  { %v6628_v49 = vpop.f32.mrf.mxu1  ;;  %4741 = vmatmul.mubr.msk.bf16.gmra.mxu1 %vm635_vm1, %v5224_v46 }
 0x2d7   :  { %3275 = vmatprep.mubr.bf16.mxu1 %v7054_v60 }
 0x2d8   :  { %v6632_v0 = vpop.f32.mrf.mxu1 }
 0x2da   :  { %v6634_v61 = vpop.f32.mrf.mxu1 }
 0x2dc   :  { %v3033_v51 = vpop.f32.mrf.mxu1 }
 0x2de   :  { %v6639_v16 = vpop.f32.mrf.mxu1  ;;  %4742 = vmatmul.mubr.msk.bf16.gmra.mxu1 %vm635_vm1, %v5225_v27 }
 0x2df   :  { %3285 = vmatprep.mubr.bf16.mxu1 %v7054_v60 }
 0x2e0   :  { %v3039_v10 = vpop.f32.mrf.mxu1 }
 0x2e2   :  { %v6646_v34 = vpop.f32.mrf.mxu1 }
 0x2e4   :  { %v3043_v55 = vpop.f32.mrf.mxu1 }
 0x2e6   :  { %v3047_v39 = vpop.f32.mrf.mxu1  ;;  %4743 = vmatmul.mubr.msk.bf16.gmra.mxu1 %vm635_vm1, %v5226_v24 }
 0x2e7   :  { %3295 = vmatprep.mubr.bf16.mxu1 %v7054_v60 }
 0x2e8   :  { %v3049_v47 = vpop.f32.mrf.mxu1 }
 0x2ea   :  { %v3051_v6 = vpop.f32.mrf.mxu1 }
 0x2ec   :  { %v3053_v62 = vpop.f32.mrf.mxu1 }
 0x2ee   :  { %v3057_v40 = vpop.f32.mrf.mxu1  ;;  %4744 = vmatmul.mubr.msk.bf16.gmra.mxu1 %vm635_vm1, %v5227_v1 }
 0x2ef   :  { %3305 = vmatprep.mubr.bf16.mxu1 %v7054_v60 }
 0x2f0   :  { %v3059_v46 = vpop.f32.mrf.mxu1 }
 0x2f1   :  { %v3060_v42 = vadd.f32 %v3059_v46, %v6314_v38 }
 0x2f2   :  { %v3061_v27 = vpop.f32.mrf.mxu1 }
 0x2f3   :  { %v3062_v13 = vadd.f32 %v3061_v27, %v6319_v2 }
 0x2f4   :  { %v3063_v24 = vpop.f32.mrf.mxu1 }
 0x2f5   :  { %v3064_v56 = vadd.f32 %v3063_v24, %v6319_v2  ;;  %v3052_v2 = vadd.f32 %v3051_v6, %v6327_v8 }
 0x2f6   :  { %v3067_v9 = vpop.f32.mrf.mxu1  ;;  %4745 = vmatmul.mubr.msk.bf16.gmra.mxu1 %vm635_vm1, %v5228_v26  ;;  %v3054_v26 = vadd.f32 %v3053_v62, %v6327_v8 }
 0x2f7   :  { %v3068_v60 = vadd.f32 %v3067_v9, %v6308_v36  ;;  %v3343_v11 = vmax.f32 %v3064_v56, 0.0  ;;  %v3341_v9 = vmax.f32 %v3060_v42, 0.0  ;;  %v3040_v42 = vadd.f32 %v3039_v10, %v6329_v48 }
 0x2f8   :  { %v3069_v21 = vpop.f32.mrf.mxu1  ;;  %v3339_v56 = vmax.f32 %v3054_v26, 0.0 }
 0x2f9   :  { %v3070_v15 = vadd.f32 %v3069_v21, %v6308_v36  ;;  %v3058_v21 = vadd.f32 %v3057_v40, %v6314_v38  ;;  %v3344_v50 = vmax.f32 %v3068_v60, 0.0  ;;  %v3050_v36 = vadd.f32 %v3049_v47, %v6322_v63 }
 0x2fa   :  { %v3071_v28 = vpop.f32.mrf.mxu1  ;;  %v3034_v47 = vadd.f32 %v3033_v51, %v6342_v58 }
 0x2fb   :  { %v3072_v1 = vadd.f32 %v3071_v28, %v6312_v31  ;;  %v3345_v37 = vmax.f32 %v3070_v15, 0.0  ;;  %v5095_v15 = vpack.c.bf16 %v3343_v11, %v3341_v9  ;;  %v3337_v8 = vmax.f32 %v3050_v36, 0.0 }
 0x2fc   :  { %v3073_v22 = vpop.f32.mrf.mxu1  ;;  %v3042_v11 = vadd.f32 %v6646_v34, %v6333_v23  ;;  %v3331_v9 = vmax.f32 %v3034_v47, 0.0 }
 0x2fd   :  { %v3074_v5 = vadd.f32 %v3073_v22, %v6312_v31  ;;  %v3346_v19 = vmax.f32 %v3072_v1, 0.0  ;;  %v3044_v31 = vadd.f32 %v3043_v55, %v6333_v23  ;;  %v3342_v22 = vmax.f32 %v3062_v13, 0.0 }
 0x2fe   :  { %v3077_v57 = vpop.f32.mrf.mxu1  ;;  %v5093_v40 = vpack.c.bf16 %v3339_v56, %v3337_v8  ;;  %v3334_v36 = vmax.f32 %v3042_v11, 0.0 }
 0x2ff   :  { %v3347_v24 = vmax.f32 %v3074_v5, 0.0  ;;  %v3078_v46 = vadd.f32 %v3077_v57, %v6422_v33  ;;  %v5096_v27 = vpack.c.bf16 %v3346_v19, %v3344_v50  ;;  %v3048_v57 = vadd.f32 %v3047_v39, %v6322_v63 }
 0x300   :  { %v3079_v28 = vpop.f32.mrf.mxu1  ;;  %v3038_v39 = vadd.f32 %v6639_v16, %v6329_v48 }
 0x301   :  { %v5097_v53 = vpack.c.bf16 %v3347_v24, %v3345_v37  ;;  %v3080_v5 = vadd.f32 %v3079_v28, %v6422_v33  ;;  %v3340_v37 = vmax.f32 %v3058_v21, 0.0  ;;  %v3348_v13 = vmax.f32 %v3078_v46, 0.0 }
 0x302   :  { %v3081_v62 = vpop.f32.mrf.mxu1  ;;  %v3335_v33 = vmax.f32 %v3044_v31, 0.0  ;;  %v3336_v60 = vmax.f32 %v3048_v57, 0.0  ;;  %v3333_v24 = vmax.f32 %v3040_v42, 0.0  ;;  %v3024_v21 = vadd.f32 %v6626_v7, %v6349_v14 }
 0x303   :  { %v3082_v38 = vadd.f32 %v3081_v62, %v6426_v12  ;;  %4348 = vmatprep.subr.bf16.mxu0 %v5097_v53  ;;  %v3338_v53 = vmax.f32 %v3052_v2, 0.0  ;;  %v5094_v6 = vpack.c.bf16 %v3342_v22, %v3340_v37  ;;  %v3349_v10 = vmax.f32 %v3080_v5, 0.0 }
 0x304   :  { %v3083_v55 = vpop.f32.mrf.mxu1  ;;  %4349 = vmatpush1.bf16.msra.mxu0 %v5096_v27  ;;  %v3032_v28 = vadd.f32 %v6634_v61, %v6342_v58  ;;  %v5091_v46 = vpack.c.bf16 %v3335_v33, %v3333_v24  ;;  %v3020_v2 = vadd.f32 %v6617_v25, %v6344_v17  ;;  %v3028_v22 = vadd.f32 %v6628_v49, %v6338_v41 }
 0x305   :  { %v3350_v50 = vmax.f32 %v3082_v38, 0.0  ;;  %v3084_v19 = vadd.f32 %v3083_v55, %v6426_v12  ;;  %4350 = vmatprep.subr.bf16.mxu0 %v5095_v15  ;;  %v3030_v12 = vadd.f32 %v6632_v0, %v6338_v41  ;;  %v5092_v48 = vpack.c.bf16 %v3338_v53, %v3336_v60 }
 0x306   :  { %v3087_v51 = vpop.f32.mrf.mxu1  ;;  %v3332_v27 = vmax.f32 %v3038_v39, 0.0  ;;  %v3327_v15 = vmax.f32 %v3024_v21, 0.0  ;;  %v3330_v5 = vmax.f32 %v3032_v28, 0.0  ;;  %v3018_v57 = vadd.f32 %v6611_v29, %v6344_v17 }
 0x307   :  { %v6683_v1 = vpack.c.bf16 %v3350_v50, %v3348_v13  ;;  %v3351_v63 = vmax.f32 %v3084_v19, 0.0  ;;  %v3088_v34 = vadd.f32 %v3087_v51, %v6415_v52  ;;  %v3329_v62 = vmax.f32 %v3030_v12, 0.0 }
 0x308   :  { %v3089_v26 = vpop.f32.mrf.mxu1  ;;  %4351 = vmatpush1.bf16.msra.mxu0 %v5094_v6  ;;  %v5090_v38 = vpack.c.bf16 %v3334_v36, %v3332_v27  ;;  %v3328_v37 = vmax.f32 %v3028_v22, 0.0  ;;  %v3324_v19 = vmax.f32 %v3018_v57, 0.0 }
 0x309   :  { %v6689_v23 = vpack.c.bf16 %v3351_v63, %v3349_v10  ;;  %4352 = vmatprep.subr.bf16.mxu0 %v5093_v40  ;;  %v3090_v31 = vadd.f32 %v3089_v26, %v6415_v52  ;;  %v3352_v58 = vmax.f32 %v3088_v34, 0.0  ;;  %v3022_v52 = vadd.f32 %v6621_v54, %v6349_v14 }
 0x30a   :  { %v3091_v16 = vpop.f32.mrf.mxu1  ;;  %v5089_v49 = vpack.c.bf16 %v3331_v9, %v3329_v62  ;;  %v5088_v54 = vpack.c.bf16 %v3330_v5, %v3328_v37 }
 0x30b   :  { %v3092_v0 = vadd.f32 %v3091_v16, %v6420_v18  ;;  %v3353_v25 = vmax.f32 %v3090_v31, 0.0  ;;  %v3326_v14 = vmax.f32 %v3022_v52, 0.0 }
 0x30c   :  { %v3093_v7 = vpop.f32.mrf.mxu1  ;;  %4353 = vmatpush1.bf16.msra.mxu0 %v5092_v48 }
 0x30d   :  { %v3354_v61 = vmax.f32 %v3092_v0, 0.0  ;;  %v3094_v56 = vadd.f32 %v3093_v7, %v6420_v18  ;;  %4354 = vmatprep.subr.bf16.mxu0 %v5091_v46  ;;  %v3325_v18 = vmax.f32 %v3020_v2, 0.0  ;;  %v5086_v33 = vpack.c.bf16 %v3326_v14, %v3324_v19  ;;  %v7096_v19 = vld [vmem:[#allocation4_spill] sm:$0xff] }
 0x30e   :  { %v6705_v47 = vpop.f32.mrf.mxu1 }
 0x30f   :  { %v6707_v42 = vpack.c.bf16 %v3354_v61, %v3352_v58  ;;  %v3355_v41 = vmax.f32 %v3094_v56, 0.0  ;;  %v5087_v50 = vpack.c.bf16 %v3327_v15, %v3325_v18 }
 0x310   :  { %v6711_v55 = vpop.f32.mrf.mxu1  ;;  %4355 = vmatpush1.bf16.msra.mxu0 %v5090_v38  ;;  %v7093_v38 = vld [vmem:[#allocation23_spill] sm:$0xff] }
 0x311   :  { %v6713_v8 = vpack.c.bf16 %v3355_v41, %v3353_v25  ;;  %4356 = vmatprep.subr.bf16.mxu0 %v5089_v49 }
 0x312   :  { %v6715_v13 = vpop.f32.mrf.mxu1 }
 0x314   :  { %v6717_v11 = vpop.f32.mrf.mxu1  ;;  %4357 = vmatpush1.bf16.msra.mxu0 %v5088_v54 }
 0x315   :  { %4358 = vmatprep.subr.bf16.mxu0 %v5087_v50 }
 0x316   :  { %v6719_v17 = vpop.f32.mrf.mxu1 }
 0x318   :  { %v6721_v29 = vpop.f32.mrf.mxu1  ;;  %4359 = vmatpush1.bf16.msra.mxu0 %v5086_v33 }
 0x319   :  { %4360 = vmatprep.subr.bf16.mxu0 %v6619_v3 }
 0x31a   :  { %v6724_v53 = vpop.f32.mrf.mxu1 }
 0x31c   :  { %v3113_v6 = vpop.f32.mrf.mxu1  ;;  %4361 = vmatpush1.bf16.msra.mxu0 %v6614_v32 }
 0x31d   :  { %4362 = vmatprep.subr.bf16.mxu0 %v6603_v4  ;;  %v3114_v33 = vadd.f32 %v3113_v6, %v7096_v19 }
 0x31e   :  { %v6728_v51 = vpop.f32.mrf.mxu1 }
 0x320   :  { %v3119_v40 = vpop.f32.mrf.mxu1  ;;  %4363 = vmatpush1.bf16.msra.mxu0 %v6599_v43 }
 0x322   :  { %v3121_v10 = vpop.f32.mrf.mxu1 }
 0x324   :  { %v3123_v63 = vpop.f32.mrf.mxu1 }
 0x326   :  { %v3127_v39 = vpop.f32.mrf.mxu1 }
 0x328   :  { %v3129_v60 = vpop.f32.mrf.mxu1 }
 0x32a   :  { %v3131_v26 = vpop.f32.mrf.mxu1 }
 0x32c   :  { %v3133_v12 = vpop.f32.mrf.mxu1 }
 0x32d   :  { %v3134_v27 = vadd.f32 %v3133_v12, %v6389_v59 }
 0x32e   :  { %v3137_v24 = vpop.f32.mrf.mxu1 }
 0x32f   :  { %v3138_v61 = vadd.f32 %v3137_v24, %v6375_v35  ;;  %v3371_v18 = vmax.f32 %v3134_v27, 0.0  ;;  %v3128_v24 = vadd.f32 %v3127_v39, %v6384_v45  ;;  %v7100_v27 = vld [vmem:[#allocation14_spill] sm:$0xff] }
 0x330   :  { %v3139_v3 = vpop.f32.mrf.mxu1 }
 0x331   :  { %v3140_v46 = vadd.f32 %v3139_v3, %v6375_v35  ;;  %v7095_v35 = vld [vmem:[#allocation24_spill] sm:$0xff]  ;;  %v3372_v3 = vmax.f32 %v3138_v61, 0.0 }
 0x332   :  { %v3141_v34 = vpop.f32.mrf.mxu1 }
 0x333   :  { %v3142_v0 = vadd.f32 %v3141_v34, %v6380_v30  ;;  %v3373_v15 = vmax.f32 %v3140_v46, 0.0  ;;  %v7098_v46 = vld [vmem:[#allocation5_spill] sm:$0xff] }
 0x334   :  { %v3143_v21 = vpop.f32.mrf.mxu1 }
 0x335   :  { %v3144_v4 = vadd.f32 %v3143_v21, %v6380_v30  ;;  %v3132_v30 = vadd.f32 %v3131_v26, %v6389_v59  ;;  %v3374_v49 = vmax.f32 %v3142_v0, 0.0 }
 0x336   :  { %v3147_v28 = vpop.f32.mrf.mxu1 }
 0x337   :  { %v3148_v43 = vadd.f32 %v3147_v28, %v6369_v44  ;;  %v3375_v7 = vmax.f32 %v3144_v4, 0.0  ;;  %v5110_v4 = vpack.c.bf16 %v3374_v49, %v3372_v3 }
 0x338   :  { %v3149_v36 = vpop.f32.mrf.mxu1 }
 0x339   :  { %v3150_v48 = vadd.f32 %v3149_v36, %v6369_v44  ;;  %v3376_v56 = vmax.f32 %v3148_v43, 0.0  ;;  %v3130_v44 = vadd.f32 %v3129_v60, %v6384_v45  ;;  %v5111_v14 = vpack.c.bf16 %v3375_v7, %v3373_v15  ;;  %v7097_v60 = vld [vmem:[#allocation12_spill] sm:$0xff] }
 0x33a   :  { %v3151_v32 = vpop.f32.mrf.mxu1  ;;  %v3120_v12 = vadd.f32 %v3119_v40, %v7097_v60  ;;  %v3118_v39 = vadd.f32 %v6728_v51, %v7097_v60  ;;  %v3368_v43 = vmax.f32 %v3128_v24, 0.0  ;;  %v3104_v7 = vadd.f32 %v6717_v11, %v7100_v27 }
 0x33b   :  { %v3152_v16 = vadd.f32 %v3151_v32, %v6373_v20  ;;  %v3377_v62 = vmax.f32 %v3150_v48, 0.0  ;;  %v3369_v59 = vmax.f32 %v3130_v44, 0.0  ;;  %v3370_v32 = vmax.f32 %v3132_v30, 0.0 }
 0x33c   :  { %v3153_v9 = vpop.f32.mrf.mxu1  ;;  %v3365_v0 = vmax.f32 %v3120_v12, 0.0 }
 0x33d   :  { %v3154_v31 = vadd.f32 %v3153_v9, %v6373_v20  ;;  %v3378_v2 = vmax.f32 %v3152_v16, 0.0  ;;  %v7094_v20 = vld [vmem:[#allocation13_spill] sm:$0xff]  ;;  %v5109_v6 = vpack.c.bf16 %v3371_v18, %v3369_v59  ;;  %v5108_v51 = vpack.c.bf16 %v3370_v32, %v3368_v43  ;;  %v5237_v43 = vld [vmem:[%s6948_s3 + $0xc] ss:$16 sps:$4 sm:$0xff]  }
 0x33e   :  { %v3157_v22 = vpop.f32.mrf.mxu1  ;;  %v3124_v41 = vadd.f32 %v3123_v63, %v7094_v20  ;;  %v3122_v28 = vadd.f32 %v3121_v10, %v7094_v20  ;;  %v3364_v20 = vmax.f32 %v3118_v39, 0.0 }
 0x33f   :  { %v3379_v58 = vmax.f32 %v3154_v31, 0.0  ;;  %v3158_v25 = vadd.f32 %v3157_v22, %v7093_v38  ;;  %v5112_v57 = vpack.c.bf16 %v3378_v2, %v3376_v56  ;;  %v3110_v31 = vadd.f32 %v6721_v29, %v7098_v46  ;;  %v7099_v2 = vld [vmem:[#allocation21_spill] sm:$0xff]  ;;  %v7101_v29 = vld [vmem:[#allocation22_spill] sm:$0xff] }
 0x340   :  { %v3159_v52 = vpop.f32.mrf.mxu1  ;;  %v3367_v36 = vmax.f32 %v3124_v41, 0.0  ;;  %v3363_v56 = vmax.f32 %v3114_v33, 0.0 }
 0x341   :  { %v5113_v5 = vpack.c.bf16 %v3379_v58, %v3377_v62  ;;  %v3160_v54 = vadd.f32 %v3159_v52, %v7093_v38  ;;  %v3380_v26 = vmax.f32 %v3158_v25, 0.0  ;;  %v3112_v62 = vadd.f32 %v6724_v53, %v7096_v19 }
 0x342   :  { %v3161_v37 = vpop.f32.mrf.mxu1  ;;  %v3366_v58 = vmax.f32 %v3122_v28, 0.0  ;;  %v5107_v52 = vpack.c.bf16 %v3367_v36, %v3365_v0  ;;  %v3108_v25 = vadd.f32 %v6719_v17, %v7098_v46  ;;  %v3361_v41 = vmax.f32 %v3110_v31, 0.0 }
 0x343   :  { %v3162_v50 = vadd.f32 %v3161_v37, %v7095_v35  ;;  %4364 = vmatprep.subr.bf16.mxu0 %v5113_v5  ;;  %v3381_v16 = vmax.f32 %v3160_v54, 0.0  ;;  %v7102_v5 = vld [vmem:[#allocation3_spill] sm:$0xff]  ;;  %v3359_v37 = vmax.f32 %v3104_v7, 0.0  ;;  %v3362_v18 = vmax.f32 %v3112_v62, 0.0  ;;  %v7103_v62 = vld [vmem:[#allocation8_spill] sm:$0xff] }
 0x344   :  { %v3163_v63 = vpop.f32.mrf.mxu1  ;;  %4365 = vmatpush2.bf16.msra.mxu0 %v5112_v57  ;;  %v3100_v38 = vadd.f32 %v6711_v55, %v7102_v5  ;;  %v3102_v57 = vadd.f32 %v6715_v13, %v7100_v27  ;;  %v5105_v55 = vpack.c.bf16 %v3363_v56, %v3361_v41  ;;  %v3098_v19 = vadd.f32 %v6705_v47, %v7102_v5  ;;  %v7105_v56 = vld [vmem:[#allocation6_spill] sm:$0xff]  ;;  %v7107_v41 = vld [vmem:[#allocation9_spill] sm:$0xff] }
 0x345   :  { %v3382_v34 = vmax.f32 %v3162_v50, 0.0  ;;  %v3164_v21 = vadd.f32 %v3163_v63, %v7095_v35  ;;  %4366 = vmatprep.subr.bf16.mxu0 %v5111_v14  ;;  %v5106_v14 = vpack.c.bf16 %v3366_v58, %v3364_v20  ;;  %v3360_v33 = vmax.f32 %v3108_v25, 0.0 }
 0x346   :  { %v3167_v48 = vpop.f32.mrf.mxu1  ;;  %v3357_v12 = vmax.f32 %v3100_v38, 0.0  ;;  %v3358_v13 = vmax.f32 %v3102_v57, 0.0 }
 0x347   :  { %v6751_v40 = vpack.c.bf16 %v3382_v34, %v3380_v26  ;;  %v3383_v45 = vmax.f32 %v3164_v21, 0.0  ;;  %v3168_v22 = vadd.f32 %v3167_v48, %v7099_v2  ;;  %v5104_v3 = vpack.c.bf16 %v3362_v18, %v3360_v33  ;;  %v5229_v48 = vld [vmem:[%s6948_s3] ss:$16 sps:$4 sm:$0xff]  }
 0x348   :  { %v3169_v9 = vpop.f32.mrf.mxu1  ;;  %4367 = vmatpush2.bf16.msra.mxu0 %v5110_v4  ;;  %v5103_v59 = vpack.c.bf16 %v3359_v37, %v3357_v12  ;;  %v3356_v26 = vmax.f32 %v3098_v19, 0.0  ;;  %v7109_v33 = vld [vmem:[#allocation39_spill] sm:$0xff] }
 0x349   :  { %v6757_v10 = vpack.c.bf16 %v3383_v45, %v3381_v16  ;;  %4368 = vmatprep.subr.bf16.mxu0 %v5109_v6  ;;  %v3170_v44 = vadd.f32 %v3169_v9, %v7099_v2  ;;  %v3384_v53 = vmax.f32 %v3168_v22, 0.0 }
 0x34a   :  { %v3171_v61 = vpop.f32.mrf.mxu1  ;;  %v5102_v21 = vpack.c.bf16 %v3358_v13, %v3356_v26  ;;  %v7110_v13 = vld [vmem:[#allocation16_spill] sm:$0xff] }
 0x34b   :  { %v3172_v15 = vadd.f32 %v3171_v61, %v7101_v29  ;;  %v3385_v35 = vmax.f32 %v3170_v44, 0.0 }
 0x34c   :  { %v3173_v11 = vpop.f32.mrf.mxu1  ;;  %4369 = vmatpush2.bf16.msra.mxu0 %v5108_v51  ;;  %v7104_v51 = vld [vmem:[#allocation7_spill] sm:$0xff] }
 0x34d   :  { %v3386_v30 = vmax.f32 %v3172_v15, 0.0  ;;  %v3174_v49 = vadd.f32 %v3173_v11, %v7101_v29  ;;  %4370 = vmatprep.subr.bf16.mxu0 %v5107_v52  ;;  %v7106_v15 = vld [vmem:[#allocation10_spill] sm:$0xff] }
 0x34e   :  { %v6773_v54 = vpop.f32.mrf.mxu1 }
 0x34f   :  { %v6775_v17 = vpack.c.bf16 %v3386_v30, %v3384_v53  ;;  %v3387_v50 = vmax.f32 %v3174_v49, 0.0 }
 0x350   :  { %v6779_v60 = vpop.f32.mrf.mxu1  ;;  %4371 = vmatpush2.bf16.msra.mxu0 %v5106_v14 }
 0x351   :  { %v6781_v24 = vpack.c.bf16 %v3387_v50, %v3385_v35  ;;  %4372 = vmatprep.subr.bf16.mxu0 %v5105_v55  ;;  %v7108_v55 = vld [vmem:[#allocation11_spill] sm:$0xff] }
 0x352   :  { %v6783_v63 = vpop.f32.mrf.mxu1 }
 0x354   :  { %v6785_v34 = vpop.f32.mrf.mxu1  ;;  %4373 = vmatpush2.bf16.msra.mxu0 %v5104_v3 }
 0x355   :  { %4374 = vmatprep.subr.bf16.mxu0 %v5103_v59 }
 0x356   :  { %v6787_v47 = vpop.f32.mrf.mxu1 }
 0x358   :  { %v6789_v28 = vpop.f32.mrf.mxu1  ;;  %4375 = vmatpush2.bf16.msra.mxu0 %v5102_v21 }
 0x359   :  { %4376 = vmatprep.subr.bf16.mxu0 %v6713_v8  ;;  %v5234_v8 = vld [vmem:[%s6948_s3 + $0x24] ss:$16 sps:$4 sm:$0xff]  }
 0x35a   :  { %v6792_v36 = vpop.f32.mrf.mxu1 }
 0x35c   :  { %v3193_v32 = vpop.f32.mrf.mxu1  ;;  %4377 = vmatpush2.bf16.msra.mxu0 %v6707_v42 }
 0x35d   :  { %4378 = vmatprep.subr.bf16.mxu0 %v6689_v23  ;;  %v5232_v23 = vld [vmem:[%s6948_s3 + $0x20] ss:$16 sps:$4 sm:$0xff]  }
 0x35e   :  { %v6796_v4 = vpop.f32.mrf.mxu1 }
 0x360   :  { %v3199_v6 = vpop.f32.mrf.mxu1  ;;  %4379 = vmatpush2.bf16.msra.mxu0 %v6683_v1 }
 0x362   :  { %v3201_v16 = vpop.f32.mrf.mxu1 }
 0x363   :  { %4381 = vmatmul.mubr.bf16.vlgmr.msra.gmra.mxu0 %v5229_v48 }
 0x364   :  { %v3203_v45 = vpop.f32.mrf.mxu1  ;;  %4390 = vmatprep.mubr.bf16.mxu0 %v5234_v8 }
 0x365   :  { %v3204_v3 = vadd.f32 %v3203_v45, %v7110_v13 }
 0x366   :  { %v3207_v42 = vpop.f32.mrf.mxu1 }
 0x368   :  { %v3209_v39 = vpop.f32.mrf.mxu1 }
 0x369   :  { %v3210_v35 = vadd.f32 %v3209_v39, %v7108_v55 }
 0x36a   :  { %v3211_v9 = vpop.f32.mrf.mxu1 }
 0x36b   :  { %4391 = vmatmul.mubr.bf16.gmra.mxu0 %v5232_v23  ;;  %v3212_v59 = vadd.f32 %v3211_v9, %v7107_v41  ;;  %v3401_v9 = vmax.f32 %v3210_v35, 0.0 }
 0x36c   :  { %v3213_v1 = vpop.f32.mrf.mxu1  ;;  %4433 = vmatprep.mubr.bf16.mxu0 %v5237_v43 }
 0x36d   :  { %v3214_v53 = vadd.f32 %v3213_v1, %v7107_v41  ;;  %v7111_v1 = vld [vmem:[#allocation40_spill] sm:$0xff]  ;;  %v7115_v41 = vld [vmem:[#allocation37_spill] sm:$0xff] }
 0x36e   :  { %v3217_v46 = vpop.f32.mrf.mxu1 }
 0x36f   :  { %v3218_v37 = vadd.f32 %v3217_v46, %v7106_v15  ;;  %v3403_v8 = vmax.f32 %v3214_v53, 0.0 }
 0x370   :  { %v3219_v31 = vpop.f32.mrf.mxu1 }
 0x371   :  { %v3220_v5 = vadd.f32 %v3219_v31, %v7106_v15  ;;  %v7112_v31 = vld [vmem:[#allocation18_spill] sm:$0xff] }
 0x372   :  { %v3221_v0 = vpop.f32.mrf.mxu1  ;;  %v3194_v39 = vadd.f32 %v3193_v32, %v7112_v31  ;;  %v5125_v32 = vpack.c.bf16 %v3403_v8, %v3401_v9 }
 0x373   :  { %v3222_v25 = vadd.f32 %v3221_v0, %v7103_v62  ;;  %v3405_v50 = vmax.f32 %v3220_v5, 0.0  ;;  %v7113_v0 = vld [vmem:[#allocation15_spill] sm:$0xff] }
 0x374   :  { %v3223_v2 = vpop.f32.mrf.mxu1  ;;  %v3198_v15 = vadd.f32 %v6796_v4, %v7113_v0 }
 0x375   :  { %v3224_v58 = vadd.f32 %v3223_v2, %v7103_v62  ;;  %v3406_v26 = vmax.f32 %v3222_v25, 0.0  ;;  %v3200_v2 = vadd.f32 %v3199_v6, %v7113_v0  ;;  %v7114_v25 = vld [vmem:[#allocation17_spill] sm:$0xff] }
 0x376   :  { %v3227_v22 = vpop.f32.mrf.mxu1 }
 0x377   :  { %v3228_v44 = vadd.f32 %v3227_v22, %v7104_v51  ;;  %v3407_v30 = vmax.f32 %v3224_v58, 0.0  ;;  %v3208_v22 = vadd.f32 %v3207_v42, %v7108_v55 }
 0x378   :  { %v3229_v27 = vpop.f32.mrf.mxu1 }
 0x379   :  { %v3230_v61 = vadd.f32 %v3229_v27, %v7104_v51  ;;  %v3408_v18 = vmax.f32 %v3228_v44, 0.0  ;;  %v5127_v23 = vpack.c.bf16 %v3407_v30, %v3405_v50  ;;  %v3404_v27 = vmax.f32 %v3218_v37, 0.0  ;;  %v7116_v30 = vld [vmem:[#allocation20_spill] sm:$0xff] }
 0x37a   :  { %v3231_v7 = vpop.f32.mrf.mxu1  ;;  %v3202_v51 = vadd.f32 %v3201_v16, %v7110_v13  ;;  %v3400_v5 = vmax.f32 %v3208_v22, 0.0  ;;  %v3396_v13 = vmax.f32 %v3198_v15, 0.0 }
 0x37b   :  { %v3232_v52 = vadd.f32 %v3231_v7, %v7105_v56  ;;  %v3409_v49 = vmax.f32 %v3230_v61, 0.0  ;;  %v3399_v61 = vmax.f32 %v3204_v3, 0.0 }
 0x37c   :  { %v3233_v29 = vpop.f32.mrf.mxu1  ;;  %v3398_v37 = vmax.f32 %v3202_v51, 0.0 }
 0x37d   :  { %v3234_v38 = vadd.f32 %v3233_v29, %v7105_v56  ;;  %v3410_v20 = vmax.f32 %v3232_v52, 0.0  ;;  %v3402_v56 = vmax.f32 %v3212_v59, 0.0  ;;  %v5126_v52 = vpack.c.bf16 %v3406_v26, %v3404_v27 }
 0x37e   :  { %v3237_v11 = vpop.f32.mrf.mxu1 }
 0x37f   :  { %v3411_v57 = vmax.f32 %v3234_v38, 0.0  ;;  %v3238_v12 = vadd.f32 %v3237_v11, %v7109_v33  ;;  %v5128_v21 = vpack.c.bf16 %v3410_v20, %v3408_v18  ;;  %v3190_v20 = vadd.f32 %v6789_v28, %v7114_v25  ;;  %v7117_v28 = vld [vmem:[#allocation38_spill] sm:$0xff] }
 0x380   :  { %v3239_v14 = vpop.f32.mrf.mxu1  ;;  %v3397_v11 = vmax.f32 %v3200_v2, 0.0  ;;  %v5124_v4 = vpack.c.bf16 %v3402_v56, %v3400_v5 }
 0x381   :  { %v5129_v19 = vpack.c.bf16 %v3411_v57, %v3409_v49  ;;  %v3240_v43 = vadd.f32 %v3239_v14, %v7109_v33  ;;  %v3412_v7 = vmax.f32 %v3238_v12, 0.0  ;;  %v3184_v49 = vadd.f32 %v6785_v34, %v7116_v30 }
 0x382   :  { %v3241_v48 = vpop.f32.mrf.mxu1  ;;  %v3192_v57 = vadd.f32 %v6792_v36, %v7112_v31  ;;  %v3395_v14 = vmax.f32 %v3194_v39, 0.0  ;;  %v5123_v55 = vpack.c.bf16 %v3399_v61, %v3397_v11  ;;  %v3188_v12 = vadd.f32 %v6787_v47, %v7114_v25 }
 0x383   :  { %v3242_v46 = vadd.f32 %v3241_v48, %v7111_v1  ;;  %4401 = vmatprep.subr.bf16.mxu0 %v5129_v19  ;;  %v3413_v29 = vmax.f32 %v3240_v43, 0.0  ;;  %v7118_v19 = vld [vmem:[#allocation19_spill] sm:$0xff]  ;;  %v3393_v3 = vmax.f32 %v3190_v20, 0.0  ;;  %v3391_v48 = vmax.f32 %v3184_v49, 0.0 }
 0x384   :  { %v3243_v45 = vpop.f32.mrf.mxu1  ;;  %4402 = vmatpush1.bf16.msra.mxu0 %v5128_v21  ;;  %v3180_v33 = vadd.f32 %v6779_v60, %v7118_v19  ;;  %v3182_v21 = vadd.f32 %v6783_v63, %v7116_v30  ;;  %v3394_v8 = vmax.f32 %v3192_v57, 0.0  ;;  %v3178_v31 = vadd.f32 %v6773_v54, %v7118_v19  ;;  %v7123_v19 = vld [vmem:[#allocation30_spill] sm:$0xff] }
 0x385   :  { %v3414_v62 = vmax.f32 %v3242_v46, 0.0  ;;  %v3244_v58 = vadd.f32 %v3243_v45, %v7111_v1  ;;  %4403 = vmatprep.subr.bf16.mxu0 %v5127_v23  ;;  %v5122_v23 = vpack.c.bf16 %v3398_v37, %v3396_v13  ;;  %v5121_v60 = vpack.c.bf16 %v3395_v14, %v3393_v3  ;;  %v7121_v37 = vld [vmem:[#allocation26_spill] sm:$0xff]  ;;  %v7122_v14 = vld [vmem:[#allocation27_spill] sm:$0xff] }
 0x386   :  { %v3247_v44 = vpop.f32.mrf.mxu1  ;;  %v3392_v39 = vmax.f32 %v3188_v12, 0.0  ;;  %v3389_v2 = vmax.f32 %v3180_v33, 0.0  ;;  %v3390_v63 = vmax.f32 %v3182_v21, 0.0 }
 0x387   :  { %v6831_v6 = vpack.c.bf16 %v3414_v62, %v3412_v7  ;;  %v3415_v42 = vmax.f32 %v3244_v58, 0.0  ;;  %v3248_v53 = vadd.f32 %v3247_v44, %v7115_v41  ;;  %v3388_v7 = vmax.f32 %v3178_v31, 0.0 }
 0x388   :  { %v3249_v38 = vpop.f32.mrf.mxu1  ;;  %4404 = vmatpush1.bf16.msra.mxu0 %v5126_v52  ;;  %v5120_v27 = vpack.c.bf16 %v3394_v8, %v3392_v39  ;;  %v5119_v9 = vpack.c.bf16 %v3391_v48, %v3389_v2 }
 0x389   :  { %v6837_v16 = vpack.c.bf16 %v3415_v42, %v3413_v29  ;;  %4405 = vmatprep.subr.bf16.mxu0 %v5125_v32  ;;  %v3250_v35 = vadd.f32 %v3249_v38, %v7115_v41  ;;  %v3416_v36 = vmax.f32 %v3248_v53, 0.0  ;;  %v5118_v58 = vpack.c.bf16 %v3390_v63, %v3388_v7 }
 0x38a   :  { %v3251_v18 = vpop.f32.mrf.mxu1 }
 0x38b   :  { %v3252_v50 = vadd.f32 %v3251_v18, %v7117_v28  ;;  %v3417_v1 = vmax.f32 %v3250_v35, 0.0 }
 0x38c   :  { %v3253_v34 = vpop.f32.mrf.mxu1  ;;  %4406 = vmatpush1.bf16.msra.mxu0 %v5124_v4 }
 0x38d   :  { %v3418_v59 = vmax.f32 %v3252_v50, 0.0  ;;  %v3254_v26 = vadd.f32 %v3253_v34, %v7117_v28  ;;  %4407 = vmatprep.subr.bf16.mxu0 %v5123_v55 }
 0x38e   :  { %v6853_v43 = vpop.f32.mrf.mxu1 }
 0x38f   :  { %v6855_v47 = vpack.c.bf16 %v3418_v59, %v3416_v36  ;;  %v3419_v46 = vmax.f32 %v3254_v26, 0.0  ;;  %v7124_v59 = vld [vmem:[#allocation29_spill] sm:$0xff] }
 0x390   :  { %v6859_v0 = vpop.f32.mrf.mxu1  ;;  %4408 = vmatpush1.bf16.msra.mxu0 %v5122_v23 }
 0x391   :  { %v6861_v22 = vpack.c.bf16 %v3419_v46, %v3417_v1  ;;  %4409 = vmatprep.subr.bf16.mxu0 %v5121_v60  ;;  %v7125_v1 = vld [vmem:[#allocation32_spill] sm:$0xff] }
 0x392   :  { %v6863_v45 = vpop.f32.mrf.mxu1 }
 0x394   :  { %v6865_v62 = vpop.f32.mrf.mxu1  ;;  %4410 = vmatpush1.bf16.msra.mxu0 %v5120_v27  ;;  %v7126_v27 = vld [vmem:[#allocation31_spill] sm:$0xff] }
 0x395   :  { %4411 = vmatprep.subr.bf16.mxu0 %v5119_v9 }
 0x396   :  { %v6867_v54 = vpop.f32.mrf.mxu1 }
 0x398   :  { %v6869_v51 = vpop.f32.mrf.mxu1  ;;  %4412 = vmatpush1.bf16.msra.mxu0 %v5118_v58 }
 0x399   :  { %4413 = vmatprep.subr.bf16.mxu0 %v6781_v24 }
 0x39a   :  { %v6872_v61 = vpop.f32.mrf.mxu1 }
 0x39c   :  { %v3273_v56 = vpop.f32.mrf.mxu1  ;;  %4414 = vmatpush1.bf16.msra.mxu0 %v6775_v17  ;;  %v7119_v17 = vld [vmem:[#allocation28_spill] sm:$0xff] }
 0x39d   :  { %4415 = vmatprep.subr.bf16.mxu0 %v6757_v10  ;;  %v7120_v10 = vld [vmem:[#allocation25_spill] sm:$0xff] }
 0x39e   :  { %v3277_v52 = vpop.f32.mrf.mxu1 }
 0x3a0   :  { %v3279_v44 = vpop.f32.mrf.mxu1  ;;  %4416 = vmatpush1.bf16.msra.mxu0 %v6751_v40 }
 0x3a1   :  { %v3280_v9 = vadd.f32 %v3279_v44, %v7126_v27 }
 0x3a2   :  { %v3281_v32 = vpop.f32.mrf.mxu1 }
 0x3a3   :  { %v3282_v58 = vadd.f32 %v3281_v32, %v7125_v1 }
 0x3a4   :  { %v3283_v29 = vpop.f32.mrf.mxu1 }
 0x3a5   :  { %v3284_v46 = vadd.f32 %v3283_v29, %v7125_v1  ;;  %v3278_v29 = vadd.f32 %v3277_v52, %v7126_v27 }
 0x3a6   :  { %v3287_v42 = vpop.f32.mrf.mxu1 }
 0x3a7   :  { %v3288_v2 = vadd.f32 %v3287_v42, %v7124_v59 }
 0x3a8   :  { %v3289_v15 = vpop.f32.mrf.mxu1 }
 0x3a9   :  { %v3290_v26 = vadd.f32 %v3289_v15, %v7124_v59  ;;  %v3971_v59 = vpop.permute.xlu0 %3970 }
 0x3aa   :  { %v3291_v5 = vpop.f32.mrf.mxu1 }
 0x3ab   :  { %v3292_v8 = vadd.f32 %v3291_v5, %v7123_v19  ;;  %v3433_v7 = vmax.f32 %v3290_v26, 0.0  ;;  %v7127_v5 = vld [vmem:[#allocation34_spill] sm:$0xff] }
 0x3ac   :  { %v3293_v38 = vpop.f32.mrf.mxu1  ;;  %v3272_v44 = vadd.f32 %v6872_v61, %v7127_v5 }
 0x3ad   :  { %v3294_v33 = vadd.f32 %v3293_v38, %v7123_v19  ;;  %v3434_v15 = vmax.f32 %v3292_v8, 0.0 }
 0x3ae   :  { %v3297_v25 = vpop.f32.mrf.mxu1 }
 0x3af   :  { %v3298_v3 = vadd.f32 %v3297_v25, %v7122_v14  ;;  %v3435_v31 = vmax.f32 %v3294_v33, 0.0  ;;  %v3274_v25 = vadd.f32 %v3273_v56, %v7127_v5 }
 0x3b0   :  { %v3299_v20 = vpop.f32.mrf.mxu1 }
 0x3b1   :  { %v3300_v55 = vadd.f32 %v3299_v20, %v7122_v14  ;;  %v3436_v63 = vmax.f32 %v3298_v3, 0.0  ;;  %v3431_v20 = vmax.f32 %v3284_v46, 0.0  ;;  %v3427_v56 = vmax.f32 %v3274_v25, 0.0 }
 0x3b2   :  { %v3301_v24 = vpop.f32.mrf.mxu1 }
 0x3b3   :  { %v3302_v28 = vadd.f32 %v3301_v24, %v7119_v17  ;;  %v3437_v21 = vmax.f32 %v3300_v55, 0.0  ;;  %v5141_v24 = vpack.c.bf16 %v3435_v31, %v3433_v7 }
 0x3b4   :  { %v3303_v11 = vpop.f32.mrf.mxu1 }
 0x3b5   :  { %v3304_v49 = vadd.f32 %v3303_v11, %v7119_v17  ;;  %v3438_v23 = vmax.f32 %v3302_v28, 0.0  ;;  %v3432_v11 = vmax.f32 %v3288_v2, 0.0  ;;  %v7129_v17 = vld [vmem:[#allocation36_spill] sm:$0xff] }
 0x3b6   :  { %v3307_v41 = vpop.f32.mrf.mxu1  ;;  %v3262_v61 = vadd.f32 %v6863_v45, %v7129_v17  ;;  %v5240_v45 = vld [vmem:[%s6948_s3 + $0x2c] ss:$16 sps:$4 sm:$0xff]  }
 0x3b7   :  { %v3308_v40 = vadd.f32 %v3307_v41, %v7120_v10  ;;  %v3439_v12 = vmax.f32 %v3304_v49, 0.0  ;;  %v5142_v38 = vpack.c.bf16 %v3438_v23, %v3436_v63  ;;  %v7128_v41 = vld [vmem:[#allocation33_spill] sm:$0xff]  ;;  %v5140_v32 = vpack.c.bf16 %v3434_v15, %v3432_v11  ;;  %v3976_v23 = vpop.permute.xlu1 %3975 }
 0x3b8   :  { %v3309_v53 = vpop.f32.mrf.mxu1  ;;  %v3270_v42 = vadd.f32 %v6869_v51, %v7128_v41  ;;  %v3264_v49 = vadd.f32 %v6865_v62, %v7129_v17  ;;  %v3268_v52 = vadd.f32 %v6867_v54, %v7128_v41  ;;  %v3422_v28 = vmax.f32 %v3262_v61, 0.0 }
 0x3b9   :  { %v3310_v57 = vadd.f32 %v3309_v53, %v7120_v10  ;;  %v3440_v36 = vmax.f32 %v3308_v40, 0.0  ;;  %v5143_v39 = vpack.c.bf16 %v3439_v12, %v3437_v21  ;;  %v3429_v53 = vmax.f32 %v3280_v9, 0.0  ;;  %v3981_v9 = vpop.permute.xlu0 %3980 }
 0x3ba   :  { %v3311_v30 = vpop.f32.mrf.mxu1  ;;  %v3426_v40 = vmax.f32 %v3272_v44, 0.0  ;;  %v3423_v14 = vmax.f32 %v3264_v49, 0.0 }
 0x3bb   :  { %v3312_v4 = vadd.f32 %v3311_v30, %v7121_v37  ;;  %v3441_v13 = vmax.f32 %v3310_v57, 0.0  ;;  %v3430_v30 = vmax.f32 %v3282_v58, 0.0  ;;  %v5139_v10 = vpack.c.bf16 %v3431_v20, %v3429_v53 }
 0x3bc   :  { %v3313_v18 = vpop.f32.mrf.mxu1  ;;  %v3428_v57 = vmax.f32 %v3278_v29, 0.0  ;;  %v3986_v29 = vpop.permute.xlu1 %3985 }
 0x3bd   :  { %v3314_v35 = vadd.f32 %v3313_v18, %v7121_v37  ;;  %v3442_v50 = vmax.f32 %v3312_v4, 0.0  ;;  %v7130_v37 = vld [vmem:[#allocation35_spill] sm:$0xff]  ;;  %v3425_v4 = vmax.f32 %v3270_v42, 0.0 }
 0x3be   :  { %v3260_v51 = vadd.f32 %v6859_v0, %v7130_v37  ;;  %v5138_v18 = vpack.c.bf16 %v3430_v30, %v3428_v57  ;;  %v3258_v62 = vadd.f32 %v6853_v43, %v7130_v37  ;;  %v5235_v43 = vld [vmem:[%s6948_s3 + $0x8] ss:$16 sps:$4 sm:$0xff]  }
 0x3bf   :  { %v3443_v34 = vmax.f32 %v3314_v35, 0.0  ;;  %v5144_v60 = vpack.c.bf16 %v3442_v50, %v3440_v36  ;;  %v5137_v55 = vpack.c.bf16 %v3427_v56, %v3425_v4  ;;  %v3424_v35 = vmax.f32 %v3268_v52, 0.0 }
 0x3c0   :  { %v3421_v54 = vmax.f32 %v3260_v51, 0.0  ;;  %v3420_v0 = vmax.f32 %v3258_v62, 0.0 }
 0x3c1   :  { %v5145_v48 = vpack.c.bf16 %v3443_v34, %v3441_v13  ;;  %v5136_v50 = vpack.c.bf16 %v3426_v40, %v3424_v35 }
 0x3c2   :  { %v5135_v19 = vpack.c.bf16 %v3423_v14, %v3421_v54  ;;  %v5134_v33 = vpack.c.bf16 %v3422_v28, %v3420_v0 }
 0x3c3   :  { %4417 = vmatprep.subr.bf16.mxu0 %v5145_v48 }
 0x3c4   :  { %4418 = vmatpush2.bf16.msra.mxu0 %v5144_v60 }
 0x3c5   :  { %4419 = vmatprep.subr.bf16.mxu0 %v5143_v39 }
 0x3c8   :  { %4420 = vmatpush2.bf16.msra.mxu0 %v5142_v38 }
 0x3c9   :  { %4421 = vmatprep.subr.bf16.mxu0 %v5141_v24 }
 0x3cc   :  { %4422 = vmatpush2.bf16.msra.mxu0 %v5140_v32 }
 0x3cd   :  { %4423 = vmatprep.subr.bf16.mxu0 %v5139_v10 }
 0x3d0   :  { %4424 = vmatpush2.bf16.msra.mxu0 %v5138_v18 }
 0x3d1   :  { %4425 = vmatprep.subr.bf16.mxu0 %v5137_v55 }
 0x3d4   :  { %4426 = vmatpush2.bf16.msra.mxu0 %v5136_v50 }
 0x3d5   :  { %4427 = vmatprep.subr.bf16.mxu0 %v5135_v19 }
 0x3d8   :  { %4428 = vmatpush2.bf16.msra.mxu0 %v5134_v33 }
 0x3d9   :  { %4429 = vmatprep.subr.bf16.mxu0 %v6861_v22  ;;  %v5238_v22 = vld [vmem:[%s6948_s3 + $0x28] ss:$16 sps:$4 sm:$0xff]  }
 0x3dc   :  { %4430 = vmatpush2.bf16.msra.mxu0 %v6855_v47 }
 0x3dd   :  { %4431 = vmatprep.subr.bf16.mxu0 %v6837_v16 }
 0x3e0   :  { %4432 = vmatpush2.bf16.msra.mxu0 %v6831_v6 }
 0x3e3   :  { %4434 = vmatmul.mubr.bf16.vlgmr.msra.gmra.mxu0 %v5235_v43 }
 0x3e4   :  { %4443 = vmatprep.mubr.bf16.mxu0 %v5240_v45 }
 0x3eb   :  { %4444 = vmatmul.mubr.bf16.gmra.mxu0 %v5238_v22 }
 0x423   :  { %v4382_v47 = vpop.f32.mrf.mxu0 }
 0x424   :  { %v4383_v26 = vadd.f32 %v4382_v47, %v3971_v59 }
 0x425   :  { %v4384_v12 = vpop.f32.mrf.mxu0 }
 0x426   :  { %v4385_v48 = vadd.f32 %v4384_v12, %v3971_v59 }
 0x427   :  { %v4386_v16 = vpop.f32.mrf.mxu0 }
 0x428   :  { %v4387_v1 = vadd.f32 %v4386_v16, %v3976_v23 }
 0x429   :  { %v4388_v13 = vpop.f32.mrf.mxu0 }
 0x42a   :  { %v4389_v2 = vadd.f32 %v4388_v13, %v3976_v23 }
 0x42b   :  { %v4392_v34 = vpop.f32.mrf.mxu0 }
 0x42c   :  { %v4393_v58 = vadd.f32 %v4392_v34, %v3981_v9 }
 0x42d   :  { %v4394_v3 = vpop.f32.mrf.mxu0 }
 0x42e   :  { %v4395_v25 = vadd.f32 %v4394_v3, %v3981_v9 }
 0x42f   :  { %v4396_v36 = vpop.f32.mrf.mxu0 }
 0x430   :  { %v4397_v41 = vadd.f32 %v4396_v36, %v3986_v29 }
 0x431   :  { %v4398_v6 = vpop.f32.mrf.mxu0 }
 0x432   :  { %v4399_v30 = vadd.f32 %v4398_v6, %v3986_v29 }
 0x4a3   :  { %v4435_v21 = vpop.f32.mrf.mxu0 }
 0x4a4   :  { %v4436_v8 = vadd.f32 %v4435_v21, %v4383_v26 }
 0x4a5   :  { %v4437_v60 = vpop.f32.mrf.mxu0 }
 0x4a6   :  { %v4454_v46 = vmax.f32 %v4436_v8, 0.0  ;;  %v4438_v31 = vadd.f32 %v4437_v60, %v4385_v48 }
 0x4a7   :  { %v4439_v39 = vpop.f32.mrf.mxu0 }
 0x4a8   :  { %4882 = vst [vmem:[%s6950_s5 + $0x40] sm:$0xff] %v4454_v46  ;;  %v4455_v63 = vmax.f32 %v4438_v31, 0.0  ;;  %v4440_v27 = vadd.f32 %v4439_v39, %v4387_v1 }
 0x4a9   :  { %v4441_v7 = vpop.f32.mrf.mxu0 }
 0x4aa   :  { %4883 = vst [vmem:[%s6950_s5 + $0x48] sm:$0xff] %v4455_v63  ;;  %v4456_v15 = vmax.f32 %v4440_v27, 0.0  ;;  %v4442_v38 = vadd.f32 %v4441_v7, %v4389_v2 }
 0x4ab   :  { %v4445_v5 = vpop.f32.mrf.mxu0 }
 0x4ac   :  { %4884 = vst [vmem:[%s6950_s5 + $0x50] sm:$0xff] %v4456_v15  ;;  %v4457_v20 = vmax.f32 %v4442_v38, 0.0  ;;  %v4446_v24 = vadd.f32 %v4445_v5, %v4393_v58 }
 0x4ad   :  { %v4447_v11 = vpop.f32.mrf.mxu0 }
 0x4ae   :  { %4885 = vst [vmem:[%s6950_s5 + $0x58] sm:$0xff] %v4457_v20  ;;  %v4458_v42 = vmax.f32 %v4446_v24, 0.0  ;;  %v4448_v53 = vadd.f32 %v4447_v11, %v4395_v25 }
 0x4af   :  { %v4449_v44 = vpop.f32.mrf.mxu0 }
 0x4b0   :  { %4886 = vst [vmem:[%s6950_s5 + $0x60] sm:$0xff] %v4458_v42  ;;  %v4459_v32 = vmax.f32 %v4448_v53, 0.0  ;;  %v4450_v17 = vadd.f32 %v4449_v44, %v4397_v41 }
 0x4b1   :  { %v4451_v49 = vpop.f32.mrf.mxu0 }
 0x4b2   :  { %4887 = vst [vmem:[%s6950_s5 + $0x68] sm:$0xff] %v4459_v32  ;;  %v4460_v56 = vmax.f32 %v4450_v17, 0.0  ;;  %v4452_v10 = vadd.f32 %v4451_v49, %v4399_v30 }
 0x4b4   :  { %4888 = vst [vmem:[%s6950_s5 + $0x70] sm:$0xff] %v4460_v56  ;;  %v4461_v52 = vmax.f32 %v4452_v10, 0.0 }
 0x4b6   :  { %4889 = vst [vmem:[%s6950_s5 + $0x78] sm:$0xff] %v4461_v52 }

// kernel: attention_forward.1
= control target key start
LH: loop header
LB: loop body
LE: loop exit
PB: predicated region body
PF: predicated region fallthrough
CT: control target
= control target key end

     0   :  { %v6954_v0 = vmov 0   ;;  %vm732_vm0 = vcmask 1043456   ;;  %vm635_vm1 = vcmask 64512   ;;  %s6945_s2 = inlined_call_operand.vmem [shape: f32[512,1], index: 2, kind: input, shape index: {}]   ;;  %s6946_s0 = inlined_call_operand.vmem [shape: bf16[2,8,256], index: 0, kind: input, shape index: {}]   ;;  %s6947_s1 = inlined_call_operand.vmem [shape: bf16[512,8], index: 1, kind: input, shape index: {}]   ;;  %s6948_s3 = inlined_call_operand.vmem [shape: bf16[32,512], index: 3, kind: input, shape index: {}]   ;;  %s6949_s4 = inlined_call_operand.vmem [shape: f32[32,1], index: 4, kind: input, shape index: {}]   ;;  %s6950_s5 = inlined_call_operand.vmem [shape: f32[2,32,256], index: 5, kind: output, shape index: {}]  }
   0x1   :  { %5148 = vset.pattern.permute.xlu1 %v6954_v0  ;;  %5147 = vset.pattern.permute.xlu0 %v6954_v0  ;;  %v5277_v1 = vld [vmem:[%s6945_s2 + $0x70] sm:$0xff]  ;;  %v5282_v2 = vld [vmem:[%s6945_s2 + $0x60] sm:$0xff]  ;;  %v5292_v6 = vld [vmem:[%s6945_s2 + $0x78] sm:$0xff] }
   0x2   :  { %v85_v3 = vld [vmem:[%s6946_s0] sm:$0xff]  ;;  %222 = vperm.xlu0 %5147, %v5277_v1   ;;  %212 = vperm.xlu1 %5148, %v5282_v2   ;;  %v5297_v7 = vld [vmem:[%s6945_s2 + $0x68] sm:$0xff]  ;;  %v5310_v10 = vld [vmem:[%s6945_s2 + $0x58] sm:$0xff] }
   0x3   :  { %v4508_v4 = vcombine.high %v85_v3, %v85_v3  ;;  %v4507_v5 = vcombine.low %v85_v3, %v85_v3  ;;  %771 = vmatprep.mubr.bf16.mxu0 %v6954_v0  ;;  %v5152_v9 = vld [vmem:[%s6947_s1] sm:$0xff]   ;;  %v5315_v11 = vld [vmem:[%s6945_s2 + $0x50] sm:$0xff]  ;;  %v5324_v12 = vld [vmem:[%s6945_s2 + $0x48] sm:$0xff] }
   0x4   :  { %v5329_v13 = vld [vmem:[%s6945_s2 + $0x40] sm:$0xff]  ;;  %v5153_v14 = vld [vmem:[%s6947_s1 + $0x8] sm:$0xff]   ;;  %v5339_v15 = vld [vmem:[%s6945_s2 + $0x38] sm:$0xff] }
   0x5   :  { %4509 = vmatprep.subr.msk.bf16.mxu0 %vm732_vm0, %v4508_v4  ;;  %v734_v8 = vsel %vm732_vm0, %v4507_v5, 0  ;;  %v5344_v16 = vld [vmem:[%s6945_s2 + $0x30] sm:$0xff]  ;;  %v5353_v17 = vld [vmem:[%s6945_s2 + $0x28] sm:$0xff]  ;;  %v5358_v18 = vld [vmem:[%s6945_s2 + $0x20] sm:$0xff] }
   0x6   :  { %754 = vmatpush1.bf16.msra.mxu0 %v734_v8  ;;  %227 = vperm.xlu0 %5147, %v5292_v6   ;;  %v5154_v19 = vld [vmem:[%s6947_s1 + $0x10] sm:$0xff]   ;;  %v5368_v20 = vld [vmem:[%s6945_s2 + $0x18] sm:$0xff]  ;;  %v5382_v22 = vld [vmem:[%s6945_s2 + $0x8] sm:$0xff] }
   0x7   :  { %217 = vperm.xlu1 %5148, %v5297_v7   ;;  %v5373_v21 = vld [vmem:[%s6945_s2 + $0x10] sm:$0xff]  ;;  %v5387_v23 = vld [vmem:[%s6945_s2] sm:$0xff]  ;;  %v5155_v24 = vld [vmem:[%s6947_s1 + $0x18] sm:$0xff]  }
   0x8   :  { %v5397_v25 = vld [vmem:[%s6945_s2 + $0xf8] sm:$0xff]  ;;  %v5402_v26 = vld [vmem:[%s6945_s2 + $0xf0] sm:$0xff]  ;;  %v5411_v27 = vld [vmem:[%s6945_s2 + $0xe8] sm:$0xff] }
   0x9   :  { %4510 = vmatmul.mubr.msk.bf16.vlgmr.msra.gmra.mxu0 %vm635_vm1, %v5152_v9  ;;  %v5416_v28 = vld [vmem:[%s6945_s2 + $0xe0] sm:$0xff]  ;;  %v5426_v30 = vld [vmem:[%s6945_s2 + $0xd8] sm:$0xff]  ;;  %v5431_v31 = vld [vmem:[%s6945_s2 + $0xd0] sm:$0xff] }
   0xa   :  { %781 = vmatprep.mubr.bf16.mxu0 %v6954_v0  ;;  %202 = vperm.xlu0 %5147, %v5315_v11   ;;  %v5156_v29 = vld [vmem:[%s6947_s1 + $0x20] sm:$0xff]   ;;  %v5437_v32 = vld [vmem:[%s6945_s2 + $0xc8] sm:$0xff]  ;;  %v5453_v35 = vld [vmem:[%s6945_s2 + $0xb8] sm:$0xff] }
   0xb   :  { %207 = vperm.xlu1 %5148, %v5310_v10   ;;  %v5445_v33 = vld [vmem:[%s6945_s2 + $0xc0] sm:$0xff]  ;;  %v5157_v34 = vld [vmem:[%s6947_s1 + $0x28] sm:$0xff]   ;;  %v5460_v36 = vld [vmem:[%s6945_s2 + $0xb0] sm:$0xff] }
   0xc   :  { %v5466_v37 = vld [vmem:[%s6945_s2 + $0xa8] sm:$0xff]  ;;  %v5471_v38 = vld [vmem:[%s6945_s2 + $0xa0] sm:$0xff]  ;;  %v5158_v39 = vld [vmem:[%s6947_s1 + $0x30] sm:$0xff]  }
   0xd   :  { %v5482_v40 = vld [vmem:[%s6945_s2 + $0x98] sm:$0xff]  ;;  %v5489_v41 = vld [vmem:[%s6945_s2 + $0x90] sm:$0xff]  ;;  %v5495_v42 = vld [vmem:[%s6945_s2 + $0x88] sm:$0xff] }
   0xe   :  { %192 = vperm.xlu0 %5147, %v5329_v13   ;;  %v5500_v43 = vld [vmem:[%s6945_s2 + $0x80] sm:$0xff]  ;;  %v5159_v44 = vld [vmem:[%s6947_s1 + $0x38] sm:$0xff]   ;;  %v5518_v46 = vld [vmem:[%s6945_s2 + $0x170] sm:$0xff] }
   0xf   :  { %197 = vperm.xlu1 %5148, %v5324_v12   ;;  %v5511_v45 = vld [vmem:[%s6945_s2 + $0x178] sm:$0xff]  ;;  %v5524_v47 = vld [vmem:[%s6945_s2 + $0x168] sm:$0xff]  ;;  %v5529_v48 = vld [vmem:[%s6945_s2 + $0x160] sm:$0xff] }
  0x10   :  { %v5160_v49 = vld [vmem:[%s6947_s1 + $0x40] sm:$0xff]   ;;  %v5540_v50 = vld [vmem:[%s6945_s2 + $0x158] sm:$0xff]  ;;  %v5547_v51 = vld [vmem:[%s6945_s2 + $0x150] sm:$0xff] }
  0x11   :  { %4511 = vmatmul.mubr.msk.bf16.gmra.mxu0 %vm635_vm1, %v5153_v14  ;;  %v5556_v52 = vld [vmem:[%s6945_s2 + $0x148] sm:$0xff]  ;;  %v5561_v53 = vld [vmem:[%s6945_s2 + $0x140] sm:$0xff]  ;;  %v5571_v55 = vld [vmem:[%s6945_s2 + $0x138] sm:$0xff] }
  0x12   :  { %791 = vmatprep.mubr.bf16.mxu0 %v6954_v0  ;;  %182 = vperm.xlu0 %5147, %v5344_v16   ;;  %v5161_v54 = vld [vmem:[%s6947_s1 + $0x48] sm:$0xff]   ;;  %v5576_v56 = vld [vmem:[%s6945_s2 + $0x130] sm:$0xff]  ;;  %v5590_v58 = vld [vmem:[%s6945_s2 + $0x120] sm:$0xff] }
  0x13   :  { %187 = vperm.xlu1 %5148, %v5339_v15   ;;  %v5585_v57 = vld [vmem:[%s6945_s2 + $0x128] sm:$0xff]  ;;  %v5162_v59 = vld [vmem:[%s6947_s1 + $0x50] sm:$0xff]   ;;  %v5600_v60 = vld [vmem:[%s6945_s2 + $0x118] sm:$0xff] }
  0x14   :  { %v5605_v61 = vld [vmem:[%s6945_s2 + $0x110] sm:$0xff]  ;;  %v5614_v62 = vld [vmem:[%s6945_s2 + $0x108] sm:$0xff]  ;;  %v5619_v63 = vld [vmem:[%s6945_s2 + $0x100] sm:$0xff] }
  0x15   :  { %v5163_v3 = vld [vmem:[%s6947_s1 + $0x58] sm:$0xff]   ;;  %v5634_v5 = vld [vmem:[%s6945_s2 + $0x1f0] sm:$0xff]  ;;  %v5643_v8 = vld [vmem:[%s6945_s2 + $0x1e8] sm:$0xff] }
  0x16   :  { %172 = vperm.xlu0 %5147, %v5358_v18   ;;  %v5629_v4 = vld [vmem:[%s6945_s2 + $0x1f8] sm:$0xff]  ;;  %v5648_v9 = vld [vmem:[%s6945_s2 + $0x1e0] sm:$0xff] }
  0x17   :  { %177 = vperm.xlu1 %5148, %v5353_v17   ;;  %v5164_v14 = vld [vmem:[%s6947_s1 + $0x60] sm:$0xff]  }
  0x19   :  { %4512 = vmatmul.mubr.msk.bf16.gmra.mxu0 %vm635_vm1, %v5154_v19  ;;  %v5658_v19 = vld [vmem:[%s6945_s2 + $0x1d8] sm:$0xff] }
  0x1a   :  { %801 = vmatprep.mubr.bf16.mxu0 %v6954_v0  ;;  %162 = vperm.xlu0 %5147, %v5373_v21  }
  0x1b   :  { %167 = vperm.xlu1 %5148, %v5368_v20  }
  0x1e   :  { %152 = vperm.xlu0 %5147, %v5387_v23  }
  0x1f   :  { %157 = vperm.xlu1 %5148, %v5382_v22  }
  0x21   :  { %4513 = vmatmul.mubr.msk.bf16.gmra.mxu0 %vm635_vm1, %v5155_v24  ;;  %v5663_v24 = vld [vmem:[%s6945_s2 + $0x1d0] sm:$0xff] }
  0x22   :  { %811 = vmatprep.mubr.bf16.mxu0 %v6954_v0  ;;  %302 = vperm.xlu0 %5147, %v5402_v26  }
  0x23   :  { %307 = vperm.xlu1 %5148, %v5397_v25  }
  0x26   :  { %292 = vperm.xlu0 %5147, %v5416_v28  }
  0x27   :  { %297 = vperm.xlu1 %5148, %v5411_v27  }
  0x29   :  { %4514 = vmatmul.mubr.msk.bf16.gmra.mxu0 %vm635_vm1, %v5156_v29  ;;  %v5672_v29 = vld [vmem:[%s6945_s2 + $0x1c8] sm:$0xff] }
  0x2a   :  { %821 = vmatprep.mubr.bf16.mxu0 %v6954_v0  ;;  %282 = vperm.xlu0 %5147, %v5431_v31  }
  0x2b   :  { %287 = vperm.xlu1 %5148, %v5426_v30  }
  0x2e   :  { %272 = vperm.xlu0 %5147, %v5445_v33  }
  0x2f   :  { %277 = vperm.xlu1 %5148, %v5437_v32  }
  0x31   :  { %4515 = vmatmul.mubr.msk.bf16.gmra.mxu0 %vm635_vm1, %v5157_v34  ;;  %v5677_v34 = vld [vmem:[%s6945_s2 + $0x1c0] sm:$0xff] }
  0x32   :  { %831 = vmatprep.mubr.bf16.mxu0 %v6954_v0  ;;  %262 = vperm.xlu0 %5147, %v5460_v36  }
  0x33   :  { %267 = vperm.xlu1 %5148, %v5453_v35  }
  0x36   :  { %252 = vperm.xlu0 %5147, %v5471_v38  }
  0x37   :  { %257 = vperm.xlu1 %5148, %v5466_v37  }
  0x39   :  { %4516 = vmatmul.mubr.msk.bf16.gmra.mxu0 %vm635_vm1, %v5158_v39  ;;  %v5165_v39 = vld [vmem:[%s6947_s1 + $0x68] sm:$0xff]  }
  0x3a   :  { %841 = vmatprep.mubr.bf16.mxu0 %v6954_v0  ;;  %242 = vperm.xlu0 %5147, %v5489_v41  }
  0x3b   :  { %247 = vperm.xlu1 %5148, %v5482_v40  }
  0x3e   :  { %232 = vperm.xlu0 %5147, %v5500_v43  }
  0x3f   :  { %237 = vperm.xlu1 %5148, %v5495_v42  }
  0x41   :  { %4517 = vmatmul.mubr.msk.bf16.gmra.mxu0 %vm635_vm1, %v5159_v44  ;;  %v5687_v44 = vld [vmem:[%s6945_s2 + $0x1b8] sm:$0xff] }
  0x42   :  { %851 = vmatprep.mubr.bf16.mxu0 %v6954_v0  ;;  %382 = vperm.xlu0 %5147, %v5518_v46  }
  0x43   :  { %387 = vperm.xlu1 %5148, %v5511_v45  }
  0x46   :  { %372 = vperm.xlu0 %5147, %v5529_v48  }
  0x47   :  { %377 = vperm.xlu1 %5148, %v5524_v47  }
  0x49   :  { %4518 = vmatmul.mubr.msk.bf16.gmra.mxu0 %vm635_vm1, %v5160_v49  ;;  %v5692_v49 = vld [vmem:[%s6945_s2 + $0x1b0] sm:$0xff] }
  0x4a   :  { %861 = vmatprep.mubr.bf16.mxu0 %v6954_v0  ;;  %362 = vperm.xlu0 %5147, %v5547_v51  }
  0x4b   :  { %367 = vperm.xlu1 %5148, %v5540_v50  }
  0x4e   :  { %352 = vperm.xlu0 %5147, %v5561_v53  }
  0x4f   :  { %357 = vperm.xlu1 %5148, %v5556_v52  }
  0x51   :  { %4519 = vmatmul.mubr.msk.bf16.gmra.mxu0 %vm635_vm1, %v5161_v54  ;;  %v5701_v54 = vld [vmem:[%s6945_s2 + $0x1a8] sm:$0xff] }
  0x52   :  { %871 = vmatprep.mubr.bf16.mxu0 %v6954_v0  ;;  %342 = vperm.xlu0 %5147, %v5576_v56   ;;  %7012 = vst [vmem:[#allocation3_spill] sm:$0xff] %v5701_v54 }
  0x53   :  { %347 = vperm.xlu1 %5148, %v5571_v55  }
  0x56   :  { %332 = vperm.xlu0 %5147, %v5590_v58  }
  0x57   :  { %337 = vperm.xlu1 %5148, %v5585_v57  }
  0x59   :  { %4520 = vmatmul.mubr.msk.bf16.gmra.mxu0 %vm635_vm1, %v5162_v59  ;;  %v5706_v59 = vld [vmem:[%s6945_s2 + $0x1a0] sm:$0xff] }
  0x5a   :  { %881 = vmatprep.mubr.bf16.mxu0 %v6954_v0  ;;  %322 = vperm.xlu0 %5147, %v5605_v61   ;;  %7013 = vst [vmem:[#allocation4_spill] sm:$0xff] %v5706_v59 }
  0x5b   :  { %327 = vperm.xlu1 %5148, %v5600_v60  }
  0x5e   :  { %312 = vperm.xlu0 %5147, %v5619_v63  }
  0x5f   :  { %317 = vperm.xlu1 %5148, %v5614_v62  }
  0x61   :  { %4521 = vmatmul.mubr.msk.bf16.gmra.mxu0 %vm635_vm1, %v5163_v3  ;;  %v5166_v3 = vld [vmem:[%s6947_s1 + $0x70] sm:$0xff]  }
  0x62   :  { %891 = vmatprep.mubr.bf16.mxu0 %v6954_v0  ;;  %462 = vperm.xlu0 %5147, %v5634_v5  }
  0x63   :  { %467 = vperm.xlu1 %5148, %v5629_v4  }
  0x66   :  { %452 = vperm.xlu0 %5147, %v5648_v9  }
  0x67   :  { %457 = vperm.xlu1 %5148, %v5643_v8  }
  0x69   :  { %4522 = vmatmul.mubr.msk.bf16.gmra.mxu0 %vm635_vm1, %v5164_v14  ;;  %v5716_v14 = vld [vmem:[%s6945_s2 + $0x198] sm:$0xff] }
  0x6a   :  { %901 = vmatprep.mubr.bf16.mxu0 %v6954_v0  ;;  %442 = vperm.xlu0 %5147, %v5663_v24  }
  0x6b   :  { %447 = vperm.xlu1 %5148, %v5658_v19  }
  0x6e   :  { %432 = vperm.xlu0 %5147, %v5677_v34  }
  0x6f   :  { %437 = vperm.xlu1 %5148, %v5672_v29  }
  0x71   :  { %4523 = vmatmul.mubr.msk.bf16.gmra.mxu0 %vm635_vm1, %v5165_v39  ;;  %v5721_v39 = vld [vmem:[%s6945_s2 + $0x190] sm:$0xff] }
  0x72   :  { %911 = vmatprep.mubr.bf16.mxu0 %v6954_v0  ;;  %422 = vperm.xlu0 %5147, %v5692_v49   ;;  %7014 = vst [vmem:[#allocation5_spill] sm:$0xff] %v5721_v39 }
  0x73   :  { %427 = vperm.xlu1 %5148, %v5687_v44  }
  0x76   :  { %412 = vperm.xlu0 %5147, %v5706_v59   ;;  %v5730_v59 = vld [vmem:[%s6945_s2 + $0x188] sm:$0xff] }
  0x77   :  { %417 = vperm.xlu1 %5148, %v5701_v54   ;;  %v5735_v54 = vld [vmem:[%s6945_s2 + $0x180] sm:$0xff] }
  0x79   :  { %4524 = vmatmul.mubr.msk.bf16.gmra.mxu0 %vm635_vm1, %v5166_v3  ;;  %v5167_v3 = vld [vmem:[%s6947_s1 + $0x78] sm:$0xff]  }
  0x7a   :  { %921 = vmatprep.mubr.bf16.mxu0 %v6954_v0  ;;  %402 = vperm.xlu0 %5147, %v5721_v39   ;;  %v5168_v39 = vld [vmem:[%s6947_s1 + $0x80] sm:$0xff]  }
  0x7b   :  { %407 = vperm.xlu1 %5148, %v5716_v14  }
  0x7e   :  { %392 = vperm.xlu0 %5147, %v5735_v54  }
  0x7f   :  { %397 = vperm.xlu1 %5148, %v5730_v59  }
  0x81   :  { %4525 = vmatmul.mubr.msk.bf16.gmra.mxu0 %vm635_vm1, %v5167_v3 }
  0x82   :  { %931 = vmatprep.mubr.bf16.mxu0 %v6954_v0  ;;  %2448 = vperm.xlu0 %5147, %v5277_v1   ;;  %v5169_v1 = vld [vmem:[%s6947_s1 + $0x88] sm:$0xff]  }
  0x83   :  { %2453 = vperm.xlu1 %5148, %v5292_v6   ;;  %v5171_v6 = vld [vmem:[%s6947_s1 + $0x98] sm:$0xff]  }
  0x86   :  { %2438 = vperm.xlu0 %5147, %v5282_v2   ;;  %v5170_v2 = vld [vmem:[%s6947_s1 + $0x90] sm:$0xff]  }
  0x87   :  { %2443 = vperm.xlu1 %5148, %v5297_v7   ;;  %v5778_v7 = vpop.permute.xlu0 %222 }
  0x89   :  { %4526 = vmatmul.mubr.msk.bf16.gmra.mxu0 %vm635_vm1, %v5168_v39 }
  0x8a   :  { %941 = vmatprep.mubr.bf16.mxu0 %v6954_v0  ;;  %2428 = vperm.xlu0 %5147, %v5315_v11   ;;  %v5172_v11 = vld [vmem:[%s6947_s1 + $0xa0] sm:$0xff]  }
  0x8b   :  { %2433 = vperm.xlu1 %5148, %v5310_v10   ;;  %v5781_v10 = vpop.permute.xlu1 %212 }
  0x8e   :  { %2418 = vperm.xlu0 %5147, %v5329_v13  }
  0x8f   :  { %2423 = vperm.xlu1 %5148, %v5324_v12   ;;  %v5789_v12 = vpop.permute.xlu0 %227  ;;  %v5793_v13 = vpop.permute.xlu1 %217 }
  0x91   :  { %4527 = vmatmul.mubr.msk.bf16.gmra.mxu0 %vm635_vm1, %v5169_v1 }
  0x92   :  { %951 = vmatprep.mubr.bf16.mxu0 %v6954_v0  ;;  %2408 = vperm.xlu0 %5147, %v5344_v16   ;;  %v5173_v16 = vld [vmem:[%s6947_s1 + $0xa8] sm:$0xff]  }
  0x93   :  { %2413 = vperm.xlu1 %5148, %v5339_v15   ;;  %v5799_v15 = vpop.permute.xlu0 %202 }
  0x96   :  { %2398 = vperm.xlu0 %5147, %v5358_v18  }
  0x97   :  { %2403 = vperm.xlu1 %5148, %v5353_v17   ;;  %v5804_v17 = vpop.permute.xlu1 %207  ;;  %v5810_v18 = vpop.permute.xlu0 %192 }
  0x99   :  { %4528 = vmatmul.mubr.msk.bf16.gmra.mxu0 %vm635_vm1, %v5170_v2 }
  0x9a   :  { %961 = vmatprep.mubr.bf16.mxu0 %v6954_v0  ;;  %2388 = vperm.xlu0 %5147, %v5373_v21   ;;  %v5174_v21 = vld [vmem:[%s6947_s1 + $0xb0] sm:$0xff]  }
  0x9b   :  { %2393 = vperm.xlu1 %5148, %v5368_v20   ;;  %v5814_v20 = vpop.permute.xlu1 %197 }
  0x9e   :  { %2378 = vperm.xlu0 %5147, %v5387_v23  }
  0x9f   :  { %2383 = vperm.xlu1 %5148, %v5382_v22   ;;  %v5821_v22 = vpop.permute.xlu0 %182  ;;  %v5824_v23 = vpop.permute.xlu1 %187 }
  0xa1   :  { %4529 = vmatmul.mubr.msk.bf16.gmra.mxu0 %vm635_vm1, %v5171_v6 }
  0xa2   :  { %971 = vmatprep.mubr.bf16.mxu0 %v6954_v0  ;;  %2528 = vperm.xlu0 %5147, %v5402_v26  }
  0xa3   :  { %2533 = vperm.xlu1 %5148, %v5397_v25   ;;  %v5175_v25 = vld [vmem:[%s6947_s1 + $0xb8] sm:$0xff]   ;;  %v5832_v26 = vpop.permute.xlu0 %172 }
  0xa6   :  { %2518 = vperm.xlu0 %5147, %v5416_v28  }
  0xa7   :  { %2523 = vperm.xlu1 %5148, %v5411_v27   ;;  %v5836_v27 = vpop.permute.xlu1 %177  ;;  %v163_v28 = vpop.permute.xlu0 %162 }
  0xa9   :  { %4530 = vmatmul.mubr.msk.bf16.gmra.mxu0 %vm635_vm1, %v5172_v11  ;;  %v5178_v11 = vld [vmem:[%s6947_s1 + $0xd0] sm:$0xff]  }
  0xaa   :  { %981 = vmatprep.mubr.bf16.mxu0 %v6954_v0  ;;  %2508 = vperm.xlu0 %5147, %v5431_v31  }
  0xab   :  { %2513 = vperm.xlu1 %5148, %v5426_v30   ;;  %v5176_v30 = vld [vmem:[%s6947_s1 + $0xc0] sm:$0xff]   ;;  %v168_v31 = vpop.permute.xlu1 %167 }
  0xae   :  { %2498 = vperm.xlu0 %5147, %v5445_v33   ;;  %v153_v33 = vpop.permute.xlu0 %152 }
  0xaf   :  { %2503 = vperm.xlu1 %5148, %v5437_v32  }
  0xb1   :  { %4531 = vmatmul.mubr.msk.bf16.gmra.mxu0 %vm635_vm1, %v5173_v16 }
  0xb2   :  { %991 = vmatprep.mubr.bf16.mxu0 %v6954_v0  ;;  %2488 = vperm.xlu0 %5147, %v5460_v36   ;;  %v158_v36 = vpop.permute.xlu1 %157  ;;  %v5862_v1 = vpop.permute.xlu0 %302 }
  0xb3   :  { %2493 = vperm.xlu1 %5148, %v5453_v35  }
  0xb6   :  { %2478 = vperm.xlu0 %5147, %v5471_v38  }
  0xb7   :  { %2483 = vperm.xlu1 %5148, %v5466_v37  }
  0xb9   :  { %4532 = vmatmul.mubr.msk.bf16.gmra.mxu0 %vm635_vm1, %v5174_v21 }
  0xba   :  { %1001 = vmatprep.mubr.bf16.mxu0 %v6954_v0  ;;  %2468 = vperm.xlu0 %5147, %v5489_v41  }
  0xbb   :  { %2473 = vperm.xlu1 %5148, %v5482_v40   ;;  %v5177_v40 = vld [vmem:[%s6947_s1 + $0xc8] sm:$0xff]  }
  0xbe   :  { %2458 = vperm.xlu0 %5147, %v5500_v43  }
  0xbf   :  { %2463 = vperm.xlu1 %5148, %v5495_v42  }
  0xc1   :  { %4533 = vmatmul.mubr.msk.bf16.gmra.mxu0 %vm635_vm1, %v5175_v25 }
  0xc2   :  { %1011 = vmatprep.mubr.bf16.mxu0 %v6954_v0  ;;  %2608 = vperm.xlu0 %5147, %v5518_v46  }
  0xc3   :  { %2613 = vperm.xlu1 %5148, %v5511_v45  }
  0xc6   :  { %2598 = vperm.xlu0 %5147, %v5529_v48  }
  0xc7   :  { %2603 = vperm.xlu1 %5148, %v5524_v47  }
  0xc9   :  { %v773_v32 = vpop.f32.mrf.mxu0  ;;  %4534 = vmatmul.mubr.msk.bf16.gmra.mxu0 %vm635_vm1, %v5176_v30 }
  0xca   :  { %1021 = vmatprep.mubr.bf16.mxu0 %v6954_v0  ;;  %2588 = vperm.xlu0 %5147, %v5547_v51   ;;  %v774_v37 = vadd.f32 %v773_v32, %v153_v33 }
  0xcb   :  { %2593 = vperm.xlu1 %5148, %v5540_v50   ;;  %v775_v35 = vpop.f32.mrf.mxu0  ;;  %v5857_v50 = vpop.permute.xlu1 %307 }
  0xcc   :  { %v776_v41 = vadd.f32 %v775_v35, %v153_v33  ;;  %v1092_v45 = vmax.f32 %v774_v37, 0.0  ;;  %v5875_v33 = vpop.permute.xlu0 %292 }
  0xcd   :  { %v777_v38 = vpop.f32.mrf.mxu0 }
  0xce   :  { %v778_v42 = vadd.f32 %v777_v38, %v158_v36  ;;  %2578 = vperm.xlu0 %5147, %v5561_v53   ;;  %v1093_v51 = vmax.f32 %v776_v41, 0.0 }
  0xcf   :  { %2583 = vperm.xlu1 %5148, %v5556_v52   ;;  %v779_v43 = vpop.f32.mrf.mxu0  ;;  %v5873_v30 = vpop.permute.xlu1 %297 }
  0xd0   :  { %v1094_v46 = vmax.f32 %v778_v42, 0.0  ;;  %v780_v47 = vadd.f32 %v779_v43, %v158_v36  ;;  %v5894_v43 = vpop.permute.xlu0 %282 }
  0xd1   :  { %v783_v48 = vpop.f32.mrf.mxu0  ;;  %4535 = vmatmul.mubr.msk.bf16.gmra.mxu0 %vm635_vm1, %v5177_v40  ;;  %v5179_v40 = vld [vmem:[%s6947_s1 + $0xd8] sm:$0xff]   ;;  %7016 = vst [vmem:[#allocation7_spill] sm:$0xff] %v5894_v43 }
  0xd2   :  { %v5859_v39 = vpack.c.bf16 %v1094_v46, %v1092_v45  ;;  %v1095_v3 = vmax.f32 %v780_v47, 0.0  ;;  %1031 = vmatprep.mubr.bf16.mxu0 %v6954_v0  ;;  %2568 = vperm.xlu0 %5147, %v5576_v56   ;;  %v784_v53 = vadd.f32 %v783_v48, %v163_v28 }
  0xd3   :  { %2573 = vperm.xlu1 %5148, %v5571_v55   ;;  %v785_v52 = vpop.f32.mrf.mxu0  ;;  %v5891_v41 = vpop.permute.xlu1 %287 }
  0xd4   :  { %v5866_v2 = vpack.c.bf16 %v1095_v3, %v1093_v51  ;;  %v786_v16 = vadd.f32 %v785_v52, %v163_v28  ;;  %v1096_v55 = vmax.f32 %v784_v53, 0.0  ;;  %7015 = vst [vmem:[#allocation6_spill] sm:$0xff] %v5891_v41  ;;  %v5180_v3 = vld [vmem:[%s6947_s1 + $0xe0] sm:$0xff]  }
  0xd5   :  { %v787_v6 = vpop.f32.mrf.mxu0 }
  0xd6   :  { %v788_v21 = vadd.f32 %v787_v6, %v168_v31  ;;  %2558 = vperm.xlu0 %5147, %v5590_v58   ;;  %v1097_v36 = vmax.f32 %v786_v16, 0.0 }
  0xd7   :  { %2563 = vperm.xlu1 %5148, %v5585_v57   ;;  %v789_v25 = vpop.f32.mrf.mxu0 }
  0xd8   :  { %v1098_v56 = vmax.f32 %v788_v21, 0.0  ;;  %v790_v32 = vadd.f32 %v789_v25, %v168_v31 }
  0xd9   :  { %v793_v35 = vpop.f32.mrf.mxu0  ;;  %4536 = vmatmul.mubr.msk.bf16.gmra.mxu0 %vm635_vm1, %v5178_v11  ;;  %v5181_v11 = vld [vmem:[%s6947_s1 + $0xe8] sm:$0xff]  }
  0xda   :  { %v5878_v37 = vpack.c.bf16 %v1098_v56, %v1096_v55  ;;  %v1099_v28 = vmax.f32 %v790_v32, 0.0  ;;  %1041 = vmatprep.mubr.bf16.mxu0 %v6954_v0  ;;  %2548 = vperm.xlu0 %5147, %v5605_v61   ;;  %v794_v58 = vadd.f32 %v793_v35, %v5832_v26  ;;  %v7023_v32 = vld [vmem:[#allocation3_spill] sm:$0xff]  ;;  %v7024_v35 = vld [vmem:[#allocation4_spill] sm:$0xff] }
  0xdb   :  { %2553 = vperm.xlu1 %5148, %v5600_v60   ;;  %v5883_v57 = vpop.f32.mrf.mxu0 }
  0xdc   :  { %v5886_v31 = vpack.c.bf16 %v1099_v28, %v1097_v36  ;;  %v1100_v61 = vmax.f32 %v794_v58, 0.0 }
  0xdd   :  { %v797_v38 = vpop.f32.mrf.mxu0 }
  0xde   :  { %v798_v42 = vadd.f32 %v797_v38, %v5836_v27  ;;  %2538 = vperm.xlu0 %5147, %v5619_v63   ;;  %v5912_v63 = vpop.permute.xlu0 %272 }
  0xdf   :  { %2543 = vperm.xlu1 %5148, %v5614_v62   ;;  %v5898_v60 = vpop.f32.mrf.mxu0  ;;  %v5910_v62 = vpop.permute.xlu1 %277  ;;  %7018 = vst [vmem:[#allocation9_spill] sm:$0xff] %v5912_v63 }
  0xe0   :  { %v1102_v45 = vmax.f32 %v798_v42, 0.0  ;;  %7017 = vst [vmem:[#allocation8_spill] sm:$0xff] %v5910_v62  ;;  %v5183_v42 = vld [vmem:[%s6947_s1 + $0xf8] sm:$0xff]  }
  0xe1   :  { %v5900_v46 = vpop.f32.mrf.mxu0  ;;  %4537 = vmatmul.mubr.msk.bf16.gmra.mxu0 %vm635_vm1, %v5179_v40 }
  0xe2   :  { %v5903_v47 = vpack.c.bf16 %v1102_v45, %v1100_v61  ;;  %1051 = vmatprep.mubr.bf16.mxu0 %v6954_v0  ;;  %2688 = vperm.xlu0 %5147, %v5634_v5   ;;  %v5929_v53 = vpop.permute.xlu0 %262  ;;  %v1740_v45 = vld [vmem:[%s6949_s4] sm:$0xff] }
  0xe3   :  { %2693 = vperm.xlu1 %5148, %v5629_v4   ;;  %v5908_v48 = vpop.f32.mrf.mxu0  ;;  %v5926_v5 = vpop.permute.xlu1 %267  ;;  %7020 = vst [vmem:[#allocation11_spill] sm:$0xff] %v5929_v53 }
  0xe4   :  { %7019 = vst [vmem:[#allocation10_spill] sm:$0xff] %v5926_v5 }
  0xe5   :  { %v5914_v51 = vpop.f32.mrf.mxu0 }
  0xe6   :  { %2678 = vperm.xlu0 %5147, %v5648_v9   ;;  %v5949_v16 = vpop.permute.xlu0 %252 }
  0xe7   :  { %2683 = vperm.xlu1 %5148, %v5643_v8   ;;  %v5921_v52 = vpop.f32.mrf.mxu0  ;;  %v5186_v8 = vld [vmem:[%s6948_s3 + $0x4] ss:$16 sps:$4 sm:$0xff]   ;;  %7022 = vst [vmem:[#allocation13_spill] sm:$0xff] %v5949_v16 }
  0xe8   :  { %2156 = vmatprep.mubr.bf16.mxu1 %v5186_v8 }
  0xe9   :  { %v5923_v4 = vpop.f32.mrf.mxu0  ;;  %4538 = vmatmul.mubr.msk.bf16.gmra.mxu0 %vm635_vm1, %v5180_v3 }
  0xea   :  { %1061 = vmatprep.mubr.bf16.mxu0 %v6954_v0  ;;  %2668 = vperm.xlu0 %5147, %v5663_v24   ;;  %v5947_v24 = vpop.permute.xlu1 %257  ;;  %v5962_v56 = vpop.permute.xlu0 %242 }
  0xeb   :  { %2673 = vperm.xlu1 %5148, %v5658_v19   ;;  %v5933_v6 = vpop.f32.mrf.mxu0  ;;  %7021 = vst [vmem:[#allocation12_spill] sm:$0xff] %v5947_v24 }
  0xed   :  { %v5938_v9 = vpop.f32.mrf.mxu0 }
  0xee   :  { %2658 = vperm.xlu0 %5147, %v5677_v34   ;;  %v5182_v34 = vld [vmem:[%s6947_s1 + $0xf0] sm:$0xff]   ;;  %v5960_v55 = vpop.permute.xlu1 %247  ;;  %v233_v38 = vpop.permute.xlu0 %232 }
  0xef   :  { %2663 = vperm.xlu1 %5148, %v5672_v29   ;;  %v5945_v19 = vpop.f32.mrf.mxu0 }
  0xf1   :  { %v5951_v21 = vpop.f32.mrf.mxu0  ;;  %4539 = vmatmul.mubr.msk.bf16.gmra.mxu0 %vm635_vm1, %v5181_v11 }
  0xf2   :  { %1071 = vmatprep.mubr.bf16.mxu0 %v6954_v0  ;;  %2648 = vperm.xlu0 %5147, %v5692_v49   ;;  %v5970_v58 = vpop.permute.xlu1 %237  ;;  %v5986_v11 = vpop.permute.xlu0 %382 }
  0xf3   :  { %2653 = vperm.xlu1 %5148, %v5687_v44   ;;  %v825_v25 = vpop.f32.mrf.mxu0  ;;  %v7025_v44 = vld [vmem:[#allocation5_spill] sm:$0xff]  ;;  %7027 = vst [vmem:[#allocation4_spill] sm:$0xff] %v5986_v11 }
  0xf5   :  { %v827_v29 = vpop.f32.mrf.mxu0 }
  0xf6   :  { %2638 = vperm.xlu0 %5147, %v7024_v35   ;;  %v5984_v8 = vpop.permute.xlu1 %387  ;;  %v6001_v24 = vpop.permute.xlu0 %372 }
  0xf7   :  { %2643 = vperm.xlu1 %5148, %v7023_v32   ;;  %v829_v36 = vpop.f32.mrf.mxu0  ;;  %7026 = vst [vmem:[#allocation3_spill] sm:$0xff] %v5984_v8  ;;  %7029 = vst [vmem:[#allocation14_spill] sm:$0xff] %v6001_v24  ;;  %v826_v24 = vadd.f32 %v825_v25, %v5799_v15 }
  0xf9   :  { %v833_v28 = vpop.f32.mrf.mxu0  ;;  %4540 = vmatmul.mubr.msk.bf16.gmra.mxu0 %vm635_vm1, %v5182_v34  ;;  %v1742_v34 = vld [vmem:[%s6949_s4 + $0x10] sm:$0xff] }
  0xfa   :  { %1081 = vmatprep.mubr.bf16.mxu0 %v6954_v0  ;;  %2628 = vperm.xlu0 %5147, %v7025_v44   ;;  %v5997_v8 = vpop.permute.xlu1 %377 }
  0xfb   :  { %2633 = vperm.xlu1 %5148, %v5716_v14   ;;  %v835_v49 = vpop.f32.mrf.mxu0  ;;  %v1741_v14 = vld [vmem:[%s6949_s4 + $0x8] sm:$0xff]  ;;  %7028 = vst [vmem:[#allocation5_spill] sm:$0xff] %v5997_v8 }
  0xfc   :  { %v836_v53 = vadd.f32 %v835_v49, %v5781_v10  ;;  %v828_v49 = vadd.f32 %v827_v29, %v5804_v17 }
  0xfd   :  { %v837_v40 = vpop.f32.mrf.mxu0 }
  0xfe   :  { %2618 = vperm.xlu0 %5147, %v5735_v54   ;;  %v1743_v54 = vld [vmem:[%s6949_s4 + $0x18] sm:$0xff]  ;;  %v1117_v41 = vmax.f32 %v836_v53, 0.0 }
  0xff   :  { %2623 = vperm.xlu1 %5148, %v5730_v59   ;;  %v839_v61 = vpop.f32.mrf.mxu0 }
 0x101   :  { %v843_v3 = vpop.f32.mrf.mxu0  ;;  %4541 = vmatmul.mubr.msk.bf16.gmra.mxu0 %vm635_vm1, %v5183_v42  ;;  %v840_v42 = vadd.f32 %v839_v61, %v5793_v13  ;;  %v830_v61 = vadd.f32 %v829_v36, %v5804_v17 }
 0x102   :  { %1746 = vperm.xlu0 %5147, %v1740_v45   ;;  %v844_v11 = vadd.f32 %v843_v3, %v5778_v7 }
 0x103   :  { %1751 = vperm.xlu1 %5148, %v1741_v14   ;;  %v845_v59 = vpop.f32.mrf.mxu0  ;;  %v1119_v43 = vmax.f32 %v840_v42, 0.0 }
 0x104   :  { %v846_v35 = vadd.f32 %v845_v59, %v5778_v7  ;;  %v838_v59 = vadd.f32 %v837_v40, %v5793_v13  ;;  %v834_v7 = vadd.f32 %v833_v28, %v5781_v10  ;;  %v1120_v3 = vmax.f32 %v844_v11, 0.0  ;;  %v6009_v40 = vpop.permute.xlu1 %367 }
 0x105   :  { %v847_v32 = vpop.f32.mrf.mxu0  ;;  %v820_v10 = vadd.f32 %v5945_v19, %v5814_v20  ;;  %v818_v19 = vadd.f32 %v5938_v9, %v5814_v20  ;;  %v1114_v11 = vmax.f32 %v828_v49, 0.0 }
 0x106   :  { %v848_v44 = vadd.f32 %v847_v32, %v5789_v12  ;;  %1756 = vperm.xlu0 %5147, %v1742_v34   ;;  %v1121_v5 = vmax.f32 %v846_v35, 0.0  ;;  %v1116_v53 = vmax.f32 %v834_v7, 0.0 }
 0x107   :  { %1761 = vperm.xlu1 %5148, %v1743_v54   ;;  %v849_v0 = vpop.f32.mrf.mxu0  ;;  %v1110_v7 = vmax.f32 %v818_v19, 0.0 }
 0x108   :  { %v850_v16 = vadd.f32 %v849_v0, %v5789_v12  ;;  %v1122_v32 = vmax.f32 %v848_v44, 0.0 }
 0x109   :  { %v853_v63 = vpop.f32.mrf.mxu0 }
 0x10a   :  { %v1123_v62 = vmax.f32 %v850_v16, 0.0  ;;  %3970 = vperm.xlu0 %5147, %v1740_v45   ;;  %v854_v0 = vadd.f32 %v853_v63, %v233_v38  ;;  %v1118_v16 = vmax.f32 %v838_v59, 0.0  ;;  %v6012_v45 = vpop.permute.xlu0 %362  ;;  %v1115_v63 = vmax.f32 %v830_v61, 0.0 }
 0x10b   :  { %3975 = vperm.xlu1 %5148, %v1741_v14   ;;  %v855_v8 = vpop.f32.mrf.mxu0  ;;  %v5032_v14 = vpack.c.bf16 %v1122_v32, %v1120_v3  ;;  %v808_v32 = vadd.f32 %v5914_v51, %v5824_v23 }
 0x10c   :  { %v5033_v12 = vpack.c.bf16 %v1123_v62, %v1121_v5  ;;  %v856_v35 = vadd.f32 %v855_v8, %v233_v38  ;;  %v824_v62 = vadd.f32 %v5951_v21, %v5799_v15  ;;  %v5031_v5 = vpack.c.bf16 %v1119_v43, %v1117_v41 }
 0x10d   :  { %v857_v13 = vpop.f32.mrf.mxu0  ;;  %v1124_v25 = vmax.f32 %v854_v0, 0.0  ;;  %v816_v38 = vadd.f32 %v5933_v6, %v5810_v18  ;;  %v1113_v8 = vmax.f32 %v826_v24, 0.0  ;;  %v5030_v21 = vpack.c.bf16 %v1118_v16, %v1116_v53 }
 0x10e   :  { %v858_v36 = vadd.f32 %v857_v13, %v5970_v58  ;;  %2124 = vmatprep.subr.bf16.mxu1 %v5033_v12  ;;  %3980 = vperm.xlu0 %5147, %v1742_v34   ;;  %v810_v43 = vadd.f32 %v5921_v52, %v5824_v23  ;;  %v814_v6 = vadd.f32 %v5923_v4, %v5810_v18  ;;  %v1112_v59 = vmax.f32 %v824_v62, 0.0 }
 0x10f   :  { %3985 = vperm.xlu1 %5148, %v1743_v54   ;;  %v859_v17 = vpop.f32.mrf.mxu0  ;;  %2125 = vmatpush1.bf16.msra.mxu1 %v5032_v14  ;;  %v1125_v54 = vmax.f32 %v856_v35, 0.0  ;;  %v5029_v42 = vpack.c.bf16 %v1115_v63, %v1113_v8  ;;  %v806_v24 = vadd.f32 %v5908_v48, %v5821_v22  ;;  %v1109_v61 = vmax.f32 %v816_v38, 0.0 }
 0x110   :  { %v1126_v29 = vmax.f32 %v858_v36, 0.0  ;;  %v860_v28 = vadd.f32 %v859_v17, %v5970_v58  ;;  %2126 = vmatprep.subr.bf16.mxu1 %v5031_v5  ;;  %v1111_v58 = vmax.f32 %v820_v10, 0.0  ;;  %v5028_v3 = vpack.c.bf16 %v1114_v11, %v1112_v59 }
 0x111   :  { %v863_v15 = vpop.f32.mrf.mxu0  ;;  %v800_v4 = vadd.f32 %v5898_v60, %v5836_v27  ;;  %v804_v12 = vadd.f32 %v5900_v46, %v5821_v22  ;;  %v1107_v49 = vmax.f32 %v810_v43, 0.0  ;;  %v1108_v16 = vmax.f32 %v814_v6, 0.0  ;;  %v6072_v43 = vpop.permute.xlu0 %352 }
 0x112   :  { %v6023_v34 = vpack.c.bf16 %v1126_v29, %v1124_v25  ;;  %v1127_v41 = vmax.f32 %v860_v28, 0.0  ;;  %v864_v9 = vadd.f32 %v863_v15, %v5962_v56  ;;  %v5027_v13 = vpack.c.bf16 %v1111_v58, %v1109_v61 }
 0x113   :  { %v865_v44 = vpop.f32.mrf.mxu0  ;;  %2127 = vmatpush1.bf16.msra.mxu1 %v5030_v21  ;;  %v1105_v36 = vmax.f32 %v806_v24, 0.0  ;;  %v1106_v14 = vmax.f32 %v808_v32, 0.0  ;;  %v5026_v27 = vpack.c.bf16 %v1110_v7, %v1108_v16  ;;  %v1103_v62 = vmax.f32 %v800_v4, 0.0 }
 0x114   :  { %v6029_v20 = vpack.c.bf16 %v1127_v41, %v1125_v54  ;;  %2128 = vmatprep.subr.bf16.mxu1 %v5029_v42  ;;  %v866_v0 = vadd.f32 %v865_v44, %v5962_v56  ;;  %v1128_v23 = vmax.f32 %v864_v9, 0.0  ;;  %v796_v56 = vadd.f32 %v5883_v57, %v5832_v26 }
 0x115   :  { %v867_v52 = vpop.f32.mrf.mxu0  ;;  %v5025_v17 = vpack.c.bf16 %v1107_v49, %v1105_v36  ;;  %v1104_v5 = vmax.f32 %v804_v12, 0.0  ;;  %v6076_v42 = vpop.permute.xlu0 %342 }
 0x116   :  { %v868_v18 = vadd.f32 %v867_v52, %v5960_v55  ;;  %v1129_v60 = vmax.f32 %v866_v0, 0.0  ;;  %v1101_v53 = vmax.f32 %v796_v56, 0.0 }
 0x117   :  { %v869_v48 = vpop.f32.mrf.mxu0  ;;  %2129 = vmatpush1.bf16.msra.mxu1 %v5028_v3  ;;  %v5024_v57 = vpack.c.bf16 %v1106_v14, %v1104_v5 }
 0x118   :  { %v1130_v51 = vmax.f32 %v868_v18, 0.0  ;;  %v870_v35 = vadd.f32 %v869_v48, %v5960_v55  ;;  %2130 = vmatprep.subr.bf16.mxu1 %v5027_v13  ;;  %v5023_v29 = vpack.c.bf16 %v1103_v62, %v1101_v53 }
 0x119   :  { %v6045_v10 = vpop.f32.mrf.mxu0  ;;  %v6080_v9 = vpop.permute.xlu0 %332 }
 0x11a   :  { %v6047_v22 = vpack.c.bf16 %v1130_v51, %v1128_v23  ;;  %v1131_v46 = vmax.f32 %v870_v35, 0.0  ;;  %v7030_v35 = vld [vmem:[#allocation6_spill] sm:$0xff] }
 0x11b   :  { %v6049_v63 = vpop.f32.mrf.mxu0  ;;  %2131 = vmatpush1.bf16.msra.mxu1 %v5026_v27 }
 0x11c   :  { %v6051_v55 = vpack.c.bf16 %v1131_v46, %v1129_v60  ;;  %2132 = vmatprep.subr.bf16.mxu1 %v5025_v17 }
 0x11d   :  { %v6053_v26 = vpop.f32.mrf.mxu0  ;;  %v6084_v52 = vpop.permute.xlu0 %322 }
 0x11f   :  { %v6055_v25 = vpop.f32.mrf.mxu0  ;;  %2133 = vmatpush1.bf16.msra.mxu1 %v5024_v57 }
 0x120   :  { %2134 = vmatprep.subr.bf16.mxu1 %v5023_v29 }
 0x121   :  { %v6057_v28 = vpop.f32.mrf.mxu0  ;;  %v313_v60 = vpop.permute.xlu0 %312 }
 0x123   :  { %v6059_v38 = vpop.f32.mrf.mxu0  ;;  %2135 = vmatpush1.bf16.msra.mxu1 %v5903_v47 }
 0x124   :  { %2136 = vmatprep.subr.bf16.mxu1 %v5886_v31  ;;  %v6074_v31 = vpop.permute.xlu1 %357 }
 0x125   :  { %v6063_v19 = vpop.f32.mrf.mxu0 }
 0x127   :  { %v889_v8 = vpop.f32.mrf.mxu0  ;;  %2137 = vmatpush1.bf16.msra.mxu1 %v5878_v37 }
 0x128   :  { %2138 = vmatprep.subr.bf16.mxu1 %v5866_v2  ;;  %v6078_v2 = vpop.permute.xlu1 %347 }
 0x129   :  { %v6067_v11 = vpop.f32.mrf.mxu0 }
 0x12b   :  { %v895_v15 = vpop.f32.mrf.mxu0  ;;  %2139 = vmatpush1.bf16.msra.mxu1 %v5859_v39 }
 0x12c   :  { %v6082_v24 = vpop.permute.xlu1 %337 }
 0x12d   :  { %v6070_v21 = vpop.f32.mrf.mxu0 }
 0x12f   :  { %v899_v54 = vpop.f32.mrf.mxu0 }
 0x130   :  { %v6089_v4 = vpop.permute.xlu1 %327 }
 0x131   :  { %v903_v41 = vpop.f32.mrf.mxu0 }
 0x133   :  { %v905_v47 = vpop.f32.mrf.mxu0 }
 0x135   :  { %v907_v58 = vpop.f32.mrf.mxu0 }
 0x137   :  { %v909_v44 = vpop.f32.mrf.mxu0 }
 0x138   :  { %v910_v56 = vadd.f32 %v909_v44, %v7030_v35 }
 0x139   :  { %v913_v37 = vpop.f32.mrf.mxu0 }
 0x13a   :  { %v914_v46 = vadd.f32 %v913_v37, %v5875_v33 }
 0x13b   :  { %v915_v6 = vpop.f32.mrf.mxu0 }
 0x13c   :  { %v916_v48 = vadd.f32 %v915_v6, %v5875_v33  ;;  %v7032_v6 = vld [vmem:[#allocation8_spill] sm:$0xff]  ;;  %v7033_v33 = vld [vmem:[#allocation10_spill] sm:$0xff] }
 0x13d   :  { %v917_v59 = vpop.f32.mrf.mxu0  ;;  %v890_v37 = vadd.f32 %v889_v8, %v7033_v33 }
 0x13e   :  { %v918_v16 = vadd.f32 %v917_v59, %v5873_v30  ;;  %v1149_v53 = vmax.f32 %v916_v48, 0.0  ;;  %v908_v59 = vadd.f32 %v907_v58, %v7030_v35 }
 0x13f   :  { %v919_v39 = vpop.f32.mrf.mxu0 }
 0x140   :  { %v920_v3 = vadd.f32 %v919_v39, %v5873_v30  ;;  %v900_v30 = vadd.f32 %v899_v54, %v7032_v6  ;;  %v1150_v39 = vmax.f32 %v918_v16, 0.0  ;;  %v1146_v35 = vmax.f32 %v908_v59, 0.0 }
 0x141   :  { %v923_v32 = vpop.f32.mrf.mxu0 }
 0x142   :  { %v924_v12 = vadd.f32 %v923_v32, %v5862_v1  ;;  %v1151_v36 = vmax.f32 %v920_v3, 0.0 }
 0x143   :  { %v925_v61 = vpop.f32.mrf.mxu0 }
 0x144   :  { %v926_v0 = vadd.f32 %v925_v61, %v5862_v1  ;;  %v1152_v62 = vmax.f32 %v924_v12, 0.0  ;;  %v7031_v1 = vld [vmem:[#allocation7_spill] sm:$0xff]  ;;  %v1147_v61 = vmax.f32 %v910_v56, 0.0 }
 0x145   :  { %v927_v7 = vpop.f32.mrf.mxu0  ;;  %v906_v5 = vadd.f32 %v905_v47, %v7031_v1  ;;  %v904_v12 = vadd.f32 %v903_v41, %v7031_v1 }
 0x146   :  { %v928_v18 = vadd.f32 %v927_v7, %v5857_v50  ;;  %v1153_v14 = vmax.f32 %v926_v0, 0.0  ;;  %v5047_v7 = vpack.c.bf16 %v1151_v36, %v1149_v53  ;;  %v7036_v53 = vld [vmem:[#allocation12_spill] sm:$0xff] }
 0x147   :  { %v929_v49 = vpop.f32.mrf.mxu0  ;;  %v1145_v54 = vmax.f32 %v906_v5, 0.0 }
 0x148   :  { %v930_v13 = vadd.f32 %v929_v49, %v5857_v50  ;;  %v1154_v23 = vmax.f32 %v928_v18, 0.0  ;;  %v318_v50 = vpop.permute.xlu1 %317  ;;  %v7034_v18 = vld [vmem:[#allocation9_spill] sm:$0xff]  ;;  %v1148_v49 = vmax.f32 %v914_v46, 0.0 }
 0x149   :  { %v933_v51 = vpop.f32.mrf.mxu0  ;;  %v896_v47 = vadd.f32 %v895_v15, %v7034_v18  ;;  %v5045_v8 = vpack.c.bf16 %v1147_v61, %v1145_v54 }
 0x14a   :  { %v1155_v27 = vmax.f32 %v930_v13, 0.0  ;;  %v934_v29 = vadd.f32 %v933_v51, %v313_v60  ;;  %v5048_v44 = vpack.c.bf16 %v1154_v23, %v1152_v62  ;;  %v898_v23 = vadd.f32 %v6070_v21, %v7032_v6  ;;  %v7035_v62 = vld [vmem:[#allocation11_spill] sm:$0xff] }
 0x14b   :  { %v935_v17 = vpop.f32.mrf.mxu0  ;;  %v1143_v51 = vmax.f32 %v900_v30, 0.0  ;;  %v5046_v56 = vpack.c.bf16 %v1150_v39, %v1148_v49  ;;  %v1141_v1 = vmax.f32 %v896_v47, 0.0  ;;  %v1139_v30 = vmax.f32 %v890_v37, 0.0 }
 0x14c   :  { %v5049_v57 = vpack.c.bf16 %v1155_v27, %v1153_v14  ;;  %v936_v3 = vadd.f32 %v935_v17, %v313_v60  ;;  %v1156_v13 = vmax.f32 %v934_v29, 0.0  ;;  %v894_v27 = vadd.f32 %v6067_v11, %v7034_v18 }
 0x14d   :  { %v937_v32 = vpop.f32.mrf.mxu0  ;;  %v1144_v60 = vmax.f32 %v904_v12, 0.0  ;;  %v886_v17 = vadd.f32 %v6059_v38, %v7035_v62  ;;  %v888_v29 = vadd.f32 %v6063_v19, %v7033_v33  ;;  %v5043_v59 = vpack.c.bf16 %v1143_v51, %v1141_v1 }
 0x14e   :  { %v938_v0 = vadd.f32 %v937_v32, %v318_v50  ;;  %2140 = vmatprep.subr.bf16.mxu1 %v5049_v57  ;;  %v1157_v14 = vmax.f32 %v936_v3, 0.0  ;;  %v880_v57 = vadd.f32 %v6055_v25, %v7036_v53  ;;  %v884_v61 = vadd.f32 %v6057_v28, %v7035_v62 }
 0x14f   :  { %v939_v48 = vpop.f32.mrf.mxu0  ;;  %2141 = vmatpush2.bf16.msra.mxu1 %v5048_v44  ;;  %v5044_v11 = vpack.c.bf16 %v1146_v35, %v1144_v60  ;;  %v7037_v44 = vld [vmem:[#allocation13_spill] sm:$0xff]  ;;  %v1137_v3 = vmax.f32 %v886_v17, 0.0  ;;  %v1138_v18 = vmax.f32 %v888_v29, 0.0 }
 0x150   :  { %v1158_v58 = vmax.f32 %v938_v0, 0.0  ;;  %v940_v16 = vadd.f32 %v939_v48, %v318_v50  ;;  %2142 = vmatprep.subr.bf16.mxu1 %v5047_v7  ;;  %v1142_v50 = vmax.f32 %v898_v23, 0.0  ;;  %v876_v32 = vadd.f32 %v6049_v63, %v7037_v44 }
 0x151   :  { %v943_v36 = vpop.f32.mrf.mxu0  ;;  %v1140_v7 = vmax.f32 %v894_v27, 0.0  ;;  %v1135_v37 = vmax.f32 %v880_v57, 0.0  ;;  %v5041_v63 = vpack.c.bf16 %v1139_v30, %v1137_v3  ;;  %v874_v54 = vadd.f32 %v6045_v10, %v7037_v44  ;;  %v5192_v30 = vld [vmem:[%s6948_s3 + $0xc] ss:$16 sps:$4 sm:$0xff]  }
 0x152   :  { %v6105_v15 = vpack.c.bf16 %v1158_v58, %v1156_v13  ;;  %v1159_v41 = vmax.f32 %v940_v16, 0.0  ;;  %v944_v5 = vadd.f32 %v943_v36, %v6084_v52  ;;  %v1136_v13 = vmax.f32 %v884_v61, 0.0 }
 0x153   :  { %v945_v46 = vpop.f32.mrf.mxu0  ;;  %2143 = vmatpush2.bf16.msra.mxu1 %v5046_v56  ;;  %v5042_v47 = vpack.c.bf16 %v1142_v50, %v1140_v7  ;;  %v1132_v56 = vmax.f32 %v874_v54, 0.0  ;;  %v7046_v54 = vld [vmem:[#allocation3_spill] sm:$0xff] }
 0x154   :  { %v6111_v21 = vpack.c.bf16 %v1159_v41, %v1157_v14  ;;  %2144 = vmatprep.subr.bf16.mxu1 %v5045_v8  ;;  %v946_v39 = vadd.f32 %v945_v46, %v6084_v52  ;;  %v1160_v19 = vmax.f32 %v944_v5, 0.0  ;;  %v878_v52 = vadd.f32 %v6053_v26, %v7036_v53  ;;  %v6141_v8 = vpop.permute.xlu0 %462  ;;  %v6145_v41 = vpop.permute.xlu1 %467  ;;  %v5184_v5 = vld [vmem:[%s6948_s3] ss:$16 sps:$4 sm:$0xff]  }
 0x155   :  { %v947_v6 = vpop.f32.mrf.mxu0  ;;  %v5040_v23 = vpack.c.bf16 %v1138_v18, %v1136_v13 }
 0x156   :  { %v948_v38 = vadd.f32 %v947_v6, %v6089_v4  ;;  %v1161_v49 = vmax.f32 %v946_v39, 0.0  ;;  %v1134_v26 = vmax.f32 %v878_v52, 0.0 }
 0x157   :  { %v949_v25 = vpop.f32.mrf.mxu0  ;;  %2145 = vmatpush2.bf16.msra.mxu1 %v5044_v11  ;;  %v5189_v11 = vld [vmem:[%s6948_s3 + $0x20] ss:$16 sps:$4 sm:$0xff]  }
 0x158   :  { %v1162_v0 = vmax.f32 %v948_v38, 0.0  ;;  %v950_v33 = vadd.f32 %v949_v25, %v6089_v4  ;;  %2146 = vmatprep.subr.bf16.mxu1 %v5043_v59  ;;  %v1133_v4 = vmax.f32 %v876_v32, 0.0  ;;  %v5038_v10 = vpack.c.bf16 %v1134_v26, %v1132_v56  ;;  %v6152_v46 = vpop.permute.xlu0 %452  ;;  %v6158_v17 = vpop.permute.xlu1 %457 }
 0x159   :  { %v6127_v12 = vpop.f32.mrf.mxu0 }
 0x15a   :  { %v6129_v28 = vpack.c.bf16 %v1162_v0, %v1160_v19  ;;  %v1163_v48 = vmax.f32 %v950_v33, 0.0  ;;  %v5039_v35 = vpack.c.bf16 %v1135_v37, %v1133_v4 }
 0x15b   :  { %v6133_v58 = vpop.f32.mrf.mxu0  ;;  %2147 = vmatpush2.bf16.msra.mxu1 %v5042_v47  ;;  %v7044_v47 = vld [vmem:[#allocation5_spill] sm:$0xff] }
 0x15c   :  { %v6135_v16 = vpack.c.bf16 %v1163_v48, %v1161_v49  ;;  %2148 = vmatprep.subr.bf16.mxu1 %v5041_v63  ;;  %v6171_v57 = vpop.permute.xlu0 %442  ;;  %v7045_v49 = vld [vmem:[#allocation4_spill] sm:$0xff] }
 0x15d   :  { %v6137_v51 = vpop.f32.mrf.mxu0 }
 0x15f   :  { %v6139_v36 = vpop.f32.mrf.mxu0  ;;  %2149 = vmatpush2.bf16.msra.mxu1 %v5040_v23 }
 0x160   :  { %2150 = vmatprep.subr.bf16.mxu1 %v5039_v35  ;;  %v6180_v6 = vpop.permute.xlu0 %432  ;;  %v7047_v35 = vld [vmem:[#allocation14_spill] sm:$0xff] }
 0x161   :  { %v6143_v14 = vpop.f32.mrf.mxu0  ;;  %7038 = vst [vmem:[#allocation6_spill] sm:$0xff] %v6180_v6 }
 0x163   :  { %v6147_v27 = vpop.f32.mrf.mxu0  ;;  %2151 = vmatpush2.bf16.msra.mxu1 %v5038_v10 }
 0x164   :  { %2152 = vmatprep.subr.bf16.mxu1 %v6051_v55  ;;  %v5187_v55 = vld [vmem:[%s6948_s3 + $0x24] ss:$16 sps:$4 sm:$0xff]   ;;  %v6187_v44 = vpop.permute.xlu0 %422 }
 0x165   :  { %v6150_v60 = vpop.f32.mrf.mxu0  ;;  %7040 = vst [vmem:[#allocation8_spill] sm:$0xff] %v6187_v44 }
 0x167   :  { %v6154_v62 = vpop.f32.mrf.mxu0  ;;  %2153 = vmatpush2.bf16.msra.mxu1 %v6047_v22 }
 0x168   :  { %2154 = vmatprep.subr.bf16.mxu1 %v6029_v20  ;;  %v6175_v20 = vpop.permute.xlu1 %447  ;;  %v6191_v3 = vpop.permute.xlu0 %412 }
 0x169   :  { %v6160_v1 = vpop.f32.mrf.mxu0  ;;  %7042 = vst [vmem:[#allocation9_spill] sm:$0xff] %v6191_v3 }
 0x16b   :  { %v6165_v53 = vpop.f32.mrf.mxu0  ;;  %2155 = vmatpush2.bf16.msra.mxu1 %v6023_v34 }
 0x16c   :  { %v6185_v59 = vpop.permute.xlu1 %437  ;;  %v6195_v37 = vpop.permute.xlu0 %402 }
 0x16d   :  { %v6173_v22 = vpop.f32.mrf.mxu0  ;;  %7039 = vst [vmem:[#allocation7_spill] sm:$0xff] %v6185_v59 }
 0x16e   :  { %2157 = vmatmul.mubr.bf16.vlgmr.msra.gmra.mxu1 %v5184_v5 }
 0x16f   :  { %v979_v29 = vpop.f32.mrf.mxu0  ;;  %2166 = vmatprep.mubr.bf16.mxu1 %v5187_v55 }
 0x170   :  { %v6189_v61 = vpop.permute.xlu1 %427 }
 0x171   :  { %v983_v50 = vpop.f32.mrf.mxu0  ;;  %7041 = vst [vmem:[#allocation10_spill] sm:$0xff] %v6189_v61 }
 0x173   :  { %v985_v34 = vpop.f32.mrf.mxu0 }
 0x174   :  { %v6193_v0 = vpop.permute.xlu1 %417 }
 0x175   :  { %v987_v39 = vpop.f32.mrf.mxu0  ;;  %7043 = vst [vmem:[#allocation11_spill] sm:$0xff] %v6193_v0  ;;  %v393_v0 = vpop.permute.xlu0 %392 }
 0x176   :  { %2167 = vmatmul.mubr.bf16.gmra.mxu1 %v5189_v11 }
 0x177   :  { %v989_v38 = vpop.f32.mrf.mxu0  ;;  %2209 = vmatprep.mubr.bf16.mxu1 %v5192_v30 }
 0x178   :  { %v6200_v4 = vpop.permute.xlu1 %407  ;;  %v990_v30 = vadd.f32 %v989_v38, %v6009_v40 }
 0x179   :  { %v993_v32 = vpop.f32.mrf.mxu0 }
 0x17b   :  { %v995_v7 = vpop.f32.mrf.mxu0 }
 0x17c   :  { %v996_v56 = vadd.f32 %v995_v7, %v7047_v35 }
 0x17d   :  { %v997_v25 = vpop.f32.mrf.mxu0 }
 0x17e   :  { %v998_v5 = vadd.f32 %v997_v25, %v7044_v47  ;;  %v980_v25 = vadd.f32 %v979_v29, %v6074_v31 }
 0x17f   :  { %v999_v19 = vpop.f32.mrf.mxu0 }
 0x180   :  { %v1000_v63 = vadd.f32 %v999_v19, %v7044_v47  ;;  %v988_v47 = vadd.f32 %v987_v39, %v6009_v40 }
 0x181   :  { %v1003_v33 = vpop.f32.mrf.mxu0 }
 0x182   :  { %v1004_v26 = vadd.f32 %v1003_v33, %v7045_v49  ;;  %v1183_v19 = vmax.f32 %v1000_v63, 0.0  ;;  %v986_v33 = vadd.f32 %v985_v34, %v6012_v45  ;;  %v976_v34 = vadd.f32 %v6165_v53, %v6072_v43 }
 0x183   :  { %v1005_v52 = vpop.f32.mrf.mxu0 }
 0x184   :  { %v1006_v48 = vadd.f32 %v1005_v52, %v7045_v49  ;;  %v1184_v44 = vmax.f32 %v1004_v26, 0.0  ;;  %v1181_v49 = vmax.f32 %v996_v56, 0.0  ;;  %v1177_v40 = vmax.f32 %v986_v33, 0.0 }
 0x185   :  { %v1007_v18 = vpop.f32.mrf.mxu0  ;;  %v1178_v56 = vmax.f32 %v988_v47, 0.0  ;;  %v964_v47 = vadd.f32 %v6143_v14, %v6076_v42 }
 0x186   :  { %v1008_v13 = vadd.f32 %v1007_v18, %v7046_v54  ;;  %v1185_v3 = vmax.f32 %v1006_v48, 0.0  ;;  %v994_v18 = vadd.f32 %v993_v32, %v7047_v35  ;;  %v1179_v48 = vmax.f32 %v990_v30, 0.0 }
 0x187   :  { %v1009_v23 = vpop.f32.mrf.mxu0  ;;  %v970_v32 = vadd.f32 %v6154_v62, %v6078_v2 }
 0x188   :  { %v1010_v10 = vadd.f32 %v1009_v23, %v7046_v54  ;;  %v1186_v55 = vmax.f32 %v1008_v13, 0.0  ;;  %v398_v54 = vpop.permute.xlu1 %397  ;;  %v1182_v13 = vmax.f32 %v998_v5, 0.0  ;;  %v5063_v23 = vpack.c.bf16 %v1183_v19, %v1181_v49 }
 0x189   :  { %v1013_v11 = vpop.f32.mrf.mxu0  ;;  %v1180_v26 = vmax.f32 %v994_v18, 0.0  ;;  %v1173_v19 = vmax.f32 %v976_v34, 0.0  ;;  %v968_v18 = vadd.f32 %v6150_v60, %v6078_v2  ;;  %v1171_v49 = vmax.f32 %v970_v32, 0.0 }
 0x18a   :  { %v1187_v52 = vmax.f32 %v1010_v10, 0.0  ;;  %v1014_v6 = vadd.f32 %v1013_v11, %v393_v0  ;;  %v5064_v38 = vpack.c.bf16 %v1186_v55, %v1184_v44  ;;  %v5061_v55 = vpack.c.bf16 %v1179_v48, %v1177_v40 }
 0x18b   :  { %v1015_v61 = vpop.f32.mrf.mxu0  ;;  %v5062_v5 = vpack.c.bf16 %v1182_v13, %v1180_v26  ;;  %v1168_v26 = vmax.f32 %v964_v47, 0.0 }
 0x18c   :  { %v5065_v7 = vpack.c.bf16 %v1187_v52, %v1185_v3  ;;  %v1016_v10 = vadd.f32 %v1015_v61, %v393_v0  ;;  %v984_v3 = vadd.f32 %v983_v50, %v6012_v45  ;;  %v1188_v39 = vmax.f32 %v1014_v6, 0.0 }
 0x18d   :  { %v1017_v63 = vpop.f32.mrf.mxu0  ;;  %v978_v61 = vadd.f32 %v6173_v22, %v6074_v31  ;;  %v1175_v0 = vmax.f32 %v980_v25, 0.0  ;;  %v974_v50 = vadd.f32 %v6160_v1, %v6072_v43  ;;  %v960_v52 = vadd.f32 %v6139_v36, %v6082_v24 }
 0x18e   :  { %v1018_v59 = vadd.f32 %v1017_v63, %v398_v54  ;;  %2177 = vmatprep.subr.bf16.mxu1 %v5065_v7  ;;  %v1189_v11 = vmax.f32 %v1016_v10, 0.0  ;;  %v1176_v30 = vmax.f32 %v984_v3, 0.0  ;;  %v956_v25 = vadd.f32 %v6133_v58, %v6080_v9 }
 0x18f   :  { %v1019_v29 = vpop.f32.mrf.mxu0  ;;  %2178 = vmatpush1.bf16.msra.mxu1 %v5064_v38  ;;  %v1174_v33 = vmax.f32 %v978_v61, 0.0  ;;  %v5059_v7 = vpack.c.bf16 %v1175_v0, %v1173_v19  ;;  %v1172_v13 = vmax.f32 %v974_v50, 0.0  ;;  %v1167_v48 = vmax.f32 %v960_v52, 0.0 }
 0x190   :  { %v1190_v44 = vmax.f32 %v1018_v59, 0.0  ;;  %v1020_v35 = vadd.f32 %v1019_v29, %v398_v54  ;;  %2179 = vmatprep.subr.bf16.mxu1 %v5063_v23  ;;  %v966_v59 = vadd.f32 %v6147_v27, %v6076_v42  ;;  %v5060_v43 = vpack.c.bf16 %v1178_v56, %v1176_v30 }
 0x191   :  { %v1023_v62 = vpop.f32.mrf.mxu0  ;;  %v1170_v23 = vmax.f32 %v968_v18, 0.0  ;;  %v5058_v10 = vpack.c.bf16 %v1174_v33, %v1172_v13  ;;  %v954_v3 = vadd.f32 %v6127_v12, %v6080_v9 }
 0x192   :  { %v6218_v53 = vpack.c.bf16 %v1190_v44, %v1188_v39  ;;  %v1191_v45 = vmax.f32 %v1020_v35, 0.0  ;;  %v1024_v22 = vadd.f32 %v1023_v62, %v6195_v37  ;;  %v1169_v38 = vmax.f32 %v966_v59, 0.0 }
 0x193   :  { %v1025_v6 = vpop.f32.mrf.mxu0  ;;  %2180 = vmatpush1.bf16.msra.mxu1 %v5062_v5  ;;  %v1164_v35 = vmax.f32 %v954_v3, 0.0 }
 0x194   :  { %v6224_v31 = vpack.c.bf16 %v1191_v45, %v1189_v11  ;;  %2181 = vmatprep.subr.bf16.mxu1 %v5061_v55  ;;  %v1026_v54 = vadd.f32 %v1025_v6, %v6195_v37  ;;  %v1192_v2 = vmax.f32 %v1024_v22, 0.0  ;;  %v958_v37 = vadd.f32 %v6137_v51, %v6082_v24 }
 0x195   :  { %v1027_v1 = vpop.f32.mrf.mxu0  ;;  %v5057_v58 = vpack.c.bf16 %v1171_v49, %v1169_v38  ;;  %v5056_v51 = vpack.c.bf16 %v1170_v23, %v1168_v26  ;;  %v7049_v26 = vld [vmem:[#allocation6_spill] sm:$0xff] }
 0x196   :  { %v1028_v27 = vadd.f32 %v1027_v1, %v6200_v4  ;;  %v1193_v34 = vmax.f32 %v1026_v54, 0.0  ;;  %v1166_v24 = vmax.f32 %v958_v37, 0.0 }
 0x197   :  { %v1029_v36 = vpop.f32.mrf.mxu0  ;;  %2182 = vmatpush1.bf16.msra.mxu1 %v5060_v43 }
 0x198   :  { %v1194_v60 = vmax.f32 %v1028_v27, 0.0  ;;  %v1030_v63 = vadd.f32 %v1029_v36, %v6200_v4  ;;  %2183 = vmatprep.subr.bf16.mxu1 %v5059_v7  ;;  %v1165_v4 = vmax.f32 %v956_v25, 0.0  ;;  %v5054_v0 = vpack.c.bf16 %v1166_v24, %v1164_v35 }
 0x199   :  { %v6240_v32 = vpop.f32.mrf.mxu0 }
 0x19a   :  { %v6242_v42 = vpack.c.bf16 %v1194_v60, %v1192_v2  ;;  %v1195_v14 = vmax.f32 %v1030_v63, 0.0  ;;  %v5055_v44 = vpack.c.bf16 %v1167_v48, %v1165_v4 }
 0x19b   :  { %v6246_v29 = vpop.f32.mrf.mxu0  ;;  %2184 = vmatpush1.bf16.msra.mxu1 %v5058_v10 }
 0x19c   :  { %v6248_v40 = vpack.c.bf16 %v1195_v14, %v1193_v34  ;;  %2185 = vmatprep.subr.bf16.mxu1 %v5057_v58 }
 0x19d   :  { %v6250_v39 = vpop.f32.mrf.mxu0 }
 0x19f   :  { %v6252_v61 = vpop.f32.mrf.mxu0  ;;  %2186 = vmatpush1.bf16.msra.mxu1 %v5056_v51 }
 0x1a0   :  { %2187 = vmatprep.subr.bf16.mxu1 %v5055_v44 }
 0x1a1   :  { %v6254_v9 = vpop.f32.mrf.mxu0 }
 0x1a3   :  { %v6256_v12 = vpop.f32.mrf.mxu0  ;;  %2188 = vmatpush1.bf16.msra.mxu1 %v5054_v0 }
 0x1a4   :  { %2189 = vmatprep.subr.bf16.mxu1 %v6135_v16 }
 0x1a5   :  { %v6259_v56 = vpop.f32.mrf.mxu0 }
 0x1a7   :  { %v1049_v5 = vpop.f32.mrf.mxu0  ;;  %2190 = vmatpush1.bf16.msra.mxu1 %v6129_v28 }
 0x1a8   :  { %2191 = vmatprep.subr.bf16.mxu1 %v6111_v21 }
 0x1a9   :  { %v1053_v62 = vpop.f32.mrf.mxu0 }
 0x1ab   :  { %v1055_v55 = vpop.f32.mrf.mxu0  ;;  %2192 = vmatpush1.bf16.msra.mxu1 %v6105_v15 }
 0x1ad   :  { %v1057_v11 = vpop.f32.mrf.mxu0 }
 0x1af   :  { %v1059_v45 = vpop.f32.mrf.mxu0 }
 0x1b1   :  { %v1063_v50 = vpop.f32.mrf.mxu0 }
 0x1b2   :  { %v1064_v14 = vadd.f32 %v1063_v50, %v6171_v57 }
 0x1b3   :  { %v1065_v30 = vpop.f32.mrf.mxu0 }
 0x1b4   :  { %v1066_v63 = vadd.f32 %v1065_v30, %v6171_v57 }
 0x1b5   :  { %v1067_v6 = vpop.f32.mrf.mxu0 }
 0x1b6   :  { %v1068_v48 = vadd.f32 %v1067_v6, %v6175_v20  ;;  %v1209_v4 = vmax.f32 %v1066_v63, 0.0  ;;  %v1208_v6 = vmax.f32 %v1064_v14, 0.0 }
 0x1b7   :  { %v1069_v59 = vpop.f32.mrf.mxu0 }
 0x1b8   :  { %v1070_v47 = vadd.f32 %v1069_v59, %v6175_v20  ;;  %v1210_v51 = vmax.f32 %v1068_v48, 0.0  ;;  %v7050_v20 = vld [vmem:[#allocation10_spill] sm:$0xff]  ;;  %v7051_v59 = vld [vmem:[#allocation8_spill] sm:$0xff] }
 0x1b9   :  { %v1073_v19 = vpop.f32.mrf.mxu0  ;;  %v1050_v35 = vadd.f32 %v1049_v5, %v7050_v20  ;;  %v1046_v57 = vadd.f32 %v6256_v12, %v7051_v59 }
 0x1ba   :  { %v1074_v2 = vadd.f32 %v1073_v19, %v6152_v46 }
 0x1bb   :  { %v1075_v22 = vpop.f32.mrf.mxu0  ;;  %v1203_v5 = vmax.f32 %v1050_v35, 0.0 }
 0x1bc   :  { %v1076_v7 = vadd.f32 %v1075_v22, %v6152_v46  ;;  %v1212_v3 = vmax.f32 %v1074_v2, 0.0  ;;  %v1056_v46 = vadd.f32 %v1055_v55, %v7049_v26  ;;  %v1048_v55 = vadd.f32 %v6259_v56, %v7050_v20  ;;  %v7052_v22 = vld [vmem:[#allocation11_spill] sm:$0xff] }
 0x1bd   :  { %v1077_v16 = vpop.f32.mrf.mxu0  ;;  %v1038_v56 = vadd.f32 %v6250_v39, %v7052_v22  ;;  %v4678_v39 = vld [vmem:[%s6946_s0 + $0x8] sm:$0xff] }
 0x1be   :  { %v1078_v27 = vadd.f32 %v1077_v16, %v6158_v17  ;;  %v1213_v37 = vmax.f32 %v1076_v7, 0.0  ;;  %v1205_v50 = vmax.f32 %v1056_v46, 0.0  ;;  %v1040_v16 = vadd.f32 %v6252_v61, %v7052_v22 }
 0x1bf   :  { %v1079_v52 = vpop.f32.mrf.mxu0  ;;  %v1198_v7 = vmax.f32 %v1038_v56, 0.0 }
 0x1c0   :  { %v1080_v28 = vadd.f32 %v1079_v52, %v6158_v17  ;;  %v1214_v23 = vmax.f32 %v1078_v27, 0.0  ;;  %v1211_v17 = vmax.f32 %v1070_v47, 0.0  ;;  %v4711_v47 = vcombine.low %v4678_v39, %v4678_v39 }
 0x1c1   :  { %v1083_v18 = vpop.f32.mrf.mxu0 }
 0x1c2   :  { %v1084_v15 = vadd.f32 %v1083_v18, %v6141_v8  ;;  %v1215_v13 = vmax.f32 %v1080_v28, 0.0  ;;  %v5078_v44 = vpack.c.bf16 %v1214_v23, %v1212_v3  ;;  %v5077_v30 = vpack.c.bf16 %v1211_v17, %v1209_v4 }
 0x1c3   :  { %v1085_v33 = vpop.f32.mrf.mxu0  ;;  %v1202_v28 = vmax.f32 %v1048_v55, 0.0  ;;  %v5204_v55 = vld [vmem:[%s6947_s1 + $0x38] sm:$0xff]  }
 0x1c4   :  { %v1086_v21 = vadd.f32 %v1085_v33, %v6141_v8  ;;  %v1216_v60 = vmax.f32 %v1084_v15, 0.0  ;;  %v5079_v34 = vpack.c.bf16 %v1215_v13, %v1213_v37  ;;  %v7053_v33 = vld [vmem:[#allocation9_spill] sm:$0xff]  ;;  %v5190_v13 = vld [vmem:[%s6948_s3 + $0x8] ss:$16 sps:$4 sm:$0xff]   ;;  %v5197_v37 = vld [vmem:[%s6947_s1] sm:$0xff]  }
 0x1c5   :  { %v1087_v43 = vpop.f32.mrf.mxu0  ;;  %v1036_v12 = vadd.f32 %v6246_v29, %v7053_v33  ;;  %v1034_v61 = vadd.f32 %v6240_v32, %v7053_v33  ;;  %v4712_v32 = vcombine.high %v4678_v39, %v4678_v39 }
 0x1c6   :  { %v1088_v1 = vadd.f32 %v1087_v43, %v6145_v41  ;;  %v1217_v36 = vmax.f32 %v1086_v21, 0.0  ;;  %v1201_v43 = vmax.f32 %v1046_v57, 0.0 }
 0x1c7   :  { %v1089_v49 = vpop.f32.mrf.mxu0  ;;  %v1196_v29 = vmax.f32 %v1034_v61, 0.0 }
 0x1c8   :  { %v1090_v54 = vadd.f32 %v1089_v49, %v6145_v41  ;;  %v1218_v25 = vmax.f32 %v1088_v1, 0.0  ;;  %v7048_v41 = vld [vmem:[#allocation7_spill] sm:$0xff]  ;;  %v1199_v1 = vmax.f32 %v1040_v16, 0.0  ;;  %v5073_v15 = vpack.c.bf16 %v1203_v5, %v1201_v43  ;;  %v5207_v43 = vld [vmem:[%s6947_s1 + $0x50] sm:$0xff]  }
 0x1c9   :  { %v1060_v58 = vadd.f32 %v1059_v45, %v7048_v41  ;;  %v1058_v24 = vadd.f32 %v1057_v11, %v7048_v41  ;;  %v1054_v45 = vadd.f32 %v1053_v62, %v7049_v26  ;;  %v5076_v11 = vpack.c.bf16 %v1210_v51, %v1208_v6  ;;  %v5200_v26 = vld [vmem:[%s6947_s1 + $0x18] sm:$0xff]   ;;  %v5201_v51 = vld [vmem:[%s6947_s1 + $0x20] sm:$0xff]   ;;  %v5203_v6 = vld [vmem:[%s6947_s1 + $0x30] sm:$0xff]  }
 0x1ca   :  { %v1219_v38 = vmax.f32 %v1090_v54, 0.0  ;;  %v5080_v10 = vpack.c.bf16 %v1218_v25, %v1216_v60  ;;  %v1044_v62 = vadd.f32 %v6254_v9, %v7051_v59  ;;  %v1197_v9 = vmax.f32 %v1036_v12, 0.0  ;;  %v5205_v16 = vld [vmem:[%s6947_s1 + $0x40] sm:$0xff]  }
 0x1cb   :  { %v1207_v0 = vmax.f32 %v1060_v58, 0.0  ;;  %v1206_v19 = vmax.f32 %v1058_v24, 0.0  ;;  %v1204_v18 = vmax.f32 %v1054_v45, 0.0  ;;  %v5070_v25 = vpack.c.bf16 %v1198_v7, %v1196_v29 }
 0x1cc   :  { %v5081_v8 = vpack.c.bf16 %v1219_v38, %v1217_v36  ;;  %v1200_v49 = vmax.f32 %v1044_v62, 0.0  ;;  %v5071_v27 = vpack.c.bf16 %v1199_v1, %v1197_v9  ;;  %v6308_v36 = vpop.permute.xlu0 %2448  ;;  %v7054_v60 = vmov 0   ;;  %v5206_v62 = vld [vmem:[%s6947_s1 + $0x48] sm:$0xff]   ;;  %v5208_v1 = vld [vmem:[%s6947_s1 + $0x58] sm:$0xff]  }
 0x1cd   :  { %v5075_v52 = vpack.c.bf16 %v1207_v0, %v1205_v50  ;;  %v5074_v21 = vpack.c.bf16 %v1206_v19, %v1204_v18  ;;  %v5202_v0 = vld [vmem:[%s6947_s1 + $0x28] sm:$0xff]  }
 0x1ce   :  { %2193 = vmatprep.subr.bf16.mxu1 %v5081_v8  ;;  %v5072_v54 = vpack.c.bf16 %v1202_v28, %v1200_v49  ;;  %v5209_v49 = vld [vmem:[%s6947_s1 + $0x60] sm:$0xff]  }
 0x1cf   :  { %2194 = vmatpush2.bf16.msra.mxu1 %v5080_v10  ;;  %v5198_v10 = vld [vmem:[%s6947_s1 + $0x8] sm:$0xff]  }
 0x1d0   :  { %2195 = vmatprep.subr.bf16.mxu1 %v5079_v34  ;;  %v6314_v38 = vpop.permute.xlu0 %2438  ;;  %v5199_v34 = vld [vmem:[%s6947_s1 + $0x10] sm:$0xff]  }
 0x1d3   :  { %2196 = vmatpush2.bf16.msra.mxu1 %v5078_v44 }
 0x1d4   :  { %2197 = vmatprep.subr.bf16.mxu1 %v5077_v30  ;;  %v6322_v63 = vpop.permute.xlu0 %2428 }
 0x1d7   :  { %2198 = vmatpush2.bf16.msra.mxu1 %v5076_v11 }
 0x1d8   :  { %2199 = vmatprep.subr.bf16.mxu1 %v5075_v52  ;;  %v6329_v48 = vpop.permute.xlu0 %2418 }
 0x1db   :  { %2200 = vmatpush2.bf16.msra.mxu1 %v5074_v21 }
 0x1dc   :  { %2201 = vmatprep.subr.bf16.mxu1 %v5073_v15  ;;  %v6338_v41 = vpop.permute.xlu0 %2408 }
 0x1df   :  { %2202 = vmatpush2.bf16.msra.mxu1 %v5072_v54 }
 0x1e0   :  { %2203 = vmatprep.subr.bf16.mxu1 %v5071_v27  ;;  %v6344_v17 = vpop.permute.xlu0 %2398  ;;  %v5210_v27 = vld [vmem:[%s6947_s1 + $0x68] sm:$0xff]  }
 0x1e3   :  { %2204 = vmatpush2.bf16.msra.mxu1 %v5070_v25 }
 0x1e4   :  { %2205 = vmatprep.subr.bf16.mxu1 %v6248_v40  ;;  %v5193_v40 = vld [vmem:[%s6948_s3 + $0x2c] ss:$16 sps:$4 sm:$0xff]   ;;  %v6353_v3 = vpop.permute.xlu0 %2388 }
 0x1e7   :  { %2206 = vmatpush2.bf16.msra.mxu1 %v6242_v42  ;;  %v2958_v42 = vsel %vm732_vm0, %v4711_v47, 0 }
 0x1e8   :  { %2207 = vmatprep.subr.bf16.mxu1 %v6224_v31  ;;  %v6312_v31 = vpop.permute.xlu1 %2453  ;;  %v6360_v4 = vpop.permute.xlu0 %2378 }
 0x1eb   :  { %2208 = vmatpush2.bf16.msra.mxu1 %v6218_v53  ;;  %v5195_v53 = vld [vmem:[%s6948_s3 + $0x28] ss:$16 sps:$4 sm:$0xff]  }
 0x1ec   :  { %4713 = vmatprep.subr.msk.bf16.mxu1 %vm732_vm0, %v4712_v32  ;;  %v6319_v2 = vpop.permute.xlu1 %2443  ;;  %v6369_v44 = vpop.permute.xlu0 %2528  ;;  %v5211_v32 = vld [vmem:[%s6947_s1 + $0x70] sm:$0xff]  }
 0x1ee   :  { %2210 = vmatmul.mubr.bf16.vlgmr.msra.gmra.mxu1 %v5190_v13 }
 0x1ef   :  { %2219 = vmatprep.mubr.bf16.mxu1 %v5193_v40  ;;  %2978 = vmatpush1.bf16.msra.mxu1 %v2958_v42  ;;  %v5212_v40 = vld [vmem:[%s6947_s1 + $0x78] sm:$0xff]  }
 0x1f0   :  { %v6327_v8 = vpop.permute.xlu1 %2433  ;;  %v6375_v35 = vpop.permute.xlu0 %2518 }
 0x1f4   :  { %v6333_v23 = vpop.permute.xlu1 %2423  ;;  %v6384_v45 = vpop.permute.xlu0 %2508 }
 0x1f6   :  { %2220 = vmatmul.mubr.bf16.gmra.mxu1 %v5195_v53 }
 0x1f7   :  { %2995 = vmatprep.mubr.bf16.mxu1 %v7054_v60 }
 0x1f8   :  { %v6342_v58 = vpop.permute.xlu1 %2413  ;;  %v6391_v57 = vpop.permute.xlu0 %2498 }
 0x1f9   :  { %7055 = vst [vmem:[#allocation12_spill] sm:$0xff] %v6391_v57 }
 0x1fc   :  { %v6349_v14 = vpop.permute.xlu1 %2403  ;;  %v6400_v19 = vpop.permute.xlu0 %2488 }
 0x1fd   :  { %7057 = vst [vmem:[#allocation5_spill] sm:$0xff] %v6400_v19 }
 0x1fe   :  { %4714 = vmatmul.mubr.msk.bf16.vlgmr.msra.gmra.mxu1 %vm635_vm1, %v5197_v37 }
 0x1ff   :  { %3005 = vmatprep.mubr.bf16.mxu1 %v7054_v60 }
 0x200   :  { %v6358_v46 = vpop.permute.xlu1 %2393  ;;  %v6406_v22 = vpop.permute.xlu0 %2478 }
 0x201   :  { %7059 = vst [vmem:[#allocation3_spill] sm:$0xff] %v6406_v22 }
 0x204   :  { %v6364_v24 = vpop.permute.xlu1 %2383  ;;  %v6415_v52 = vpop.permute.xlu0 %2468 }
 0x206   :  { %4715 = vmatmul.mubr.msk.bf16.gmra.mxu1 %vm635_vm1, %v5198_v10  ;;  %v5213_v10 = vld [vmem:[%s6947_s1 + $0x80] sm:$0xff]  }
 0x207   :  { %3015 = vmatprep.mubr.bf16.mxu1 %v7054_v60 }
 0x208   :  { %v6373_v20 = vpop.permute.xlu1 %2533  ;;  %v6422_v33 = vpop.permute.xlu0 %2458 }
 0x20c   :  { %v6380_v30 = vpop.permute.xlu1 %2523  ;;  %v6431_v56 = vpop.permute.xlu0 %2608 }
 0x20d   :  { %7061 = vst [vmem:[#allocation7_spill] sm:$0xff] %v6431_v56 }
 0x20e   :  { %4716 = vmatmul.mubr.msk.bf16.gmra.mxu1 %vm635_vm1, %v5199_v34 }
 0x20f   :  { %3025 = vmatprep.mubr.bf16.mxu1 %v7054_v60 }
 0x210   :  { %v6389_v59 = vpop.permute.xlu1 %2513  ;;  %v6437_v21 = vpop.permute.xlu0 %2598 }
 0x211   :  { %7063 = vst [vmem:[#allocation10_spill] sm:$0xff] %v6437_v21 }
 0x214   :  { %v6395_v50 = vpop.permute.xlu1 %2503  ;;  %v6446_v61 = vpop.permute.xlu0 %2588 }
 0x215   :  { %7056 = vst [vmem:[#allocation13_spill] sm:$0xff] %v6395_v50  ;;  %7065 = vst [vmem:[#allocation11_spill] sm:$0xff] %v6446_v61 }
 0x216   :  { %4717 = vmatmul.mubr.msk.bf16.gmra.mxu1 %vm635_vm1, %v5200_v26 }
 0x217   :  { %3035 = vmatprep.mubr.bf16.mxu1 %v7054_v60 }
 0x218   :  { %v6404_v11 = vpop.permute.xlu1 %2493  ;;  %v6453_v7 = vpop.permute.xlu0 %2578 }
 0x219   :  { %7058 = vst [vmem:[#allocation4_spill] sm:$0xff] %v6404_v11  ;;  %7067 = vst [vmem:[#allocation15_spill] sm:$0xff] %v6453_v7 }
 0x21c   :  { %v6411_v5 = vpop.permute.xlu1 %2483  ;;  %v6462_v29 = vpop.permute.xlu0 %2568 }
 0x21d   :  { %7060 = vst [vmem:[#allocation14_spill] sm:$0xff] %v6411_v5  ;;  %7069 = vst [vmem:[#allocation17_spill] sm:$0xff] %v6462_v29 }
 0x21e   :  { %4718 = vmatmul.mubr.msk.bf16.gmra.mxu1 %vm635_vm1, %v5201_v51 }
 0x21f   :  { %3045 = vmatprep.mubr.bf16.mxu1 %v7054_v60 }
 0x220   :  { %v6420_v18 = vpop.permute.xlu1 %2473  ;;  %v6468_v39 = vpop.permute.xlu0 %2558 }
 0x221   :  { %7071 = vst [vmem:[#allocation19_spill] sm:$0xff] %v6468_v39 }
 0x224   :  { %v6426_v12 = vpop.permute.xlu1 %2463  ;;  %v6477_v13 = vpop.permute.xlu0 %2548 }
 0x225   :  { %7073 = vst [vmem:[#allocation21_spill] sm:$0xff] %v6477_v13 }
 0x226   :  { %4719 = vmatmul.mubr.msk.bf16.gmra.mxu1 %vm635_vm1, %v5202_v0  ;;  %v5214_v0 = vld [vmem:[%s6947_s1 + $0x88] sm:$0xff]  }
 0x227   :  { %3055 = vmatprep.mubr.bf16.mxu1 %v7054_v60 }
 0x228   :  { %v6435_v28 = vpop.permute.xlu1 %2613  ;;  %v6484_v53 = vpop.permute.xlu0 %2538 }
 0x229   :  { %7062 = vst [vmem:[#allocation6_spill] sm:$0xff] %v6435_v28  ;;  %7075 = vst [vmem:[#allocation23_spill] sm:$0xff] %v6484_v53 }
 0x22c   :  { %v6442_v15 = vpop.permute.xlu1 %2603  ;;  %v6493_v34 = vpop.permute.xlu0 %2688 }
 0x22d   :  { %7064 = vst [vmem:[#allocation8_spill] sm:$0xff] %v6442_v15  ;;  %7077 = vst [vmem:[#allocation25_spill] sm:$0xff] %v6493_v34 }
 0x22e   :  { %4720 = vmatmul.mubr.msk.bf16.gmra.mxu1 %vm635_vm1, %v5203_v6 }
 0x22f   :  { %3065 = vmatprep.mubr.bf16.mxu1 %v7054_v60 }
 0x230   :  { %v6451_v9 = vpop.permute.xlu1 %2593  ;;  %v6499_v51 = vpop.permute.xlu0 %2678 }
 0x231   :  { %7066 = vst [vmem:[#allocation9_spill] sm:$0xff] %v6451_v9  ;;  %7079 = vst [vmem:[#allocation27_spill] sm:$0xff] %v6499_v51 }
 0x234   :  { %v6457_v54 = vpop.permute.xlu1 %2583 }
 0x235   :  { %7068 = vst [vmem:[#allocation16_spill] sm:$0xff] %v6457_v54 }
 0x236   :  { %4721 = vmatmul.mubr.msk.bf16.gmra.mxu1 %vm635_vm1, %v5204_v55  ;;  %v6508_v55 = vpop.permute.xlu0 %2668 }
 0x237   :  { %3075 = vmatprep.mubr.bf16.mxu1 %v7054_v60  ;;  %7081 = vst [vmem:[#allocation29_spill] sm:$0xff] %v6508_v55 }
 0x238   :  { %v6466_v25 = vpop.permute.xlu1 %2573 }
 0x239   :  { %7070 = vst [vmem:[#allocation18_spill] sm:$0xff] %v6466_v25 }
 0x23c   :  { %v6473_v47 = vpop.permute.xlu1 %2563 }
 0x23d   :  { %7072 = vst [vmem:[#allocation20_spill] sm:$0xff] %v6473_v47 }
 0x23e   :  { %4722 = vmatmul.mubr.msk.bf16.gmra.mxu1 %vm635_vm1, %v5205_v16  ;;  %v5215_v16 = vld [vmem:[%s6947_s1 + $0x90] sm:$0xff]  }
 0x23f   :  { %3085 = vmatprep.mubr.bf16.mxu1 %v7054_v60 }
 0x240   :  { %v6482_v42 = vpop.permute.xlu1 %2553 }
 0x241   :  { %7074 = vst [vmem:[#allocation22_spill] sm:$0xff] %v6482_v42 }
 0x244   :  { %v6488_v37 = vpop.permute.xlu1 %2543 }
 0x245   :  { %7076 = vst [vmem:[#allocation24_spill] sm:$0xff] %v6488_v37 }
 0x246   :  { %4723 = vmatmul.mubr.msk.bf16.gmra.mxu1 %vm635_vm1, %v5206_v62 }
 0x247   :  { %3095 = vmatprep.mubr.bf16.mxu1 %v7054_v60 }
 0x248   :  { %v6497_v26 = vpop.permute.xlu1 %2693 }
 0x249   :  { %7078 = vst [vmem:[#allocation26_spill] sm:$0xff] %v6497_v26  ;;  %v5219_v26 = vld [vmem:[%s6947_s1 + $0xb0] sm:$0xff]  }
 0x24c   :  { %v6504_v6 = vpop.permute.xlu1 %2683 }
 0x24d   :  { %7080 = vst [vmem:[#allocation28_spill] sm:$0xff] %v6504_v6 }
 0x24e   :  { %4724 = vmatmul.mubr.msk.bf16.gmra.mxu1 %vm635_vm1, %v5207_v43  ;;  %v6515_v43 = vpop.permute.xlu0 %2658 }
 0x24f   :  { %3105 = vmatprep.mubr.bf16.mxu1 %v7054_v60  ;;  %7083 = vst [vmem:[#allocation31_spill] sm:$0xff] %v6515_v43  ;;  %v5217_v43 = vld [vmem:[%s6947_s1 + $0xa0] sm:$0xff]  }
 0x250   :  { %v6513_v62 = vpop.permute.xlu1 %2673 }
 0x251   :  { %7082 = vst [vmem:[#allocation30_spill] sm:$0xff] %v6513_v62 }
 0x256   :  { %4725 = vmatmul.mubr.msk.bf16.gmra.mxu1 %vm635_vm1, %v5208_v1  ;;  %v2158_v1 = vpop.f32.mrf.mxu1 }
 0x257   :  { %3115 = vmatprep.mubr.bf16.mxu1 %v7054_v60 }
 0x25e   :  { %4726 = vmatmul.mubr.msk.bf16.gmra.mxu1 %vm635_vm1, %v5209_v49  ;;  %v6519_v49 = vpop.permute.xlu1 %2663 }
 0x25f   :  { %3125 = vmatprep.mubr.bf16.mxu1 %v7054_v60  ;;  %7084 = vst [vmem:[#allocation32_spill] sm:$0xff] %v6519_v49 }
 0x266   :  { %4727 = vmatmul.mubr.msk.bf16.gmra.mxu1 %vm635_vm1, %v5210_v27  ;;  %v5216_v27 = vld [vmem:[%s6947_s1 + $0x98] sm:$0xff]  }
 0x267   :  { %3135 = vmatprep.mubr.bf16.mxu1 %v7054_v60 }
 0x26e   :  { %4728 = vmatmul.mubr.msk.bf16.gmra.mxu1 %vm635_vm1, %v5211_v32  ;;  %v6524_v32 = vpop.permute.xlu0 %2648 }
 0x26f   :  { %3145 = vmatprep.mubr.bf16.mxu1 %v7054_v60  ;;  %7085 = vst [vmem:[#allocation33_spill] sm:$0xff] %v6524_v32 }
 0x276   :  { %4729 = vmatmul.mubr.msk.bf16.gmra.mxu1 %vm635_vm1, %v5212_v40  ;;  %v2160_v40 = vpop.f32.mrf.mxu1 }
 0x277   :  { %3155 = vmatprep.mubr.bf16.mxu1 %v7054_v60 }
 0x27e   :  { %4730 = vmatmul.mubr.msk.bf16.gmra.mxu1 %vm635_vm1, %v5213_v10  ;;  %v6528_v10 = vpop.permute.xlu1 %2653 }
 0x27f   :  { %3165 = vmatprep.mubr.bf16.mxu1 %v7054_v60  ;;  %7086 = vst [vmem:[#allocation34_spill] sm:$0xff] %v6528_v10  ;;  %v5218_v10 = vld [vmem:[%s6947_s1 + $0xa8] sm:$0xff]  }
 0x282   :  { %v6535_v55 = vpop.permute.xlu1 %2643 }
 0x283   :  { %7088 = vst [vmem:[#allocation36_spill] sm:$0xff] %v6535_v55 }
 0x286   :  { %4731 = vmatmul.mubr.msk.bf16.gmra.mxu1 %vm635_vm1, %v5214_v0  ;;  %v2162_v0 = vpop.f32.mrf.mxu1  ;;  %v6544_v62 = vpop.permute.xlu1 %2633 }
 0x287   :  { %3175 = vmatprep.mubr.bf16.mxu1 %v7054_v60  ;;  %7090 = vst [vmem:[#allocation38_spill] sm:$0xff] %v6544_v62 }
 0x288   :  { %v2164_v49 = vpop.f32.mrf.mxu1 }
 0x28e   :  { %4732 = vmatmul.mubr.msk.bf16.gmra.mxu1 %vm635_vm1, %v5215_v16  ;;  %v6530_v16 = vpop.permute.xlu0 %2638 }
 0x28f   :  { %3185 = vmatprep.mubr.bf16.mxu1 %v7054_v60  ;;  %7087 = vst [vmem:[#allocation35_spill] sm:$0xff] %v6530_v16 }
 0x292   :  { %v6539_v32 = vpop.permute.xlu0 %2628 }
 0x293   :  { %7089 = vst [vmem:[#allocation37_spill] sm:$0xff] %v6539_v32 }
 0x296   :  { %4733 = vmatmul.mubr.msk.bf16.gmra.mxu1 %vm635_vm1, %v5216_v27  ;;  %v2168_v27 = vpop.f32.mrf.mxu1  ;;  %v6546_v51 = vpop.permute.xlu0 %2618 }
 0x297   :  { %3195 = vmatprep.mubr.bf16.mxu1 %v7054_v60  ;;  %7091 = vst [vmem:[#allocation39_spill] sm:$0xff] %v6546_v51  ;;  %v5220_v51 = vld [vmem:[%s6947_s1 + $0xb8] sm:$0xff]  }
 0x298   :  { %v2170_v16 = vpop.f32.mrf.mxu1 }
 0x29a   :  { %v2172_v55 = vpop.f32.mrf.mxu1  ;;  %v1747_v34 = vpop.permute.xlu0 %1746 }
 0x29b   :  { %v2159_v39 = vadd.f32 %v2158_v1, %v1747_v34  ;;  %v2161_v62 = vadd.f32 %v2160_v40, %v1747_v34 }
 0x29c   :  { %v2174_v6 = vpop.f32.mrf.mxu1 }
 0x29e   :  { %4734 = vmatmul.mubr.msk.bf16.gmra.mxu1 %vm635_vm1, %v5217_v43  ;;  %v6550_v43 = vpop.permute.xlu1 %2623 }
 0x29f   :  { %3205 = vmatprep.mubr.bf16.mxu1 %v7054_v60  ;;  %7092 = vst [vmem:[#allocation40_spill] sm:$0xff] %v6550_v43 }
 0x2a6   :  { %4735 = vmatmul.mubr.msk.bf16.gmra.mxu1 %vm635_vm1, %v5218_v10  ;;  %v1752_v10 = vpop.permute.xlu1 %1751 }
 0x2a7   :  { %3215 = vmatprep.mubr.bf16.mxu1 %v7054_v60  ;;  %v2163_v7 = vadd.f32 %v2162_v0, %v1752_v10  ;;  %v2165_v61 = vadd.f32 %v2164_v49, %v1752_v10 }
 0x2ae   :  { %v2211_v47 = vpop.f32.mrf.mxu1  ;;  %4736 = vmatmul.mubr.msk.bf16.gmra.mxu1 %vm635_vm1, %v5219_v26 }
 0x2af   :  { %v2212_v32 = vadd.f32 %v2211_v47, %v2159_v39  ;;  %3225 = vmatprep.mubr.bf16.mxu1 %v7054_v60  ;;  %v1757_v39 = vpop.permute.xlu0 %1756 }
 0x2b0   :  { %v2213_v29 = vpop.f32.mrf.mxu1  ;;  %v2169_v1 = vadd.f32 %v2168_v27, %v1757_v39  ;;  %v2171_v40 = vadd.f32 %v2170_v16, %v1757_v39 }
 0x2b1   :  { %v2230_v25 = vmax.f32 %v2212_v32, 0.0  ;;  %v2214_v54 = vadd.f32 %v2213_v29, %v2161_v62 }
 0x2b2   :  { %v2215_v43 = vpop.f32.mrf.mxu1 }
 0x2b3   :  { %2238 = vst [vmem:[%s6950_s5] sm:$0xff] %v2230_v25  ;;  %v2231_v26 = vmax.f32 %v2214_v54, 0.0  ;;  %v2216_v34 = vadd.f32 %v2215_v43, %v2163_v7  ;;  %v1762_v7 = vpop.permute.xlu1 %1761 }
 0x2b4   :  { %v2217_v47 = vpop.f32.mrf.mxu1  ;;  %v2173_v0 = vadd.f32 %v2172_v55, %v1762_v7  ;;  %v2175_v16 = vadd.f32 %v2174_v6, %v1762_v7 }
 0x2b5   :  { %2239 = vst [vmem:[%s6950_s5 + $0x8] sm:$0xff] %v2231_v26  ;;  %v2232_v29 = vmax.f32 %v2216_v34, 0.0  ;;  %v2218_v62 = vadd.f32 %v2217_v47, %v2165_v61 }
 0x2b6   :  { %v2221_v32 = vpop.f32.mrf.mxu1  ;;  %4737 = vmatmul.mubr.msk.bf16.gmra.mxu1 %vm635_vm1, %v5220_v51  ;;  %v5221_v51 = vld [vmem:[%s6947_s1 + $0xc0] sm:$0xff]  }
 0x2b7   :  { %2240 = vst [vmem:[%s6950_s5 + $0x10] sm:$0xff] %v2232_v29  ;;  %v2233_v25 = vmax.f32 %v2218_v62, 0.0  ;;  %v2222_v54 = vadd.f32 %v2221_v32, %v2169_v1  ;;  %3235 = vmatprep.mubr.bf16.mxu1 %v7054_v60  ;;  %v5222_v32 = vld [vmem:[%s6947_s1 + $0xc8] sm:$0xff]  }
 0x2b8   :  { %v2223_v49 = vpop.f32.mrf.mxu1 }
 0x2b9   :  { %2241 = vst [vmem:[%s6950_s5 + $0x18] sm:$0xff] %v2233_v25  ;;  %v2234_v61 = vmax.f32 %v2222_v54, 0.0  ;;  %v2224_v27 = vadd.f32 %v2223_v49, %v2171_v40 }
 0x2ba   :  { %v2225_v43 = vpop.f32.mrf.mxu1 }
 0x2bb   :  { %2242 = vst [vmem:[%s6950_s5 + $0x20] sm:$0xff] %v2234_v61  ;;  %v2235_v10 = vmax.f32 %v2224_v27, 0.0  ;;  %v2226_v26 = vadd.f32 %v2225_v43, %v2173_v0 }
 0x2bc   :  { %v2227_v34 = vpop.f32.mrf.mxu1 }
 0x2bd   :  { %2243 = vst [vmem:[%s6950_s5 + $0x28] sm:$0xff] %v2235_v10  ;;  %v2236_v55 = vmax.f32 %v2226_v26, 0.0  ;;  %v2228_v39 = vadd.f32 %v2227_v34, %v2175_v16  ;;  %v5223_v34 = vld [vmem:[%s6947_s1 + $0xd0] sm:$0xff]  }
 0x2be   :  { %v2997_v47 = vpop.f32.mrf.mxu1  ;;  %4738 = vmatmul.mubr.msk.bf16.gmra.mxu1 %vm635_vm1, %v5221_v51 }
 0x2bf   :  { %2244 = vst [vmem:[%s6950_s5 + $0x30] sm:$0xff] %v2236_v55  ;;  %v2237_v6 = vmax.f32 %v2228_v39, 0.0  ;;  %3245 = vmatprep.mubr.bf16.mxu1 %v7054_v60  ;;  %v2998_v29 = vadd.f32 %v2997_v47, %v6360_v4 }
 0x2c0   :  { %v2999_v1 = vpop.f32.mrf.mxu1 }
 0x2c1   :  { %2245 = vst [vmem:[%s6950_s5 + $0x38] sm:$0xff] %v2237_v6  ;;  %v3000_v40 = vadd.f32 %v2999_v1, %v6360_v4  ;;  %v3316_v7 = vmax.f32 %v2998_v29, 0.0 }
 0x2c2   :  { %v3001_v62 = vpop.f32.mrf.mxu1 }
 0x2c3   :  { %v3002_v25 = vadd.f32 %v3001_v62, %v6364_v24  ;;  %v3317_v27 = vmax.f32 %v3000_v40, 0.0 }
 0x2c4   :  { %v3003_v54 = vpop.f32.mrf.mxu1 }
 0x2c5   :  { %v3318_v49 = vmax.f32 %v3002_v25, 0.0  ;;  %v3004_v0 = vadd.f32 %v3003_v54, %v6364_v24 }
 0x2c6   :  { %v3007_v61 = vpop.f32.mrf.mxu1  ;;  %4739 = vmatmul.mubr.msk.bf16.gmra.mxu1 %vm635_vm1, %v5222_v32 }
 0x2c7   :  { %v6599_v43 = vpack.c.bf16 %v3318_v49, %v3316_v7  ;;  %v3319_v51 = vmax.f32 %v3004_v0, 0.0  ;;  %3255 = vmatprep.mubr.bf16.mxu1 %v7054_v60  ;;  %v3008_v10 = vadd.f32 %v3007_v61, %v6353_v3 }
 0x2c8   :  { %v3009_v16 = vpop.f32.mrf.mxu1 }
 0x2c9   :  { %v6603_v4 = vpack.c.bf16 %v3319_v51, %v3317_v27  ;;  %v3010_v24 = vadd.f32 %v3009_v16, %v6353_v3  ;;  %v3320_v47 = vmax.f32 %v3008_v10, 0.0  ;;  %v5225_v27 = vld [vmem:[%s6947_s1 + $0xe0] sm:$0xff]  }
 0x2ca   :  { %v3011_v26 = vpop.f32.mrf.mxu1 }
 0x2cb   :  { %v3012_v55 = vadd.f32 %v3011_v26, %v6358_v46  ;;  %v3321_v62 = vmax.f32 %v3010_v24, 0.0  ;;  %v5231_v26 = vld [vmem:[%s6948_s3 + $0x4] ss:$16 sps:$4 sm:$0xff]   ;;  %v5226_v24 = vld [vmem:[%s6947_s1 + $0xe8] sm:$0xff]  }
 0x2cc   :  { %v3013_v39 = vpop.f32.mrf.mxu1  ;;  %4380 = vmatprep.mubr.bf16.mxu0 %v5231_v26  ;;  %v5228_v26 = vld [vmem:[%s6947_s1 + $0xf8] sm:$0xff]  }
 0x2cd   :  { %v3322_v6 = vmax.f32 %v3012_v55, 0.0  ;;  %v3014_v1 = vadd.f32 %v3013_v39, %v6358_v46  ;;  %v5224_v46 = vld [vmem:[%s6947_s1 + $0xd8] sm:$0xff]  }
 0x2ce   :  { %v6611_v29 = vpop.f32.mrf.mxu1  ;;  %4740 = vmatmul.mubr.msk.bf16.gmra.mxu1 %vm635_vm1, %v5223_v34 }
 0x2cf   :  { %v6614_v32 = vpack.c.bf16 %v3322_v6, %v3320_v47  ;;  %v3323_v40 = vmax.f32 %v3014_v1, 0.0  ;;  %3265 = vmatprep.mubr.bf16.mxu1 %v7054_v60  ;;  %v5227_v1 = vld [vmem:[%s6947_s1 + $0xf0] sm:$0xff]  }
 0x2d0   :  { %v6617_v25 = vpop.f32.mrf.mxu1 }
 0x2d1   :  { %v6619_v3 = vpack.c.bf16 %v3323_v40, %v3321_v62 }
 0x2d2   :  { %v6621_v54 = vpop.f32.mrf.mxu1 }
 0x2d4   :  { %v6626_v7 = vpop.f32.mrf.mxu1 }
 0x2d6   :  { %v6628_v49 = vpop.f32.mrf.mxu1  ;;  %4741 = vmatmul.mubr.msk.bf16.gmra.mxu1 %vm635_vm1, %v5224_v46 }
 0x2d7   :  { %3275 = vmatprep.mubr.bf16.mxu1 %v7054_v60 }
 0x2d8   :  { %v6632_v0 = vpop.f32.mrf.mxu1 }
 0x2da   :  { %v6634_v61 = vpop.f32.mrf.mxu1 }
 0x2dc   :  { %v3033_v51 = vpop.f32.mrf.mxu1 }
 0x2de   :  { %v6639_v16 = vpop.f32.mrf.mxu1  ;;  %4742 = vmatmul.mubr.msk.bf16.gmra.mxu1 %vm635_vm1, %v5225_v27 }
 0x2df   :  { %3285 = vmatprep.mubr.bf16.mxu1 %v7054_v60 }
 0x2e0   :  { %v3039_v10 = vpop.f32.mrf.mxu1 }
 0x2e2   :  { %v6646_v34 = vpop.f32.mrf.mxu1 }
 0x2e4   :  { %v3043_v55 = vpop.f32.mrf.mxu1 }
 0x2e6   :  { %v3047_v39 = vpop.f32.mrf.mxu1  ;;  %4743 = vmatmul.mubr.msk.bf16.gmra.mxu1 %vm635_vm1, %v5226_v24 }
 0x2e7   :  { %3295 = vmatprep.mubr.bf16.mxu1 %v7054_v60 }
 0x2e8   :  { %v3049_v47 = vpop.f32.mrf.mxu1 }
 0x2ea   :  { %v3051_v6 = vpop.f32.mrf.mxu1 }
 0x2ec   :  { %v3053_v62 = vpop.f32.mrf.mxu1 }
 0x2ee   :  { %v3057_v40 = vpop.f32.mrf.mxu1  ;;  %4744 = vmatmul.mubr.msk.bf16.gmra.mxu1 %vm635_vm1, %v5227_v1 }
 0x2ef   :  { %3305 = vmatprep.mubr.bf16.mxu1 %v7054_v60 }
 0x2f0   :  { %v3059_v46 = vpop.f32.mrf.mxu1 }
 0x2f1   :  { %v3060_v42 = vadd.f32 %v3059_v46, %v6314_v38 }
 0x2f2   :  { %v3061_v27 = vpop.f32.mrf.mxu1 }
 0x2f3   :  { %v3062_v13 = vadd.f32 %v3061_v27, %v6319_v2 }
 0x2f4   :  { %v3063_v24 = vpop.f32.mrf.mxu1 }
 0x2f5   :  { %v3064_v56 = vadd.f32 %v3063_v24, %v6319_v2  ;;  %v3052_v2 = vadd.f32 %v3051_v6, %v6327_v8 }
 0x2f6   :  { %v3067_v9 = vpop.f32.mrf.mxu1  ;;  %4745 = vmatmul.mubr.msk.bf16.gmra.mxu1 %vm635_vm1, %v5228_v26  ;;  %v3054_v26 = vadd.f32 %v3053_v62, %v6327_v8 }
 0x2f7   :  { %v3068_v60 = vadd.f32 %v3067_v9, %v6308_v36  ;;  %v3343_v11 = vmax.f32 %v3064_v56, 0.0  ;;  %v3341_v9 = vmax.f32 %v3060_v42, 0.0  ;;  %v3040_v42 = vadd.f32 %v3039_v10, %v6329_v48 }
 0x2f8   :  { %v3069_v21 = vpop.f32.mrf.mxu1  ;;  %v3339_v56 = vmax.f32 %v3054_v26, 0.0 }
 0x2f9   :  { %v3070_v15 = vadd.f32 %v3069_v21, %v6308_v36  ;;  %v3058_v21 = vadd.f32 %v3057_v40, %v6314_v38  ;;  %v3344_v50 = vmax.f32 %v3068_v60, 0.0  ;;  %v3050_v36 = vadd.f32 %v3049_v47, %v6322_v63 }
 0x2fa   :  { %v3071_v28 = vpop.f32.mrf.mxu1  ;;  %v3034_v47 = vadd.f32 %v3033_v51, %v6342_v58 }
 0x2fb   :  { %v3072_v1 = vadd.f32 %v3071_v28, %v6312_v31  ;;  %v3345_v37 = vmax.f32 %v3070_v15, 0.0  ;;  %v5095_v15 = vpack.c.bf16 %v3343_v11, %v3341_v9  ;;  %v3337_v8 = vmax.f32 %v3050_v36, 0.0 }
 0x2fc   :  { %v3073_v22 = vpop.f32.mrf.mxu1  ;;  %v3042_v11 = vadd.f32 %v6646_v34, %v6333_v23  ;;  %v3331_v9 = vmax.f32 %v3034_v47, 0.0 }
 0x2fd   :  { %v3074_v5 = vadd.f32 %v3073_v22, %v6312_v31  ;;  %v3346_v19 = vmax.f32 %v3072_v1, 0.0  ;;  %v3044_v31 = vadd.f32 %v3043_v55, %v6333_v23  ;;  %v3342_v22 = vmax.f32 %v3062_v13, 0.0 }
 0x2fe   :  { %v3077_v57 = vpop.f32.mrf.mxu1  ;;  %v5093_v40 = vpack.c.bf16 %v3339_v56, %v3337_v8  ;;  %v3334_v36 = vmax.f32 %v3042_v11, 0.0 }
 0x2ff   :  { %v3347_v24 = vmax.f32 %v3074_v5, 0.0  ;;  %v3078_v46 = vadd.f32 %v3077_v57, %v6422_v33  ;;  %v5096_v27 = vpack.c.bf16 %v3346_v19, %v3344_v50  ;;  %v3048_v57 = vadd.f32 %v3047_v39, %v6322_v63 }
 0x300   :  { %v3079_v28 = vpop.f32.mrf.mxu1  ;;  %v3038_v39 = vadd.f32 %v6639_v16, %v6329_v48 }
 0x301   :  { %v5097_v53 = vpack.c.bf16 %v3347_v24, %v3345_v37  ;;  %v3080_v5 = vadd.f32 %v3079_v28, %v6422_v33  ;;  %v3340_v37 = vmax.f32 %v3058_v21, 0.0  ;;  %v3348_v13 = vmax.f32 %v3078_v46, 0.0 }
 0x302   :  { %v3081_v62 = vpop.f32.mrf.mxu1  ;;  %v3335_v33 = vmax.f32 %v3044_v31, 0.0  ;;  %v3336_v60 = vmax.f32 %v3048_v57, 0.0  ;;  %v3333_v24 = vmax.f32 %v3040_v42, 0.0  ;;  %v3024_v21 = vadd.f32 %v6626_v7, %v6349_v14 }
 0x303   :  { %v3082_v38 = vadd.f32 %v3081_v62, %v6426_v12  ;;  %4348 = vmatprep.subr.bf16.mxu0 %v5097_v53  ;;  %v3338_v53 = vmax.f32 %v3052_v2, 0.0  ;;  %v5094_v6 = vpack.c.bf16 %v3342_v22, %v3340_v37  ;;  %v3349_v10 = vmax.f32 %v3080_v5, 0.0 }
 0x304   :  { %v3083_v55 = vpop.f32.mrf.mxu1  ;;  %4349 = vmatpush1.bf16.msra.mxu0 %v5096_v27  ;;  %v3032_v28 = vadd.f32 %v6634_v61, %v6342_v58  ;;  %v5091_v46 = vpack.c.bf16 %v3335_v33, %v3333_v24  ;;  %v3020_v2 = vadd.f32 %v6617_v25, %v6344_v17  ;;  %v3028_v22 = vadd.f32 %v6628_v49, %v6338_v41 }
 0x305   :  { %v3350_v50 = vmax.f32 %v3082_v38, 0.0  ;;  %v3084_v19 = vadd.f32 %v3083_v55, %v6426_v12  ;;  %4350 = vmatprep.subr.bf16.mxu0 %v5095_v15  ;;  %v3030_v12 = vadd.f32 %v6632_v0, %v6338_v41  ;;  %v5092_v48 = vpack.c.bf16 %v3338_v53, %v3336_v60 }
 0x306   :  { %v3087_v51 = vpop.f32.mrf.mxu1  ;;  %v3332_v27 = vmax.f32 %v3038_v39, 0.0  ;;  %v3327_v15 = vmax.f32 %v3024_v21, 0.0  ;;  %v3330_v5 = vmax.f32 %v3032_v28, 0.0  ;;  %v3018_v57 = vadd.f32 %v6611_v29, %v6344_v17 }
 0x307   :  { %v6683_v1 = vpack.c.bf16 %v3350_v50, %v3348_v13  ;;  %v3351_v63 = vmax.f32 %v3084_v19, 0.0  ;;  %v3088_v34 = vadd.f32 %v3087_v51, %v6415_v52  ;;  %v3329_v62 = vmax.f32 %v3030_v12, 0.0 }
 0x308   :  { %v3089_v26 = vpop.f32.mrf.mxu1  ;;  %4351 = vmatpush1.bf16.msra.mxu0 %v5094_v6  ;;  %v5090_v38 = vpack.c.bf16 %v3334_v36, %v3332_v27  ;;  %v3328_v37 = vmax.f32 %v3028_v22, 0.0  ;;  %v3324_v19 = vmax.f32 %v3018_v57, 0.0 }
 0x309   :  { %v6689_v23 = vpack.c.bf16 %v3351_v63, %v3349_v10  ;;  %4352 = vmatprep.subr.bf16.mxu0 %v5093_v40  ;;  %v3090_v31 = vadd.f32 %v3089_v26, %v6415_v52  ;;  %v3352_v58 = vmax.f32 %v3088_v34, 0.0  ;;  %v3022_v52 = vadd.f32 %v6621_v54, %v6349_v14 }
 0x30a   :  { %v3091_v16 = vpop.f32.mrf.mxu1  ;;  %v5089_v49 = vpack.c.bf16 %v3331_v9, %v3329_v62  ;;  %v5088_v54 = vpack.c.bf16 %v3330_v5, %v3328_v37 }
 0x30b   :  { %v3092_v0 = vadd.f32 %v3091_v16, %v6420_v18  ;;  %v3353_v25 = vmax.f32 %v3090_v31, 0.0  ;;  %v3326_v14 = vmax.f32 %v3022_v52, 0.0 }
 0x30c   :  { %v3093_v7 = vpop.f32.mrf.mxu1  ;;  %4353 = vmatpush1.bf16.msra.mxu0 %v5092_v48 }
 0x30d   :  { %v3354_v61 = vmax.f32 %v3092_v0, 0.0  ;;  %v3094_v56 = vadd.f32 %v3093_v7, %v6420_v18  ;;  %4354 = vmatprep.subr.bf16.mxu0 %v5091_v46  ;;  %v3325_v18 = vmax.f32 %v3020_v2, 0.0  ;;  %v5086_v33 = vpack.c.bf16 %v3326_v14, %v3324_v19  ;;  %v7096_v19 = vld [vmem:[#allocation4_spill] sm:$0xff] }
 0x30e   :  { %v6705_v47 = vpop.f32.mrf.mxu1 }
 0x30f   :  { %v6707_v42 = vpack.c.bf16 %v3354_v61, %v3352_v58  ;;  %v3355_v41 = vmax.f32 %v3094_v56, 0.0  ;;  %v5087_v50 = vpack.c.bf16 %v3327_v15, %v3325_v18 }
 0x310   :  { %v6711_v55 = vpop.f32.mrf.mxu1  ;;  %4355 = vmatpush1.bf16.msra.mxu0 %v5090_v38  ;;  %v7093_v38 = vld [vmem:[#allocation23_spill] sm:$0xff] }
 0x311   :  { %v6713_v8 = vpack.c.bf16 %v3355_v41, %v3353_v25  ;;  %4356 = vmatprep.subr.bf16.mxu0 %v5089_v49 }
 0x312   :  { %v6715_v13 = vpop.f32.mrf.mxu1 }
 0x314   :  { %v6717_v11 = vpop.f32.mrf.mxu1  ;;  %4357 = vmatpush1.bf16.msra.mxu0 %v5088_v54 }
 0x315   :  { %4358 = vmatprep.subr.bf16.mxu0 %v5087_v50 }
 0x316   :  { %v6719_v17 = vpop.f32.mrf.mxu1 }
 0x318   :  { %v6721_v29 = vpop.f32.mrf.mxu1  ;;  %4359 = vmatpush1.bf16.msra.mxu0 %v5086_v33 }
 0x319   :  { %4360 = vmatprep.subr.bf16.mxu0 %v6619_v3 }
 0x31a   :  { %v6724_v53 = vpop.f32.mrf.mxu1 }
 0x31c   :  { %v3113_v6 = vpop.f32.mrf.mxu1  ;;  %4361 = vmatpush1.bf16.msra.mxu0 %v6614_v32 }
 0x31d   :  { %4362 = vmatprep.subr.bf16.mxu0 %v6603_v4  ;;  %v3114_v33 = vadd.f32 %v3113_v6, %v7096_v19 }
 0x31e   :  { %v6728_v51 = vpop.f32.mrf.mxu1 }
 0x320   :  { %v3119_v40 = vpop.f32.mrf.mxu1  ;;  %4363 = vmatpush1.bf16.msra.mxu0 %v6599_v43 }
 0x322   :  { %v3121_v10 = vpop.f32.mrf.mxu1 }
 0x324   :  { %v3123_v63 = vpop.f32.mrf.mxu1 }
 0x326   :  { %v3127_v39 = vpop.f32.mrf.mxu1 }
 0x328   :  { %v3129_v60 = vpop.f32.mrf.mxu1 }
 0x32a   :  { %v3131_v26 = vpop.f32.mrf.mxu1 }
 0x32c   :  { %v3133_v12 = vpop.f32.mrf.mxu1 }
 0x32d   :  { %v3134_v27 = vadd.f32 %v3133_v12, %v6389_v59 }
 0x32e   :  { %v3137_v24 = vpop.f32.mrf.mxu1 }
 0x32f   :  { %v3138_v61 = vadd.f32 %v3137_v24, %v6375_v35  ;;  %v3371_v18 = vmax.f32 %v3134_v27, 0.0  ;;  %v3128_v24 = vadd.f32 %v3127_v39, %v6384_v45  ;;  %v7100_v27 = vld [vmem:[#allocation14_spill] sm:$0xff] }
 0x330   :  { %v3139_v3 = vpop.f32.mrf.mxu1 }
 0x331   :  { %v3140_v46 = vadd.f32 %v3139_v3, %v6375_v35  ;;  %v7095_v35 = vld [vmem:[#allocation24_spill] sm:$0xff]  ;;  %v3372_v3 = vmax.f32 %v3138_v61, 0.0 }
 0x332   :  { %v3141_v34 = vpop.f32.mrf.mxu1 }
 0x333   :  { %v3142_v0 = vadd.f32 %v3141_v34, %v6380_v30  ;;  %v3373_v15 = vmax.f32 %v3140_v46, 0.0  ;;  %v7098_v46 = vld [vmem:[#allocation5_spill] sm:$0xff] }
 0x334   :  { %v3143_v21 = vpop.f32.mrf.mxu1 }
 0x335   :  { %v3144_v4 = vadd.f32 %v3143_v21, %v6380_v30  ;;  %v3132_v30 = vadd.f32 %v3131_v26, %v6389_v59  ;;  %v3374_v49 = vmax.f32 %v3142_v0, 0.0 }
 0x336   :  { %v3147_v28 = vpop.f32.mrf.mxu1 }
 0x337   :  { %v3148_v43 = vadd.f32 %v3147_v28, %v6369_v44  ;;  %v3375_v7 = vmax.f32 %v3144_v4, 0.0  ;;  %v5110_v4 = vpack.c.bf16 %v3374_v49, %v3372_v3 }
 0x338   :  { %v3149_v36 = vpop.f32.mrf.mxu1 }
 0x339   :  { %v3150_v48 = vadd.f32 %v3149_v36, %v6369_v44  ;;  %v3376_v56 = vmax.f32 %v3148_v43, 0.0  ;;  %v3130_v44 = vadd.f32 %v3129_v60, %v6384_v45  ;;  %v5111_v14 = vpack.c.bf16 %v3375_v7, %v3373_v15  ;;  %v7097_v60 = vld [vmem:[#allocation12_spill] sm:$0xff] }
 0x33a   :  { %v3151_v32 = vpop.f32.mrf.mxu1  ;;  %v3120_v12 = vadd.f32 %v3119_v40, %v7097_v60  ;;  %v3118_v39 = vadd.f32 %v6728_v51, %v7097_v60  ;;  %v3368_v43 = vmax.f32 %v3128_v24, 0.0  ;;  %v3104_v7 = vadd.f32 %v6717_v11, %v7100_v27 }
 0x33b   :  { %v3152_v16 = vadd.f32 %v3151_v32, %v6373_v20  ;;  %v3377_v62 = vmax.f32 %v3150_v48, 0.0  ;;  %v3369_v59 = vmax.f32 %v3130_v44, 0.0  ;;  %v3370_v32 = vmax.f32 %v3132_v30, 0.0 }
 0x33c   :  { %v3153_v9 = vpop.f32.mrf.mxu1  ;;  %v3365_v0 = vmax.f32 %v3120_v12, 0.0 }
 0x33d   :  { %v3154_v31 = vadd.f32 %v3153_v9, %v6373_v20  ;;  %v3378_v2 = vmax.f32 %v3152_v16, 0.0  ;;  %v7094_v20 = vld [vmem:[#allocation13_spill] sm:$0xff]  ;;  %v5109_v6 = vpack.c.bf16 %v3371_v18, %v3369_v59  ;;  %v5108_v51 = vpack.c.bf16 %v3370_v32, %v3368_v43  ;;  %v5237_v43 = vld [vmem:[%s6948_s3 + $0xc] ss:$16 sps:$4 sm:$0xff]  }
 0x33e   :  { %v3157_v22 = vpop.f32.mrf.mxu1  ;;  %v3124_v41 = vadd.f32 %v3123_v63, %v7094_v20  ;;  %v3122_v28 = vadd.f32 %v3121_v10, %v7094_v20  ;;  %v3364_v20 = vmax.f32 %v3118_v39, 0.0 }
 0x33f   :  { %v3379_v58 = vmax.f32 %v3154_v31, 0.0  ;;  %v3158_v25 = vadd.f32 %v3157_v22, %v7093_v38  ;;  %v5112_v57 = vpack.c.bf16 %v3378_v2, %v3376_v56  ;;  %v3110_v31 = vadd.f32 %v6721_v29, %v7098_v46  ;;  %v7099_v2 = vld [vmem:[#allocation21_spill] sm:$0xff]  ;;  %v7101_v29 = vld [vmem:[#allocation22_spill] sm:$0xff] }
 0x340   :  { %v3159_v52 = vpop.f32.mrf.mxu1  ;;  %v3367_v36 = vmax.f32 %v3124_v41, 0.0  ;;  %v3363_v56 = vmax.f32 %v3114_v33, 0.0 }
 0x341   :  { %v5113_v5 = vpack.c.bf16 %v3379_v58, %v3377_v62  ;;  %v3160_v54 = vadd.f32 %v3159_v52, %v7093_v38  ;;  %v3380_v26 = vmax.f32 %v3158_v25, 0.0  ;;  %v3112_v62 = vadd.f32 %v6724_v53, %v7096_v19 }
 0x342   :  { %v3161_v37 = vpop.f32.mrf.mxu1  ;;  %v3366_v58 = vmax.f32 %v3122_v28, 0.0  ;;  %v5107_v52 = vpack.c.bf16 %v3367_v36, %v3365_v0  ;;  %v3108_v25 = vadd.f32 %v6719_v17, %v7098_v46  ;;  %v3361_v41 = vmax.f32 %v3110_v31, 0.0 }
 0x343   :  { %v3162_v50 = vadd.f32 %v3161_v37, %v7095_v35  ;;  %4364 = vmatprep.subr.bf16.mxu0 %v5113_v5  ;;  %v3381_v16 = vmax.f32 %v3160_v54, 0.0  ;;  %v7102_v5 = vld [vmem:[#allocation3_spill] sm:$0xff]  ;;  %v3359_v37 = vmax.f32 %v3104_v7, 0.0  ;;  %v3362_v18 = vmax.f32 %v3112_v62, 0.0  ;;  %v7103_v62 = vld [vmem:[#allocation8_spill] sm:$0xff] }
 0x344   :  { %v3163_v63 = vpop.f32.mrf.mxu1  ;;  %4365 = vmatpush2.bf16.msra.mxu0 %v5112_v57  ;;  %v3100_v38 = vadd.f32 %v6711_v55, %v7102_v5  ;;  %v3102_v57 = vadd.f32 %v6715_v13, %v7100_v27  ;;  %v5105_v55 = vpack.c.bf16 %v3363_v56, %v3361_v41  ;;  %v3098_v19 = vadd.f32 %v6705_v47, %v7102_v5  ;;  %v7105_v56 = vld [vmem:[#allocation6_spill] sm:$0xff]  ;;  %v7107_v41 = vld [vmem:[#allocation9_spill] sm:$0xff] }
 0x345   :  { %v3382_v34 = vmax.f32 %v3162_v50, 0.0  ;;  %v3164_v21 = vadd.f32 %v3163_v63, %v7095_v35  ;;  %4366 = vmatprep.subr.bf16.mxu0 %v5111_v14  ;;  %v5106_v14 = vpack.c.bf16 %v3366_v58, %v3364_v20  ;;  %v3360_v33 = vmax.f32 %v3108_v25, 0.0 }
 0x346   :  { %v3167_v48 = vpop.f32.mrf.mxu1  ;;  %v3357_v12 = vmax.f32 %v3100_v38, 0.0  ;;  %v3358_v13 = vmax.f32 %v3102_v57, 0.0 }
 0x347   :  { %v6751_v40 = vpack.c.bf16 %v3382_v34, %v3380_v26  ;;  %v3383_v45 = vmax.f32 %v3164_v21, 0.0  ;;  %v3168_v22 = vadd.f32 %v3167_v48, %v7099_v2  ;;  %v5104_v3 = vpack.c.bf16 %v3362_v18, %v3360_v33  ;;  %v5229_v48 = vld [vmem:[%s6948_s3] ss:$16 sps:$4 sm:$0xff]  }
 0x348   :  { %v3169_v9 = vpop.f32.mrf.mxu1  ;;  %4367 = vmatpush2.bf16.msra.mxu0 %v5110_v4  ;;  %v5103_v59 = vpack.c.bf16 %v3359_v37, %v3357_v12  ;;  %v3356_v26 = vmax.f32 %v3098_v19, 0.0  ;;  %v7109_v33 = vld [vmem:[#allocation39_spill] sm:$0xff] }
 0x349   :  { %v6757_v10 = vpack.c.bf16 %v3383_v45, %v3381_v16  ;;  %4368 = vmatprep.subr.bf16.mxu0 %v5109_v6  ;;  %v3170_v44 = vadd.f32 %v3169_v9, %v7099_v2  ;;  %v3384_v53 = vmax.f32 %v3168_v22, 0.0 }
 0x34a   :  { %v3171_v61 = vpop.f32.mrf.mxu1  ;;  %v5102_v21 = vpack.c.bf16 %v3358_v13, %v3356_v26  ;;  %v7110_v13 = vld [vmem:[#allocation16_spill] sm:$0xff] }
 0x34b   :  { %v3172_v15 = vadd.f32 %v3171_v61, %v7101_v29  ;;  %v3385_v35 = vmax.f32 %v3170_v44, 0.0 }
 0x34c   :  { %v3173_v11 = vpop.f32.mrf.mxu1  ;;  %4369 = vmatpush2.bf16.msra.mxu0 %v5108_v51  ;;  %v7104_v51 = vld [vmem:[#allocation7_spill] sm:$0xff] }
 0x34d   :  { %v3386_v30 = vmax.f32 %v3172_v15, 0.0  ;;  %v3174_v49 = vadd.f32 %v3173_v11, %v7101_v29  ;;  %4370 = vmatprep.subr.bf16.mxu0 %v5107_v52  ;;  %v7106_v15 = vld [vmem:[#allocation10_spill] sm:$0xff] }
 0x34e   :  { %v6773_v54 = vpop.f32.mrf.mxu1 }
 0x34f   :  { %v6775_v17 = vpack.c.bf16 %v3386_v30, %v3384_v53  ;;  %v3387_v50 = vmax.f32 %v3174_v49, 0.0 }
 0x350   :  { %v6779_v60 = vpop.f32.mrf.mxu1  ;;  %4371 = vmatpush2.bf16.msra.mxu0 %v5106_v14 }
 0x351   :  { %v6781_v24 = vpack.c.bf16 %v3387_v50, %v3385_v35  ;;  %4372 = vmatprep.subr.bf16.mxu0 %v5105_v55  ;;  %v7108_v55 = vld [vmem:[#allocation11_spill] sm:$0xff] }
 0x352   :  { %v6783_v63 = vpop.f32.mrf.mxu1 }
 0x354   :  { %v6785_v34 = vpop.f32.mrf.mxu1  ;;  %4373 = vmatpush2.bf16.msra.mxu0 %v5104_v3 }
 0x355   :  { %4374 = vmatprep.subr.bf16.mxu0 %v5103_v59 }
 0x356   :  { %v6787_v47 = vpop.f32.mrf.mxu1 }
 0x358   :  { %v6789_v28 = vpop.f32.mrf.mxu1  ;;  %4375 = vmatpush2.bf16.msra.mxu0 %v5102_v21 }
 0x359   :  { %4376 = vmatprep.subr.bf16.mxu0 %v6713_v8  ;;  %v5234_v8 = vld [vmem:[%s6948_s3 + $0x24] ss:$16 sps:$4 sm:$0xff]  }
 0x35a   :  { %v6792_v36 = vpop.f32.mrf.mxu1 }
 0x35c   :  { %v3193_v32 = vpop.f32.mrf.mxu1  ;;  %4377 = vmatpush2.bf16.msra.mxu0 %v6707_v42 }
 0x35d   :  { %4378 = vmatprep.subr.bf16.mxu0 %v6689_v23  ;;  %v5232_v23 = vld [vmem:[%s6948_s3 + $0x20] ss:$16 sps:$4 sm:$0xff]  }
 0x35e   :  { %v6796_v4 = vpop.f32.mrf.mxu1 }
 0x360   :  { %v3199_v6 = vpop.f32.mrf.mxu1  ;;  %4379 = vmatpush2.bf16.msra.mxu0 %v6683_v1 }
 0x362   :  { %v3201_v16 = vpop.f32.mrf.mxu1 }
 0x363   :  { %4381 = vmatmul.mubr.bf16.vlgmr.msra.gmra.mxu0 %v5229_v48 }
 0x364   :  { %v3203_v45 = vpop.f32.mrf.mxu1  ;;  %4390 = vmatprep.mubr.bf16.mxu0 %v5234_v8 }
 0x365   :  { %v3204_v3 = vadd.f32 %v3203_v45, %v7110_v13 }
 0x366   :  { %v3207_v42 = vpop.f32.mrf.mxu1 }
 0x368   :  { %v3209_v39 = vpop.f32.mrf.mxu1 }
 0x369   :  { %v3210_v35 = vadd.f32 %v3209_v39, %v7108_v55 }
 0x36a   :  { %v3211_v9 = vpop.f32.mrf.mxu1 }
 0x36b   :  { %4391 = vmatmul.mubr.bf16.gmra.mxu0 %v5232_v23  ;;  %v3212_v59 = vadd.f32 %v3211_v9, %v7107_v41  ;;  %v3401_v9 = vmax.f32 %v3210_v35, 0.0 }
 0x36c   :  { %v3213_v1 = vpop.f32.mrf.mxu1  ;;  %4433 = vmatprep.mubr.bf16.mxu0 %v5237_v43 }
 0x36d   :  { %v3214_v53 = vadd.f32 %v3213_v1, %v7107_v41  ;;  %v7111_v1 = vld [vmem:[#allocation40_spill] sm:$0xff]  ;;  %v7115_v41 = vld [vmem:[#allocation37_spill] sm:$0xff] }
 0x36e   :  { %v3217_v46 = vpop.f32.mrf.mxu1 }
 0x36f   :  { %v3218_v37 = vadd.f32 %v3217_v46, %v7106_v15  ;;  %v3403_v8 = vmax.f32 %v3214_v53, 0.0 }
 0x370   :  { %v3219_v31 = vpop.f32.mrf.mxu1 }
 0x371   :  { %v3220_v5 = vadd.f32 %v3219_v31, %v7106_v15  ;;  %v7112_v31 = vld [vmem:[#allocation18_spill] sm:$0xff] }
 0x372   :  { %v3221_v0 = vpop.f32.mrf.mxu1  ;;  %v3194_v39 = vadd.f32 %v3193_v32, %v7112_v31  ;;  %v5125_v32 = vpack.c.bf16 %v3403_v8, %v3401_v9 }
 0x373   :  { %v3222_v25 = vadd.f32 %v3221_v0, %v7103_v62  ;;  %v3405_v50 = vmax.f32 %v3220_v5, 0.0  ;;  %v7113_v0 = vld [vmem:[#allocation15_spill] sm:$0xff] }
 0x374   :  { %v3223_v2 = vpop.f32.mrf.mxu1  ;;  %v3198_v15 = vadd.f32 %v6796_v4, %v7113_v0 }
 0x375   :  { %v3224_v58 = vadd.f32 %v3223_v2, %v7103_v62  ;;  %v3406_v26 = vmax.f32 %v3222_v25, 0.0  ;;  %v3200_v2 = vadd.f32 %v3199_v6, %v7113_v0  ;;  %v7114_v25 = vld [vmem:[#allocation17_spill] sm:$0xff] }
 0x376   :  { %v3227_v22 = vpop.f32.mrf.mxu1 }
 0x377   :  { %v3228_v44 = vadd.f32 %v3227_v22, %v7104_v51  ;;  %v3407_v30 = vmax.f32 %v3224_v58, 0.0  ;;  %v3208_v22 = vadd.f32 %v3207_v42, %v7108_v55 }
 0x378   :  { %v3229_v27 = vpop.f32.mrf.mxu1 }
 0x379   :  { %v3230_v61 = vadd.f32 %v3229_v27, %v7104_v51  ;;  %v3408_v18 = vmax.f32 %v3228_v44, 0.0  ;;  %v5127_v23 = vpack.c.bf16 %v3407_v30, %v3405_v50  ;;  %v3404_v27 = vmax.f32 %v3218_v37, 0.0  ;;  %v7116_v30 = vld [vmem:[#allocation20_spill] sm:$0xff] }
 0x37a   :  { %v3231_v7 = vpop.f32.mrf.mxu1  ;;  %v3202_v51 = vadd.f32 %v3201_v16, %v7110_v13  ;;  %v3400_v5 = vmax.f32 %v3208_v22, 0.0  ;;  %v3396_v13 = vmax.f32 %v3198_v15, 0.0 }
 0x37b   :  { %v3232_v52 = vadd.f32 %v3231_v7, %v7105_v56  ;;  %v3409_v49 = vmax.f32 %v3230_v61, 0.0  ;;  %v3399_v61 = vmax.f32 %v3204_v3, 0.0 }
 0x37c   :  { %v3233_v29 = vpop.f32.mrf.mxu1  ;;  %v3398_v37 = vmax.f32 %v3202_v51, 0.0 }
 0x37d   :  { %v3234_v38 = vadd.f32 %v3233_v29, %v7105_v56  ;;  %v3410_v20 = vmax.f32 %v3232_v52, 0.0  ;;  %v3402_v56 = vmax.f32 %v3212_v59, 0.0  ;;  %v5126_v52 = vpack.c.bf16 %v3406_v26, %v3404_v27 }
 0x37e   :  { %v3237_v11 = vpop.f32.mrf.mxu1 }
 0x37f   :  { %v3411_v57 = vmax.f32 %v3234_v38, 0.0  ;;  %v3238_v12 = vadd.f32 %v3237_v11, %v7109_v33  ;;  %v5128_v21 = vpack.c.bf16 %v3410_v20, %v3408_v18  ;;  %v3190_v20 = vadd.f32 %v6789_v28, %v7114_v25  ;;  %v7117_v28 = vld [vmem:[#allocation38_spill] sm:$0xff] }
 0x380   :  { %v3239_v14 = vpop.f32.mrf.mxu1  ;;  %v3397_v11 = vmax.f32 %v3200_v2, 0.0  ;;  %v5124_v4 = vpack.c.bf16 %v3402_v56, %v3400_v5 }
 0x381   :  { %v5129_v19 = vpack.c.bf16 %v3411_v57, %v3409_v49  ;;  %v3240_v43 = vadd.f32 %v3239_v14, %v7109_v33  ;;  %v3412_v7 = vmax.f32 %v3238_v12, 0.0  ;;  %v3184_v49 = vadd.f32 %v6785_v34, %v7116_v30 }
 0x382   :  { %v3241_v48 = vpop.f32.mrf.mxu1  ;;  %v3192_v57 = vadd.f32 %v6792_v36, %v7112_v31  ;;  %v3395_v14 = vmax.f32 %v3194_v39, 0.0  ;;  %v5123_v55 = vpack.c.bf16 %v3399_v61, %v3397_v11  ;;  %v3188_v12 = vadd.f32 %v6787_v47, %v7114_v25 }
 0x383   :  { %v3242_v46 = vadd.f32 %v3241_v48, %v7111_v1  ;;  %4401 = vmatprep.subr.bf16.mxu0 %v5129_v19  ;;  %v3413_v29 = vmax.f32 %v3240_v43, 0.0  ;;  %v7118_v19 = vld [vmem:[#allocation19_spill] sm:$0xff]  ;;  %v3393_v3 = vmax.f32 %v3190_v20, 0.0  ;;  %v3391_v48 = vmax.f32 %v3184_v49, 0.0 }
 0x384   :  { %v3243_v45 = vpop.f32.mrf.mxu1  ;;  %4402 = vmatpush1.bf16.msra.mxu0 %v5128_v21  ;;  %v3180_v33 = vadd.f32 %v6779_v60, %v7118_v19  ;;  %v3182_v21 = vadd.f32 %v6783_v63, %v7116_v30  ;;  %v3394_v8 = vmax.f32 %v3192_v57, 0.0  ;;  %v3178_v31 = vadd.f32 %v6773_v54, %v7118_v19  ;;  %v7123_v19 = vld [vmem:[#allocation30_spill] sm:$0xff] }
 0x385   :  { %v3414_v62 = vmax.f32 %v3242_v46, 0.0  ;;  %v3244_v58 = vadd.f32 %v3243_v45, %v7111_v1  ;;  %4403 = vmatprep.subr.bf16.mxu0 %v5127_v23  ;;  %v5122_v23 = vpack.c.bf16 %v3398_v37, %v3396_v13  ;;  %v5121_v60 = vpack.c.bf16 %v3395_v14, %v3393_v3  ;;  %v7121_v37 = vld [vmem:[#allocation26_spill] sm:$0xff]  ;;  %v7122_v14 = vld [vmem:[#allocation27_spill] sm:$0xff] }
 0x386   :  { %v3247_v44 = vpop.f32.mrf.mxu1  ;;  %v3392_v39 = vmax.f32 %v3188_v12, 0.0  ;;  %v3389_v2 = vmax.f32 %v3180_v33, 0.0  ;;  %v3390_v63 = vmax.f32 %v3182_v21, 0.0 }
 0x387   :  { %v6831_v6 = vpack.c.bf16 %v3414_v62, %v3412_v7  ;;  %v3415_v42 = vmax.f32 %v3244_v58, 0.0  ;;  %v3248_v53 = vadd.f32 %v3247_v44, %v7115_v41  ;;  %v3388_v7 = vmax.f32 %v3178_v31, 0.0 }
 0x388   :  { %v3249_v38 = vpop.f32.mrf.mxu1  ;;  %4404 = vmatpush1.bf16.msra.mxu0 %v5126_v52  ;;  %v5120_v27 = vpack.c.bf16 %v3394_v8, %v3392_v39  ;;  %v5119_v9 = vpack.c.bf16 %v3391_v48, %v3389_v2 }
 0x389   :  { %v6837_v16 = vpack.c.bf16 %v3415_v42, %v3413_v29  ;;  %4405 = vmatprep.subr.bf16.mxu0 %v5125_v32  ;;  %v3250_v35 = vadd.f32 %v3249_v38, %v7115_v41  ;;  %v3416_v36 = vmax.f32 %v3248_v53, 0.0  ;;  %v5118_v58 = vpack.c.bf16 %v3390_v63, %v3388_v7 }
 0x38a   :  { %v3251_v18 = vpop.f32.mrf.mxu1 }
 0x38b   :  { %v3252_v50 = vadd.f32 %v3251_v18, %v7117_v28  ;;  %v3417_v1 = vmax.f32 %v3250_v35, 0.0 }
 0x38c   :  { %v3253_v34 = vpop.f32.mrf.mxu1  ;;  %4406 = vmatpush1.bf16.msra.mxu0 %v5124_v4 }
 0x38d   :  { %v3418_v59 = vmax.f32 %v3252_v50, 0.0  ;;  %v3254_v26 = vadd.f32 %v3253_v34, %v7117_v28  ;;  %4407 = vmatprep.subr.bf16.mxu0 %v5123_v55 }
 0x38e   :  { %v6853_v43 = vpop.f32.mrf.mxu1 }
 0x38f   :  { %v6855_v47 = vpack.c.bf16 %v3418_v59, %v3416_v36  ;;  %v3419_v46 = vmax.f32 %v3254_v26, 0.0  ;;  %v7124_v59 = vld [vmem:[#allocation29_spill] sm:$0xff] }
 0x390   :  { %v6859_v0 = vpop.f32.mrf.mxu1  ;;  %4408 = vmatpush1.bf16.msra.mxu0 %v5122_v23 }
 0x391   :  { %v6861_v22 = vpack.c.bf16 %v3419_v46, %v3417_v1  ;;  %4409 = vmatprep.subr.bf16.mxu0 %v5121_v60  ;;  %v7125_v1 = vld [vmem:[#allocation32_spill] sm:$0xff] }
 0x392   :  { %v6863_v45 = vpop.f32.mrf.mxu1 }
 0x394   :  { %v6865_v62 = vpop.f32.mrf.mxu1  ;;  %4410 = vmatpush1.bf16.msra.mxu0 %v5120_v27  ;;  %v7126_v27 = vld [vmem:[#allocation31_spill] sm:$0xff] }
 0x395   :  { %4411 = vmatprep.subr.bf16.mxu0 %v5119_v9 }
 0x396   :  { %v6867_v54 = vpop.f32.mrf.mxu1 }
 0x398   :  { %v6869_v51 = vpop.f32.mrf.mxu1  ;;  %4412 = vmatpush1.bf16.msra.mxu0 %v5118_v58 }
 0x399   :  { %4413 = vmatprep.subr.bf16.mxu0 %v6781_v24 }
 0x39a   :  { %v6872_v61 = vpop.f32.mrf.mxu1 }
 0x39c   :  { %v3273_v56 = vpop.f32.mrf.mxu1  ;;  %4414 = vmatpush1.bf16.msra.mxu0 %v6775_v17  ;;  %v7119_v17 = vld [vmem:[#allocation28_spill] sm:$0xff] }
 0x39d   :  { %4415 = vmatprep.subr.bf16.mxu0 %v6757_v10  ;;  %v7120_v10 = vld [vmem:[#allocation25_spill] sm:$0xff] }
 0x39e   :  { %v3277_v52 = vpop.f32.mrf.mxu1 }
 0x3a0   :  { %v3279_v44 = vpop.f32.mrf.mxu1  ;;  %4416 = vmatpush1.bf16.msra.mxu0 %v6751_v40 }
 0x3a1   :  { %v3280_v9 = vadd.f32 %v3279_v44, %v7126_v27 }
 0x3a2   :  { %v3281_v32 = vpop.f32.mrf.mxu1 }
 0x3a3   :  { %v3282_v58 = vadd.f32 %v3281_v32, %v7125_v1 }
 0x3a4   :  { %v3283_v29 = vpop.f32.mrf.mxu1 }
 0x3a5   :  { %v3284_v46 = vadd.f32 %v3283_v29, %v7125_v1  ;;  %v3278_v29 = vadd.f32 %v3277_v52, %v7126_v27 }
 0x3a6   :  { %v3287_v42 = vpop.f32.mrf.mxu1 }
 0x3a7   :  { %v3288_v2 = vadd.f32 %v3287_v42, %v7124_v59 }
 0x3a8   :  { %v3289_v15 = vpop.f32.mrf.mxu1 }
 0x3a9   :  { %v3290_v26 = vadd.f32 %v3289_v15, %v7124_v59  ;;  %v3971_v59 = vpop.permute.xlu0 %3970 }
 0x3aa   :  { %v3291_v5 = vpop.f32.mrf.mxu1 }
 0x3ab   :  { %v3292_v8 = vadd.f32 %v3291_v5, %v7123_v19  ;;  %v3433_v7 = vmax.f32 %v3290_v26, 0.0  ;;  %v7127_v5 = vld [vmem:[#allocation34_spill] sm:$0xff] }
 0x3ac   :  { %v3293_v38 = vpop.f32.mrf.mxu1  ;;  %v3272_v44 = vadd.f32 %v6872_v61, %v7127_v5 }
 0x3ad   :  { %v3294_v33 = vadd.f32 %v3293_v38, %v7123_v19  ;;  %v3434_v15 = vmax.f32 %v3292_v8, 0.0 }
 0x3ae   :  { %v3297_v25 = vpop.f32.mrf.mxu1 }
 0x3af   :  { %v3298_v3 = vadd.f32 %v3297_v25, %v7122_v14  ;;  %v3435_v31 = vmax.f32 %v3294_v33, 0.0  ;;  %v3274_v25 = vadd.f32 %v3273_v56, %v7127_v5 }
 0x3b0   :  { %v3299_v20 = vpop.f32.mrf.mxu1 }
 0x3b1   :  { %v3300_v55 = vadd.f32 %v3299_v20, %v7122_v14  ;;  %v3436_v63 = vmax.f32 %v3298_v3, 0.0  ;;  %v3431_v20 = vmax.f32 %v3284_v46, 0.0  ;;  %v3427_v56 = vmax.f32 %v3274_v25, 0.0 }
 0x3b2   :  { %v3301_v24 = vpop.f32.mrf.mxu1 }
 0x3b3   :  { %v3302_v28 = vadd.f32 %v3301_v24, %v7119_v17  ;;  %v3437_v21 = vmax.f32 %v3300_v55, 0.0  ;;  %v5141_v24 = vpack.c.bf16 %v3435_v31, %v3433_v7 }
 0x3b4   :  { %v3303_v11 = vpop.f32.mrf.mxu1 }
 0x3b5   :  { %v3304_v49 = vadd.f32 %v3303_v11, %v7119_v17  ;;  %v3438_v23 = vmax.f32 %v3302_v28, 0.0  ;;  %v3432_v11 = vmax.f32 %v3288_v2, 0.0  ;;  %v7129_v17 = vld [vmem:[#allocation36_spill] sm:$0xff] }
 0x3b6   :  { %v3307_v41 = vpop.f32.mrf.mxu1  ;;  %v3262_v61 = vadd.f32 %v6863_v45, %v7129_v17  ;;  %v5240_v45 = vld [vmem:[%s6948_s3 + $0x2c] ss:$16 sps:$4 sm:$0xff]  }
 0x3b7   :  { %v3308_v40 = vadd.f32 %v3307_v41, %v7120_v10  ;;  %v3439_v12 = vmax.f32 %v3304_v49, 0.0  ;;  %v5142_v38 = vpack.c.bf16 %v3438_v23, %v3436_v63  ;;  %v7128_v41 = vld [vmem:[#allocation33_spill] sm:$0xff]  ;;  %v5140_v32 = vpack.c.bf16 %v3434_v15, %v3432_v11  ;;  %v3976_v23 = vpop.permute.xlu1 %3975 }
 0x3b8   :  { %v3309_v53 = vpop.f32.mrf.mxu1  ;;  %v3270_v42 = vadd.f32 %v6869_v51, %v7128_v41  ;;  %v3264_v49 = vadd.f32 %v6865_v62, %v7129_v17  ;;  %v3268_v52 = vadd.f32 %v6867_v54, %v7128_v41  ;;  %v3422_v28 = vmax.f32 %v3262_v61, 0.0 }
 0x3b9   :  { %v3310_v57 = vadd.f32 %v3309_v53, %v7120_v10  ;;  %v3440_v36 = vmax.f32 %v3308_v40, 0.0  ;;  %v5143_v39 = vpack.c.bf16 %v3439_v12, %v3437_v21  ;;  %v3429_v53 = vmax.f32 %v3280_v9, 0.0  ;;  %v3981_v9 = vpop.permute.xlu0 %3980 }
 0x3ba   :  { %v3311_v30 = vpop.f32.mrf.mxu1  ;;  %v3426_v40 = vmax.f32 %v3272_v44, 0.0  ;;  %v3423_v14 = vmax.f32 %v3264_v49, 0.0 }
 0x3bb   :  { %v3312_v4 = vadd.f32 %v3311_v30, %v7121_v37  ;;  %v3441_v13 = vmax.f32 %v3310_v57, 0.0  ;;  %v3430_v30 = vmax.f32 %v3282_v58, 0.0  ;;  %v5139_v10 = vpack.c.bf16 %v3431_v20, %v3429_v53 }
 0x3bc   :  { %v3313_v18 = vpop.f32.mrf.mxu1  ;;  %v3428_v57 = vmax.f32 %v3278_v29, 0.0  ;;  %v3986_v29 = vpop.permute.xlu1 %3985 }
 0x3bd   :  { %v3314_v35 = vadd.f32 %v3313_v18, %v7121_v37  ;;  %v3442_v50 = vmax.f32 %v3312_v4, 0.0  ;;  %v7130_v37 = vld [vmem:[#allocation35_spill] sm:$0xff]  ;;  %v3425_v4 = vmax.f32 %v3270_v42, 0.0 }
 0x3be   :  { %v3260_v51 = vadd.f32 %v6859_v0, %v7130_v37  ;;  %v5138_v18 = vpack.c.bf16 %v3430_v30, %v3428_v57  ;;  %v3258_v62 = vadd.f32 %v6853_v43, %v7130_v37  ;;  %v5235_v43 = vld [vmem:[%s6948_s3 + $0x8] ss:$16 sps:$4 sm:$0xff]  }
 0x3bf   :  { %v3443_v34 = vmax.f32 %v3314_v35, 0.0  ;;  %v5144_v60 = vpack.c.bf16 %v3442_v50, %v3440_v36  ;;  %v5137_v55 = vpack.c.bf16 %v3427_v56, %v3425_v4  ;;  %v3424_v35 = vmax.f32 %v3268_v52, 0.0 }
 0x3c0   :  { %v3421_v54 = vmax.f32 %v3260_v51, 0.0  ;;  %v3420_v0 = vmax.f32 %v3258_v62, 0.0 }
 0x3c1   :  { %v5145_v48 = vpack.c.bf16 %v3443_v34, %v3441_v13  ;;  %v5136_v50 = vpack.c.bf16 %v3426_v40, %v3424_v35 }
 0x3c2   :  { %v5135_v19 = vpack.c.bf16 %v3423_v14, %v3421_v54  ;;  %v5134_v33 = vpack.c.bf16 %v3422_v28, %v3420_v0 }
 0x3c3   :  { %4417 = vmatprep.subr.bf16.mxu0 %v5145_v48 }
 0x3c4   :  { %4418 = vmatpush2.bf16.msra.mxu0 %v5144_v60 }
 0x3c5   :  { %4419 = vmatprep.subr.bf16.mxu0 %v5143_v39 }
 0x3c8   :  { %4420 = vmatpush2.bf16.msra.mxu0 %v5142_v38 }
 0x3c9   :  { %4421 = vmatprep.subr.bf16.mxu0 %v5141_v24 }
 0x3cc   :  { %4422 = vmatpush2.bf16.msra.mxu0 %v5140_v32 }
 0x3cd   :  { %4423 = vmatprep.subr.bf16.mxu0 %v5139_v10 }
 0x3d0   :  { %4424 = vmatpush2.bf16.msra.mxu0 %v5138_v18 }
 0x3d1   :  { %4425 = vmatprep.subr.bf16.mxu0 %v5137_v55 }
 0x3d4   :  { %4426 = vmatpush2.bf16.msra.mxu0 %v5136_v50 }
 0x3d5   :  { %4427 = vmatprep.subr.bf16.mxu0 %v5135_v19 }
 0x3d8   :  { %4428 = vmatpush2.bf16.msra.mxu0 %v5134_v33 }
 0x3d9   :  { %4429 = vmatprep.subr.bf16.mxu0 %v6861_v22  ;;  %v5238_v22 = vld [vmem:[%s6948_s3 + $0x28] ss:$16 sps:$4 sm:$0xff]  }
 0x3dc   :  { %4430 = vmatpush2.bf16.msra.mxu0 %v6855_v47 }
 0x3dd   :  { %4431 = vmatprep.subr.bf16.mxu0 %v6837_v16 }
 0x3e0   :  { %4432 = vmatpush2.bf16.msra.mxu0 %v6831_v6 }
 0x3e3   :  { %4434 = vmatmul.mubr.bf16.vlgmr.msra.gmra.mxu0 %v5235_v43 }
 0x3e4   :  { %4443 = vmatprep.mubr.bf16.mxu0 %v5240_v45 }
 0x3eb   :  { %4444 = vmatmul.mubr.bf16.gmra.mxu0 %v5238_v22 }
 0x423   :  { %v4382_v47 = vpop.f32.mrf.mxu0 }
 0x424   :  { %v4383_v26 = vadd.f32 %v4382_v47, %v3971_v59 }
 0x425   :  { %v4384_v12 = vpop.f32.mrf.mxu0 }
 0x426   :  { %v4385_v48 = vadd.f32 %v4384_v12, %v3971_v59 }
 0x427   :  { %v4386_v16 = vpop.f32.mrf.mxu0 }
 0x428   :  { %v4387_v1 = vadd.f32 %v4386_v16, %v3976_v23 }
 0x429   :  { %v4388_v13 = vpop.f32.mrf.mxu0 }
 0x42a   :  { %v4389_v2 = vadd.f32 %v4388_v13, %v3976_v23 }
 0x42b   :  { %v4392_v34 = vpop.f32.mrf.mxu0 }
 0x42c   :  { %v4393_v58 = vadd.f32 %v4392_v34, %v3981_v9 }
 0x42d   :  { %v4394_v3 = vpop.f32.mrf.mxu0 }
 0x42e   :  { %v4395_v25 = vadd.f32 %v4394_v3, %v3981_v9 }
 0x42f   :  { %v4396_v36 = vpop.f32.mrf.mxu0 }
 0x430   :  { %v4397_v41 = vadd.f32 %v4396_v36, %v3986_v29 }
 0x431   :  { %v4398_v6 = vpop.f32.mrf.mxu0 }
 0x432   :  { %v4399_v30 = vadd.f32 %v4398_v6, %v3986_v29 }
 0x4a3   :  { %v4435_v21 = vpop.f32.mrf.mxu0 }
 0x4a4   :  { %v4436_v8 = vadd.f32 %v4435_v21, %v4383_v26 }
 0x4a5   :  { %v4437_v60 = vpop.f32.mrf.mxu0 }
 0x4a6   :  { %v4454_v46 = vmax.f32 %v4436_v8, 0.0  ;;  %v4438_v31 = vadd.f32 %v4437_v60, %v4385_v48 }
 0x4a7   :  { %v4439_v39 = vpop.f32.mrf.mxu0 }
 0x4a8   :  { %4882 = vst [vmem:[%s6950_s5 + $0x40] sm:$0xff] %v4454_v46  ;;  %v4455_v63 = vmax.f32 %v4438_v31, 0.0  ;;  %v4440_v27 = vadd.f32 %v4439_v39, %v4387_v1 }
 0x4a9   :  { %v4441_v7 = vpop.f32.mrf.mxu0 }
 0x4aa   :  { %4883 = vst [vmem:[%s6950_s5 + $0x48] sm:$0xff] %v4455_v63  ;;  %v4456_v15 = vmax.f32 %v4440_v27, 0.0  ;;  %v4442_v38 = vadd.f32 %v4441_v7, %v4389_v2 }
 0x4ab   :  { %v4445_v5 = vpop.f32.mrf.mxu0 }
 0x4ac   :  { %4884 = vst [vmem:[%s6950_s5 + $0x50] sm:$0xff] %v4456_v15  ;;  %v4457_v20 = vmax.f32 %v4442_v38, 0.0  ;;  %v4446_v24 = vadd.f32 %v4445_v5, %v4393_v58 }
 0x4ad   :  { %v4447_v11 = vpop.f32.mrf.mxu0 }
 0x4ae   :  { %4885 = vst [vmem:[%s6950_s5 + $0x58] sm:$0xff] %v4457_v20  ;;  %v4458_v42 = vmax.f32 %v4446_v24, 0.0  ;;  %v4448_v53 = vadd.f32 %v4447_v11, %v4395_v25 }
 0x4af   :  { %v4449_v44 = vpop.f32.mrf.mxu0 }
 0x4b0   :  { %4886 = vst [vmem:[%s6950_s5 + $0x60] sm:$0xff] %v4458_v42  ;;  %v4459_v32 = vmax.f32 %v4448_v53, 0.0  ;;  %v4450_v17 = vadd.f32 %v4449_v44, %v4397_v41 }
 0x4b1   :  { %v4451_v49 = vpop.f32.mrf.mxu0 }
 0x4b2   :  { %4887 = vst [vmem:[%s6950_s5 + $0x68] sm:$0xff] %v4459_v32  ;;  %v4460_v56 = vmax.f32 %v4450_v17, 0.0  ;;  %v4452_v10 = vadd.f32 %v4451_v49, %v4399_v30 }
 0x4b4   :  { %4888 = vst [vmem:[%s6950_s5 + $0x70] sm:$0xff] %v4460_v56  ;;  %v4461_v52 = vmax.f32 %v4452_v10, 0.0 }
 0x4b6   :  { %4889 = vst [vmem:[%s6950_s5 + $0x78] sm:$0xff] %v4461_v52 }

</bundles_post_ra>
